<compile_context>
chip_gen: v7x
topology: tpu7x:2x2x1
jax: 0.10.0
libtpu: 0.0.40
codegen_flags: <defaults>
</compile_context>

<pallas_src>
import numpy as np
import jax
import jax.numpy as jnp
from jax.experimental import pallas as pl
from jax.experimental.pallas import tpu as pltpu


# ----------------------------------------------------------------------------
# Adjacency matrix (same math as PoseGCN._get_adjacency_matrix, buffer const)
# ----------------------------------------------------------------------------
def get_adjacency_matrix(num_keypoints: int = 17) -> np.ndarray:
    skeleton = [(0, 1), (0, 2), (1, 3), (2, 4), (5, 6), (5, 11), (6, 12),
                (11, 12), (5, 7), (7, 9), (6, 8), (8, 10), (11, 13), (13, 15),
                (12, 14), (14, 16)]
    adj = np.zeros((num_keypoints, num_keypoints), dtype=np.float32)
    for i, j in skeleton:
        adj[i, j] = 1.0
        adj[j, i] = 1.0
    adj = adj + np.eye(num_keypoints, dtype=np.float32)
    rowsum = adj.sum(1)
    d_inv_sqrt = np.power(rowsum, -0.5)
    d_inv_sqrt[np.isinf(d_inv_sqrt)] = 0.0
    d_mat = np.diag(d_inv_sqrt).astype(np.float32)
    return (d_mat @ adj @ d_mat).astype(np.float32)


def _round_up(n: int, m: int) -> int:
    return (n + m - 1) // m * m


# ----------------------------------------------------------------------------
# Pallas kernel: one grid step per batch tile of TB elements.
# All operands are 2-D, all contractions run on the MXU with f32 accumulation.
# ----------------------------------------------------------------------------
def pose_gcn_kernel(x_ref, m1_ref, tb1_ref, m2_ref, tb2_ref,
                    wc1_ref, bc1_ref, wc2_ref, bc2_ref, out_ref):
    # GCN layer 1 (adj folded into m1):  (TB, KDp) @ (KDp, KHp)
    h = jnp.dot(x_ref[...], m1_ref[...], preferred_element_type=jnp.float32)
    h = jnp.maximum(h + tb1_ref[...], 0.0)                    # (TB, KHp)

    # GCN layer 2 (adj folded into m2):  (TB, KHp) @ (KHp, KHp)
    h = jnp.dot(h, m2_ref[...], preferred_element_type=jnp.float32)
    h = jnp.maximum(h + tb2_ref[...], 0.0)                    # (TB, KHp)

    # Classifier Linear(K*H, 128) + ReLU:  (TB, KHp) @ (KHp, 128)
    c = jnp.dot(h, wc1_ref[...], preferred_element_type=jnp.float32)
    c = jnp.maximum(c + bc1_ref[...], 0.0)                    # (TB, 128)

    # Dropout(0.5) -> identity in eval mode.
    # Classifier Linear(128, C), padded to 128 lanes for an unmasked store.
    out_ref[...] = (jnp.dot(c, wc2_ref[...], preferred_element_type=jnp.float32)
                    + bc2_ref[...])                           # (TB, Cp)


# ----------------------------------------------------------------------------
# One-time constant folding of the graph structure into dense weights.
# Everything is zero-padded to (8, 128)-aligned shapes (exactness preserved).
# ----------------------------------------------------------------------------
def fold_params(adj, params, lane: int = 128, sublane: int = 8):
    """relu(A @ X @ W + b) on (K, Din) data == relu(vec(X) @ kron(A.T, W) + tile(b, K))
    with row-major (k-major) vec() -- exactly the flatten order of x.view(B, -1)."""
    w1, b1, w2, b2, wc1, bc1, wc2, bc2 = params
    K = adj.shape[0]
    D = w1.shape[0]
    H = w1.shape[1]
    C = wc2.shape[1]
    F1 = wc1.shape[1]          # classifier hidden width (128)
    adj_t = adj.T

    KD, KH = K * D, K * H
    KDp = _round_up(max(KD, 1), lane)
    KHp = _round_up(max(KH, 1), lane)
    F1p = _round_up(max(F1, 1), lane)
    Cp = _round_up(max(C, 1), lane)

    def pad2(a, rows, cols):
        out = jnp.zeros((rows, cols), jnp.float32)
        return out.at[:a.shape[0], :a.shape[1]].set(a.astype(jnp.float32))

    m1 = pad2(jnp.kron(adj_t, w1), KDp, KHp)     # (KDp, KHp)
    m2 = pad2(jnp.kron(adj_t, w2), KHp, KHp)     # (KHp, KHp)
    tb1 = pad2(jnp.tile(b1, (1, K)), 1, KHp)     # (1, KHp)
    tb2 = pad2(jnp.tile(b2, (1, K)), 1, KHp)     # (1, KHp)

    wc1p = pad2(wc1, KHp, F1p)                   # (KHp, F1p)
    bc1p = pad2(bc1, 1, F1p)                     # (1, F1p)
    wc2p = pad2(wc2, F1p, Cp)                    # (F1p, Cp)
    bc2p = pad2(bc2, 1, Cp)                      # (1, Cp)

    meta = dict(KD=KD, KDp=KDp, C=C, Cp=Cp)
    return (m1, tb1, m2, tb2, wc1p, bc1p, wc2p, bc2p), meta


# ----------------------------------------------------------------------------
# Wrapper: batch-tiled pallas_call.
# ----------------------------------------------------------------------------
def pose_gcn_forward(x, folded, meta, *, tb_max: int = 256):
    """x: (B, K, 3) float32 -> logits (B, num_classes) float32."""
    m1, tb1, m2, tb2, wc1, bc1, wc2, bc2 = folded
    B, K, D = x.shape
    KD, KDp = meta["KD"], meta["KDp"]
    C, Cp = meta["C"], meta["Cp"]
    assert KD == K * D

    # Flatten keypoints (k-major), pad lanes to KDp and the batch so it tiles
    # evenly.  Cheap one-time XLA-side layout ops.
    x_flat = x.reshape(B, KD).astype(jnp.float32)
    TB = min(tb_max, _round_up(B, 8))     # tb_max can be raised for big batches
    B_pad = _round_up(B, TB)
    x_flat = jnp.pad(x_flat, ((0, B_pad - B), (0, KDp - KD)))

    def const_spec(arr):
        zeros = (0,) * arr.ndim
        return pl.BlockSpec(arr.shape, lambda i: zeros)

    out = pl.pallas_call(
        pose_gcn_kernel,
        out_shape=jax.ShapeDtypeStruct((B_pad, Cp), jnp.float32),
        grid_spec=pltpu.PrefetchScalarGridSpec(
            num_scalar_prefetch=0,
            grid=(B_pad // TB,),
            in_specs=[
                pl.BlockSpec((TB, KDp), lambda i: (i, 0)),  # x batch tile
                const_spec(m1), const_spec(tb1),            # folded GCN layer 1
                const_spec(m2), const_spec(tb2),            # folded GCN layer 2
                const_spec(wc1), const_spec(bc1),           # classifier fc1
                const_spec(wc2), const_spec(bc2),           # classifier fc2 (padded)
            ],
            out_specs=pl.BlockSpec((TB, Cp), lambda i: (i, 0)),
        ),
        compiler_params=pltpu.CompilerParams(
            dimension_semantics=("parallel",),
            vmem_limit_bytes=32 * 1024 * 1024,
        ),
    )(x_flat, m1, tb1, m2, tb2, wc1, bc1, wc2, bc2)

    return out[:B, :C]


# ----------------------------------------------------------------------------
# Pure-JAX reference (mirrors the PyTorch forward exactly, no folding).
# ----------------------------------------------------------------------------
def pose_gcn_reference(x, adj, params):
    w1, b1, w2, b2, wc1, bc1, wc2, bc2 = params
    B = x.shape[0]
    h = jnp.einsum('lk,bkd->bld', adj, x)
    h = jax.nn.relu(h @ w1 + b1)                       # (B, K, H)
    h = jnp.einsum('lk,bkd->bld', adj, h)
    h = jax.nn.relu(h @ w2 + b2)                       # (B, K, H)
    flat = h.reshape(B, -1)
    c1 = jax.nn.relu(flat @ wc1 + bc1)
    return c1 @ wc2 + bc2                              # dropout = identity (eval)


# ----------------------------------------------------------------------------
# Deterministic parameter construction (torch.nn.Linear-style init, (in,out))
# ----------------------------------------------------------------------------
def make_params(key, num_keypoints, hidden_dim, num_classes):
    D, K, H, C = 3, num_keypoints, hidden_dim, num_classes
    keys = jax.random.split(key, 8)

    def lin(kw, kb, fan_in, shape_w, shape_b):
        bound = 1.0 / np.sqrt(fan_in)
        w = jax.random.uniform(kw, shape_w, jnp.float32, -bound, bound)
        b = jax.random.uniform(kb, shape_b, jnp.float32, -bound, bound)
        return w, b

    w1, b1 = lin(keys[0], keys[1], D, (D, H), (1, H))
    w2, b2 = lin(keys[2], keys[3], H, (H, H), (1, H))
    wc1, bc1 = lin(keys[4], keys[5], K * H, (K * H, 128), (1, 128))
    wc2, bc2 = lin(keys[6], keys[7], 128, (128, C), (1, C))
    return (w1, b1, w2, b2, wc1, bc1, wc2, bc2)


if __name__ == "__main__":
    B = 32          # small demo batch (wrapper tiles/pads any B)
    K = 17          # num_keypoints (fixed by the skeleton topology)
    H = 64          # hidden_dim (module default)
    C = 5           # num_classes

    key = jax.random.PRNGKey(0)
    k_x, k_p = jax.random.split(key)

    x = jax.random.normal(k_x, (B, K, 3), dtype=jnp.float32)
    adj = jnp.asarray(get_adjacency_matrix(K))
    params = make_params(k_p, K, H, C)

    folded, meta = fold_params(adj, params)   # one-time weight preprocessing
    out = pose_gcn_forward(x, folded, meta)
    out = jax.block_until_ready(out)

    ref = pose_gcn_reference(x, adj, params)
    np.testing.assert_allclose(np.asarray(out), np.asarray(ref),
                               rtol=1e-4, atol=1e-4)

    print("KERNEL_OK")
</pallas_src>

<mosaic_0001>
module attributes {stable_mosaic.version = 11 : i64} {
  func.func @pose_gcn_kernel(%arg0: i32, %arg1: memref<32x128xf32, #tpu.memory_space<vmem>>, %arg2: memref<128x1152xf32, #tpu.memory_space<vmem>>, %arg3: memref<1x1152xf32, #tpu.memory_space<vmem>>, %arg4: memref<1152x1152xf32, #tpu.memory_space<vmem>>, %arg5: memref<1x1152xf32, #tpu.memory_space<vmem>>, %arg6: memref<1152x128xf32, #tpu.memory_space<vmem>>, %arg7: memref<1x128xf32, #tpu.memory_space<vmem>>, %arg8: memref<128x128xf32, #tpu.memory_space<vmem>>, %arg9: memref<1x128xf32, #tpu.memory_space<vmem>>, %arg10: memref<32x128xf32, #tpu.memory_space<vmem>>) attributes {dimension_semantics = [#tpu.dimension_semantics<parallel>], iteration_bounds = array<i64: 1>, scalar_prefetch = 0 : i64, scratch_operands = 0 : i64, tpu.core_type = #tpu.core_type<tc>, window_params = [{transform_indices = @transform_0, window_bounds = array<i64: 32, 128>}, {pipeline_mode = #tpu.pipeline_mode<synchronous>, transform_indices = @transform_1, window_bounds = array<i64: 128, 1152>}, {pipeline_mode = #tpu.pipeline_mode<synchronous>, transform_indices = @transform_2, window_bounds = array<i64: 1, 1152>}, {pipeline_mode = #tpu.pipeline_mode<synchronous>, transform_indices = @transform_3, window_bounds = array<i64: 1152, 1152>}, {pipeline_mode = #tpu.pipeline_mode<synchronous>, transform_indices = @transform_4, window_bounds = array<i64: 1, 1152>}, {pipeline_mode = #tpu.pipeline_mode<synchronous>, transform_indices = @transform_5, window_bounds = array<i64: 1152, 128>}, {pipeline_mode = #tpu.pipeline_mode<synchronous>, transform_indices = @transform_6, window_bounds = array<i64: 1, 128>}, {pipeline_mode = #tpu.pipeline_mode<synchronous>, transform_indices = @transform_7, window_bounds = array<i64: 128, 128>}, {pipeline_mode = #tpu.pipeline_mode<synchronous>, transform_indices = @transform_8, window_bounds = array<i64: 1, 128>}, {transform_indices = @transform_9, window_bounds = array<i64: 32, 128>}]} {
    %c0 = arith.constant 0 : index
    %c0_0 = arith.constant 0 : index
    %0 = vector.load %arg1[%c0, %c0_0] : memref<32x128xf32, #tpu.memory_space<vmem>>, vector<32x128xf32>
    %c0_1 = arith.constant 0 : index
    %c0_2 = arith.constant 0 : index
    %1 = vector.load %arg2[%c0_1, %c0_2] : memref<128x1152xf32, #tpu.memory_space<vmem>>, vector<128x1152xf32>
    %cst = arith.constant dense<0.000000e+00> : vector<32x1152xf32>
    %2 = tpu.matmul %0, %1, %cst {dimension_numbers = #tpu.dot_dimension_numbers<[1], [0], [0], [1], [0, 0, 1, 1], [], []>} : vector<32x128xf32>, vector<128x1152xf32>, vector<32x1152xf32> -> vector<32x1152xf32>
    %c0_3 = arith.constant 0 : index
    %c0_4 = arith.constant 0 : index
    %3 = vector.load %arg3[%c0_3, %c0_4] : memref<1x1152xf32, #tpu.memory_space<vmem>>, vector<1x1152xf32>
    %4 = vector.broadcast %3 : vector<1x1152xf32> to vector<32x1152xf32>
    %5 = arith.addf %2, %4 : vector<32x1152xf32>
    %cst_5 = arith.constant 0.000000e+00 : f32
    %6 = vector.broadcast %cst_5 : f32 to vector<32x1152xf32>
    %7 = arith.maximumf %5, %6 : vector<32x1152xf32>
    %c0_6 = arith.constant 0 : index
    %c0_7 = arith.constant 0 : index
    %8 = vector.load %arg4[%c0_6, %c0_7] : memref<1152x1152xf32, #tpu.memory_space<vmem>>, vector<1152x1152xf32>
    %cst_8 = arith.constant dense<0.000000e+00> : vector<32x1152xf32>
    %9 = tpu.matmul %7, %8, %cst_8 {dimension_numbers = #tpu.dot_dimension_numbers<[1], [0], [0], [1], [0, 0, 1, 1], [], []>} : vector<32x1152xf32>, vector<1152x1152xf32>, vector<32x1152xf32> -> vector<32x1152xf32>
    %c0_9 = arith.constant 0 : index
    %c0_10 = arith.constant 0 : index
    %10 = vector.load %arg5[%c0_9, %c0_10] : memref<1x1152xf32, #tpu.memory_space<vmem>>, vector<1x1152xf32>
    %11 = vector.broadcast %10 : vector<1x1152xf32> to vector<32x1152xf32>
    %12 = arith.addf %9, %11 : vector<32x1152xf32>
    %cst_11 = arith.constant 0.000000e+00 : f32
    %13 = vector.broadcast %cst_11 : f32 to vector<32x1152xf32>
    %14 = arith.maximumf %12, %13 : vector<32x1152xf32>
    %c0_12 = arith.constant 0 : index
    %c0_13 = arith.constant 0 : index
    %15 = vector.load %arg6[%c0_12, %c0_13] : memref<1152x128xf32, #tpu.memory_space<vmem>>, vector<1152x128xf32>
    %cst_14 = arith.constant dense<0.000000e+00> : vector<32x128xf32>
    %16 = tpu.matmul %14, %15, %cst_14 {dimension_numbers = #tpu.dot_dimension_numbers<[1], [0], [0], [1], [0, 0, 1, 1], [], []>} : vector<32x1152xf32>, vector<1152x128xf32>, vector<32x128xf32> -> vector<32x128xf32>
    %c0_15 = arith.constant 0 : index
    %c0_16 = arith.constant 0 : index
    %17 = vector.load %arg7[%c0_15, %c0_16] : memref<1x128xf32, #tpu.memory_space<vmem>>, vector<1x128xf32>
    %18 = vector.broadcast %17 : vector<1x128xf32> to vector<32x128xf32>
    %19 = arith.addf %16, %18 : vector<32x128xf32>
    %cst_17 = arith.constant 0.000000e+00 : f32
    %20 = vector.broadcast %cst_17 : f32 to vector<32x128xf32>
    %21 = arith.maximumf %19, %20 : vector<32x128xf32>
    %c0_18 = arith.constant 0 : index
    %c0_19 = arith.constant 0 : index
    %22 = vector.load %arg8[%c0_18, %c0_19] : memref<128x128xf32, #tpu.memory_space<vmem>>, vector<128x128xf32>
    %cst_20 = arith.constant dense<0.000000e+00> : vector<32x128xf32>
    %23 = tpu.matmul %21, %22, %cst_20 {dimension_numbers = #tpu.dot_dimension_numbers<[1], [0], [0], [1], [0, 0, 1, 1], [], []>} : vector<32x128xf32>, vector<128x128xf32>, vector<32x128xf32> -> vector<32x128xf32>
    %c0_21 = arith.constant 0 : index
    %c0_22 = arith.constant 0 : index
    %24 = vector.load %arg9[%c0_21, %c0_22] : memref<1x128xf32, #tpu.memory_space<vmem>>, vector<1x128xf32>
    %25 = vector.broadcast %24 : vector<1x128xf32> to vector<32x128xf32>
    %26 = arith.addf %23, %25 : vector<32x128xf32>
    %c0_23 = arith.constant 0 : index
    %c0_24 = arith.constant 0 : index
    %27 = vector.load %arg10[%c0_23, %c0_24] : memref<32x128xf32, #tpu.memory_space<vmem>>, vector<32x128xf32>
    tpu.vector_store %arg10[%c0_23, %c0_24], %26 {strides = array<i32>} : memref<32x128xf32, #tpu.memory_space<vmem>>, vector<32x128xf32>,
    return
  }
  func.func @transform_0(%arg0: i32) -> (i32, i32) {
    %c0_i32 = arith.constant 0 : i32
    %c0_i32_0 = arith.constant 0 : i32
    return %arg0, %c0_i32 : i32, i32
  }
  func.func @transform_1(%arg0: i32) -> (i32, i32) {
    %c0_i32 = arith.constant 0 : i32
    %c0_i32_0 = arith.constant 0 : i32
    %c0_i32_1 = arith.constant 0 : i32
    return %c0_i32, %c0_i32_0 : i32, i32
  }
  func.func @transform_2(%arg0: i32) -> (i32, i32) {
    %c0_i32 = arith.constant 0 : i32
    %c0_i32_0 = arith.constant 0 : i32
    %c0_i32_1 = arith.constant 0 : i32
    return %c0_i32, %c0_i32_0 : i32, i32
  }
  func.func @transform_3(%arg0: i32) -> (i32, i32) {
    %c0_i32 = arith.constant 0 : i32
    %c0_i32_0 = arith.constant 0 : i32
    %c0_i32_1 = arith.constant 0 : i32
    return %c0_i32, %c0_i32_0 : i32, i32
  }
  func.func @transform_4(%arg0: i32) -> (i32, i32) {
    %c0_i32 = arith.constant 0 : i32
    %c0_i32_0 = arith.constant 0 : i32
    %c0_i32_1 = arith.constant 0 : i32
    return %c0_i32, %c0_i32_0 : i32, i32
  }
  func.func @transform_5(%arg0: i32) -> (i32, i32) {
    %c0_i32 = arith.constant 0 : i32
    %c0_i32_0 = arith.constant 0 : i32
    %c0_i32_1 = arith.constant 0 : i32
    return %c0_i32, %c0_i32_0 : i32, i32
  }
  func.func @transform_6(%arg0: i32) -> (i32, i32) {
    %c0_i32 = arith.constant 0 : i32
    %c0_i32_0 = arith.constant 0 : i32
    %c0_i32_1 = arith.constant 0 : i32
    return %c0_i32, %c0_i32_0 : i32, i32
  }
  func.func @transform_7(%arg0: i32) -> (i32, i32) {
    %c0_i32 = arith.constant 0 : i32
    %c0_i32_0 = arith.constant 0 : i32
    %c0_i32_1 = arith.constant 0 : i32
    return %c0_i32, %c0_i32_0 : i32, i32
  }
  func.func @transform_8(%arg0: i32) -> (i32, i32) {
    %c0_i32 = arith.constant 0 : i32
    %c0_i32_0 = arith.constant 0 : i32
    %c0_i32_1 = arith.constant 0 : i32
    return %c0_i32, %c0_i32_0 : i32, i32
  }
  func.func @transform_9(%arg0: i32) -> (i32, i32) {
    %c0_i32 = arith.constant 0 : i32
    %c0_i32_0 = arith.constant 0 : i32
    return %arg0, %c0_i32 : i32, i32
  }
}

</mosaic_0001>

<bundles_post_ra>
// kernel: tpu_custom_call.1
= control target key start
LH: loop header
LB: loop body
LE: loop exit
PB: predicated region body
PF: predicated region fallthrough
CT: control target
= control target key end

     0   :  { %14 = vsyncpa [#allocation3], 0  ;;  %s8579_s0 = inlined_call_operand.hbm [shape: f32[32,128], index: 0, kind: input, shape index: {}]   ;;  %s8580_s1 = inlined_call_operand.hbm [shape: f32[128,1152], index: 1, kind: input, shape index: {}]   ;;  %s8581_s2 = inlined_call_operand.hbm [shape: f32[1,1152], index: 2, kind: input, shape index: {}]   ;;  %s8582_s3 = inlined_call_operand.hbm [shape: f32[1152,1152], index: 3, kind: input, shape index: {}]   ;;  %s8583_s4 = inlined_call_operand.hbm [shape: f32[1,1152], index: 4, kind: input, shape index: {}]   ;;  %s8584_s5 = inlined_call_operand.hbm [shape: f32[1152,128], index: 5, kind: input, shape index: {}]   ;;  %s8585_s6 = inlined_call_operand.hbm [shape: f32[1,128], index: 6, kind: input, shape index: {}]   ;;  %s8586_s7 = inlined_call_operand.hbm [shape: f32[128,128], index: 7, kind: input, shape index: {}]   ;;  %s8587_s8 = inlined_call_operand.hbm [shape: f32[1,128], index: 8, kind: input, shape index: {}]   ;;  %s8588_s9 = inlined_call_operand.hbm [shape: f32[32,128], index: 9, kind: output, shape index: {}]  }
   0x1   :  { %15 = vsyncpa [#allocation6], 0 }
   0x2   :  { %16 = vsyncpa [#allocation9], 0 }
   0x3   :  { %17 = vsyncpa [#allocation12], 0 }
   0x4   :  { %18 = vsyncpa [#allocation15], 0 }
   0x5   :  { %19 = vsyncpa [#allocation4], 0  ;;  %s7780_s30 = smov [#allocation5]   ;;  %s7548_s13 = scalar_lea.hbm %s8580_s1, 18432 }
   0x6   :  { %s37_s10 = sshll.u32 %s7780_s30, 4  ;;  %p7549_p0 = scmp.ne.s32.totalorder %s8580_s1, %s7548_s13  ;;  %s38_s10 = int_to_ptr.vmem [resolvable:$true] %s37_s10 }
   0x7   :  { %p7552_p1 = scmp.lt.u32.totalorder %s7548_s13, %s8580_s1 }
   0x9   :  { %p7554_p2 = pnand %p7552_p1, %p7549_p0 }
   0xb   :  { %7557 = shalt.err (!%p7554_p2)
}
   0xc   :  { %s7558_s18 = scalar_lea.vmem %s38_s10, 18432  ;;  %p7563_p4 = scmp.lt.s32.totalorder %s38_s10, %s38_s10 }
   0xd   :  { %p7559_p3 = scmp.ne.s32.totalorder %s38_s10, %s7558_s18  ;;  %p7564_p5 = scmp.lt.s32.totalorder %s7558_s18, %s7558_s18 }
   0xf   :  { %p7565_p6 = por %p7564_p5, %p7563_p4 }
  0x11   :  { %p7566_p7 = pnand %p7565_p6, %p7559_p3 }
  0x13   :  { %7569 = shalt.err (!%p7566_p7)
}
  0x14   :  { %s7781_s19 = smov 1152   ;;  %s7782_s20 = smov 72  }
  0x15   :  { %43 = dma.hbm_to_vmem [thread:$0]  %s8580_s1, 18432, %s38_s10, [#allocation6], %s7781_s19, %s7781_s19, %s7782_s20  }
  0x16   :  { %s7783_s23 = smov [#allocation8]   ;;  %s7570_s27 = scalar_lea.hbm %s8582_s3, 165888 }
  0x17   :  { %s59_s24 = sshll.u32 %s7783_s23, 4  ;;  %p7571_p8 = scmp.ne.s32.totalorder %s8582_s3, %s7570_s27  ;;  %s60_s24 = int_to_ptr.vmem [resolvable:$true] %s59_s24 }
  0x18   :  { %p7574_p9 = scmp.lt.u32.totalorder %s7570_s27, %s8582_s3 }
  0x1a   :  { %p7576_p10 = pnand %p7574_p9, %p7571_p8 }
  0x1c   :  { %7579 = shalt.err (!%p7576_p10)
}
  0x1d   :  { %s7580_s12 = scalar_lea.vmem %s60_s24, 165888  ;;  %p7585_p12 = scmp.lt.s32.totalorder %s60_s24, %s60_s24 }
  0x1e   :  { %p7581_p11 = scmp.ne.s32.totalorder %s60_s24, %s7580_s12  ;;  %p7586_p13 = scmp.lt.s32.totalorder %s7580_s12, %s7580_s12 }
  0x20   :  { %p7587_p0 = por %p7586_p13, %p7585_p12 }
  0x22   :  { %p7588_p1 = pnand %p7587_p0, %p7581_p11 }
  0x24   :  { %7591 = shalt.err (!%p7588_p1)
}
  0x25   :  { %65 = dma.hbm_to_vmem [thread:$0]  %s8582_s3, 165888, %s60_s24, [#allocation9], %s7781_s19, %s7781_s19, %s7782_s20  }
  0x26   :  { %s7784_s13 = smov [#allocation11]   ;;  %s7785_s15 = smov [#allocation14]  }
  0x27   :  { %s81_s14 = sshll.u32 %s7784_s13, 4  ;;  %s103_s16 = sshll.u32 %s7785_s15, 4  ;;  %s82_s14 = int_to_ptr.vmem [resolvable:$true] %s81_s14  ;;  %s7869_s16 = int_to_ptr.vmem [resolvable:$true] %s103_s16 }
  0x28   :  { %s7592_s21 = scalar_lea.hbm %s8584_s5, 18432 }
  0x29   :  { %p7593_p2 = scmp.ne.s32.totalorder %s8584_s5, %s7592_s21  ;;  %p7596_p3 = scmp.lt.u32.totalorder %s7592_s21, %s8584_s5 }
  0x2b   :  { %p7598_p4 = pnand %p7596_p3, %p7593_p2 }
  0x2d   :  { %7601 = shalt.err (!%p7598_p4)
}
  0x2e   :  { %s7602_s3 = scalar_lea.vmem %s82_s14, 18432  ;;  %p7607_p6 = scmp.lt.s32.totalorder %s82_s14, %s82_s14 }
  0x2f   :  { %p7603_p5 = scmp.ne.s32.totalorder %s82_s14, %s7602_s3  ;;  %p7608_p7 = scmp.lt.s32.totalorder %s7602_s3, %s7602_s3 }
  0x31   :  { %p7609_p8 = por %p7608_p7, %p7607_p6 }
  0x33   :  { %p7610_p9 = pnand %p7609_p8, %p7603_p5 }
  0x35   :  { %7613 = shalt.err (!%p7610_p9)
}
  0x36   :  { %s7786_s19 = smov 128   ;;  %s7787_s20 = smov 8  }
  0x37   :  { %87 = dma.hbm_to_vmem [thread:$0]  %s8584_s5, 18432, %s82_s14, [#allocation12], %s7786_s19, %s7786_s19, %s7787_s20  }
  0x38   :  { %s7614_s30 = scalar_lea.hbm %s8586_s7, 2048 }
  0x39   :  { %p7615_p10 = scmp.ne.s32.totalorder %s8586_s7, %s7614_s30  ;;  %p7618_p11 = scmp.lt.u32.totalorder %s7614_s30, %s8586_s7 }
  0x3b   :  { %p7620_p12 = pnand %p7618_p11, %p7615_p10 }
  0x3d   :  { %7623 = shalt.err (!%p7620_p12)
}
  0x3e   :  { %s7624_s13 = scalar_lea.vmem %s7869_s16, 2048  ;;  %p7629_p0 = scmp.lt.s32.totalorder %s7869_s16, %s7869_s16 }
  0x3f   :  { %p7625_p13 = scmp.ne.s32.totalorder %s7869_s16, %s7624_s13  ;;  %p7630_p1 = scmp.lt.s32.totalorder %s7624_s13, %s7624_s13 }
  0x41   :  { %p7631_p2 = por %p7630_p1, %p7629_p0 }
  0x43   :  { %p7632_p3 = pnand %p7631_p2, %p7625_p13 }
  0x45   :  { %7635 = shalt.err (!%p7632_p3)
}
  0x46   :  { %109 = dma.hbm_to_vmem [thread:$0]  %s8586_s7, 2048, %s7869_s16, [#allocation15], %s7786_s19, %s7786_s19, %s7787_s20  }
  0x47   :  { %s7788_s15 = smov [#allocation2]   ;;  %s7789_s18 = smov [#allocation7]  }
  0x48   :  { %s25_s17 = sshll.u32 %s7788_s15, 4  ;;  %s50_s21 = sshll.u32 %s7789_s18, 4  ;;  %s26_s17 = int_to_ptr.vmem [resolvable:$true] %s25_s17  ;;  %s51_s21 = int_to_ptr.vmem [resolvable:$true] %s50_s21 }
  0x49   :  { %s7636_s25 = scalar_lea.hbm %s8579_s0, 512 }
  0x4a   :  { %p7637_p4 = scmp.ne.s32.totalorder %s8579_s0, %s7636_s25  ;;  %p7640_p5 = scmp.lt.u32.totalorder %s7636_s25, %s8579_s0 }
  0x4c   :  { %p7642_p6 = pnand %p7640_p5, %p7637_p4 }
  0x4e   :  { %7645 = shalt.err (!%p7642_p6)
}
  0x4f   :  { %s7646_s7 = scalar_lea.vmem %s26_s17, 512  ;;  %p7651_p8 = scmp.lt.s32.totalorder %s26_s17, %s26_s17 }
  0x50   :  { %p7647_p7 = scmp.ne.s32.totalorder %s26_s17, %s7646_s7  ;;  %p7652_p9 = scmp.lt.s32.totalorder %s7646_s7, %s7646_s7 }
  0x52   :  { %p7653_p10 = por %p7652_p9, %p7651_p8 }
  0x54   :  { %p7654_p11 = pnand %p7653_p10, %p7647_p7 }
  0x56   :  { %7657 = shalt.err (!%p7654_p11)
}
  0x57   :  { %31 = dma.hbm_to_vmem [thread:$0]  %s8579_s0, 512, %s26_s17, [#allocation3], %s7786_s19, %s7786_s19, %s7787_s20  }
  0x58   :  { %s7658_s11 = scalar_lea.hbm %s8581_s2, 144 }
  0x59   :  { %p7659_p12 = scmp.ne.s32.totalorder %s8581_s2, %s7658_s11  ;;  %p7662_p13 = scmp.lt.u32.totalorder %s7658_s11, %s8581_s2 }
  0x5b   :  { %p7664_p0 = pnand %p7662_p13, %p7659_p12 }
  0x5d   :  { %7667 = shalt.err (!%p7664_p0)
}
  0x5e   :  { %s7668_s5 = scalar_lea.vmem %s51_s21, 144  ;;  %s7672_s14 = scalar_lea.vmem %s51_s21, 160 }
  0x5f   :  { %p7669_p1 = scmp.ne.s32.totalorder %s51_s21, %s7668_s5  ;;  %p7673_p2 = scmp.lt.s32.totalorder %s51_s21, %s51_s21 }
  0x60   :  { %p7674_p3 = scmp.lt.s32.totalorder %s7672_s14, %s7668_s5 }
  0x62   :  { %p7675_p4 = por %p7674_p3, %p7673_p2 }
  0x64   :  { %p7676_p5 = pnand %p7675_p4, %p7669_p1 }
  0x66   :  { %7679 = shalt.err (!%p7676_p5)
}
  0x67   :  { %53 = dma.hbm_to_vmem [thread:$0]  %s8581_s2, 144, %s51_s21, [#allocation6]  }
  0x68   :  { %s7790_s17 = smov [#allocation10]   ;;  %s7791_s22 = smov [#allocation13]  }
  0x69   :  { %s72_s18 = sshll.u32 %s7790_s17, 4  ;;  %s94_s23 = sshll.u32 %s7791_s22, 4  ;;  %s73_s18 = int_to_ptr.vmem [resolvable:$true] %s72_s18  ;;  %s95_s23 = int_to_ptr.vmem [resolvable:$true] %s94_s23 }
  0x6a   :  { %s7680_s3 = scalar_lea.hbm %s8583_s4, 144 }
  0x6b   :  { %p7681_p6 = scmp.ne.s32.totalorder %s8583_s4, %s7680_s3  ;;  %p7684_p7 = scmp.lt.u32.totalorder %s7680_s3, %s8583_s4 }
  0x6d   :  { %p7686_p8 = pnand %p7684_p7, %p7681_p6 }
  0x6f   :  { %7689 = shalt.err (!%p7686_p8)
}
  0x70   :  { %s7690_s2 = scalar_lea.vmem %s73_s18, 144  ;;  %s7694_s21 = scalar_lea.vmem %s73_s18, 160 }
  0x71   :  { %p7691_p9 = scmp.ne.s32.totalorder %s73_s18, %s7690_s2  ;;  %p7695_p10 = scmp.lt.s32.totalorder %s73_s18, %s73_s18 }
  0x72   :  { %p7696_p11 = scmp.lt.s32.totalorder %s7694_s21, %s7690_s2 }
  0x74   :  { %p7697_p12 = por %p7696_p11, %p7695_p10 }
  0x76   :  { %p7698_p13 = pnand %p7697_p12, %p7691_p9 }
  0x78   :  { %7701 = shalt.err (!%p7698_p13)
}
  0x79   :  { %75 = dma.hbm_to_vmem [thread:$0]  %s8583_s4, 144, %s73_s18, [#allocation9]  }
  0x7a   :  { %s7702_s12 = scalar_lea.hbm %s8585_s6, 16 }
  0x7b   :  { %p7703_p0 = scmp.ne.s32.totalorder %s8585_s6, %s7702_s12  ;;  %p7706_p1 = scmp.lt.u32.totalorder %s7702_s12, %s8585_s6 }
  0x7d   :  { %p7708_p2 = pnand %p7706_p1, %p7703_p0 }
  0x7f   :  { %7711 = shalt.err (!%p7708_p2)
}
  0x80   :  { %s7712_s14 = scalar_lea.vmem %s95_s23, 16  ;;  %s7716_s0 = scalar_lea.vmem %s95_s23, 32 }
  0x81   :  { %p7713_p3 = scmp.ne.s32.totalorder %s95_s23, %s7712_s14  ;;  %p7717_p4 = scmp.lt.s32.totalorder %s95_s23, %s95_s23 }
  0x82   :  { %p7718_p5 = scmp.lt.s32.totalorder %s7716_s0, %s7712_s14 }
  0x84   :  { %p7719_p6 = por %p7718_p5, %p7717_p4 }
  0x86   :  { %p7720_p7 = pnand %p7719_p6, %p7713_p3 }
  0x88   :  { %7723 = shalt.err (!%p7720_p7)
}
  0x89   :  { %97 = dma.hbm_to_vmem [thread:$0]  %s8585_s6, 16, %s95_s23, [#allocation12]  }
  0x8a   :  { %s7792_s17 = smov [#allocation16]   ;;  %s7724_s26 = scalar_lea.hbm %s8587_s8, 16 }
  0x8b   :  { %s116_s18 = sshll.u32 %s7792_s17, 4  ;;  %p7725_p8 = scmp.ne.s32.totalorder %s8587_s8, %s7724_s26  ;;  %s117_s18 = int_to_ptr.vmem [resolvable:$true] %s116_s18 }
  0x8c   :  { %p7728_p9 = scmp.lt.u32.totalorder %s7724_s26, %s8587_s8 }
  0x8e   :  { %p7730_p10 = pnand %p7728_p9, %p7725_p8 }
  0x90   :  { %7733 = shalt.err (!%p7730_p10)
}
  0x91   :  { %s7734_s16 = scalar_lea.vmem %s117_s18, 16  ;;  %s7738_s6 = scalar_lea.vmem %s117_s18, 32 }
  0x92   :  { %p7735_p11 = scmp.ne.s32.totalorder %s117_s18, %s7734_s16  ;;  %p7739_p12 = scmp.lt.s32.totalorder %s117_s18, %s117_s18 }
  0x93   :  { %p7740_p13 = scmp.lt.s32.totalorder %s7738_s6, %s7734_s16 }
  0x95   :  { %p7741_p0 = por %p7740_p13, %p7739_p12 }
  0x97   :  { %p7742_p1 = pnand %p7741_p0, %p7735_p11 }
  0x99   :  { %7745 = shalt.err (!%p7742_p1)
}
  0x9a   :  { %119 = dma.hbm_to_vmem [thread:$0]  %s8587_s8, 16, %s117_s18, [#allocation15]  }
  0x9b   :  { %7768 = dma.done.wait [#allocation3], 512  }
  0x9c   :  { %7769 = vsyncadd [#allocation3], 4294966784 }
  0x9d   :  { %7770 = dma.done.wait [#allocation6], 18576  }
  0x9e   :  { %7771 = vsyncadd [#allocation6], 4294948720 }
  0x9f   :  { %7772 = dma.done.wait [#allocation9], 166032  }
  0xa0   :  { %7773 = vsyncadd [#allocation9], 4294801264 }
  0xa1   :  { %7774 = dma.done.wait [#allocation12], 18448  }
  0xa2   :  { %7775 = vsyncadd [#allocation12], 4294948848 }
  0xa3   :  { %7776 = dma.done.wait [#allocation15], 2064  }
  0xa4   :  { %7777 = vsyncadd [#allocation15], 4294965232  ;;  %v8594_v0 = vmov 0.0   ;;  %v152_v1 = vld [vmem:[#allocation5 + $0x8] sm:$0xff]  ;;  %v161_v2 = vld [vmem:[#allocation5 + $0x50] sm:$0xff]  ;;  %s7794_s8 = smov [#allocation17]  }
  0xa5   :  { %408 = vmatprep.mubr.f32.mxu0 %v8594_v0  ;;  %497 = vmatprep.mubr.f32.mxu1 %v8594_v0  ;;  %v151_v3 = vld [vmem:[#allocation5] sm:$0xff]  ;;  %v5708_v4 = vpack.c.bf16 %v161_v2, %v152_v1  ;;  %v160_v5 = vld [vmem:[#allocation5 + $0x48] sm:$0xff]  ;;  %v170_v6 = vld [vmem:[#allocation5 + $0x98] sm:$0xff]  ;;  %s5104_s21 = sshll.u32 %s7794_s8, 4  ;;  %s5105_s21 = int_to_ptr.vmem [resolvable:$true] %s5104_s21 }
  0xa6   :  { %v179_v7 = vld [vmem:[#allocation5 + $0xe0] sm:$0xff]  ;;  %v5710_v8 = vpack.c.bf16 %v160_v5, %v151_v3  ;;  %v169_v10 = vld [vmem:[#allocation5 + $0x90] sm:$0xff]  ;;  %v178_v11 = vld [vmem:[#allocation5 + $0xd8] sm:$0xff]  ;;  %s7746_s28 = scalar_lea.vmem %s5105_s21, 512  ;;  %p7751_p3 = scmp.lt.s32.totalorder %s5105_s21, %s5105_s21 }
  0xa7   :  { %v5712_v9 = vpack.c.bf16 %v179_v7, %v170_v6  ;;  %v188_v12 = vld [vmem:[#allocation5 + $0x128] sm:$0xff]  ;;  %5709 = vmatprep.subr.bf16.mxu0 %v5708_v4  ;;  %v197_v13 = vld [vmem:[#allocation5 + $0x170] sm:$0xff]  ;;  %v5714_v14 = vpack.c.bf16 %v178_v11, %v169_v10  ;;  %v187_v16 = vld [vmem:[#allocation5 + $0x120] sm:$0xff]  ;;  %p7747_p2 = scmp.ne.s32.totalorder %s5105_s21, %s7746_s28  ;;  %p7752_p4 = scmp.lt.s32.totalorder %s7746_s28, %s7746_s28 }
  0xa8   :  { %5711 = vmatpush1.bf16.msra.mxu0 %v5710_v8  ;;  %v5716_v15 = vpack.c.bf16 %v197_v13, %v188_v12  ;;  %v196_v17 = vld [vmem:[#allocation5 + $0x168] sm:$0xff]  ;;  %v206_v18 = vld [vmem:[#allocation5 + $0x1b8] sm:$0xff]  ;;  %v215_v19 = vld [vmem:[#allocation5 + $0x200] sm:$0xff] }
  0xa9   :  { %5713 = vmatprep.subr.bf16.mxu0 %v5712_v9  ;;  %v5718_v20 = vpack.c.bf16 %v196_v17, %v187_v16  ;;  %v5720_v21 = vpack.c.bf16 %v215_v19, %v206_v18  ;;  %v205_v22 = vld [vmem:[#allocation5 + $0x1b0] sm:$0xff]  ;;  %v214_v23 = vld [vmem:[#allocation5 + $0x1f8] sm:$0xff]  ;;  %v224_v24 = vld [vmem:[#allocation5 + $0x248] sm:$0xff]  ;;  %p7753_p5 = por %p7752_p4, %p7751_p3 }
  0xaa   :  { %v233_v25 = vld [vmem:[#allocation5 + $0x290] sm:$0xff]  ;;  %v223_v26 = vld [vmem:[#allocation5 + $0x240] sm:$0xff]  ;;  %v232_v27 = vld [vmem:[#allocation5 + $0x288] sm:$0xff]  ;;  %v5722_v31 = vpack.c.bf16 %v214_v23, %v205_v22 }
  0xab   :  { %v154_v28 = vld [vmem:[#allocation5 + $0x18] sm:$0xff]  ;;  %v163_v29 = vld [vmem:[#allocation5 + $0x60] sm:$0xff]  ;;  %v153_v30 = vld [vmem:[#allocation5 + $0x10] sm:$0xff]  ;;  %v5724_v36 = vpack.c.bf16 %v233_v25, %v224_v24  ;;  %v5726_v46 = vpack.c.bf16 %v232_v27, %v223_v26  ;;  %p7754_p6 = pnand %p7753_p5, %p7747_p2 }
  0xac   :  { %5715 = vmatpush1.bf16.msra.mxu0 %v5714_v14  ;;  %v5740_v32 = vpack.c.bf16 %v163_v29, %v154_v28  ;;  %v162_v33 = vld [vmem:[#allocation5 + $0x58] sm:$0xff]  ;;  %v172_v34 = vld [vmem:[#allocation5 + $0xa8] sm:$0xff]  ;;  %v181_v35 = vld [vmem:[#allocation5 + $0xf0] sm:$0xff] }
  0xad   :  { %5717 = vmatprep.subr.bf16.mxu0 %v5716_v15  ;;  %v5742_v37 = vpack.c.bf16 %v162_v33, %v153_v30  ;;  %v5744_v38 = vpack.c.bf16 %v181_v35, %v172_v34  ;;  %v171_v39 = vld [vmem:[#allocation5 + $0xa0] sm:$0xff]  ;;  %v180_v40 = vld [vmem:[#allocation5 + $0xe8] sm:$0xff]  ;;  %v190_v41 = vld [vmem:[#allocation5 + $0x138] sm:$0xff] }
  0xae   :  { %v242_v42 = vld [vmem:[#allocation5 + $0x2d8] sm:$0xff]  ;;  %v251_v43 = vld [vmem:[#allocation5 + $0x320] sm:$0xff]  ;;  %5741 = vmatprep.subr.bf16.mxu1 %v5740_v32  ;;  %v5746_v45 = vpack.c.bf16 %v180_v40, %v171_v39  ;;  %v241_v47 = vld [vmem:[#allocation5 + $0x2d0] sm:$0xff] }
  0xaf   :  { %v199_v44 = vld [vmem:[#allocation5 + $0x180] sm:$0xff]  ;;  %5743 = vmatpush1.bf16.msra.mxu1 %v5742_v37  ;;  %v189_v49 = vld [vmem:[#allocation5 + $0x130] sm:$0xff]  ;;  %v198_v50 = vld [vmem:[#allocation5 + $0x178] sm:$0xff]  ;;  %v5728_v51 = vpack.c.bf16 %v251_v43, %v242_v42 }
  0xb0   :  { %5719 = vmatpush1.bf16.msra.mxu0 %v5718_v20  ;;  %5745 = vmatprep.subr.bf16.mxu1 %v5744_v38  ;;  %v5748_v48 = vpack.c.bf16 %v199_v44, %v190_v41  ;;  %v250_v52 = vld [vmem:[#allocation5 + $0x318] sm:$0xff]  ;;  %v208_v53 = vld [vmem:[#allocation5 + $0x1c8] sm:$0xff]  ;;  %v217_v54 = vld [vmem:[#allocation5 + $0x210] sm:$0xff]  ;;  %v5750_v57 = vpack.c.bf16 %v198_v50, %v189_v49 }
  0xb1   :  { %5721 = vmatprep.subr.bf16.mxu0 %v5720_v21  ;;  %v260_v55 = vld [vmem:[#allocation5 + $0x368] sm:$0xff]  ;;  %v269_v56 = vld [vmem:[#allocation5 + $0x3b0] sm:$0xff]  ;;  %v5730_v58 = vpack.c.bf16 %v250_v52, %v241_v47  ;;  %v259_v59 = vld [vmem:[#allocation5 + $0x360] sm:$0xff]  ;;  %v5752_v60 = vpack.c.bf16 %v217_v54, %v208_v53 }
  0xb2   :  { %v207_v61 = vld [vmem:[#allocation5 + $0x1c0] sm:$0xff]  ;;  %v216_v62 = vld [vmem:[#allocation5 + $0x208] sm:$0xff]  ;;  %v5732_v63 = vpack.c.bf16 %v269_v56, %v260_v55  ;;  %v226_v2 = vld [vmem:[#allocation5 + $0x258] sm:$0xff] }
  0xb3   :  { %5747 = vmatpush1.bf16.msra.mxu1 %v5746_v45  ;;  %v268_v1 = vld [vmem:[#allocation5 + $0x3a8] sm:$0xff]  ;;  %v235_v3 = vld [vmem:[#allocation5 + $0x2a0] sm:$0xff]  ;;  %v278_v4 = vld [vmem:[#allocation5 + $0x3f8] sm:$0xff]  ;;  %v5754_v6 = vpack.c.bf16 %v216_v62, %v207_v61 }
  0xb4   :  { %5723 = vmatpush1.bf16.msra.mxu0 %v5722_v31  ;;  %5749 = vmatprep.subr.bf16.mxu1 %v5748_v48  ;;  %v287_v5 = vld [vmem:[#allocation5 + $0x440] sm:$0xff]  ;;  %v5734_v7 = vpack.c.bf16 %v268_v1, %v259_v59  ;;  %v277_v8 = vld [vmem:[#allocation5 + $0x3f0] sm:$0xff]  ;;  %v5756_v9 = vpack.c.bf16 %v235_v3, %v226_v2  ;;  %v234_v11 = vld [vmem:[#allocation5 + $0x298] sm:$0xff] }
  0xb5   :  { %5725 = vmatprep.subr.bf16.mxu0 %v5724_v36  ;;  %v225_v10 = vld [vmem:[#allocation5 + $0x250] sm:$0xff]  ;;  %v5736_v12 = vpack.c.bf16 %v287_v5, %v278_v4  ;;  %v286_v13 = vld [vmem:[#allocation5 + $0x438] sm:$0xff]  ;;  %v244_v14 = vld [vmem:[#allocation5 + $0x2e8] sm:$0xff] }
  0xb6   :  { %v253_v15 = vld [vmem:[#allocation5 + $0x330] sm:$0xff]  ;;  %v156_v16 = vld [vmem:[#allocation5 + $0x28] sm:$0xff]  ;;  %v5758_v18 = vpack.c.bf16 %v234_v11, %v225_v10  ;;  %v5738_v19 = vpack.c.bf16 %v286_v13, %v277_v8  ;;  %v243_v21 = vld [vmem:[#allocation5 + $0x2e0] sm:$0xff] }
  0xb7   :  { %5751 = vmatpush1.bf16.msra.mxu1 %v5750_v57  ;;  %v165_v17 = vld [vmem:[#allocation5 + $0x70] sm:$0xff]  ;;  %v5760_v20 = vpack.c.bf16 %v253_v15, %v244_v14  ;;  %v252_v22 = vld [vmem:[#allocation5 + $0x328] sm:$0xff]  ;;  %v262_v23 = vld [vmem:[#allocation5 + $0x378] sm:$0xff] }
  0xb8   :  { %5727 = vmatpush1.bf16.msra.mxu0 %v5726_v46  ;;  %5753 = vmatprep.subr.bf16.mxu1 %v5752_v60  ;;  %v271_v24 = vld [vmem:[#allocation5 + $0x3c0] sm:$0xff]  ;;  %v5772_v25 = vpack.c.bf16 %v165_v17, %v156_v16  ;;  %v164_v27 = vld [vmem:[#allocation5 + $0x68] sm:$0xff]  ;;  %v5762_v28 = vpack.c.bf16 %v252_v22, %v243_v21  ;;  %v174_v29 = vld [vmem:[#allocation5 + $0xb8] sm:$0xff] }
  0xb9   :  { %5729 = vmatprep.subr.bf16.mxu0 %v5728_v51  ;;  %v155_v26 = vld [vmem:[#allocation5 + $0x20] sm:$0xff]  ;;  %v5764_v32 = vpack.c.bf16 %v271_v24, %v262_v23  ;;  %v261_v33 = vld [vmem:[#allocation5 + $0x370] sm:$0xff]  ;;  %v270_v34 = vld [vmem:[#allocation5 + $0x3b8] sm:$0xff] }
  0xba   :  { %v183_v30 = vld [vmem:[#allocation5 + $0x100] sm:$0xff]  ;;  %v280_v35 = vld [vmem:[#allocation5 + $0x408] sm:$0xff]  ;;  %v289_v36 = vld [vmem:[#allocation5 + $0x450] sm:$0xff]  ;;  %v5774_v37 = vpack.c.bf16 %v164_v27, %v155_v26  ;;  %v5766_v41 = vpack.c.bf16 %v270_v34, %v261_v33 }
  0xbb   :  { %5755 = vmatpush1.bf16.msra.mxu1 %v5754_v6  ;;  %v7971_v31 = vld [vmem:[#allocation2] sm:$0xff]  ;;  %v5776_v38 = vpack.c.bf16 %v183_v30, %v174_v29  ;;  %v173_v39 = vld [vmem:[#allocation5 + $0xb0] sm:$0xff]  ;;  %v182_v40 = vld [vmem:[#allocation5 + $0xf8] sm:$0xff]  ;;  %v5768_v45 = vpack.c.bf16 %v289_v36, %v280_v35 }
  0xbc   :  { %5731 = vmatpush1.bf16.msra.mxu0 %v5730_v58  ;;  %5757 = vmatprep.subr.bf16.mxu1 %v5756_v9  ;;  %v192_v42 = vld [vmem:[#allocation5 + $0x148] sm:$0xff]  ;;  %v201_v43 = vld [vmem:[#allocation5 + $0x190] sm:$0xff]  ;;  %v279_v46 = vld [vmem:[#allocation5 + $0x400] sm:$0xff]  ;;  %v5778_v48 = vpack.c.bf16 %v182_v40, %v173_v39 }
  0xbd   :  { %5733 = vmatprep.subr.bf16.mxu0 %v5732_v63  ;;  %v7975_v44 = vld [vmem:[#allocation2 + $0x8] sm:$0xff]  ;;  %v158_v49 = vld [vmem:[#allocation5 + $0x38] sm:$0xff]  ;;  %v167_v50 = vld [vmem:[#allocation5 + $0x80] sm:$0xff]  ;;  %v5780_v51 = vpack.c.bf16 %v201_v43, %v192_v42 }
  0xbe   :  { %v288_v47 = vld [vmem:[#allocation5 + $0x448] sm:$0xff]  ;;  %v191_v52 = vld [vmem:[#allocation5 + $0x140] sm:$0xff]  ;;  %v210_v55 = vld [vmem:[#allocation5 + $0x1d8] sm:$0xff]  ;;  %v5804_v58 = vpack.c.bf16 %v167_v50, %v158_v49 }
  0xbf   :  { %5759 = vmatpush1.bf16.msra.mxu1 %v5758_v18  ;;  %v200_v53 = vld [vmem:[#allocation5 + $0x188] sm:$0xff]  ;;  %v5770_v54 = vpack.c.bf16 %v288_v47, %v279_v46  ;;  %v219_v56 = vld [vmem:[#allocation5 + $0x220] sm:$0xff]  ;;  %v7979_v57 = vld [vmem:[#allocation2 + $0x10] sm:$0xff] }
  0xc0   :  { %5735 = vmatpush1.bf16.msra.mxu0 %v5734_v7  ;;  %5761 = vmatprep.subr.bf16.mxu1 %v5760_v20  ;;  %v5782_v59 = vpack.c.bf16 %v200_v53, %v191_v52  ;;  %v209_v60 = vld [vmem:[#allocation5 + $0x1d0] sm:$0xff]  ;;  %v166_v62 = vld [vmem:[#allocation5 + $0x78] sm:$0xff]  ;;  %v5784_v63 = vpack.c.bf16 %v219_v56, %v210_v55  ;;  %v176_v2 = vld [vmem:[#allocation5 + $0xc8] sm:$0xff] }
  0xc1   :  { %5737 = vmatprep.subr.bf16.mxu0 %v5736_v12  ;;  %v157_v61 = vld [vmem:[#allocation5 + $0x30] sm:$0xff]  ;;  %v218_v1 = vld [vmem:[#allocation5 + $0x218] sm:$0xff]  ;;  %v228_v4 = vld [vmem:[#allocation5 + $0x268] sm:$0xff] }
  0xc2   :  { %v185_v3 = vld [vmem:[#allocation5 + $0x110] sm:$0xff]  ;;  %v7983_v6 = vld [vmem:[#allocation2 + $0x18] sm:$0xff]  ;;  %v5806_v7 = vpack.c.bf16 %v166_v62, %v157_v61  ;;  %v5786_v8 = vpack.c.bf16 %v218_v1, %v209_v60  ;;  %v227_v9 = vld [vmem:[#allocation5 + $0x260] sm:$0xff] }
  0xc3   :  { %5763 = vmatpush1.bf16.msra.mxu1 %v5762_v28  ;;  %v237_v5 = vld [vmem:[#allocation5 + $0x2b0] sm:$0xff]  ;;  %v5808_v10 = vpack.c.bf16 %v185_v3, %v176_v2  ;;  %v175_v11 = vld [vmem:[#allocation5 + $0xc0] sm:$0xff]  ;;  %v184_v12 = vld [vmem:[#allocation5 + $0x108] sm:$0xff] }
  0xc4   :  { %5739 = vmatpush1.bf16.msra.mxu0 %v5738_v19  ;;  %5765 = vmatprep.subr.bf16.mxu1 %v5764_v32  ;;  %v5788_v13 = vpack.c.bf16 %v237_v5, %v228_v4  ;;  %v236_v14 = vld [vmem:[#allocation5 + $0x2a8] sm:$0xff]  ;;  %v194_v15 = vld [vmem:[#allocation5 + $0x158] sm:$0xff]  ;;  %v203_v16 = vld [vmem:[#allocation5 + $0x1a0] sm:$0xff]  ;;  %v5810_v19 = vpack.c.bf16 %v184_v12, %v175_v11 }
  0xc5   :  { %5773 = vmatprep.subr.bf16.mxu0 %v5772_v25  ;;  %v246_v17 = vld [vmem:[#allocation5 + $0x2f8] sm:$0xff]  ;;  %v255_v18 = vld [vmem:[#allocation5 + $0x340] sm:$0xff]  ;;  %v5790_v20 = vpack.c.bf16 %v236_v14, %v227_v9  ;;  %v245_v21 = vld [vmem:[#allocation5 + $0x2f0] sm:$0xff]  ;;  %v5812_v22 = vpack.c.bf16 %v203_v16, %v194_v15 }
  0xc6   :  { %v193_v23 = vld [vmem:[#allocation5 + $0x150] sm:$0xff]  ;;  %v202_v24 = vld [vmem:[#allocation5 + $0x198] sm:$0xff]  ;;  %v5792_v25 = vpack.c.bf16 %v255_v18, %v246_v17  ;;  %v212_v27 = vld [vmem:[#allocation5 + $0x1e8] sm:$0xff] }
  0xc7   :  { %409 = vmatmul.mubr.f32.vlgmr.msra.gmra.mrb[0].mxu0 %v7971_v31  ;;  %5767 = vmatpush1.bf16.msra.mxu1 %v5766_v41  ;;  %v254_v26 = vld [vmem:[#allocation5 + $0x338] sm:$0xff]  ;;  %v221_v28 = vld [vmem:[#allocation5 + $0x230] sm:$0xff]  ;;  %v264_v29 = vld [vmem:[#allocation5 + $0x388] sm:$0xff]  ;;  %v5814_v32 = vpack.c.bf16 %v202_v24, %v193_v23 }
  0xc8   :  { %414 = vmatprep.mubr.f32.mxu0 %v8594_v0  ;;  %5775 = vmatpush1.bf16.msra.mxu0 %v5774_v37  ;;  %v273_v30 = vld [vmem:[#allocation5 + $0x3d0] sm:$0xff]  ;;  %v5794_v33 = vpack.c.bf16 %v254_v26, %v245_v21  ;;  %v263_v34 = vld [vmem:[#allocation5 + $0x380] sm:$0xff]  ;;  %v5816_v35 = vpack.c.bf16 %v221_v28, %v212_v27  ;;  %v220_v37 = vld [vmem:[#allocation5 + $0x228] sm:$0xff] }
  0xc9   :  { %5777 = vmatprep.subr.bf16.mxu0 %v5776_v38  ;;  %5769 = vmatprep.subr.bf16.mxu1 %v5768_v45  ;;  %v211_v36 = vld [vmem:[#allocation5 + $0x1e0] sm:$0xff]  ;;  %v5796_v38 = vpack.c.bf16 %v273_v30, %v264_v29  ;;  %v272_v39 = vld [vmem:[#allocation5 + $0x3c8] sm:$0xff]  ;;  %v230_v40 = vld [vmem:[#allocation5 + $0x278] sm:$0xff] }
  0xca   :  { %v239_v41 = vld [vmem:[#allocation5 + $0x2c0] sm:$0xff]  ;;  %v282_v42 = vld [vmem:[#allocation5 + $0x418] sm:$0xff]  ;;  %v5818_v45 = vpack.c.bf16 %v220_v37, %v211_v36  ;;  %v5798_v46 = vpack.c.bf16 %v272_v39, %v263_v34  ;;  %v281_v47 = vld [vmem:[#allocation5 + $0x410] sm:$0xff] }
  0xcb   :  { %415 = vmatmul.mubr.f32.gmra.mrb[2].mxu0 %v7975_v44  ;;  %5771 = vmatpush1.bf16.msra.mxu1 %v5770_v54  ;;  %v291_v43 = vld [vmem:[#allocation5 + $0x460] sm:$0xff]  ;;  %v229_v49 = vld [vmem:[#allocation5 + $0x270] sm:$0xff]  ;;  %v238_v50 = vld [vmem:[#allocation5 + $0x2b8] sm:$0xff] }
  0xcc   :  { %420 = vmatprep.mubr.f32.mxu0 %v8594_v0  ;;  %5779 = vmatpush1.bf16.msra.mxu0 %v5778_v48  ;;  %v5820_v48 = vpack.c.bf16 %v239_v41, %v230_v40  ;;  %v290_v52 = vld [vmem:[#allocation5 + $0x458] sm:$0xff]  ;;  %v248_v53 = vld [vmem:[#allocation5 + $0x308] sm:$0xff]  ;;  %v257_v54 = vld [vmem:[#allocation5 + $0x350] sm:$0xff] }
  0xcd   :  { %5781 = vmatprep.subr.bf16.mxu0 %v5780_v51  ;;  %5805 = vmatprep.subr.bf16.mxu1 %v5804_v58  ;;  %v5800_v51 = vpack.c.bf16 %v291_v43, %v282_v42  ;;  %v159_v55 = vld [vmem:[#allocation5 + $0x40] sm:$0xff]  ;;  %v168_v56 = vld [vmem:[#allocation5 + $0x88] sm:$0xff]  ;;  %v5822_v58 = vpack.c.bf16 %v238_v50, %v229_v49  ;;  %v5824_v60 = vpack.c.bf16 %v257_v54, %v248_v53  ;;  %v177_v1 = vld [vmem:[#allocation5 + $0xd0] sm:$0xff] }
  0xce   :  { %498 = vmatmul.mubr.f32.vlgmr.msra.gmra.mrb[0].mxu1 %v7971_v31  ;;  %v247_v61 = vld [vmem:[#allocation5 + $0x300] sm:$0xff]  ;;  %v256_v62 = vld [vmem:[#allocation5 + $0x348] sm:$0xff]  ;;  %v186_v2 = vld [vmem:[#allocation5 + $0x118] sm:$0xff] }
  0xcf   :  { %421 = vmatmul.mubr.f32.gmra.mrb[4].mxu0 %v7979_v57  ;;  %503 = vmatprep.mubr.f32.mxu1 %v8594_v0  ;;  %v266_v3 = vld [vmem:[#allocation5 + $0x398] sm:$0xff]  ;;  %v275_v4 = vld [vmem:[#allocation5 + $0x3e0] sm:$0xff]  ;;  %v5826_v5 = vpack.c.bf16 %v256_v62, %v247_v61  ;;  %v5840_v9 = vpack.c.bf16 %v186_v2, %v177_v1  ;;  %v204_v12 = vld [vmem:[#allocation5 + $0x1a8] sm:$0xff] }
  0xd0   :  { %426 = vmatprep.mubr.f32.mxu0 %v8594_v0  ;;  %5783 = vmatpush1.bf16.msra.mxu0 %v5782_v59  ;;  %v5802_v59 = vpack.c.bf16 %v290_v52, %v281_v47  ;;  %v5828_v11 = vpack.c.bf16 %v275_v4, %v266_v3  ;;  %v293_v14 = vld [vmem:[#allocation5 + $0x470] sm:$0xff]  ;;  %v283_v16 = vld [vmem:[#allocation5 + $0x420] sm:$0xff]  ;;  %v292_v17 = vld [vmem:[#allocation5 + $0x468] sm:$0xff] }
  0xd1   :  { %5785 = vmatprep.subr.bf16.mxu0 %v5784_v63  ;;  %5807 = vmatpush1.bf16.msra.mxu1 %v5806_v7  ;;  %v5836_v63 = vpack.c.bf16 %v168_v56, %v159_v55  ;;  %v265_v7 = vld [vmem:[#allocation5 + $0x390] sm:$0xff]  ;;  %v222_v21 = vld [vmem:[#allocation5 + $0x238] sm:$0xff]  ;;  %v5834_v24 = vpack.c.bf16 %v292_v17, %v283_v16  ;;  %v231_v28 = vld [vmem:[#allocation5 + $0x280] sm:$0xff] }
  0xd2   :  { %5809 = vmatprep.subr.bf16.mxu1 %v5808_v10  ;;  %504 = vmatmul.mubr.f32.gmra.mrb[2].mxu1 %v7975_v44  ;;  %v195_v10 = vld [vmem:[#allocation5 + $0x160] sm:$0xff]  ;;  %v830_v26 = vld [vmem:[#allocation8 + $0x48] sm:$0xff]  ;;  %v240_v30 = vld [vmem:[#allocation5 + $0x2c8] sm:$0xff] }
  0xd3   :  { %427 = vmatmul.mubr.f32.gmra.mrb[6].mxu0 %v7983_v6  ;;  %509 = vmatprep.mubr.f32.mxu1 %v8594_v0  ;;  %v5844_v18 = vpack.c.bf16 %v204_v12, %v195_v10  ;;  %v831_v23 = vld [vmem:[#allocation8 + $0x50] sm:$0xff]  ;;  %v848_v36 = vld [vmem:[#allocation8 + $0xd8] sm:$0xff]  ;;  %v5852_v37 = vpack.c.bf16 %v240_v30, %v231_v28  ;;  %v858_v39 = vld [vmem:[#allocation8 + $0x128] sm:$0xff] }
  0xd4   :  { %586 = vmatprep.mubr.f32.mxu0 %v8594_v0  ;;  %5787 = vmatpush1.bf16.msra.mxu0 %v5786_v8  ;;  %v274_v8 = vld [vmem:[#allocation5 + $0x3d8] sm:$0xff]  ;;  %v249_v41 = vld [vmem:[#allocation5 + $0x310] sm:$0xff]  ;;  %v876_v49 = vld [vmem:[#allocation8 + $0x1b8] sm:$0xff] }
  0xd5   :  { %5789 = vmatprep.subr.bf16.mxu0 %v5788_v13  ;;  %5811 = vmatpush1.bf16.msra.mxu1 %v5810_v19  ;;  %v284_v13 = vld [vmem:[#allocation5 + $0x428] sm:$0xff]  ;;  %v5830_v15 = vpack.c.bf16 %v274_v8, %v265_v7  ;;  %v213_v19 = vld [vmem:[#allocation5 + $0x1f0] sm:$0xff]  ;;  %v867_v40 = vld [vmem:[#allocation8 + $0x170] sm:$0xff] }
  0xd6   :  { %5813 = vmatprep.subr.bf16.mxu1 %v5812_v22  ;;  %510 = vmatmul.mubr.f32.gmra.mrb[4].mxu1 %v7979_v57  ;;  %v822_v22 = vld [vmem:[#allocation8 + $0x8] sm:$0xff]  ;;  %v5848_v27 = vpack.c.bf16 %v222_v21, %v213_v19  ;;  %v885_v50 = vld [vmem:[#allocation8 + $0x200] sm:$0xff]  ;;  %v875_v55 = vld [vmem:[#allocation8 + $0x1b0] sm:$0xff] }
  0xd7   :  { %515 = vmatprep.mubr.f32.mxu1 %v8594_v0  ;;  %v5868_v29 = vpack.c.bf16 %v831_v23, %v822_v22  ;;  %v258_v42 = vld [vmem:[#allocation5 + $0x358] sm:$0xff]  ;;  %v276_v52 = vld [vmem:[#allocation5 + $0x3e8] sm:$0xff]  ;;  %v5880_v54 = vpack.c.bf16 %v885_v50, %v876_v49 }
  0xd8   :  { %5791 = vmatpush1.bf16.msra.mxu0 %v5790_v20  ;;  %v5832_v20 = vpack.c.bf16 %v293_v14, %v284_v13  ;;  %v866_v47 = vld [vmem:[#allocation8 + $0x168] sm:$0xff]  ;;  %v884_v56 = vld [vmem:[#allocation8 + $0x1f8] sm:$0xff]  ;;  %v893_v1 = vld [vmem:[#allocation8 + $0x240] sm:$0xff] }
  0xd9   :  { %5793 = vmatprep.subr.bf16.mxu0 %v5792_v25  ;;  %5815 = vmatpush1.bf16.msra.mxu1 %v5814_v32  ;;  %v821_v25 = vld [vmem:[#allocation8] sm:$0xff]  ;;  %v840_v32 = vld [vmem:[#allocation8 + $0x98] sm:$0xff]  ;;  %v294_v61 = vld [vmem:[#allocation5 + $0x478] sm:$0xff]  ;;  %v5882_v62 = vpack.c.bf16 %v884_v56, %v875_v55 }
  0xda   :  { %5817 = vmatprep.subr.bf16.mxu1 %v5816_v35  ;;  %516 = vmatmul.mubr.f32.gmra.mrb[6].mxu1 %v7983_v6  ;;  %v5870_v34 = vpack.c.bf16 %v830_v26, %v821_v25  ;;  %v839_v35 = vld [vmem:[#allocation8 + $0x90] sm:$0xff]  ;;  %v902_v2 = vld [vmem:[#allocation8 + $0x288] sm:$0xff]  ;;  %v912_v4 = vld [vmem:[#allocation8 + $0x2d8] sm:$0xff] }
  0xdb   :  { %675 = vmatprep.mubr.f32.mxu1 %v8594_v0  ;;  %v5874_v43 = vpack.c.bf16 %v848_v36, %v839_v35  ;;  %v824_v7 = vld [vmem:[#allocation8 + $0x18] sm:$0xff]  ;;  %v833_v8 = vld [vmem:[#allocation8 + $0x60] sm:$0xff]  ;;  %v823_v10 = vld [vmem:[#allocation8 + $0x10] sm:$0xff] }
  0xdc   :  { %5795 = vmatpush1.bf16.msra.mxu0 %v5794_v33  ;;  %v849_v33 = vld [vmem:[#allocation8 + $0xe0] sm:$0xff]  ;;  %v911_v12 = vld [vmem:[#allocation8 + $0x2d0] sm:$0xff]  ;;  %v920_v13 = vld [vmem:[#allocation8 + $0x318] sm:$0xff]  ;;  %v6156_v14 = vpack.c.bf16 %v833_v8, %v824_v7 }
  0xdd   :  { %5797 = vmatprep.subr.bf16.mxu0 %v5796_v38  ;;  %5819 = vmatpush1.bf16.msra.mxu1 %v5818_v45  ;;  %v5872_v38 = vpack.c.bf16 %v849_v33, %v840_v32  ;;  %v5876_v45 = vpack.c.bf16 %v867_v40, %v858_v39  ;;  %v930_v16 = vld [vmem:[#allocation8 + $0x368] sm:$0xff]  ;;  %v939_v17 = vld [vmem:[#allocation8 + $0x3b0] sm:$0xff]  ;;  %v841_v22 = vld [vmem:[#allocation8 + $0xa0] sm:$0xff] }
  0xde   :  { %5821 = vmatprep.subr.bf16.mxu1 %v5820_v48  ;;  %v5856_v48 = vpack.c.bf16 %v258_v42, %v249_v41  ;;  %v851_v19 = vld [vmem:[#allocation8 + $0xf0] sm:$0xff]  ;;  %v5892_v23 = vpack.c.bf16 %v939_v17, %v930_v16  ;;  %v938_v25 = vld [vmem:[#allocation8 + $0x3a8] sm:$0xff]  ;;  %v948_v28 = vld [vmem:[#allocation8 + $0x3f8] sm:$0xff] }
  0xdf   :  { %v860_v30 = vld [vmem:[#allocation8 + $0x138] sm:$0xff]  ;;  %v869_v32 = vld [vmem:[#allocation8 + $0x180] sm:$0xff]  ;;  %v859_v35 = vld [vmem:[#allocation8 + $0x130] sm:$0xff] }
  0xe0   :  { %5799 = vmatpush1.bf16.msra.mxu0 %v5798_v46  ;;  %v857_v46 = vld [vmem:[#allocation8 + $0x120] sm:$0xff]  ;;  %v6164_v39 = vpack.c.bf16 %v869_v32, %v860_v30  ;;  %v868_v40 = vld [vmem:[#allocation8 + $0x178] sm:$0xff]  ;;  %v966_v41 = vld [vmem:[#allocation8 + $0x488] sm:$0xff] }
  0xe1   :  { %5801 = vmatprep.subr.bf16.mxu0 %v5800_v51  ;;  %5823 = vmatpush1.bf16.msra.mxu1 %v5822_v58  ;;  %v267_v51 = vld [vmem:[#allocation5 + $0x3a0] sm:$0xff]  ;;  %v5878_v53 = vpack.c.bf16 %v866_v47, %v857_v46  ;;  %v894_v58 = vld [vmem:[#allocation8 + $0x248] sm:$0xff]  ;;  %v6166_v46 = vpack.c.bf16 %v868_v40, %v859_v35  ;;  %v877_v47 = vld [vmem:[#allocation8 + $0x1c0] sm:$0xff] }
  0xe2   :  { %5825 = vmatprep.subr.bf16.mxu1 %v5824_v60  ;;  %v285_v60 = vld [vmem:[#allocation5 + $0x430] sm:$0xff]  ;;  %v975_v42 = vld [vmem:[#allocation8 + $0x4d0] sm:$0xff]  ;;  %v896_v55 = vld [vmem:[#allocation8 + $0x258] sm:$0xff] }
  0xe3   :  { %v5864_v3 = vpack.c.bf16 %v294_v61, %v285_v60  ;;  %v965_v49 = vld [vmem:[#allocation8 + $0x480] sm:$0xff]  ;;  %v974_v50 = vld [vmem:[#allocation8 + $0x4c8] sm:$0xff]  ;;  %v992_v60 = vld [vmem:[#allocation8 + $0x558] sm:$0xff] }
  0xe4   :  { %5803 = vmatpush1.bf16.msra.mxu0 %v5802_v59  ;;  %v903_v59 = vld [vmem:[#allocation8 + $0x290] sm:$0xff]  ;;  %v5902_v56 = vpack.c.bf16 %v974_v50, %v965_v49  ;;  %v913_v7 = vld [vmem:[#allocation8 + $0x2e0] sm:$0xff]  ;;  %v1046_v35 = vld [vmem:[#allocation8 + $0x708] sm:$0xff] }
  0xe5   :  { %5837 = vmatprep.subr.bf16.mxu0 %v5836_v63  ;;  %5827 = vmatpush1.bf16.msra.mxu1 %v5826_v5  ;;  %v921_v5 = vld [vmem:[#allocation8 + $0x320] sm:$0xff]  ;;  %v968_v40 = vld [vmem:[#allocation8 + $0x498] sm:$0xff]  ;;  %v1074_v50 = vld [vmem:[#allocation8 + $0x7e8] sm:$0xff] }
  0xe6   :  { %5829 = vmatprep.subr.bf16.mxu1 %v5828_v11  ;;  %v5888_v11 = vpack.c.bf16 %v921_v5, %v912_v4  ;;  %v941_v16 = vld [vmem:[#allocation8 + $0x3c0] sm:$0xff]  ;;  %v976_v49 = vld [vmem:[#allocation8 + $0x4d8] sm:$0xff] }
  0xe7   :  { %587 = vmatmul.mubr.f32.vlgmr.msra.gmra.mrb[8].mxu0 %v7971_v31  ;;  %v949_v32 = vld [vmem:[#allocation8 + $0x400] sm:$0xff] }
  0xe8   :  { %5839 = vmatpush3.bf16.msra.mxu0 %v5836_v63  ;;  %592 = vmatprep.mubr.f32.mxu0 %v8594_v0  ;;  %v5884_v63 = vpack.c.bf16 %v903_v59, %v894_v58  ;;  %v895_v58 = vld [vmem:[#allocation8 + $0x250] sm:$0xff] }
  0xe9   :  { %5841 = vmatprep.subr.bf16.mxu0 %v5840_v9  ;;  %5831 = vmatpush1.bf16.msra.mxu1 %v5830_v15  ;;  %v832_v15 = vld [vmem:[#allocation8 + $0x58] sm:$0xff]  ;;  %v983_v59 = vld [vmem:[#allocation8 + $0x510] sm:$0xff] }
  0xea   :  { %5833 = vmatprep.subr.bf16.mxu1 %v5832_v20  ;;  %v5890_v20 = vpack.c.bf16 %v920_v13, %v911_v12  ;;  %v6158_v21 = vpack.c.bf16 %v832_v15, %v823_v10  ;;  %v5906_v4 = vpack.c.bf16 %v992_v60, %v983_v59  ;;  %v1010_v10 = vld [vmem:[#allocation8 + $0x5e8] sm:$0xff]  ;;  %v1020_v13 = vld [vmem:[#allocation8 + $0x638] sm:$0xff] }
  0xeb   :  { %593 = vmatmul.mubr.f32.gmra.mrb[10].mxu0 %v7975_v44  ;;  %v922_v12 = vld [vmem:[#allocation8 + $0x328] sm:$0xff]  ;;  %v932_v15 = vld [vmem:[#allocation8 + $0x378] sm:$0xff] }
  0xec   :  { %5843 = vmatpush3.bf16.msra.mxu0 %v5840_v9  ;;  %598 = vmatprep.mubr.f32.mxu0 %v8594_v0  ;;  %v5886_v9 = vpack.c.bf16 %v902_v2, %v893_v1  ;;  %v1011_v1 = vld [vmem:[#allocation8 + $0x5f0] sm:$0xff]  ;;  %v914_v2 = vld [vmem:[#allocation8 + $0x2e8] sm:$0xff]  ;;  %v1092_v60 = vld [vmem:[#allocation8 + $0x878] sm:$0xff] }
  0xed   :  { %5845 = vmatprep.subr.bf16.mxu0 %v5844_v18  ;;  %5835 = vmatpush1.bf16.msra.mxu1 %v5834_v24  ;;  %v929_v24 = vld [vmem:[#allocation8 + $0x360] sm:$0xff]  ;;  %v994_v59 = vld [vmem:[#allocation8 + $0x568] sm:$0xff] }
  0xee   :  { %5869 = vmatprep.subr.bf16.mxu1 %v5868_v29  ;;  %v957_v29 = vld [vmem:[#allocation8 + $0x440] sm:$0xff]  ;;  %v5894_v33 = vpack.c.bf16 %v938_v25, %v929_v24  ;;  %v940_v24 = vld [vmem:[#allocation8 + $0x3b8] sm:$0xff]  ;;  %v1038_v25 = vld [vmem:[#allocation8 + $0x6c8] sm:$0xff] }
  0xef   :  { %599 = vmatmul.mubr.f32.gmra.mrb[12].mxu0 %v7979_v57  ;;  %v5896_v36 = vpack.c.bf16 %v957_v29, %v948_v28  ;;  %v959_v28 = vld [vmem:[#allocation8 + $0x450] sm:$0xff] }
  0xf0   :  { %5847 = vmatpush3.bf16.msra.mxu0 %v5844_v18  ;;  %604 = vmatprep.mubr.f32.mxu0 %v8594_v0  ;;  %v842_v18 = vld [vmem:[#allocation8 + $0xa8] sm:$0xff] }
  0xf1   :  { %5849 = vmatprep.subr.bf16.mxu0 %v5848_v27  ;;  %676 = vmatmul.mubr.f32.vlgmr.msra.gmra.mrb[8].mxu1 %v7971_v31  ;;  %v6160_v26 = vpack.c.bf16 %v851_v19, %v842_v18  ;;  %v6178_v18 = vpack.c.bf16 %v922_v12, %v913_v7  ;;  %v931_v19 = vld [vmem:[#allocation8 + $0x370] sm:$0xff]  ;;  %v1100_v7 = vld [vmem:[#allocation8 + $0x8b8] sm:$0xff]  ;;  %v1022_v12 = vld [vmem:[#allocation8 + $0x648] sm:$0xff] }
  0xf2   :  { %5871 = vmatpush1.bf16.msra.mxu1 %v5870_v34  ;;  %681 = vmatprep.mubr.f32.mxu1 %v8594_v0  ;;  %v6182_v30 = vpack.c.bf16 %v940_v24, %v931_v19  ;;  %v1030_v19 = vld [vmem:[#allocation8 + $0x688] sm:$0xff]  ;;  %v1039_v24 = vld [vmem:[#allocation8 + $0x6d0] sm:$0xff] }
  0xf3   :  { %605 = vmatmul.mubr.f32.gmra.mrb[14].mxu0 %v7983_v6  ;;  %5873 = vmatprep.subr.bf16.mxu1 %v5872_v38  ;;  %v956_v38 = vld [vmem:[#allocation8 + $0x438] sm:$0xff] }
  0xf4   :  { %5851 = vmatpush3.bf16.msra.mxu0 %v5848_v27  ;;  %5588 = vmatprep.mubr.f32.mxu0 %v7971_v31  ;;  %v5860_v31 = vpack.c.bf16 %v276_v52, %v267_v51  ;;  %v850_v27 = vld [vmem:[#allocation8 + $0xe8] sm:$0xff] }
  0xf5   :  { %5853 = vmatprep.subr.bf16.mxu0 %v5852_v37  ;;  %682 = vmatmul.mubr.f32.gmra.mrb[10].mxu1 %v7975_v44  ;;  %v6162_v34 = vpack.c.bf16 %v850_v27, %v841_v22  ;;  %v886_v52 = vld [vmem:[#allocation8 + $0x208] sm:$0xff]  ;;  %v1028_v22 = vld [vmem:[#allocation8 + $0x678] sm:$0xff] }
  0xf6   :  { %5875 = vmatpush1.bf16.msra.mxu1 %v5874_v43  ;;  %687 = vmatprep.mubr.f32.mxu1 %v8594_v0  ;;  %v878_v43 = vld [vmem:[#allocation8 + $0x1c8] sm:$0xff] }
  0xf7   :  { %5877 = vmatprep.subr.bf16.mxu1 %v5876_v45  ;;  %v887_v45 = vld [vmem:[#allocation8 + $0x210] sm:$0xff]  ;;  %v950_v27 = vld [vmem:[#allocation8 + $0x408] sm:$0xff] }
  0xf8   :  { %5855 = vmatpush3.bf16.msra.mxu0 %v5852_v37  ;;  %v947_v37 = vld [vmem:[#allocation8 + $0x3f0] sm:$0xff]  ;;  %v6168_v51 = vpack.c.bf16 %v887_v45, %v878_v43 }
  0xf9   :  { %5857 = vmatprep.subr.bf16.mxu0 %v5856_v48  ;;  %688 = vmatmul.mubr.f32.gmra.mrb[12].mxu1 %v7979_v57  ;;  %v967_v45 = vld [vmem:[#allocation8 + $0x490] sm:$0xff] }
  0xfa   :  { %5879 = vmatpush1.bf16.msra.mxu1 %v5878_v53  ;;  %693 = vmatprep.mubr.f32.mxu1 %v8594_v0  ;;  %v984_v53 = vld [vmem:[#allocation8 + $0x518] sm:$0xff] }
  0xfb   :  { %5881 = vmatprep.subr.bf16.mxu1 %v5880_v54  ;;  %v993_v54 = vld [vmem:[#allocation8 + $0x560] sm:$0xff] }
  0xfc   :  { %5859 = vmatpush3.bf16.msra.mxu0 %v5856_v48  ;;  %v5900_v48 = vpack.c.bf16 %v975_v42, %v966_v41  ;;  %v977_v41 = vld [vmem:[#allocation8 + $0x4e0] sm:$0xff] }
  0xfd   :  { %5861 = vmatprep.subr.bf16.mxu0 %v5860_v31  ;;  %694 = vmatmul.mubr.f32.gmra.mrb[14].mxu1 %v7983_v6 }
  0xfe   :  { %5883 = vmatpush1.bf16.msra.mxu1 %v5882_v62  ;;  %v904_v62 = vld [vmem:[#allocation8 + $0x298] sm:$0xff] }
  0xff   :  { %5885 = vmatprep.subr.bf16.mxu1 %v5884_v63  ;;  %v1002_v63 = vld [vmem:[#allocation8 + $0x5a8] sm:$0xff]  ;;  %v6174_v5 = vpack.c.bf16 %v904_v62, %v895_v58  ;;  %v1004_v62 = vld [vmem:[#allocation8 + $0x5b8] sm:$0xff] }
 0x100   :  { %5863 = vmatpush3.bf16.msra.mxu0 %v5860_v31  ;;  %v6170_v31 = vpack.c.bf16 %v886_v52, %v877_v47  ;;  %v5908_v8 = vpack.c.bf16 %v1011_v1, %v1002_v63  ;;  %v1064_v47 = vld [vmem:[#allocation8 + $0x798] sm:$0xff]  ;;  %v986_v52 = vld [vmem:[#allocation8 + $0x528] sm:$0xff]  ;;  %v1013_v63 = vld [vmem:[#allocation8 + $0x600] sm:$0xff] }
 0x101   :  { %5865 = vmatprep.subr.bf16.mxu0 %v5864_v3  ;;  %v1082_v58 = vld [vmem:[#allocation8 + $0x828] sm:$0xff] }
 0x102   :  { %5887 = vmatpush1.bf16.msra.mxu1 %v5886_v9  ;;  %v1001_v9 = vld [vmem:[#allocation8 + $0x5a0] sm:$0xff] }
 0x103   :  { %5889 = vmatprep.subr.bf16.mxu1 %v5888_v11  ;;  %v5910_v17 = vpack.c.bf16 %v1010_v10, %v1001_v9  ;;  %v1012_v9 = vld [vmem:[#allocation8 + $0x5f8] sm:$0xff]  ;;  %v1110_v10 = vld [vmem:[#allocation8 + $0x908] sm:$0xff] }
 0x104   :  { %5867 = vmatpush3.bf16.msra.mxu0 %v5864_v3  ;;  %v923_v3 = vld [vmem:[#allocation8 + $0x330] sm:$0xff] }
 0x105   :  { %6157 = vmatprep.subr.bf16.mxu0 %v6156_v14  ;;  %v6176_v11 = vpack.c.bf16 %v923_v3, %v914_v2  ;;  %v1029_v14 = vld [vmem:[#allocation8 + $0x680] sm:$0xff]  ;;  %v1003_v3 = vld [vmem:[#allocation8 + $0x5b0] sm:$0xff] }
 0x106   :  { %5891 = vmatpush1.bf16.msra.mxu1 %v5890_v20  ;;  %v5912_v20 = vpack.c.bf16 %v1029_v14, %v1020_v13  ;;  %v1031_v13 = vld [vmem:[#allocation8 + $0x690] sm:$0xff] }
 0x107   :  { %5589 = vmatmul.mubr.f32.vlgmr.msra.gmra.mrb[16].mxu0 %v7975_v44  ;;  %5893 = vmatprep.subr.bf16.mxu1 %v5892_v23  ;;  %v5898_v44 = vpack.c.bf16 %v956_v38, %v947_v37  ;;  %v6180_v23 = vpack.c.bf16 %v941_v16, %v932_v15  ;;  %v958_v37 = vld [vmem:[#allocation8 + $0x448] sm:$0xff]  ;;  %v1056_v38 = vld [vmem:[#allocation8 + $0x758] sm:$0xff]  ;;  %v6198_v15 = vpack.c.bf16 %v1012_v9, %v1003_v3 }
 0x108   :  { %6159 = vmatpush1.bf16.msra.mxu0 %v6158_v21  ;;  %5591 = vmatprep.mubr.f32.mxu0 %v7979_v57  ;;  %v905_v57 = vld [vmem:[#allocation8 + $0x2a0] sm:$0xff]  ;;  %v1019_v21 = vld [vmem:[#allocation8 + $0x630] sm:$0xff]  ;;  %v6186_v43 = vpack.c.bf16 %v958_v37, %v949_v32  ;;  %v1066_v32 = vld [vmem:[#allocation8 + $0x7a8] sm:$0xff] }
 0x109   :  { %6161 = vmatprep.subr.bf16.mxu0 %v6160_v26  ;;  %v6172_v61 = vpack.c.bf16 %v905_v57, %v896_v55  ;;  %v1047_v26 = vld [vmem:[#allocation8 + $0x710] sm:$0xff]  ;;  %v5914_v29 = vpack.c.bf16 %v1028_v22, %v1019_v21  ;;  %v6190_v55 = vpack.c.bf16 %v976_v49, %v967_v45  ;;  %v985_v57 = vld [vmem:[#allocation8 + $0x520] sm:$0xff]  ;;  %v1102_v45 = vld [vmem:[#allocation8 + $0x8c8] sm:$0xff]  ;;  %v299_v49 = vlaneseq }
 0x10a   :  { %5895 = vmatpush1.bf16.msra.mxu1 %v5894_v33  ;;  %v5916_v33 = vpack.c.bf16 %v1047_v26, %v1038_v25  ;;  %v6194_v2 = vpack.c.bf16 %v994_v59, %v985_v57  ;;  %v1049_v21 = vld [vmem:[#allocation8 + $0x720] sm:$0xff]  ;;  %v1048_v25 = vld [vmem:[#allocation8 + $0x718] sm:$0xff]  ;;  %v1058_v26 = vld [vmem:[#allocation8 + $0x768] sm:$0xff] }
 0x10b   :  { %5592 = vmatmul.mubr.f32.gmra.mrb[18].mxu0 %v7983_v6  ;;  %5897 = vmatprep.subr.bf16.mxu1 %v5896_v36  ;;  %v5904_v6 = vpack.c.bf16 %v993_v54, %v984_v53  ;;  %v6184_v36 = vpack.c.bf16 %v959_v28, %v950_v27  ;;  %v995_v53 = vld [vmem:[#allocation8 + $0x570] sm:$0xff]  ;;  %v6206_v28 = vpack.c.bf16 %v1048_v25, %v1039_v24 }
 0x10c   :  { %6163 = vmatpush1.bf16.msra.mxu0 %v6162_v34  ;;  %v1037_v34 = vld [vmem:[#allocation8 + $0x6c0] sm:$0xff]  ;;  %v1067_v27 = vld [vmem:[#allocation8 + $0x7b0] sm:$0xff] }
 0x10d   :  { %6165 = vmatprep.subr.bf16.mxu0 %v6164_v39  ;;  %v1065_v39 = vld [vmem:[#allocation8 + $0x7a0] sm:$0xff]  ;;  %v5918_v42 = vpack.c.bf16 %v1046_v35, %v1037_v34  ;;  %v1075_v37 = vld [vmem:[#allocation8 + $0x7f0] sm:$0xff] }
 0x10e   :  { %5899 = vmatpush1.bf16.msra.mxu1 %v5898_v44  ;;  %v5920_v44 = vpack.c.bf16 %v1065_v39, %v1056_v38  ;;  %v1085_v34 = vld [vmem:[#allocation8 + $0x840] sm:$0xff]  ;;  %v1084_v38 = vld [vmem:[#allocation8 + $0x838] sm:$0xff]  ;;  %v1094_v39 = vld [vmem:[#allocation8 + $0x888] sm:$0xff] }
 0x10f   :  { %5901 = vmatprep.subr.bf16.mxu1 %v5900_v48  ;;  %v6188_v48 = vpack.c.bf16 %v977_v41, %v968_v40  ;;  %v1103_v40 = vld [vmem:[#allocation8 + $0x8d0] sm:$0xff]  ;;  %v6214_v41 = vpack.c.bf16 %v1084_v38, %v1075_v37  ;;  %v1173_v38 = vld [vmem:[#allocation8 + $0xb00] sm:$0xff] }
 0x110   :  { %6167 = vmatpush1.bf16.msra.mxu0 %v6166_v46  ;;  %v1055_v46 = vld [vmem:[#allocation8 + $0x750] sm:$0xff] }
 0x111   :  { %6169 = vmatprep.subr.bf16.mxu0 %v6168_v51  ;;  %v1083_v51 = vld [vmem:[#allocation8 + $0x830] sm:$0xff]  ;;  %v5922_v54 = vpack.c.bf16 %v1064_v47, %v1055_v46  ;;  %v1121_v46 = vld [vmem:[#allocation8 + $0x960] sm:$0xff] }
 0x112   :  { %5903 = vmatpush1.bf16.msra.mxu1 %v5902_v56  ;;  %v5924_v56 = vpack.c.bf16 %v1083_v51, %v1074_v50  ;;  %v8013_v50 = vshrl.u32 %v299_v49, 7  ;;  %v1111_v59 = vld [vmem:[#allocation8 + $0x910] sm:$0xff] }
 0x113   :  { %5905 = vmatprep.subr.bf16.mxu1 %v5904_v6  ;;  %v6192_v6 = vpack.c.bf16 %v995_v53, %v986_v52  ;;  %v8016_v52 = vld [vmem:[#allocation7] sm:$0xff] }
 0x114   :  { %6171 = vmatpush1.bf16.msra.mxu0 %v6170_v31  ;;  %v1073_v31 = vld [vmem:[#allocation8 + $0x7e0] sm:$0xff]  ;;  %v8592_v51 = vsub.s32 0, %v8013_v50  ;;  %v8593_v53 = vsub.s32 1, %v8013_v50 }
 0x115   :  { %6173 = vmatprep.subr.bf16.mxu0 %v6172_v61  ;;  %v1101_v61 = vld [vmem:[#allocation8 + $0x8c0] sm:$0xff]  ;;  %v5926_v1 = vpack.c.bf16 %v1082_v58, %v1073_v31  ;;  %v1118_v31 = vld [vmem:[#allocation8 + $0x948] sm:$0xff] }
 0x116   :  { %5907 = vmatpush1.bf16.msra.mxu1 %v5906_v4  ;;  %v5928_v4 = vpack.c.bf16 %v1101_v61, %v1092_v60  ;;  %v1120_v60 = vld [vmem:[#allocation8 + $0x958] sm:$0xff] }
 0x117   :  { %5909 = vmatprep.subr.bf16.mxu1 %v5908_v8  ;;  %v6196_v8 = vpack.c.bf16 %v1013_v63, %v1004_v62  ;;  %v1128_v61 = vld [vmem:[#allocation8 + $0x998] sm:$0xff]  ;;  %v1137_v63 = vld [vmem:[#allocation8 + $0x9e0] sm:$0xff] }
 0x118   :  { %6175 = vmatpush1.bf16.msra.mxu0 %v6174_v5  ;;  %v1091_v5 = vld [vmem:[#allocation8 + $0x870] sm:$0xff] }
 0x119   :  { %6177 = vmatprep.subr.bf16.mxu0 %v6176_v11  ;;  %v1119_v11 = vld [vmem:[#allocation8 + $0x950] sm:$0xff]  ;;  %v5930_v14 = vpack.c.bf16 %v1100_v7, %v1091_v5  ;;  %v6222_v5 = vpack.c.bf16 %v1120_v60, %v1111_v59  ;;  %v1174_v59 = vld [vmem:[#allocation8 + $0xb08] sm:$0xff] }
 0x11a   :  { %5911 = vmatpush1.bf16.msra.mxu1 %v5910_v17  ;;  %v5932_v16 = vpack.c.bf16 %v1119_v11, %v1110_v10  ;;  %v6200_v17 = vpack.c.bf16 %v1031_v13, %v1022_v12  ;;  %v1127_v7 = vld [vmem:[#allocation8 + $0x990] sm:$0xff]  ;;  %v5936_v11 = vpack.c.bf16 %v1137_v63, %v1128_v61  ;;  %v1129_v13 = vld [vmem:[#allocation8 + $0x9a0] sm:$0xff]  ;;  %v1182_v60 = vld [vmem:[#allocation8 + $0xb48] sm:$0xff] }
 0x11b   :  { %5913 = vmatprep.subr.bf16.mxu1 %v5912_v20  ;;  %v1040_v20 = vld [vmem:[#allocation8 + $0x6d8] sm:$0xff]  ;;  %v1191_v63 = vld [vmem:[#allocation8 + $0xb90] sm:$0xff] }
 0x11c   :  { %6179 = vmatpush1.bf16.msra.mxu0 %v6178_v18  ;;  %v1021_v18 = vld [vmem:[#allocation8 + $0x640] sm:$0xff] }
 0x11d   :  { %6181 = vmatprep.subr.bf16.mxu0 %v6180_v23  ;;  %v6202_v22 = vpack.c.bf16 %v1030_v19, %v1021_v18  ;;  %v6204_v23 = vpack.c.bf16 %v1049_v21, %v1040_v20  ;;  %v1155_v18 = vld [vmem:[#allocation8 + $0xa70] sm:$0xff]  ;;  %v1148_v19 = vld [vmem:[#allocation8 + $0xa38] sm:$0xff]  ;;  %v1157_v20 = vld [vmem:[#allocation8 + $0xa80] sm:$0xff] }
 0x11e   :  { %5915 = vmatpush1.bf16.msra.mxu1 %v5914_v29  ;;  %v6208_v29 = vpack.c.bf16 %v1067_v27, %v1058_v26  ;;  %v1145_v26 = vld [vmem:[#allocation8 + $0xa20] sm:$0xff]  ;;  %v1154_v27 = vld [vmem:[#allocation8 + $0xa68] sm:$0xff] }
 0x11f   :  { %5917 = vmatprep.subr.bf16.mxu1 %v5916_v33  ;;  %v1076_v33 = vld [vmem:[#allocation8 + $0x7f8] sm:$0xff] }
 0x120   :  { %6183 = vmatpush1.bf16.msra.mxu0 %v6182_v30  ;;  %v1057_v30 = vld [vmem:[#allocation8 + $0x760] sm:$0xff] }
 0x121   :  { %6185 = vmatprep.subr.bf16.mxu0 %v6184_v36  ;;  %v6210_v35 = vpack.c.bf16 %v1066_v32, %v1057_v30  ;;  %v6212_v36 = vpack.c.bf16 %v1085_v34, %v1076_v33  ;;  %v6228_v32 = vpack.c.bf16 %v1157_v20, %v1148_v19  ;;  %v1147_v33 = vld [vmem:[#allocation8 + $0xa30] sm:$0xff]  ;;  %v1156_v34 = vld [vmem:[#allocation8 + $0xa78] sm:$0xff]  ;;  %v1209_v19 = vld [vmem:[#allocation8 + $0xc20] sm:$0xff] }
 0x122   :  { %5919 = vmatpush1.bf16.msra.mxu1 %v5918_v42  ;;  %v6216_v42 = vpack.c.bf16 %v1103_v40, %v1094_v39  ;;  %v1166_v39 = vld [vmem:[#allocation8 + $0xac8] sm:$0xff]  ;;  %v1175_v40 = vld [vmem:[#allocation8 + $0xb10] sm:$0xff] }
 0x123   :  { %5921 = vmatprep.subr.bf16.mxu1 %v5920_v44  ;;  %v1112_v44 = vld [vmem:[#allocation8 + $0x918] sm:$0xff]  ;;  %v1202_v20 = vld [vmem:[#allocation8 + $0xbe8] sm:$0xff] }
 0x124   :  { %6187 = vmatpush1.bf16.msra.mxu0 %v6186_v43  ;;  %v1093_v43 = vld [vmem:[#allocation8 + $0x880] sm:$0xff] }
 0x125   :  { %6189 = vmatprep.subr.bf16.mxu0 %v6188_v48  ;;  %v6218_v47 = vpack.c.bf16 %v1102_v45, %v1093_v43  ;;  %v6220_v48 = vpack.c.bf16 %v1121_v46, %v1112_v44  ;;  %v5942_v44 = vpack.c.bf16 %v1154_v27, %v1145_v26  ;;  %v6230_v46 = vpack.c.bf16 %v1156_v34, %v1147_v33 }
 0x126   :  { %5923 = vmatpush1.bf16.msra.mxu1 %v5922_v54  ;;  %v8022_v54 = vrot.slane %v8016_v52, %v8592_v51 }
 0x127   :  { %5925 = vmatprep.subr.bf16.mxu1 %v5924_v56  ;;  %v1109_v56 = vld [vmem:[#allocation8 + $0x900] sm:$0xff] }
 0x128   :  { %6191 = vmatpush1.bf16.msra.mxu0 %v6190_v55  ;;  %v8027_v55 = vrot.slane %v8016_v52, %v8593_v53 }
 0x129   :  { %6193 = vmatprep.subr.bf16.mxu0 %v6192_v6 }
 0x12a   :  { %5927 = vmatpush1.bf16.msra.mxu1 %v5926_v1  ;;  %v1130_v1 = vld [vmem:[#allocation8 + $0x9a8] sm:$0xff] }
 0x12b   :  { %5929 = vmatprep.subr.bf16.mxu1 %v5928_v4  ;;  %v5934_v4 = vpack.c.bf16 %v1118_v31, %v1109_v56 }
 0x12c   :  { %6195 = vmatpush1.bf16.msra.mxu0 %v6194_v2  ;;  %v1139_v2 = vld [vmem:[#allocation8 + $0x9f0] sm:$0xff] }
 0x12d   :  { %6197 = vmatprep.subr.bf16.mxu0 %v6196_v8  ;;  %v1136_v8 = vld [vmem:[#allocation8 + $0x9d8] sm:$0xff]  ;;  %v6224_v12 = vpack.c.bf16 %v1139_v2, %v1130_v1  ;;  %v1193_v2 = vld [vmem:[#allocation8 + $0xba0] sm:$0xff] }
 0x12e   :  { %5931 = vmatpush1.bf16.msra.mxu1 %v5930_v14  ;;  %v1138_v14 = vld [vmem:[#allocation8 + $0x9e8] sm:$0xff]  ;;  %v5938_v24 = vpack.c.bf16 %v1136_v8, %v1127_v7  ;;  %v1184_v1 = vld [vmem:[#allocation8 + $0xb58] sm:$0xff] }
 0x12f   :  { %5933 = vmatprep.subr.bf16.mxu1 %v5932_v16  ;;  %v6226_v25 = vpack.c.bf16 %v1138_v14, %v1129_v13  ;;  %v5948_v14 = vpack.c.bf16 %v1191_v63, %v1182_v60  ;;  %v1245_v60 = vld [vmem:[#allocation8 + $0xd40] sm:$0xff] }
 0x130   :  { %6199 = vmatpush1.bf16.msra.mxu0 %v6198_v15  ;;  %v1146_v15 = vld [vmem:[#allocation8 + $0xa28] sm:$0xff] }
 0x131   :  { %6201 = vmatprep.subr.bf16.mxu0 %v6200_v17  ;;  %v5940_v30 = vpack.c.bf16 %v1155_v18, %v1146_v15  ;;  %v6236_v15 = vpack.c.bf16 %v1193_v2, %v1184_v1  ;;  %v1200_v18 = vld [vmem:[#allocation8 + $0xbd8] sm:$0xff]  ;;  %v1235_v2 = vld [vmem:[#allocation8 + $0xcf0] sm:$0xff] }
 0x132   :  { %v5952_v33 = vpack.c.bf16 %v1209_v19, %v1200_v18  ;;  %v1253_v19 = vld [vmem:[#allocation8 + $0xd80] sm:$0xff] }
 0x134   :  { %6203 = vmatpush1.bf16.msra.mxu0 %v6202_v22  ;;  %v8591_v22 = vsub.s32 3, %v8013_v50 }
 0x135   :  { %6205 = vmatprep.subr.bf16.mxu0 %v6204_v23 }
 0x138   :  { %6207 = vmatpush1.bf16.msra.mxu0 %v6206_v28 }
 0x139   :  { %6209 = vmatprep.subr.bf16.mxu0 %v6208_v29 }
 0x13c   :  { %6211 = vmatpush1.bf16.msra.mxu0 %v6210_v35  ;;  %v1164_v35 = vld [vmem:[#allocation8 + $0xab8] sm:$0xff] }
 0x13d   :  { %6213 = vmatprep.subr.bf16.mxu0 %v6212_v36  ;;  %v5944_v31 = vpack.c.bf16 %v1173_v38, %v1164_v35  ;;  %v1201_v35 = vld [vmem:[#allocation8 + $0xbe0] sm:$0xff]  ;;  %v1227_v38 = vld [vmem:[#allocation8 + $0xcb0] sm:$0xff] }
 0x140   :  { %6215 = vmatpush1.bf16.msra.mxu0 %v6214_v41 }
 0x141   :  { %6217 = vmatprep.subr.bf16.mxu0 %v6216_v42  ;;  %v8053_v42 = vrot.slane %v8016_v52, %v8591_v22 }
 0x144   :  { %6219 = vmatpush1.bf16.msra.mxu0 %v6218_v47  ;;  %v1163_v47 = vld [vmem:[#allocation8 + $0xab0] sm:$0xff] }
 0x145   :  { %6221 = vmatprep.subr.bf16.mxu0 %v6220_v48  ;;  %v1172_v48 = vld [vmem:[#allocation8 + $0xaf8] sm:$0xff] }
 0x19a   :  { %v410_v57 = vpop.f32.mrb[0].mxu0 }
 0x19b   :  { %v411_v58 = vadd.f32 %v410_v57, %v8022_v54  ;;  %v412_v6 = vpop.f32.mrb[1].mxu0 }
 0x19c   :  { %v413_v62 = vadd.f32 %v412_v6, %v8027_v55  ;;  %v1165_v6 = vld [vmem:[#allocation8 + $0xac0] sm:$0xff] }
 0x19d   :  { %v8033_v10 = vmax.f32 %v411_v58, 0.0  ;;  %v6232_v58 = vpack.c.bf16 %v1175_v40, %v1166_v39  ;;  %v1220_v39 = vld [vmem:[#allocation8 + $0xc78] sm:$0xff]  ;;  %v1229_v40 = vld [vmem:[#allocation8 + $0xcc0] sm:$0xff] }
 0x19e   :  { %v8031_v3 = vmax.f32 %v413_v62, 0.0  ;;  %v416_v9 = vpop.f32.mrb[2].mxu0 }
 0x19f   :  { %v417_v16 = vadd.f32 %v416_v9, %v8022_v54  ;;  %v418_v17 = vpop.f32.mrb[3].mxu0  ;;  %v6234_v9 = vpack.c.bf16 %v1174_v59, %v1165_v6  ;;  %v1228_v6 = vld [vmem:[#allocation8 + $0xcb8] sm:$0xff] }
 0x1a0   :  { %2230 = vmatprep.mubr.f32.mxu1 %v8031_v3  ;;  %2675 = vmatprep.mubr.f32.mxu0 %v8031_v3  ;;  %v419_v21 = vadd.f32 %v418_v17, %v8027_v55  ;;  %v1192_v17 = vld [vmem:[#allocation8 + $0xb98] sm:$0xff] }
 0x1a1   :  { %2231 = vmatmul.mubr.f32.vlgmr.msra.gmra.mrb[16].mxu1 %v8033_v10  ;;  %2676 = vmatmul.mubr.f32.vlgmr.msra.gmra.mrb[20].mxu0 %v8033_v10  ;;  %v8042_v23 = vmax.f32 %v417_v16, 0.0  ;;  %v8059_v45 = vpop.f32.mrb[0].mxu1  ;;  %v1183_v16 = vld [vmem:[#allocation8 + $0xb50] sm:$0xff]  ;;  %v1236_v59 = vld [vmem:[#allocation8 + $0xcf8] sm:$0xff] }
 0x1a2   :  { %5935 = vmatpush1.bf16.msra.mxu1 %v5934_v4  ;;  %6223 = vmatpush1.bf16.msra.mxu0 %v6222_v5  ;;  %v8044_v28 = vmax.f32 %v419_v21, 0.0  ;;  %v422_v29 = vpop.f32.mrb[4].mxu0  ;;  %v501_v56 = vpop.f32.mrb[1].mxu1  ;;  %v1211_v21 = vld [vmem:[#allocation8 + $0xc30] sm:$0xff]  ;;  %v6238_v27 = vpack.c.bf16 %v1192_v17, %v1183_v16  ;;  %v1265_v16 = vld [vmem:[#allocation8 + $0xde0] sm:$0xff] }
 0x1a3   :  { %5937 = vmatprep.subr.bf16.mxu1 %v5936_v11  ;;  %6225 = vmatprep.subr.bf16.mxu0 %v6224_v12  ;;  %v423_v36 = vadd.f32 %v422_v29, %v8022_v54  ;;  %v424_v37 = vpop.f32.mrb[5].mxu0  ;;  %v502_v5 = vadd.f32 %v501_v56, %v8053_v42  ;;  %v1181_v11 = vld [vmem:[#allocation8 + $0xb40] sm:$0xff]  ;;  %v1199_v29 = vld [vmem:[#allocation8 + $0xbd0] sm:$0xff]  ;;  %v6240_v34 = vpack.c.bf16 %v1211_v21, %v1202_v20  ;;  %v1262_v20 = vld [vmem:[#allocation8 + $0xdc8] sm:$0xff] }
 0x1a4   :  { %v425_v41 = vadd.f32 %v424_v37, %v8027_v55  ;;  %2236 = vmatprep.mubr.f32.mxu1 %v8044_v28  ;;  %2681 = vmatprep.mubr.f32.mxu0 %v8044_v28  ;;  %v1218_v37 = vld [vmem:[#allocation8 + $0xc68] sm:$0xff] }
 0x1a5   :  { %v8055_v43 = vmax.f32 %v423_v36, 0.0  ;;  %2237 = vmatmul.mubr.f32.gmra.mrb[18].mxu1 %v8042_v23  ;;  %2682 = vmatmul.mubr.f32.gmra.mrb[22].mxu0 %v8042_v23  ;;  %v8072_v8 = vpop.f32.mrb[2].mxu1  ;;  %v1210_v36 = vld [vmem:[#allocation8 + $0xc28] sm:$0xff]  ;;  %v5956_v56 = vpack.c.bf16 %v1227_v38, %v1218_v37  ;;  %v5966_v38 = vpack.c.bf16 %v1262_v20, %v1253_v19  ;;  %v1307_v20 = vld [vmem:[#allocation8 + $0xf30] sm:$0xff] }
 0x1a6   :  { %5939 = vmatpush1.bf16.msra.mxu1 %v5938_v24  ;;  %6227 = vmatpush1.bf16.msra.mxu0 %v6226_v25  ;;  %v8061_v49 = vmax.f32 %v425_v41, 0.0  ;;  %v428_v57 = vpop.f32.mrb[6].mxu0  ;;  %v8076_v13 = vpop.f32.mrb[3].mxu1  ;;  %v8078_v24 = vmax.f32 %v502_v5, 0.0  ;;  %v5960_v5 = vpack.c.bf16 %v1245_v60, %v1236_v59  ;;  %v1292_v59 = vld [vmem:[#allocation8 + $0xeb8] sm:$0xff]  ;;  %v1301_v60 = vld [vmem:[#allocation8 + $0xf00] sm:$0xff] }
 0x1a7   :  { %5941 = vmatprep.subr.bf16.mxu1 %v5940_v30  ;;  %6229 = vmatprep.subr.bf16.mxu0 %v6228_v32  ;;  %v429_v61 = vadd.f32 %v428_v57, %v8022_v54  ;;  %v430_v62 = vpop.f32.mrb[7].mxu0  ;;  %v5946_v54 = vpack.c.bf16 %v1172_v48, %v1163_v47  ;;  %v1208_v30 = vld [vmem:[#allocation8 + $0xc18] sm:$0xff]  ;;  %v1217_v47 = vld [vmem:[#allocation8 + $0xc60] sm:$0xff]  ;;  %v1226_v48 = vld [vmem:[#allocation8 + $0xca8] sm:$0xff] }
 0x1a8   :  { %v431_v4 = vadd.f32 %v430_v62, %v8027_v55  ;;  %2242 = vmatprep.mubr.f32.mxu1 %v8061_v49  ;;  %2687 = vmatprep.mubr.f32.mxu0 %v8061_v49  ;;  %v1190_v55 = vld [vmem:[#allocation8 + $0xb88] sm:$0xff]  ;;  %v1247_v62 = vld [vmem:[#allocation8 + $0xd50] sm:$0xff]  ;;  %v5958_v63 = vpack.c.bf16 %v1226_v48, %v1217_v47  ;;  %v1273_v48 = vld [vmem:[#allocation8 + $0xe20] sm:$0xff] }
 0x1a9   :  { %v8068_v7 = vmax.f32 %v429_v61, 0.0  ;;  %2243 = vmatmul.mubr.f32.gmra.mrb[20].mxu1 %v8055_v43  ;;  %2688 = vmatmul.mubr.f32.gmra.mrb[24].mxu0 %v8055_v43  ;;  %v8084_v25 = vpop.f32.mrb[4].mxu1  ;;  %v5950_v26 = vpack.c.bf16 %v1190_v55, %v1181_v11  ;;  %v1238_v61 = vld [vmem:[#allocation8 + $0xd08] sm:$0xff] }
 0x1aa   :  { %5943 = vmatpush1.bf16.msra.mxu1 %v5942_v44  ;;  %6231 = vmatpush1.bf16.msra.mxu0 %v6230_v46  ;;  %v8074_v12 = vmax.f32 %v431_v4, 0.0  ;;  %v8086_v32 = vpop.f32.mrb[5].mxu1  ;;  %v5954_v44 = vpack.c.bf16 %v1208_v30, %v1199_v29  ;;  %v6242_v46 = vpack.c.bf16 %v1210_v36, %v1201_v35  ;;  %v1244_v4 = vld [vmem:[#allocation8 + $0xd38] sm:$0xff]  ;;  %v1246_v11 = vld [vmem:[#allocation8 + $0xd48] sm:$0xff]  ;;  %v1283_v36 = vld [vmem:[#allocation8 + $0xe70] sm:$0xff] }
 0x1ab   :  { %5945 = vmatprep.subr.bf16.mxu1 %v5944_v31  ;;  %6233 = vmatprep.subr.bf16.mxu0 %v6232_v58  ;;  %v6244_v31 = vpack.c.bf16 %v1229_v40, %v1220_v39  ;;  %v1219_v58 = vld [vmem:[#allocation8 + $0xc70] sm:$0xff]  ;;  %v1254_v55 = vld [vmem:[#allocation8 + $0xd88] sm:$0xff]  ;;  %v5962_v17 = vpack.c.bf16 %v1244_v4, %v1235_v2  ;;  %v1264_v29 = vld [vmem:[#allocation8 + $0xdd8] sm:$0xff] }
 0x1ac   :  { %2248 = vmatprep.mubr.f32.mxu1 %v8074_v12  ;;  %2693 = vmatprep.mubr.f32.mxu0 %v8074_v12  ;;  %v6246_v1 = vpack.c.bf16 %v1228_v6, %v1219_v58  ;;  %v1272_v30 = vld [vmem:[#allocation8 + $0xe18] sm:$0xff]  ;;  %v1274_v35 = vld [vmem:[#allocation8 + $0xe28] sm:$0xff]  ;;  %v1271_v40 = vld [vmem:[#allocation8 + $0xe10] sm:$0xff] }
 0x1ad   :  { %2249 = vmatmul.mubr.f32.gmra.mrb[22].mxu1 %v8068_v7  ;;  %2694 = vmatmul.mubr.f32.gmra.mrb[26].mxu0 %v8068_v7  ;;  %v8090_v41 = vpop.f32.mrb[6].mxu1  ;;  %v6256_v47 = vpack.c.bf16 %v1283_v36, %v1274_v35  ;;  %v1299_v6 = vld [vmem:[#allocation8 + $0xef0] sm:$0xff]  ;;  %v1298_v2 = vld [vmem:[#allocation8 + $0xee8] sm:$0xff] }
 0x1ae   :  { %5947 = vmatpush1.bf16.msra.mxu1 %v5946_v54  ;;  %6235 = vmatpush1.bf16.msra.mxu0 %v6234_v9  ;;  %v8092_v57 = vpop.f32.mrb[7].mxu1  ;;  %v6248_v54 = vpack.c.bf16 %v1247_v62, %v1238_v61  ;;  %v1237_v9 = vld [vmem:[#allocation8 + $0xd00] sm:$0xff]  ;;  %v1326_v35 = vld [vmem:[#allocation8 + $0xfc8] sm:$0xff] }
 0x1af   :  { %5949 = vmatprep.subr.bf16.mxu1 %v5948_v14  ;;  %6237 = vmatprep.subr.bf16.mxu0 %v6236_v15  ;;  %v1263_v14 = vld [vmem:[#allocation8 + $0xdd0] sm:$0xff]  ;;  %v1256_v15 = vld [vmem:[#allocation8 + $0xd98] sm:$0xff]  ;;  %v6250_v18 = vpack.c.bf16 %v1246_v11, %v1237_v9 }
 0x1b0   :  { %2319 = vmatprep.mubr.f32.mxu1 %v8078_v24  ;;  %2764 = vmatprep.mubr.f32.mxu0 %v8078_v24  ;;  %v5964_v21 = vpack.c.bf16 %v1263_v14, %v1254_v55  ;;  %v1300_v9 = vld [vmem:[#allocation8 + $0xef8] sm:$0xff]  ;;  %v1317_v14 = vld [vmem:[#allocation8 + $0xf80] sm:$0xff] }
 0x1b1   :  { %v1308_v11 = vld [vmem:[#allocation8 + $0xf38] sm:$0xff] }
 0x1b2   :  { %5951 = vmatpush1.bf16.msra.mxu1 %v5950_v26  ;;  %6239 = vmatpush1.bf16.msra.mxu0 %v6238_v27  ;;  %v6252_v26 = vpack.c.bf16 %v1265_v16, %v1256_v15  ;;  %v1255_v27 = vld [vmem:[#allocation8 + $0xd90] sm:$0xff]  ;;  %v1310_v15 = vld [vmem:[#allocation8 + $0xf48] sm:$0xff] }
 0x1b3   :  { %5953 = vmatprep.subr.bf16.mxu1 %v5952_v33  ;;  %6241 = vmatprep.subr.bf16.mxu0 %v6240_v34  ;;  %v1281_v34 = vld [vmem:[#allocation8 + $0xe60] sm:$0xff]  ;;  %v6254_v39 = vpack.c.bf16 %v1264_v29, %v1255_v27  ;;  %v1319_v16 = vld [vmem:[#allocation8 + $0xf90] sm:$0xff]  ;;  %v5976_v27 = vpack.c.bf16 %v1317_v14, %v1308_v11  ;;  %v1352_v11 = vld [vmem:[#allocation8 + $0x1098] sm:$0xff] }
 0x1b4   :  { %v6264_v29 = vpack.c.bf16 %v1319_v16, %v1310_v15  ;;  %v1345_v16 = vld [vmem:[#allocation8 + $0x1060] sm:$0xff] }
 0x1b6   :  { %5955 = vmatpush1.bf16.msra.mxu1 %v5954_v44  ;;  %6243 = vmatpush1.bf16.msra.mxu0 %v6242_v46  ;;  %v1280_v44 = vld [vmem:[#allocation8 + $0xe58] sm:$0xff]  ;;  %v5968_v46 = vpack.c.bf16 %v1281_v34, %v1272_v30  ;;  %v1309_v30 = vld [vmem:[#allocation8 + $0xf40] sm:$0xff]  ;;  %v1318_v34 = vld [vmem:[#allocation8 + $0xf88] sm:$0xff] }
 0x1b7   :  { %5957 = vmatprep.subr.bf16.mxu1 %v5956_v56  ;;  %6245 = vmatprep.subr.bf16.mxu0 %v6244_v31  ;;  %v1282_v56 = vld [vmem:[#allocation8 + $0xe68] sm:$0xff]  ;;  %v5970_v62 = vpack.c.bf16 %v1280_v44, %v1271_v40  ;;  %v1328_v40 = vld [vmem:[#allocation8 + $0xfd8] sm:$0xff]  ;;  %v1337_v44 = vld [vmem:[#allocation8 + $0x1020] sm:$0xff] }
 0x1b8   :  { %v1290_v31 = vld [vmem:[#allocation8 + $0xea8] sm:$0xff] }
 0x1b9   :  { %v5972_v4 = vpack.c.bf16 %v1299_v6, %v1290_v31  ;;  %v1334_v31 = vld [vmem:[#allocation8 + $0x1008] sm:$0xff] }
 0x1ba   :  { %5959 = vmatpush1.bf16.msra.mxu1 %v5958_v63  ;;  %6247 = vmatpush1.bf16.msra.mxu0 %v6246_v1  ;;  %v8094_v33 = vpop.f32.mrb[8].mxu0  ;;  %v6258_v63 = vpack.c.bf16 %v1282_v56, %v1273_v48  ;;  %v1289_v1 = vld [vmem:[#allocation8 + $0xea0] sm:$0xff]  ;;  %v6266_v48 = vpack.c.bf16 %v1318_v34, %v1309_v30 }
 0x1bb   :  { %5961 = vmatprep.subr.bf16.mxu1 %v5960_v5  ;;  %6249 = vmatprep.subr.bf16.mxu0 %v6248_v54  ;;  %v8096_v37 = vpop.f32.mrb[9].mxu0  ;;  %v6260_v5 = vpack.c.bf16 %v1301_v60, %v1292_v59  ;;  %v1291_v54 = vld [vmem:[#allocation8 + $0xeb0] sm:$0xff]  ;;  %v1325_v56 = vld [vmem:[#allocation8 + $0xfc0] sm:$0xff]  ;;  %v6268_v59 = vpack.c.bf16 %v1337_v44, %v1328_v40 }
 0x1bc   :  { %v6262_v19 = vpack.c.bf16 %v1300_v9, %v1291_v54  ;;  %v1327_v60 = vld [vmem:[#allocation8 + $0xfd0] sm:$0xff] }
 0x1bd   :  { %v1343_v9 = vld [vmem:[#allocation8 + $0x1050] sm:$0xff] }
 0x1be   :  { %5963 = vmatpush1.bf16.msra.mxu1 %v5962_v17  ;;  %6251 = vmatpush1.bf16.msra.mxu0 %v6250_v18  ;;  %v8098_v58 = vpop.f32.mrb[10].mxu0  ;;  %v5974_v18 = vpack.c.bf16 %v1298_v2, %v1289_v1  ;;  %v1353_v1 = vld [vmem:[#allocation8 + $0x10a0] sm:$0xff]  ;;  %v1346_v2 = vld [vmem:[#allocation8 + $0x1068] sm:$0xff]  ;;  %v5986_v30 = vpack.c.bf16 %v1352_v11, %v1343_v9 }
 0x1bf   :  { %5965 = vmatprep.subr.bf16.mxu1 %v5964_v21  ;;  %6253 = vmatprep.subr.bf16.mxu0 %v6252_v26  ;;  %v8100_v61 = vpop.f32.mrb[11].mxu0  ;;  %v1316_v21 = vld [vmem:[#allocation8 + $0xf78] sm:$0xff]  ;;  %v1390_v9 = vld [vmem:[#allocation8 + $0x11c8] sm:$0xff] }
 0x1c0   :  { %v1398_v11 = vld [vmem:[#allocation8 + $0x1208] sm:$0xff] }
 0x1c2   :  { %5967 = vmatpush1.bf16.msra.mxu1 %v5966_v38  ;;  %6255 = vmatpush1.bf16.msra.mxu0 %v6254_v39  ;;  %v8102_v55 = vpop.f32.mrb[12].mxu0  ;;  %v1335_v39 = vld [vmem:[#allocation8 + $0x1010] sm:$0xff] }
 0x1c3   :  { %5969 = vmatprep.subr.bf16.mxu1 %v5968_v46  ;;  %6257 = vmatprep.subr.bf16.mxu0 %v6256_v47  ;;  %v8104_v17 = vpop.f32.mrb[13].mxu0  ;;  %v5978_v47 = vpack.c.bf16 %v1316_v21, %v1307_v20  ;;  %v5980_v6 = vpack.c.bf16 %v1335_v39, %v1326_v35  ;;  %v1371_v20 = vld [vmem:[#allocation8 + $0x1130] sm:$0xff]  ;;  %v1364_v21 = vld [vmem:[#allocation8 + $0x10f8] sm:$0xff]  ;;  %v1361_v35 = vld [vmem:[#allocation8 + $0x10e0] sm:$0xff] }
 0x1c4   :  { %v8106_v26 = vpop.f32.mrb[8].mxu1  ;;  %v1370_v39 = vld [vmem:[#allocation8 + $0x1128] sm:$0xff] }
 0x1c5   :  { %v8110_v38 = vpop.f32.mrb[9].mxu1 }
 0x1c6   :  { %5971 = vmatpush1.bf16.msra.mxu1 %v5970_v62  ;;  %6259 = vmatpush1.bf16.msra.mxu0 %v6258_v63  ;;  %v8108_v36 = vpop.f32.mrb[14].mxu0  ;;  %v1336_v62 = vld [vmem:[#allocation8 + $0x1018] sm:$0xff] }
 0x1c7   :  { %5973 = vmatprep.subr.bf16.mxu1 %v5972_v4  ;;  %6261 = vmatprep.subr.bf16.mxu0 %v6260_v5  ;;  %v8112_v46 = vpop.f32.mrb[15].mxu0  ;;  %v1344_v63 = vld [vmem:[#allocation8 + $0x1058] sm:$0xff]  ;;  %v1355_v4 = vld [vmem:[#allocation8 + $0x10b0] sm:$0xff]  ;;  %v5982_v5 = vpack.c.bf16 %v1334_v31, %v1325_v56  ;;  %v6270_v54 = vpack.c.bf16 %v1336_v62, %v1327_v60  ;;  %v1389_v31 = vld [vmem:[#allocation8 + $0x11c0] sm:$0xff]  ;;  %v5990_v62 = vpack.c.bf16 %v1370_v39, %v1361_v35 }
 0x1c8   :  { %v5984_v14 = vpack.c.bf16 %v1353_v1, %v1344_v63  ;;  %v6272_v15 = vpack.c.bf16 %v1355_v4, %v1346_v2  ;;  %v1380_v56 = vld [vmem:[#allocation8 + $0x1178] sm:$0xff]  ;;  %v1379_v1 = vld [vmem:[#allocation8 + $0x1170] sm:$0xff] }
 0x1c9   :  { %v1388_v2 = vld [vmem:[#allocation8 + $0x11b8] sm:$0xff]  ;;  %v5992_v4 = vpack.c.bf16 %v1389_v31, %v1380_v56  ;;  %v1399_v35 = vld [vmem:[#allocation8 + $0x1210] sm:$0xff] }
 0x1ca   :  { %5975 = vmatpush1.bf16.msra.mxu1 %v5974_v18  ;;  %6263 = vmatpush1.bf16.msra.mxu0 %v6262_v19  ;;  %v1354_v18 = vld [vmem:[#allocation8 + $0x10a8] sm:$0xff]  ;;  %v1408_v39 = vld [vmem:[#allocation8 + $0x1258] sm:$0xff]  ;;  %v1427_v56 = vld [vmem:[#allocation8 + $0x12f0] sm:$0xff] }
 0x1cb   :  { %5977 = vmatprep.subr.bf16.mxu1 %v5976_v27  ;;  %6265 = vmatprep.subr.bf16.mxu0 %v6264_v29  ;;  %v1362_v19 = vld [vmem:[#allocation8 + $0x10e8] sm:$0xff]  ;;  %v1373_v27 = vld [vmem:[#allocation8 + $0x1140] sm:$0xff]  ;;  %v8590_v29 = vsub.s32 2, %v8013_v50  ;;  %v6274_v34 = vpack.c.bf16 %v1354_v18, %v1345_v16 }
 0x1cc   :  { %v5988_v40 = vpack.c.bf16 %v1371_v20, %v1362_v19  ;;  %v6276_v44 = vpack.c.bf16 %v1373_v27, %v1364_v21  ;;  %v1409_v16 = vld [vmem:[#allocation8 + $0x1260] sm:$0xff]  ;;  %v5994_v19 = vpack.c.bf16 %v1388_v2, %v1379_v1  ;;  %v1406_v27 = vld [vmem:[#allocation8 + $0x1248] sm:$0xff]  ;;  %v1415_v1 = vld [vmem:[#allocation8 + $0x1290] sm:$0xff] }
 0x1cd   :  { %v8118_v60 = vrot.slane %v8016_v52, %v8590_v29  ;;  %v1397_v21 = vld [vmem:[#allocation8 + $0x1200] sm:$0xff]  ;;  %v1424_v2 = vld [vmem:[#allocation8 + $0x12d8] sm:$0xff] }
 0x1ce   :  { %5979 = vmatpush1.bf16.msra.mxu1 %v5978_v47  ;;  %6267 = vmatpush1.bf16.msra.mxu0 %v6266_v48  ;;  %v1363_v47 = vld [vmem:[#allocation8 + $0x10f0] sm:$0xff]  ;;  %v1372_v48 = vld [vmem:[#allocation8 + $0x1138] sm:$0xff]  ;;  %v1517_v29 = vld [vmem:[#allocation8 + $0x15c0] sm:$0xff] }
 0x1cf   :  { %5981 = vmatprep.subr.bf16.mxu1 %v5980_v6  ;;  %6269 = vmatprep.subr.bf16.mxu0 %v6268_v59  ;;  %v1382_v6 = vld [vmem:[#allocation8 + $0x1188] sm:$0xff]  ;;  %v1391_v59 = vld [vmem:[#allocation8 + $0x11d0] sm:$0xff]  ;;  %v6278_v63 = vpack.c.bf16 %v1372_v48, %v1363_v47  ;;  %v500_v18 = vadd.f32 %v8059_v45, %v8118_v60  ;;  %v1425_v47 = vld [vmem:[#allocation8 + $0x12e0] sm:$0xff]  ;;  %v508_v45 = vadd.f32 %v8076_v13, %v8053_v42 }
 0x1d0   :  { %v1418_v48 = vld [vmem:[#allocation8 + $0x12a8] sm:$0xff] }
 0x1d1   :  { %v1434_v13 = vld [vmem:[#allocation8 + $0x1328] sm:$0xff] }
 0x1d2   :  { %5983 = vmatpush1.bf16.msra.mxu1 %v5982_v5  ;;  %6271 = vmatpush1.bf16.msra.mxu0 %v6270_v54  ;;  %v6280_v5 = vpack.c.bf16 %v1391_v59, %v1382_v6  ;;  %v1381_v54 = vld [vmem:[#allocation8 + $0x1180] sm:$0xff]  ;;  %v8128_v6 = vmax.f32 %v500_v18, 0.0  ;;  %v506_v59 = vadd.f32 %v8072_v8, %v8118_v60  ;;  %v514_v8 = vadd.f32 %v8086_v32, %v8053_v42 }
 0x1d3   :  { %5985 = vmatprep.subr.bf16.mxu1 %v5984_v14  ;;  %6273 = vmatprep.subr.bf16.mxu0 %v6272_v15  ;;  %v1407_v14 = vld [vmem:[#allocation8 + $0x1250] sm:$0xff]  ;;  %v1400_v15 = vld [vmem:[#allocation8 + $0x1218] sm:$0xff]  ;;  %v6282_v20 = vpack.c.bf16 %v1390_v9, %v1381_v54  ;;  %v1417_v54 = vld [vmem:[#allocation8 + $0x12a0] sm:$0xff]  ;;  %v8589_v18 = vsub.s32 5, %v8013_v50 }
 0x1d4   :  { %v1426_v9 = vld [vmem:[#allocation8 + $0x12e8] sm:$0xff] }
 0x1d6   :  { %5987 = vmatpush1.bf16.msra.mxu1 %v5986_v30  ;;  %6275 = vmatpush1.bf16.msra.mxu0 %v6274_v34  ;;  %v5996_v30 = vpack.c.bf16 %v1407_v14, %v1398_v11  ;;  %v6284_v34 = vpack.c.bf16 %v1409_v16, %v1400_v15  ;;  %v1443_v11 = vld [vmem:[#allocation8 + $0x1370] sm:$0xff]  ;;  %v1436_v14 = vld [vmem:[#allocation8 + $0x1338] sm:$0xff]  ;;  %v1445_v15 = vld [vmem:[#allocation8 + $0x1380] sm:$0xff]  ;;  %v8132_v16 = vmax.f32 %v508_v45, 0.0 }
 0x1d7   :  { %5989 = vmatprep.subr.bf16.mxu1 %v5988_v40  ;;  %6277 = vmatprep.subr.bf16.mxu0 %v6276_v44  ;;  %v1416_v40 = vld [vmem:[#allocation8 + $0x1298] sm:$0xff]  ;;  %v6004_v32 = vpack.c.bf16 %v1443_v11, %v1434_v13  ;;  %v1463_v45 = vld [vmem:[#allocation8 + $0x1410] sm:$0xff]  ;;  %v1462_v13 = vld [vmem:[#allocation8 + $0x1408] sm:$0xff] }
 0x1d8   :  { %v1470_v11 = vld [vmem:[#allocation8 + $0x1448] sm:$0xff] }
 0x1da   :  { %5991 = vmatpush1.bf16.msra.mxu1 %v5990_v62  ;;  %6279 = vmatpush1.bf16.msra.mxu0 %v6278_v63  ;;  %v8122_v44 = vpop.f32.mrb[16].mxu0  ;;  %v5998_v62 = vpack.c.bf16 %v1406_v27, %v1397_v21  ;;  %v6286_v63 = vpack.c.bf16 %v1408_v39, %v1399_v35  ;;  %v6002_v21 = vpack.c.bf16 %v1424_v2, %v1415_v1  ;;  %v1435_v39 = vld [vmem:[#allocation8 + $0x1330] sm:$0xff] }
 0x1db   :  { %5993 = vmatprep.subr.bf16.mxu1 %v5992_v4  ;;  %6281 = vmatprep.subr.bf16.mxu0 %v6280_v5  ;;  %v8126_v31 = vpop.f32.mrb[17].mxu0  ;;  %v6000_v4 = vpack.c.bf16 %v1425_v47, %v1416_v40  ;;  %v6288_v5 = vpack.c.bf16 %v1427_v56, %v1418_v48  ;;  %v6290_v27 = vpack.c.bf16 %v1426_v9, %v1417_v54  ;;  %v1444_v40 = vld [vmem:[#allocation8 + $0x1378] sm:$0xff]  ;;  %v1461_v48 = vld [vmem:[#allocation8 + $0x1400] sm:$0xff]  ;;  %v1454_v56 = vld [vmem:[#allocation8 + $0x13c8] sm:$0xff] }
 0x1dc   :  { %v6292_v35 = vpack.c.bf16 %v1445_v15, %v1436_v14  ;;  %v1452_v47 = vld [vmem:[#allocation8 + $0x13b8] sm:$0xff]  ;;  %v518_v1 = vadd.f32 %v8090_v41, %v8118_v60  ;;  %v6296_v54 = vpack.c.bf16 %v1463_v45, %v1454_v56  ;;  %v1453_v9 = vld [vmem:[#allocation8 + $0x13c0] sm:$0xff]  ;;  %v1479_v15 = vld [vmem:[#allocation8 + $0x1490] sm:$0xff] }
 0x1dd   :  { %v1481_v41 = vld [vmem:[#allocation8 + $0x14a0] sm:$0xff] }
 0x1de   :  { %5995 = vmatpush1.bf16.msra.mxu1 %v5994_v19  ;;  %6283 = vmatpush1.bf16.msra.mxu0 %v6282_v20  ;;  %v8139_v19 = vmax.f32 %v506_v59, 0.0  ;;  %v512_v20 = vadd.f32 %v8084_v25, %v8118_v60  ;;  %v8143_v59 = vmax.f32 %v514_v8, 0.0  ;;  %v520_v25 = vadd.f32 %v8092_v57, %v8053_v42  ;;  %v1460_v42 = vld [vmem:[#allocation8 + $0x13f8] sm:$0xff]  ;;  %v8160_v57 = vpop.f32.mrb[10].mxu1  ;;  %v1497_v45 = vld [vmem:[#allocation8 + $0x1520] sm:$0xff] }
 0x1df   :  { %5997 = vmatprep.subr.bf16.mxu1 %v5996_v30  ;;  %6285 = vmatprep.subr.bf16.mxu0 %v6284_v34  ;;  %v1433_v30 = vld [vmem:[#allocation8 + $0x1320] sm:$0xff]  ;;  %v1442_v34 = vld [vmem:[#allocation8 + $0x1368] sm:$0xff]  ;;  %v8162_v14 = vpop.f32.mrb[11].mxu1  ;;  %v1472_v8 = vld [vmem:[#allocation8 + $0x1458] sm:$0xff] }
 0x1e0   :  { %v6006_v2 = vpack.c.bf16 %v1442_v34, %v1433_v30  ;;  %v8164_v60 = vmax.f32 %v520_v25, 0.0  ;;  %v6298_v30 = vpack.c.bf16 %v1462_v13, %v1453_v9  ;;  %v1469_v34 = vld [vmem:[#allocation8 + $0x1440] sm:$0xff]  ;;  %v1490_v25 = vld [vmem:[#allocation8 + $0x14e8] sm:$0xff] }
 0x1e1   :  { %2320 = vmatmul.mubr.f32.vlgmr.msra.gmra.mrb[16].mxu1 %v8128_v6  ;;  %2765 = vmatmul.mubr.f32.vlgmr.msra.gmra.mrb[20].mxu0 %v8128_v6 }
 0x1e2   :  { %5999 = vmatpush1.bf16.msra.mxu1 %v5998_v62  ;;  %6287 = vmatpush1.bf16.msra.mxu0 %v6286_v63  ;;  %v8152_v62 = vrot.slane %v8016_v52, %v8589_v18  ;;  %v8154_v63 = vmax.f32 %v512_v20, 0.0  ;;  %v6008_v52 = vpack.c.bf16 %v1461_v48, %v1452_v47  ;;  %v1471_v47 = vld [vmem:[#allocation8 + $0x1450] sm:$0xff]  ;;  %v1488_v48 = vld [vmem:[#allocation8 + $0x14d8] sm:$0xff] }
 0x1e3   :  { %6001 = vmatprep.subr.bf16.mxu1 %v6000_v4  ;;  %6289 = vmatprep.subr.bf16.mxu0 %v6288_v5  ;;  %v6294_v4 = vpack.c.bf16 %v1444_v40, %v1435_v39  ;;  %v1451_v5 = vld [vmem:[#allocation8 + $0x13b0] sm:$0xff]  ;;  %v6012_v39 = vpack.c.bf16 %v1479_v15, %v1470_v11  ;;  %v6300_v40 = vpack.c.bf16 %v1481_v41, %v1472_v8  ;;  %v1489_v11 = vld [vmem:[#allocation8 + $0x14e0] sm:$0xff]  ;;  %v1498_v15 = vld [vmem:[#allocation8 + $0x1528] sm:$0xff] }
 0x1e4   :  { %2325 = vmatprep.mubr.f32.mxu1 %v8132_v16  ;;  %2770 = vmatprep.mubr.f32.mxu0 %v8132_v16  ;;  %v591_v20 = vadd.f32 %v8096_v37, %v8152_v62  ;;  %v1480_v37 = vld [vmem:[#allocation8 + $0x1498] sm:$0xff]  ;;  %v6016_v9 = vpack.c.bf16 %v1497_v45, %v1488_v48  ;;  %v1506_v8 = vld [vmem:[#allocation8 + $0x1568] sm:$0xff]  ;;  %v1533_v45 = vld [vmem:[#allocation8 + $0x1640] sm:$0xff] }
 0x1e5   :  { %2326 = vmatmul.mubr.f32.gmra.mrb[18].mxu1 %v8139_v19  ;;  %2771 = vmatmul.mubr.f32.gmra.mrb[22].mxu0 %v8139_v19  ;;  %v1508_v18 = vld [vmem:[#allocation8 + $0x1578] sm:$0xff] }
 0x1e6   :  { %6003 = vmatpush1.bf16.msra.mxu1 %v6002_v21  ;;  %6291 = vmatpush1.bf16.msra.mxu0 %v6290_v27  ;;  %v8170_v21 = vmax.f32 %v518_v1, 0.0  ;;  %v6010_v27 = vpack.c.bf16 %v1460_v42, %v1451_v5  ;;  %v1499_v1 = vld [vmem:[#allocation8 + $0x1530] sm:$0xff]  ;;  %v6302_v5 = vpack.c.bf16 %v1480_v37, %v1471_v47  ;;  %v1516_v37 = vld [vmem:[#allocation8 + $0x15b8] sm:$0xff] }
 0x1e7   :  { %6005 = vmatprep.subr.bf16.mxu1 %v6004_v32  ;;  %6293 = vmatprep.subr.bf16.mxu0 %v6292_v35  ;;  %v1478_v32 = vld [vmem:[#allocation8 + $0x1488] sm:$0xff]  ;;  %v8174_v35 = vpop.f32.mrb[12].mxu1  ;;  %v1487_v42 = vld [vmem:[#allocation8 + $0x14d0] sm:$0xff]  ;;  %v6304_v13 = vpack.c.bf16 %v1499_v1, %v1490_v25  ;;  %v1524_v48 = vld [vmem:[#allocation8 + $0x15f8] sm:$0xff] }
 0x1e8   :  { %2331 = vmatprep.mubr.f32.mxu1 %v8143_v59  ;;  %2776 = vmatprep.mubr.f32.mxu0 %v8143_v59  ;;  %8603 = vst [vmem:[#allocation24_spill] sm:$0xff] %v8170_v21  ;;  %v8176_v56 = vpop.f32.mrb[13].mxu1  ;;  %v1507_v47 = vld [vmem:[#allocation8 + $0x1570] sm:$0xff]  ;;  %v1526_v25 = vld [vmem:[#allocation8 + $0x1608] sm:$0xff] }
 0x1e9   :  { %2332 = vmatmul.mubr.f32.gmra.mrb[20].mxu1 %v8154_v63  ;;  %2777 = vmatmul.mubr.f32.gmra.mrb[24].mxu0 %v8154_v63  ;;  %v1535_v1 = vld [vmem:[#allocation8 + $0x1650] sm:$0xff]  ;;  %v6310_v51 = vpack.c.bf16 %v1516_v37, %v1507_v47  ;;  %v1560_v47 = vld [vmem:[#allocation8 + $0x1718] sm:$0xff]  ;;  %v1569_v37 = vld [vmem:[#allocation8 + $0x1760] sm:$0xff] }
 0x1ea   :  { %6007 = vmatpush1.bf16.msra.mxu1 %v6006_v2  ;;  %6295 = vmatpush1.bf16.msra.mxu0 %v6294_v4  ;;  %v8178_v2 = vmax.f32 %v591_v20, 0.0  ;;  %v6014_v4 = vpack.c.bf16 %v1478_v32, %v1469_v34  ;;  %v1515_v20 = vld [vmem:[#allocation8 + $0x15b0] sm:$0xff]  ;;  %v1505_v34 = vld [vmem:[#allocation8 + $0x1560] sm:$0xff]  ;;  %v1514_v32 = vld [vmem:[#allocation8 + $0x15a8] sm:$0xff] }
 0x1eb   :  { %6009 = vmatprep.subr.bf16.mxu1 %v6008_v52  ;;  %6297 = vmatprep.subr.bf16.mxu0 %v6296_v54  ;;  %v1496_v52 = vld [vmem:[#allocation8 + $0x1518] sm:$0xff]  ;;  %v8184_v54 = vpop.f32.mrb[14].mxu1  ;;  %v6022_v22 = vpack.c.bf16 %v1514_v32, %v1505_v34 }
 0x1ec   :  { %8604 = vst [vmem:[#allocation25_spill] sm:$0xff] %v8178_v2  ;;  %2337 = vmatprep.mubr.f32.mxu1 %v8164_v60  ;;  %2782 = vmatprep.mubr.f32.mxu0 %v8164_v60  ;;  %v8186_v41 = vpop.f32.mrb[15].mxu1 }
 0x1ed   :  { %2338 = vmatmul.mubr.f32.gmra.mrb[22].mxu1 %v8170_v21  ;;  %2783 = vmatmul.mubr.f32.gmra.mrb[26].mxu0 %v8170_v21  ;;  %v597_v21 = vadd.f32 %v8100_v61, %v8152_v62  ;;  %v1724_v61 = vld [vmem:[#allocation8 + $0x1c38] sm:$0xff] }
 0x1ee   :  { %6011 = vmatpush1.bf16.msra.mxu1 %v6010_v27  ;;  %6299 = vmatpush1.bf16.msra.mxu0 %v6298_v30  ;;  %v6018_v27 = vpack.c.bf16 %v1496_v52, %v1487_v42  ;;  %v6306_v30 = vpack.c.bf16 %v1498_v15, %v1489_v11  ;;  %v6024_v42 = vpack.c.bf16 %v1533_v45, %v1524_v48  ;;  %v1542_v11 = vld [vmem:[#allocation8 + $0x1688] sm:$0xff]  ;;  %v1553_v15 = vld [vmem:[#allocation8 + $0x16e0] sm:$0xff]  ;;  %v1571_v45 = vld [vmem:[#allocation8 + $0x1770] sm:$0xff] }
 0x1ef   :  { %6013 = vmatprep.subr.bf16.mxu1 %v6012_v39  ;;  %6301 = vmatprep.subr.bf16.mxu0 %v6300_v40  ;;  %v6020_v39 = vpack.c.bf16 %v1515_v20, %v1506_v8  ;;  %v6308_v40 = vpack.c.bf16 %v1517_v29, %v1508_v18  ;;  %v6312_v52 = vpack.c.bf16 %v1535_v1, %v1526_v25  ;;  %v1551_v29 = vld [vmem:[#allocation8 + $0x16d0] sm:$0xff]  ;;  %v1544_v18 = vld [vmem:[#allocation8 + $0x1698] sm:$0xff]  ;;  %v1562_v48 = vld [vmem:[#allocation8 + $0x1728] sm:$0xff] }
 0x1f0   :  { %2408 = vmatprep.mubr.f32.mxu1 %v8178_v2  ;;  %2853 = vmatprep.mubr.f32.mxu0 %v8178_v2  ;;  %v6028_v34 = vpack.c.bf16 %v1551_v29, %v1542_v11  ;;  %v6316_v32 = vpack.c.bf16 %v1553_v15, %v1544_v18  ;;  %v1580_v11 = vld [vmem:[#allocation8 + $0x17b8] sm:$0xff]  ;;  %v1589_v29 = vld [vmem:[#allocation8 + $0x1800] sm:$0xff] }
 0x1f1   :  { %v1697_v2 = vld [vmem:[#allocation8 + $0x1b60] sm:$0xff] }
 0x1f2   :  { %6015 = vmatpush1.bf16.msra.mxu1 %v6014_v4  ;;  %6303 = vmatpush1.bf16.msra.mxu0 %v6302_v5  ;;  %v1523_v4 = vld [vmem:[#allocation8 + $0x15f0] sm:$0xff]  ;;  %v1532_v5 = vld [vmem:[#allocation8 + $0x1638] sm:$0xff] }
 0x1f3   :  { %6017 = vmatprep.subr.bf16.mxu1 %v6016_v9  ;;  %6305 = vmatprep.subr.bf16.mxu0 %v6304_v13  ;;  %v1525_v9 = vld [vmem:[#allocation8 + $0x1600] sm:$0xff]  ;;  %v1534_v13 = vld [vmem:[#allocation8 + $0x1648] sm:$0xff]  ;;  %v6026_v8 = vpack.c.bf16 %v1532_v5, %v1523_v4  ;;  %v6032_v4 = vpack.c.bf16 %v1569_v37, %v1560_v47  ;;  %v6320_v5 = vpack.c.bf16 %v1571_v45, %v1562_v48  ;;  %v1607_v45 = vld [vmem:[#allocation8 + $0x1890] sm:$0xff] }
 0x1f4   :  { %v6314_v20 = vpack.c.bf16 %v1534_v13, %v1525_v9  ;;  %v1578_v9 = vld [vmem:[#allocation8 + $0x17a8] sm:$0xff]  ;;  %v1587_v13 = vld [vmem:[#allocation8 + $0x17f0] sm:$0xff]  ;;  %v1605_v37 = vld [vmem:[#allocation8 + $0x1880] sm:$0xff] }
 0x1f5   :  { %v1598_v48 = vld [vmem:[#allocation8 + $0x1848] sm:$0xff] }
 0x1f6   :  { %6019 = vmatpush1.bf16.msra.mxu1 %v6018_v27  ;;  %6307 = vmatpush1.bf16.msra.mxu0 %v6306_v30  ;;  %v1541_v27 = vld [vmem:[#allocation8 + $0x1680] sm:$0xff]  ;;  %v1550_v30 = vld [vmem:[#allocation8 + $0x16c8] sm:$0xff] }
 0x1f7   :  { %6021 = vmatprep.subr.bf16.mxu1 %v6020_v39  ;;  %6309 = vmatprep.subr.bf16.mxu0 %v6308_v40  ;;  %v1543_v39 = vld [vmem:[#allocation8 + $0x1690] sm:$0xff]  ;;  %v1552_v40 = vld [vmem:[#allocation8 + $0x16d8] sm:$0xff]  ;;  %v6030_v25 = vpack.c.bf16 %v1550_v30, %v1541_v27  ;;  %v8190_v27 = vpop.f32.mrb[18].mxu0  ;;  %v6036_v30 = vpack.c.bf16 %v1587_v13, %v1578_v9  ;;  %v1614_v9 = vld [vmem:[#allocation8 + $0x18c8] sm:$0xff] }
 0x1f8   :  { %v6318_v1 = vpack.c.bf16 %v1552_v40, %v1543_v39  ;;  %v1588_v39 = vld [vmem:[#allocation8 + $0x17f8] sm:$0xff]  ;;  %v8192_v47 = vpop.f32.mrb[19].mxu0  ;;  %v1623_v13 = vld [vmem:[#allocation8 + $0x1910] sm:$0xff] }
 0x1f9   :  { %v1596_v40 = vld [vmem:[#allocation8 + $0x1838] sm:$0xff] }
 0x1fa   :  { %6023 = vmatpush1.bf16.msra.mxu1 %v6022_v22  ;;  %6311 = vmatpush1.bf16.msra.mxu0 %v6310_v51  ;;  %v1559_v22 = vld [vmem:[#allocation8 + $0x1710] sm:$0xff]  ;;  %v1568_v51 = vld [vmem:[#allocation8 + $0x1758] sm:$0xff] }
 0x1fb   :  { %6025 = vmatprep.subr.bf16.mxu1 %v6024_v42  ;;  %6313 = vmatprep.subr.bf16.mxu0 %v6312_v52  ;;  %v1561_v42 = vld [vmem:[#allocation8 + $0x1720] sm:$0xff]  ;;  %v1570_v52 = vld [vmem:[#allocation8 + $0x1768] sm:$0xff]  ;;  %v6034_v18 = vpack.c.bf16 %v1568_v51, %v1559_v22  ;;  %v1595_v22 = vld [vmem:[#allocation8 + $0x1830] sm:$0xff] }
 0x1fc   :  { %v6322_v15 = vpack.c.bf16 %v1570_v52, %v1561_v42  ;;  %v1604_v51 = vld [vmem:[#allocation8 + $0x1878] sm:$0xff]  ;;  %v1597_v42 = vld [vmem:[#allocation8 + $0x1840] sm:$0xff]  ;;  %v1606_v52 = vld [vmem:[#allocation8 + $0x1888] sm:$0xff] }
 0x1fd   :  { %v6042_v53 = vpack.c.bf16 %v1604_v51, %v1595_v22  ;;  %v6330_v0 = vpack.c.bf16 %v1606_v52, %v1597_v42  ;;  %v1650_v42 = vld [vmem:[#allocation8 + $0x19e8] sm:$0xff]  ;;  %v1659_v52 = vld [vmem:[#allocation8 + $0x1a30] sm:$0xff] }
 0x1fe   :  { %6027 = vmatpush1.bf16.msra.mxu1 %v6026_v8  ;;  %6315 = vmatpush1.bf16.msra.mxu0 %v6314_v20  ;;  %v1577_v8 = vld [vmem:[#allocation8 + $0x17a0] sm:$0xff]  ;;  %v1586_v20 = vld [vmem:[#allocation8 + $0x17e8] sm:$0xff] }
 0x1ff   :  { %6029 = vmatprep.subr.bf16.mxu1 %v6028_v34  ;;  %6317 = vmatprep.subr.bf16.mxu0 %v6316_v32  ;;  %v6324_v34 = vpack.c.bf16 %v1589_v29, %v1580_v11  ;;  %v1579_v32 = vld [vmem:[#allocation8 + $0x17b0] sm:$0xff]  ;;  %v1616_v11 = vld [vmem:[#allocation8 + $0x18d8] sm:$0xff]  ;;  %v1625_v29 = vld [vmem:[#allocation8 + $0x1920] sm:$0xff] }
 0x202   :  { %6031 = vmatpush1.bf16.msra.mxu1 %v6030_v25  ;;  %6319 = vmatpush1.bf16.msra.mxu0 %v6318_v1  ;;  %v6038_v25 = vpack.c.bf16 %v1586_v20, %v1577_v8  ;;  %v6326_v1 = vpack.c.bf16 %v1588_v39, %v1579_v32  ;;  %v6044_v8 = vpack.c.bf16 %v1623_v13, %v1614_v9  ;;  %v1632_v32 = vld [vmem:[#allocation8 + $0x1958] sm:$0xff]  ;;  %v1641_v39 = vld [vmem:[#allocation8 + $0x19a0] sm:$0xff] }
 0x203   :  { %6033 = vmatprep.subr.bf16.mxu1 %v6032_v4  ;;  %6321 = vmatprep.subr.bf16.mxu0 %v6320_v5  ;;  %v6040_v4 = vpack.c.bf16 %v1605_v37, %v1596_v40  ;;  %v6328_v5 = vpack.c.bf16 %v1607_v45, %v1598_v48  ;;  %v6332_v20 = vpack.c.bf16 %v1625_v29, %v1616_v11  ;;  %v1634_v40 = vld [vmem:[#allocation8 + $0x1968] sm:$0xff]  ;;  %v1643_v37 = vld [vmem:[#allocation8 + $0x19b0] sm:$0xff]  ;;  %v1652_v9 = vld [vmem:[#allocation8 + $0x19f8] sm:$0xff]  ;;  %v8598_v11 = vsub.s32 4, %v8013_v50 }
 0x204   :  { %v6048_v22 = vpack.c.bf16 %v1641_v39, %v1632_v32  ;;  %v6336_v51 = vpack.c.bf16 %v1643_v37, %v1634_v40  ;;  %v1661_v13 = vld [vmem:[#allocation8 + $0x1a40] sm:$0xff]  ;;  %v1670_v39 = vld [vmem:[#allocation8 + $0x1a88] sm:$0xff]  ;;  %v1679_v40 = vld [vmem:[#allocation8 + $0x1ad0] sm:$0xff] }
 0x205   :  { %v1649_v29 = vld [vmem:[#allocation8 + $0x19e0] sm:$0xff]  ;;  %v8195_v37 = vld [vmem:[#allocation7] sm:$0xff] }
 0x206   :  { %6035 = vmatpush1.bf16.msra.mxu1 %v6034_v18  ;;  %6323 = vmatpush1.bf16.msra.mxu0 %v6322_v15  ;;  %v1613_v18 = vld [vmem:[#allocation8 + $0x18c0] sm:$0xff]  ;;  %v1622_v15 = vld [vmem:[#allocation8 + $0x1908] sm:$0xff] }
 0x207   :  { %6037 = vmatprep.subr.bf16.mxu1 %v6036_v30  ;;  %6325 = vmatprep.subr.bf16.mxu0 %v6324_v34  ;;  %v1615_v30 = vld [vmem:[#allocation8 + $0x18d0] sm:$0xff]  ;;  %v1624_v34 = vld [vmem:[#allocation8 + $0x1918] sm:$0xff]  ;;  %v6046_v48 = vpack.c.bf16 %v1622_v15, %v1613_v18  ;;  %v1658_v18 = vld [vmem:[#allocation8 + $0x1a28] sm:$0xff]  ;;  %v6052_v15 = vpack.c.bf16 %v1659_v52, %v1650_v42 }
 0x208   :  { %v6334_v45 = vpack.c.bf16 %v1624_v34, %v1615_v30  ;;  %v1660_v30 = vld [vmem:[#allocation8 + $0x1a38] sm:$0xff]  ;;  %v1677_v32 = vld [vmem:[#allocation8 + $0x1ac0] sm:$0xff]  ;;  %v1678_v42 = vld [vmem:[#allocation8 + $0x1ac8] sm:$0xff] }
 0x209   :  { %v1668_v34 = vld [vmem:[#allocation8 + $0x1a78] sm:$0xff]  ;;  %v1686_v52 = vld [vmem:[#allocation8 + $0x1b08] sm:$0xff] }
 0x20a   :  { %6039 = vmatpush1.bf16.msra.mxu1 %v6038_v25  ;;  %6327 = vmatpush1.bf16.msra.mxu0 %v6326_v1  ;;  %v1631_v25 = vld [vmem:[#allocation8 + $0x1950] sm:$0xff]  ;;  %v1640_v1 = vld [vmem:[#allocation8 + $0x1998] sm:$0xff] }
 0x20b   :  { %6041 = vmatprep.subr.bf16.mxu1 %v6040_v4  ;;  %6329 = vmatprep.subr.bf16.mxu0 %v6328_v5  ;;  %v1633_v4 = vld [vmem:[#allocation8 + $0x1960] sm:$0xff]  ;;  %v1642_v5 = vld [vmem:[#allocation8 + $0x19a8] sm:$0xff] }
 0x20e   :  { %6043 = vmatpush1.bf16.msra.mxu1 %v6042_v53  ;;  %6331 = vmatpush1.bf16.msra.mxu0 %v6330_v0  ;;  %v6050_v53 = vpack.c.bf16 %v1640_v1, %v1631_v25  ;;  %v6338_v0 = vpack.c.bf16 %v1642_v5, %v1633_v4  ;;  %v1667_v1 = vld [vmem:[#allocation8 + $0x1a70] sm:$0xff]  ;;  %v6344_v4 = vpack.c.bf16 %v1679_v40, %v1670_v39  ;;  %v1669_v5 = vld [vmem:[#allocation8 + $0x1a80] sm:$0xff]  ;;  %v1706_v39 = vld [vmem:[#allocation8 + $0x1ba8] sm:$0xff] }
 0x20f   :  { %6045 = vmatprep.subr.bf16.mxu1 %v6044_v8  ;;  %6333 = vmatprep.subr.bf16.mxu0 %v6332_v20  ;;  %v6340_v8 = vpack.c.bf16 %v1661_v13, %v1652_v9  ;;  %v1651_v20 = vld [vmem:[#allocation8 + $0x19f0] sm:$0xff]  ;;  %v1688_v13 = vld [vmem:[#allocation8 + $0x1b18] sm:$0xff] }
 0x210   :  { %v6342_v25 = vpack.c.bf16 %v1660_v30, %v1651_v20  ;;  %v1695_v9 = vld [vmem:[#allocation8 + $0x1b50] sm:$0xff]  ;;  %v1696_v30 = vld [vmem:[#allocation8 + $0x1b58] sm:$0xff] }
 0x211   :  { %v1687_v20 = vld [vmem:[#allocation8 + $0x1b10] sm:$0xff] }
 0x212   :  { %6047 = vmatpush1.bf16.msra.mxu1 %v6046_v48  ;;  %6335 = vmatpush1.bf16.msra.mxu0 %v6334_v45  ;;  %v8200_v48 = vrot.slane %v8195_v37, %v8598_v11  ;;  %v6054_v45 = vpack.c.bf16 %v1658_v18, %v1649_v29  ;;  %v1685_v29 = vld [vmem:[#allocation8 + $0x1b00] sm:$0xff]  ;;  %v1694_v18 = vld [vmem:[#allocation8 + $0x1b48] sm:$0xff]  ;;  %v1715_v40 = vld [vmem:[#allocation8 + $0x1bf0] sm:$0xff] }
 0x213   :  { %6049 = vmatprep.subr.bf16.mxu1 %v6048_v22  ;;  %6337 = vmatprep.subr.bf16.mxu0 %v6336_v51  ;;  %v1676_v22 = vld [vmem:[#allocation8 + $0x1ab8] sm:$0xff]  ;;  %v6056_v51 = vpack.c.bf16 %v1677_v32, %v1668_v34  ;;  %v1713_v32 = vld [vmem:[#allocation8 + $0x1be0] sm:$0xff] }
 0x214   :  { %v589_v11 = vadd.f32 %v8094_v33, %v8200_v48  ;;  %v1704_v34 = vld [vmem:[#allocation8 + $0x1b98] sm:$0xff] }
 0x216   :  { %6051 = vmatpush1.bf16.msra.mxu1 %v6050_v53  ;;  %6339 = vmatpush1.bf16.msra.mxu0 %v6338_v0  ;;  %v6058_v53 = vpack.c.bf16 %v1676_v22, %v1667_v1  ;;  %v6346_v0 = vpack.c.bf16 %v1678_v42, %v1669_v5  ;;  %v8206_v33 = vmax.f32 %v589_v11, 0.0  ;;  %v6350_v1 = vpack.c.bf16 %v1696_v30, %v1687_v20  ;;  %v1703_v22 = vld [vmem:[#allocation8 + $0x1b90] sm:$0xff]  ;;  %v1705_v5 = vld [vmem:[#allocation8 + $0x1ba0] sm:$0xff]  ;;  %v1714_v42 = vld [vmem:[#allocation8 + $0x1be8] sm:$0xff] }
 0x217   :  { %6053 = vmatprep.subr.bf16.mxu1 %v6052_v15  ;;  %6341 = vmatprep.subr.bf16.mxu0 %v6340_v8  ;;  %v6060_v15 = vpack.c.bf16 %v1695_v9, %v1686_v52  ;;  %v6348_v8 = vpack.c.bf16 %v1697_v2, %v1688_v13  ;;  %v1712_v2 = vld [vmem:[#allocation8 + $0x1bd8] sm:$0xff]  ;;  %v1722_v52 = vld [vmem:[#allocation8 + $0x1c28] sm:$0xff]  ;;  %v1731_v9 = vld [vmem:[#allocation8 + $0x1c70] sm:$0xff]  ;;  %v8210_v13 = vmax.f32 %v597_v21, 0.0 }
 0x218   :  { %v1733_v11 = vld [vmem:[#allocation8 + $0x1c80] sm:$0xff]  ;;  %v1723_v30 = vld [vmem:[#allocation8 + $0x1c30] sm:$0xff] }
 0x219   :  { %v1721_v21 = vld [vmem:[#allocation8 + $0x1c20] sm:$0xff]  ;;  %v6356_v20 = vpack.c.bf16 %v1733_v11, %v1724_v61  ;;  %v1758_v61 = vld [vmem:[#allocation8 + $0x1d48] sm:$0xff]  ;;  %v1767_v11 = vld [vmem:[#allocation8 + $0x1d90] sm:$0xff] }
 0x21a   :  { %6055 = vmatpush1.bf16.msra.mxu1 %v6054_v45  ;;  %6343 = vmatpush1.bf16.msra.mxu0 %v6342_v25  ;;  %v595_v45 = vadd.f32 %v8098_v58, %v8200_v48  ;;  %v6062_v25 = vpack.c.bf16 %v1694_v18, %v1685_v29  ;;  %v603_v58 = vadd.f32 %v8104_v17, %v8152_v62 }
 0x21b   :  { %6057 = vmatprep.subr.bf16.mxu1 %v6056_v51  ;;  %6345 = vmatprep.subr.bf16.mxu0 %v6344_v4  ;;  %v6064_v51 = vpack.c.bf16 %v1713_v32, %v1704_v34  ;;  %v6352_v4 = vpack.c.bf16 %v1715_v40, %v1706_v39  ;;  %v601_v29 = vadd.f32 %v8102_v55, %v8200_v48  ;;  %v1732_v34 = vld [vmem:[#allocation8 + $0x1c78] sm:$0xff]  ;;  %v1749_v39 = vld [vmem:[#allocation8 + $0x1d00] sm:$0xff]  ;;  %v1742_v40 = vld [vmem:[#allocation8 + $0x1cc8] sm:$0xff] }
 0x21c   :  { %v6066_v18 = vpack.c.bf16 %v1712_v2, %v1703_v22  ;;  %v6068_v17 = vpack.c.bf16 %v1731_v9, %v1722_v52  ;;  %v1740_v32 = vld [vmem:[#allocation8 + $0x1cb8] sm:$0xff]  ;;  %v609_v55 = vadd.f32 %v8112_v46, %v8152_v62  ;;  %v607_v2 = vadd.f32 %v8108_v36, %v8200_v48  ;;  %v1741_v52 = vld [vmem:[#allocation8 + $0x1cc0] sm:$0xff]  ;;  %v1750_v9 = vld [vmem:[#allocation8 + $0x1d08] sm:$0xff] }
 0x21d   :  { %v8232_v22 = vmax.f32 %v601_v29, 0.0  ;;  %v1748_v46 = vld [vmem:[#allocation8 + $0x1cf8] sm:$0xff]  ;;  %v6072_v62 = vpack.c.bf16 %v1749_v39, %v1740_v32  ;;  %v1769_v29 = vld [vmem:[#allocation8 + $0x1da0] sm:$0xff] }
 0x21e   :  { %6059 = vmatpush1.bf16.msra.mxu1 %v6058_v53  ;;  %6347 = vmatpush1.bf16.msra.mxu0 %v6346_v0  ;;  %v8217_v0 = vmax.f32 %v595_v45, 0.0  ;;  %v1751_v45 = vld [vmem:[#allocation8 + $0x1d10] sm:$0xff]  ;;  %v8221_v53 = vmax.f32 %v603_v58, 0.0  ;;  %v1760_v58 = vld [vmem:[#allocation8 + $0x1d58] sm:$0xff]  ;;  %v8244_v48 = vmax.f32 %v607_v2, 0.0  ;;  %v1785_v39 = vld [vmem:[#allocation8 + $0x1e20] sm:$0xff] }
 0x21f   :  { %6061 = vmatprep.subr.bf16.mxu1 %v6060_v15  ;;  %6349 = vmatprep.subr.bf16.mxu0 %v6348_v8  ;;  %v6354_v15 = vpack.c.bf16 %v1714_v42, %v1705_v5  ;;  %v1730_v8 = vld [vmem:[#allocation8 + $0x1c68] sm:$0xff]  ;;  %v1739_v5 = vld [vmem:[#allocation8 + $0x1cb0] sm:$0xff]  ;;  %v6360_v42 = vpack.c.bf16 %v1751_v45, %v1742_v40  ;;  %v1776_v32 = vld [vmem:[#allocation8 + $0x1dd8] sm:$0xff] }
 0x220   :  { %8606 = vst [vmem:[#allocation26_spill] sm:$0xff] %v8244_v48  ;;  %v1778_v40 = vld [vmem:[#allocation8 + $0x1de8] sm:$0xff]  ;;  %v1787_v45 = vld [vmem:[#allocation8 + $0x1e30] sm:$0xff] }
 0x221   :  { %2409 = vmatmul.mubr.f32.vlgmr.msra.gmra.mrb[16].mxu1 %v8206_v33  ;;  %2854 = vmatmul.mubr.f32.vlgmr.msra.gmra.mrb[20].mxu0 %v8206_v33 }
 0x222   :  { %6063 = vmatpush1.bf16.msra.mxu1 %v6062_v25  ;;  %6351 = vmatpush1.bf16.msra.mxu0 %v6350_v1  ;;  %v8605_v25 = vsub.s32 7, %v8013_v50 }
 0x223   :  { %6065 = vmatprep.subr.bf16.mxu1 %v6064_v51  ;;  %6353 = vmatprep.subr.bf16.mxu0 %v6352_v4  ;;  %v6070_v51 = vpack.c.bf16 %v1730_v8, %v1721_v21  ;;  %v6358_v4 = vpack.c.bf16 %v1732_v34, %v1723_v30  ;;  %v1757_v21 = vld [vmem:[#allocation8 + $0x1d40] sm:$0xff]  ;;  %v1766_v8 = vld [vmem:[#allocation8 + $0x1d88] sm:$0xff]  ;;  %v1759_v30 = vld [vmem:[#allocation8 + $0x1d50] sm:$0xff] }
 0x224   :  { %2414 = vmatprep.mubr.f32.mxu1 %v8210_v13  ;;  %2859 = vmatprep.mubr.f32.mxu0 %v8210_v13  ;;  %v8230_v1 = vrot.slane %v8195_v37, %v8605_v25  ;;  %v8238_v25 = vmax.f32 %v609_v55, 0.0  ;;  %v1768_v34 = vld [vmem:[#allocation8 + $0x1d98] sm:$0xff]  ;;  %v6078_v55 = vpack.c.bf16 %v1766_v8, %v1757_v21  ;;  %v1795_v8 = vld [vmem:[#allocation8 + $0x1e70] sm:$0xff] }
 0x225   :  { %2415 = vmatmul.mubr.f32.gmra.mrb[18].mxu1 %v8217_v0  ;;  %2860 = vmatmul.mubr.f32.gmra.mrb[22].mxu0 %v8217_v0  ;;  %v6366_v2 = vpack.c.bf16 %v1768_v34, %v1759_v30  ;;  %v1821_v30 = vld [vmem:[#allocation8 + $0x1f40] sm:$0xff]  ;;  %v1814_v34 = vld [vmem:[#allocation8 + $0x1f08] sm:$0xff] }
 0x226   :  { %6067 = vmatpush1.bf16.msra.mxu1 %v6066_v18  ;;  %6355 = vmatpush1.bf16.msra.mxu0 %v6354_v15  ;;  %v680_v36 = vadd.f32 %v8110_v38, %v8230_v1  ;;  %v6074_v18 = vpack.c.bf16 %v1748_v46, %v1739_v5  ;;  %v6362_v15 = vpack.c.bf16 %v1750_v9, %v1741_v52  ;;  %v1794_v52 = vld [vmem:[#allocation8 + $0x1e68] sm:$0xff]  ;;  %v1803_v9 = vld [vmem:[#allocation8 + $0x1eb0] sm:$0xff] }
 0x227   :  { %6069 = vmatprep.subr.bf16.mxu1 %v6068_v17  ;;  %6357 = vmatprep.subr.bf16.mxu0 %v6356_v20  ;;  %v6076_v17 = vpack.c.bf16 %v1767_v11, %v1758_v61  ;;  %v6364_v20 = vpack.c.bf16 %v1769_v29, %v1760_v58  ;;  %v6080_v5 = vpack.c.bf16 %v1785_v39, %v1776_v32  ;;  %v1796_v61 = vld [vmem:[#allocation8 + $0x1e78] sm:$0xff]  ;;  %v1805_v11 = vld [vmem:[#allocation8 + $0x1ec0] sm:$0xff]  ;;  %v1823_v32 = vld [vmem:[#allocation8 + $0x1f50] sm:$0xff] }
 0x228   :  { %2420 = vmatprep.mubr.f32.mxu1 %v8221_v53  ;;  %2865 = vmatprep.mubr.f32.mxu0 %v8221_v53  ;;  %v8248_v38 = vmax.f32 %v680_v36, 0.0  ;;  %v6368_v46 = vpack.c.bf16 %v1787_v45, %v1778_v40  ;;  %v1793_v36 = vld [vmem:[#allocation8 + $0x1e60] sm:$0xff]  ;;  %v6372_v21 = vpack.c.bf16 %v1805_v11, %v1796_v61  ;;  %v1811_v45 = vld [vmem:[#allocation8 + $0x1ef0] sm:$0xff] }
 0x229   :  { %2421 = vmatmul.mubr.f32.gmra.mrb[20].mxu1 %v8232_v22  ;;  %2866 = vmatmul.mubr.f32.gmra.mrb[24].mxu0 %v8232_v22  ;;  %v1829_v11 = vld [vmem:[#allocation8 + $0x1f80] sm:$0xff] }
 0x22a   :  { %6071 = vmatpush1.bf16.msra.mxu1 %v6070_v51  ;;  %6359 = vmatpush1.bf16.msra.mxu0 %v6358_v4  ;;  %v1775_v51 = vld [vmem:[#allocation8 + $0x1dd0] sm:$0xff]  ;;  %v1784_v4 = vld [vmem:[#allocation8 + $0x1e18] sm:$0xff] }
 0x22b   :  { %6073 = vmatprep.subr.bf16.mxu1 %v6072_v62  ;;  %6361 = vmatprep.subr.bf16.mxu0 %v6360_v42  ;;  %v1777_v62 = vld [vmem:[#allocation8 + $0x1de0] sm:$0xff]  ;;  %v1786_v42 = vld [vmem:[#allocation8 + $0x1e28] sm:$0xff]  ;;  %v6082_v58 = vpack.c.bf16 %v1784_v4, %v1775_v51  ;;  %v6376_v51 = vpack.c.bf16 %v1823_v32, %v1814_v34  ;;  %v1847_v32 = vld [vmem:[#allocation8 + $0x2010] sm:$0xff] }
 0x22c   :  { %2426 = vmatprep.mubr.f32.mxu1 %v8238_v25  ;;  %2871 = vmatprep.mubr.f32.mxu0 %v8238_v25  ;;  %v6370_v29 = vpack.c.bf16 %v1786_v42, %v1777_v62  ;;  %v1813_v4 = vld [vmem:[#allocation8 + $0x1f00] sm:$0xff]  ;;  %v1839_v62 = vld [vmem:[#allocation8 + $0x1fd0] sm:$0xff]  ;;  %v1832_v42 = vld [vmem:[#allocation8 + $0x1f98] sm:$0xff] }
 0x22d   :  { %2427 = vmatmul.mubr.f32.gmra.mrb[22].mxu1 %v8244_v48  ;;  %2872 = vmatmul.mubr.f32.gmra.mrb[26].mxu0 %v8244_v48 }
 0x22e   :  { %6075 = vmatpush1.bf16.msra.mxu1 %v6074_v18  ;;  %6363 = vmatpush1.bf16.msra.mxu0 %v6362_v15  ;;  %v1802_v18 = vld [vmem:[#allocation8 + $0x1ea8] sm:$0xff]  ;;  %v6084_v15 = vpack.c.bf16 %v1803_v9, %v1794_v52  ;;  %v1841_v52 = vld [vmem:[#allocation8 + $0x1fe0] sm:$0xff] }
 0x22f   :  { %6077 = vmatprep.subr.bf16.mxu1 %v6076_v17  ;;  %6365 = vmatprep.subr.bf16.mxu0 %v6364_v20  ;;  %v1804_v17 = vld [vmem:[#allocation8 + $0x1eb8] sm:$0xff]  ;;  %v6086_v39 = vpack.c.bf16 %v1802_v18, %v1793_v36  ;;  %v6380_v36 = vpack.c.bf16 %v1841_v52, %v1832_v42  ;;  %v1831_v18 = vld [vmem:[#allocation8 + $0x1f90] sm:$0xff]  ;;  %v1865_v52 = vld [vmem:[#allocation8 + $0x20a0] sm:$0xff] }
 0x230   :  { %2497 = vmatprep.mubr.f32.mxu1 %v8248_v38  ;;  %2942 = vmatprep.mubr.f32.mxu0 %v8248_v38  ;;  %v1812_v20 = vld [vmem:[#allocation8 + $0x1ef8] sm:$0xff]  ;;  %v6374_v40 = vpack.c.bf16 %v1804_v17, %v1795_v8  ;;  %v1857_v8 = vld [vmem:[#allocation8 + $0x2060] sm:$0xff]  ;;  %v1850_v17 = vld [vmem:[#allocation8 + $0x2028] sm:$0xff] }
 0x232   :  { %6079 = vmatpush1.bf16.msra.mxu1 %v6078_v55  ;;  %6367 = vmatpush1.bf16.msra.mxu0 %v6366_v2  ;;  %v1820_v55 = vld [vmem:[#allocation8 + $0x1f38] sm:$0xff]  ;;  %v6088_v2 = vpack.c.bf16 %v1821_v30, %v1812_v20  ;;  %v1859_v20 = vld [vmem:[#allocation8 + $0x2070] sm:$0xff] }
 0x233   :  { %6081 = vmatprep.subr.bf16.mxu1 %v6080_v5  ;;  %6369 = vmatprep.subr.bf16.mxu0 %v6368_v46  ;;  %v1822_v5 = vld [vmem:[#allocation8 + $0x1f48] sm:$0xff]  ;;  %v6090_v9 = vpack.c.bf16 %v1820_v55, %v1811_v45  ;;  %v6384_v45 = vpack.c.bf16 %v1859_v20, %v1850_v17  ;;  %v1849_v55 = vld [vmem:[#allocation8 + $0x2020] sm:$0xff]  ;;  %v1883_v20 = vld [vmem:[#allocation8 + $0x2130] sm:$0xff] }
 0x234   :  { %v1830_v46 = vld [vmem:[#allocation8 + $0x1f88] sm:$0xff]  ;;  %v6378_v61 = vpack.c.bf16 %v1822_v5, %v1813_v4  ;;  %v1875_v4 = vld [vmem:[#allocation8 + $0x20f0] sm:$0xff]  ;;  %v1868_v5 = vld [vmem:[#allocation8 + $0x20b8] sm:$0xff] }
 0x236   :  { %6083 = vmatpush1.bf16.msra.mxu1 %v6082_v58  ;;  %6371 = vmatpush1.bf16.msra.mxu0 %v6370_v29  ;;  %v1838_v58 = vld [vmem:[#allocation8 + $0x1fc8] sm:$0xff]  ;;  %v6092_v29 = vpack.c.bf16 %v1839_v62, %v1830_v46  ;;  %v1877_v46 = vld [vmem:[#allocation8 + $0x2100] sm:$0xff] }
 0x237   :  { %6085 = vmatprep.subr.bf16.mxu1 %v6084_v15  ;;  %6373 = vmatprep.subr.bf16.mxu0 %v6372_v21  ;;  %v1840_v15 = vld [vmem:[#allocation8 + $0x1fd8] sm:$0xff]  ;;  %v6094_v30 = vpack.c.bf16 %v1838_v58, %v1829_v11  ;;  %v6388_v11 = vpack.c.bf16 %v1877_v46, %v1868_v5  ;;  %v1867_v58 = vld [vmem:[#allocation8 + $0x20b0] sm:$0xff]  ;;  %v1901_v46 = vld [vmem:[#allocation8 + $0x21c0] sm:$0xff] }
 0x238   :  { %v1848_v21 = vld [vmem:[#allocation8 + $0x2018] sm:$0xff]  ;;  %v6382_v34 = vpack.c.bf16 %v1840_v15, %v1831_v18  ;;  %v1893_v18 = vld [vmem:[#allocation8 + $0x2180] sm:$0xff]  ;;  %v1886_v15 = vld [vmem:[#allocation8 + $0x2148] sm:$0xff] }
 0x23a   :  { %6087 = vmatpush1.bf16.msra.mxu1 %v6086_v39  ;;  %6375 = vmatpush1.bf16.msra.mxu0 %v6374_v40  ;;  %v1856_v39 = vld [vmem:[#allocation8 + $0x2058] sm:$0xff]  ;;  %v6096_v40 = vpack.c.bf16 %v1857_v8, %v1848_v21  ;;  %v1895_v21 = vld [vmem:[#allocation8 + $0x2190] sm:$0xff] }
 0x23b   :  { %6089 = vmatprep.subr.bf16.mxu1 %v6088_v2  ;;  %6377 = vmatprep.subr.bf16.mxu0 %v6376_v51  ;;  %v1858_v2 = vld [vmem:[#allocation8 + $0x2068] sm:$0xff]  ;;  %v6098_v62 = vpack.c.bf16 %v1856_v39, %v1847_v32  ;;  %v6392_v32 = vpack.c.bf16 %v1895_v21, %v1886_v15  ;;  %v1885_v39 = vld [vmem:[#allocation8 + $0x2140] sm:$0xff]  ;;  %v1919_v21 = vld [vmem:[#allocation8 + $0x2250] sm:$0xff] }
 0x23c   :  { %v1866_v51 = vld [vmem:[#allocation8 + $0x20a8] sm:$0xff]  ;;  %v6386_v42 = vpack.c.bf16 %v1858_v2, %v1849_v55  ;;  %v1911_v55 = vld [vmem:[#allocation8 + $0x2210] sm:$0xff]  ;;  %v1904_v2 = vld [vmem:[#allocation8 + $0x21d8] sm:$0xff] }
 0x23e   :  { %6091 = vmatpush1.bf16.msra.mxu1 %v6090_v9  ;;  %6379 = vmatpush1.bf16.msra.mxu0 %v6378_v61  ;;  %v1874_v9 = vld [vmem:[#allocation8 + $0x20e8] sm:$0xff]  ;;  %v6100_v61 = vpack.c.bf16 %v1875_v4, %v1866_v51  ;;  %v1913_v51 = vld [vmem:[#allocation8 + $0x2220] sm:$0xff] }
 0x23f   :  { %6093 = vmatprep.subr.bf16.mxu1 %v6092_v29  ;;  %6381 = vmatprep.subr.bf16.mxu0 %v6380_v36  ;;  %v1876_v29 = vld [vmem:[#allocation8 + $0x20f8] sm:$0xff]  ;;  %v6102_v8 = vpack.c.bf16 %v1874_v9, %v1865_v52  ;;  %v6396_v52 = vpack.c.bf16 %v1913_v51, %v1904_v2  ;;  %v1903_v9 = vld [vmem:[#allocation8 + $0x21d0] sm:$0xff]  ;;  %v1937_v51 = vld [vmem:[#allocation8 + $0x22e0] sm:$0xff] }
 0x240   :  { %v1884_v36 = vld [vmem:[#allocation8 + $0x2138] sm:$0xff]  ;;  %v6390_v17 = vpack.c.bf16 %v1876_v29, %v1867_v58  ;;  %v1929_v58 = vld [vmem:[#allocation8 + $0x22a0] sm:$0xff]  ;;  %v1922_v29 = vld [vmem:[#allocation8 + $0x2268] sm:$0xff] }
 0x242   :  { %6095 = vmatpush1.bf16.msra.mxu1 %v6094_v30  ;;  %6383 = vmatpush1.bf16.msra.mxu0 %v6382_v34  ;;  %v1892_v30 = vld [vmem:[#allocation8 + $0x2178] sm:$0xff]  ;;  %v6104_v34 = vpack.c.bf16 %v1893_v18, %v1884_v36  ;;  %v1931_v36 = vld [vmem:[#allocation8 + $0x22b0] sm:$0xff] }
 0x243   :  { %6097 = vmatprep.subr.bf16.mxu1 %v6096_v40  ;;  %6385 = vmatprep.subr.bf16.mxu0 %v6384_v45  ;;  %v1894_v40 = vld [vmem:[#allocation8 + $0x2188] sm:$0xff]  ;;  %v6106_v4 = vpack.c.bf16 %v1892_v30, %v1883_v20  ;;  %v6400_v20 = vpack.c.bf16 %v1931_v36, %v1922_v29  ;;  %v1921_v30 = vld [vmem:[#allocation8 + $0x2260] sm:$0xff] }
 0x244   :  { %v1902_v45 = vld [vmem:[#allocation8 + $0x21c8] sm:$0xff]  ;;  %v6394_v5 = vpack.c.bf16 %v1894_v40, %v1885_v39  ;;  %v1947_v39 = vld [vmem:[#allocation8 + $0x2330] sm:$0xff]  ;;  %v1940_v40 = vld [vmem:[#allocation8 + $0x22f8] sm:$0xff] }
 0x246   :  { %6099 = vmatpush1.bf16.msra.mxu1 %v6098_v62  ;;  %6387 = vmatpush1.bf16.msra.mxu0 %v6386_v42  ;;  %v1910_v62 = vld [vmem:[#allocation8 + $0x2208] sm:$0xff]  ;;  %v6108_v42 = vpack.c.bf16 %v1911_v55, %v1902_v45  ;;  %v1949_v45 = vld [vmem:[#allocation8 + $0x2340] sm:$0xff] }
 0x247   :  { %6101 = vmatprep.subr.bf16.mxu1 %v6100_v61  ;;  %6389 = vmatprep.subr.bf16.mxu0 %v6388_v11  ;;  %v1912_v61 = vld [vmem:[#allocation8 + $0x2218] sm:$0xff]  ;;  %v6110_v18 = vpack.c.bf16 %v1910_v62, %v1901_v46  ;;  %v6404_v62 = vpack.c.bf16 %v1949_v45, %v1940_v40  ;;  %v1985_v40 = vld [vmem:[#allocation8 + $0x2460] sm:$0xff] }
 0x248   :  { %v1920_v11 = vld [vmem:[#allocation8 + $0x2258] sm:$0xff]  ;;  %v6398_v15 = vpack.c.bf16 %v1912_v61, %v1903_v9  ;;  %v1965_v61 = vld [vmem:[#allocation8 + $0x23c0] sm:$0xff] }
 0x249   :  { %v1956_v9 = vld [vmem:[#allocation8 + $0x2378] sm:$0xff] }
 0x24a   :  { %6103 = vmatpush1.bf16.msra.mxu1 %v6102_v8  ;;  %6391 = vmatpush1.bf16.msra.mxu0 %v6390_v17  ;;  %v1928_v8 = vld [vmem:[#allocation8 + $0x2298] sm:$0xff]  ;;  %v6112_v17 = vpack.c.bf16 %v1929_v58, %v1920_v11  ;;  %v1958_v11 = vld [vmem:[#allocation8 + $0x2388] sm:$0xff]  ;;  %v1967_v58 = vld [vmem:[#allocation8 + $0x23d0] sm:$0xff] }
 0x24b   :  { %6105 = vmatprep.subr.bf16.mxu1 %v6104_v34  ;;  %6393 = vmatprep.subr.bf16.mxu0 %v6392_v32  ;;  %v1930_v34 = vld [vmem:[#allocation8 + $0x22a8] sm:$0xff]  ;;  %v6114_v55 = vpack.c.bf16 %v1928_v8, %v1919_v21  ;;  %v6120_v8 = vpack.c.bf16 %v1965_v61, %v1956_v9  ;;  %v2001_v9 = vld [vmem:[#allocation8 + $0x24e0] sm:$0xff] }
 0x24c   :  { %v1938_v32 = vld [vmem:[#allocation8 + $0x22e8] sm:$0xff]  ;;  %v6402_v2 = vpack.c.bf16 %v1930_v34, %v1921_v30 }
 0x24d   :  { %v6116_v46 = vpack.c.bf16 %v1947_v39, %v1938_v32  ;;  %v1966_v30 = vld [vmem:[#allocation8 + $0x23c8] sm:$0xff]  ;;  %v1983_v32 = vld [vmem:[#allocation8 + $0x2450] sm:$0xff]  ;;  %v1976_v39 = vld [vmem:[#allocation8 + $0x2418] sm:$0xff] }
 0x24e   :  { %6107 = vmatpush1.bf16.msra.mxu1 %v6106_v4  ;;  %6395 = vmatpush1.bf16.msra.mxu0 %v6394_v5  ;;  %v1946_v4 = vld [vmem:[#allocation8 + $0x2328] sm:$0xff]  ;;  %v8601_v5 = vsub.s32 6, %v8013_v50 }
 0x24f   :  { %6109 = vmatprep.subr.bf16.mxu1 %v6108_v42  ;;  %6397 = vmatprep.subr.bf16.mxu0 %v6396_v52  ;;  %v1939_v42 = vld [vmem:[#allocation8 + $0x22f0] sm:$0xff]  ;;  %v1948_v52 = vld [vmem:[#allocation8 + $0x2338] sm:$0xff]  ;;  %v6118_v29 = vpack.c.bf16 %v1946_v4, %v1937_v51  ;;  %v1974_v34 = vld [vmem:[#allocation8 + $0x2408] sm:$0xff] }
 0x250   :  { %v6406_v36 = vpack.c.bf16 %v1948_v52, %v1939_v42  ;;  %v8260_v21 = vrot.slane %v8195_v37, %v8601_v5  ;;  %v1982_v51 = vld [vmem:[#allocation8 + $0x2448] sm:$0xff]  ;;  %v6124_v4 = vpack.c.bf16 %v1983_v32, %v1974_v34  ;;  %v1984_v42 = vld [vmem:[#allocation8 + $0x2458] sm:$0xff]  ;;  %v1825_v5 = vld [vmem:[#allocation8 + $0x1f60] sm:$0xff] }
 0x251   :  { %v1992_v52 = vld [vmem:[#allocation8 + $0x2498] sm:$0xff]  ;;  %v1994_v61 = vld [vmem:[#allocation8 + $0x24a8] sm:$0xff] }
 0x252   :  { %6111 = vmatpush1.bf16.msra.mxu1 %v6110_v18  ;;  %6399 = vmatpush1.bf16.msra.mxu0 %v6398_v15  ;;  %v1955_v18 = vld [vmem:[#allocation8 + $0x2370] sm:$0xff]  ;;  %v1964_v15 = vld [vmem:[#allocation8 + $0x23b8] sm:$0xff]  ;;  %v678_v37 = vadd.f32 %v8106_v26, %v8260_v21  ;;  %v2002_v34 = vld [vmem:[#allocation8 + $0x24e8] sm:$0xff] }
 0x253   :  { %6113 = vmatprep.subr.bf16.mxu1 %v6112_v17  ;;  %6401 = vmatprep.subr.bf16.mxu0 %v6400_v20  ;;  %v6408_v17 = vpack.c.bf16 %v1967_v58, %v1958_v11  ;;  %v1957_v20 = vld [vmem:[#allocation8 + $0x2380] sm:$0xff]  ;;  %v6122_v45 = vpack.c.bf16 %v1964_v15, %v1955_v18  ;;  %v2003_v11 = vld [vmem:[#allocation8 + $0x24f0] sm:$0xff]  ;;  %v686_v58 = vadd.f32 %v8162_v14, %v8230_v1  ;;  %v2000_v15 = vld [vmem:[#allocation8 + $0x24d8] sm:$0xff] }
 0x254   :  { %v1991_v18 = vld [vmem:[#allocation8 + $0x2490] sm:$0xff]  ;;  %v2010_v32 = vld [vmem:[#allocation8 + $0x2528] sm:$0xff] }
 0x255   :  { %v2019_v14 = vld [vmem:[#allocation8 + $0x2570] sm:$0xff] }
 0x256   :  { %6115 = vmatpush1.bf16.msra.mxu1 %v6114_v55  ;;  %6403 = vmatpush1.bf16.msra.mxu0 %v6402_v2  ;;  %v6410_v55 = vpack.c.bf16 %v1966_v30, %v1957_v20  ;;  %v1973_v2 = vld [vmem:[#allocation8 + $0x2400] sm:$0xff]  ;;  %v6416_v20 = vpack.c.bf16 %v2003_v11, %v1994_v61 }
 0x257   :  { %6117 = vmatprep.subr.bf16.mxu1 %v6116_v46  ;;  %6405 = vmatprep.subr.bf16.mxu0 %v6404_v62  ;;  %v6412_v46 = vpack.c.bf16 %v1985_v40, %v1976_v39  ;;  %v1975_v62 = vld [vmem:[#allocation8 + $0x2410] sm:$0xff]  ;;  %v1993_v30 = vld [vmem:[#allocation8 + $0x24a0] sm:$0xff]  ;;  %v8270_v39 = vmax.f32 %v686_v58, 0.0  ;;  %v2012_v40 = vld [vmem:[#allocation8 + $0x2538] sm:$0xff] }
 0x258   :  { %v6414_v26 = vpack.c.bf16 %v1984_v42, %v1975_v62  ;;  %v6132_v62 = vpack.c.bf16 %v2019_v14, %v2010_v32  ;;  %v2037_v11 = vld [vmem:[#allocation8 + $0x2600] sm:$0xff]  ;;  %v2039_v58 = vld [vmem:[#allocation8 + $0x2610] sm:$0xff]  ;;  %v2046_v32 = vld [vmem:[#allocation8 + $0x2648] sm:$0xff] }
 0x25a   :  { %6119 = vmatpush1.bf16.msra.mxu1 %v6118_v29  ;;  %6407 = vmatpush1.bf16.msra.mxu0 %v6406_v36  ;;  %v684_v29 = vadd.f32 %v8160_v57, %v8260_v21  ;;  %v6126_v36 = vpack.c.bf16 %v1982_v51, %v1973_v2  ;;  %v2021_v57 = vld [vmem:[#allocation8 + $0x2580] sm:$0xff]  ;;  %v690_v2 = vadd.f32 %v8174_v35, %v8260_v21  ;;  %v2030_v35 = vld [vmem:[#allocation8 + $0x25c8] sm:$0xff] }
 0x25b   :  { %6121 = vmatprep.subr.bf16.mxu1 %v6120_v8  ;;  %6409 = vmatprep.subr.bf16.mxu0 %v6408_v17  ;;  %v8268_v8 = vmax.f32 %v678_v37, 0.0  ;;  %v6128_v17 = vpack.c.bf16 %v2001_v9, %v1992_v52  ;;  %v6130_v51 = vpack.c.bf16 %v2000_v15, %v1991_v18  ;;  %v6418_v37 = vpack.c.bf16 %v2002_v34, %v1993_v30  ;;  %v2020_v52 = vld [vmem:[#allocation8 + $0x2578] sm:$0xff] }
 0x25c   :  { %v6420_v42 = vpack.c.bf16 %v2021_v57, %v2012_v40  ;;  %v2028_v9 = vld [vmem:[#allocation8 + $0x25b8] sm:$0xff]  ;;  %v6424_v34 = vpack.c.bf16 %v2039_v58, %v2030_v35  ;;  %v2055_v40 = vld [vmem:[#allocation8 + $0x2690] sm:$0xff] }
 0x25d   :  { %v6136_v30 = vpack.c.bf16 %v2037_v11, %v2028_v9  ;;  %v2066_v9 = vld [vmem:[#allocation8 + $0x26e8] sm:$0xff]  ;;  %v2075_v11 = vld [vmem:[#allocation8 + $0x2730] sm:$0xff] }
 0x25e   :  { %6123 = vmatpush1.bf16.msra.mxu1 %v6122_v45  ;;  %6411 = vmatpush1.bf16.msra.mxu0 %v6410_v55  ;;  %v692_v45 = vadd.f32 %v8176_v56, %v8230_v1  ;;  %v8276_v55 = vmax.f32 %v684_v29, 0.0  ;;  %v2011_v56 = vld [vmem:[#allocation8 + $0x2530] sm:$0xff]  ;;  %v698_v29 = vadd.f32 %v8186_v41, %v8230_v1  ;;  %v2029_v41 = vld [vmem:[#allocation8 + $0x25c0] sm:$0xff]  ;;  %v2038_v1 = vld [vmem:[#allocation8 + $0x2608] sm:$0xff] }
 0x25f   :  { %6125 = vmatprep.subr.bf16.mxu1 %v6124_v4  ;;  %6413 = vmatprep.subr.bf16.mxu0 %v6412_v46  ;;  %v2009_v4 = vld [vmem:[#allocation8 + $0x2520] sm:$0xff]  ;;  %v2018_v46 = vld [vmem:[#allocation8 + $0x2568] sm:$0xff]  ;;  %v6422_v15 = vpack.c.bf16 %v2020_v52, %v2011_v56  ;;  %v2064_v56 = vld [vmem:[#allocation8 + $0x26d8] sm:$0xff] }
 0x260   :  { %v8280_v61 = vmax.f32 %v692_v45, 0.0  ;;  %v6134_v18 = vpack.c.bf16 %v2018_v46, %v2009_v4  ;;  %v8292_v14 = vmax.f32 %v698_v29, 0.0  ;;  %v6140_v4 = vpack.c.bf16 %v2055_v40, %v2046_v32  ;;  %v2073_v52 = vld [vmem:[#allocation8 + $0x2720] sm:$0xff]  ;;  %v2063_v29 = vld [vmem:[#allocation8 + $0x26d0] sm:$0xff] }
 0x261   :  { %2498 = vmatmul.mubr.f32.vlgmr.msra.gmra.mrb[16].mxu1 %v8268_v8  ;;  %2943 = vmatmul.mubr.f32.vlgmr.msra.gmra.mrb[20].mxu0 %v8268_v8  ;;  %v8607_v32 = vmov 0.0  }
 0x262   :  { %6127 = vmatpush1.bf16.msra.mxu1 %v6126_v36  ;;  %6415 = vmatpush1.bf16.msra.mxu0 %v6414_v26  ;;  %v8286_v36 = vmax.f32 %v690_v2, 0.0  ;;  %v696_v26 = vadd.f32 %v8184_v54, %v8260_v21  ;;  %v2048_v54 = vld [vmem:[#allocation8 + $0x2658] sm:$0xff]  ;;  %v2057_v21 = vld [vmem:[#allocation8 + $0x26a0] sm:$0xff]  ;;  %v6426_v2 = vpack.c.bf16 %v2038_v1, %v2029_v41 }
 0x263   :  { %6129 = vmatprep.subr.bf16.mxu1 %v6128_v17  ;;  %6417 = vmatprep.subr.bf16.mxu0 %v6416_v20  ;;  %v2027_v17 = vld [vmem:[#allocation8 + $0x25b0] sm:$0xff]  ;;  %v2036_v20 = vld [vmem:[#allocation8 + $0x25f8] sm:$0xff]  ;;  %v6428_v46 = vpack.c.bf16 %v2057_v21, %v2048_v54  ;;  %v2093_v1 = vld [vmem:[#allocation8 + $0x27c0] sm:$0xff] }
 0x264   :  { %2503 = vmatprep.mubr.f32.mxu1 %v8270_v39  ;;  %2948 = vmatprep.mubr.f32.mxu0 %v8270_v39  ;;  %v8296_v57 = vmax.f32 %v696_v26, 0.0  ;;  %v6138_v45 = vpack.c.bf16 %v2036_v20, %v2027_v17  ;;  %v2072_v26 = vld [vmem:[#allocation8 + $0x2718] sm:$0xff]  ;;  %v2065_v17 = vld [vmem:[#allocation8 + $0x26e0] sm:$0xff]  ;;  %v2074_v20 = vld [vmem:[#allocation8 + $0x2728] sm:$0xff] }
 0x265   :  { %2504 = vmatmul.mubr.f32.gmra.mrb[18].mxu1 %v8276_v55  ;;  %2949 = vmatmul.mubr.f32.gmra.mrb[22].mxu0 %v8276_v55  ;;  %v2084_v41 = vld [vmem:[#allocation8 + $0x2778] sm:$0xff]  ;;  %v6146_v40 = vpack.c.bf16 %v2072_v26, %v2063_v29  ;;  %v6434_v54 = vpack.c.bf16 %v2074_v20, %v2065_v17  ;;  %v2081_v21 = vld [vmem:[#allocation8 + $0x2760] sm:$0xff]  ;;  %v826_v17 = vld [vmem:[#allocation8 + $0x28] sm:$0xff] }
 0x266   :  { %6131 = vmatpush1.bf16.msra.mxu1 %v6130_v51  ;;  %6419 = vmatpush1.bf16.msra.mxu0 %v6418_v37  ;;  %v2045_v51 = vld [vmem:[#allocation8 + $0x2640] sm:$0xff]  ;;  %v2054_v37 = vld [vmem:[#allocation8 + $0x2688] sm:$0xff]  ;;  %v835_v20 = vld [vmem:[#allocation8 + $0x70] sm:$0xff] }
 0x267   :  { %6133 = vmatprep.subr.bf16.mxu1 %v6132_v62  ;;  %6421 = vmatprep.subr.bf16.mxu0 %v6420_v42  ;;  %v2047_v62 = vld [vmem:[#allocation8 + $0x2650] sm:$0xff]  ;;  %v2056_v42 = vld [vmem:[#allocation8 + $0x2698] sm:$0xff]  ;;  %v6142_v35 = vpack.c.bf16 %v2054_v37, %v2045_v51  ;;  %v6436_v51 = vpack.c.bf16 %v2093_v1, %v2084_v41 }
 0x268   :  { %2509 = vmatprep.mubr.f32.mxu1 %v8280_v61  ;;  %2954 = vmatprep.mubr.f32.mxu0 %v8280_v61  ;;  %v6430_v58 = vpack.c.bf16 %v2056_v42, %v2047_v62  ;;  %v2083_v37 = vld [vmem:[#allocation8 + $0x2770] sm:$0xff]  ;;  %v2109_v62 = vld [vmem:[#allocation8 + $0x2840] sm:$0xff]  ;;  %v2102_v42 = vld [vmem:[#allocation8 + $0x2808] sm:$0xff] }
 0x269   :  { %2510 = vmatmul.mubr.f32.gmra.mrb[20].mxu1 %v8286_v36  ;;  %2955 = vmatmul.mubr.f32.gmra.mrb[24].mxu0 %v8286_v36 }
 0x26a   :  { %6135 = vmatpush1.bf16.msra.mxu1 %v6134_v18  ;;  %6423 = vmatpush1.bf16.msra.mxu0 %v6422_v15  ;;  %v6144_v18 = vpack.c.bf16 %v2073_v52, %v2064_v56  ;;  %v6432_v15 = vpack.c.bf16 %v2075_v11, %v2066_v9  ;;  %v2111_v56 = vld [vmem:[#allocation8 + $0x2850] sm:$0xff]  ;;  %v8306_v52 = vld [vmem:[#allocation7 + $0x8] ss:$0 sm:$0xff] }
 0x26b   :  { %6137 = vmatprep.subr.bf16.mxu1 %v6136_v30  ;;  %6425 = vmatprep.subr.bf16.mxu0 %v6424_v34  ;;  %v2082_v30 = vld [vmem:[#allocation8 + $0x2768] sm:$0xff]  ;;  %v2091_v34 = vld [vmem:[#allocation8 + $0x27b0] sm:$0xff]  ;;  %v6440_v26 = vpack.c.bf16 %v2111_v56, %v2102_v42 }
 0x26c   :  { %2515 = vmatprep.mubr.f32.mxu1 %v8292_v14  ;;  %2960 = vmatprep.mubr.f32.mxu0 %v8292_v14  ;;  %v855_v42 = vld [vmem:[#allocation8 + $0x110] sm:$0xff] }
 0x26d   :  { %2516 = vmatmul.mubr.f32.gmra.mrb[22].mxu1 %v8296_v57  ;;  %2961 = vmatmul.mubr.f32.gmra.mrb[26].mxu0 %v8296_v57 }
 0x26e   :  { %6139 = vmatpush1.bf16.msra.mxu1 %v6138_v45  ;;  %6427 = vmatpush1.bf16.msra.mxu0 %v6426_v2  ;;  %v2090_v45 = vld [vmem:[#allocation8 + $0x27a8] sm:$0xff]  ;;  %v6148_v2 = vpack.c.bf16 %v2091_v34, %v2082_v30  ;;  %v828_v30 = vld [vmem:[#allocation8 + $0x38] sm:$0xff]  ;;  %v837_v34 = vld [vmem:[#allocation8 + $0x80] sm:$0xff] }
 0x26f   :  { %6141 = vmatprep.subr.bf16.mxu1 %v6140_v4  ;;  %6429 = vmatprep.subr.bf16.mxu0 %v6428_v46  ;;  %v2092_v4 = vld [vmem:[#allocation8 + $0x27b8] sm:$0xff]  ;;  %v6150_v9 = vpack.c.bf16 %v2090_v45, %v2081_v21  ;;  %v6444_v21 = vpack.c.bf16 %v835_v20, %v826_v17  ;;  %v6732_v45 = vpack.c.bf16 %v837_v34, %v828_v30  ;;  %v862_v17 = vld [vmem:[#allocation8 + $0x148] sm:$0xff]  ;;  %v871_v30 = vld [vmem:[#allocation8 + $0x190] sm:$0xff] }
 0x270   :  { %2586 = vmatprep.mubr.f32.mxu1 %v8607_v32  ;;  %3031 = vmatprep.mubr.f32.mxu0 %v8607_v32  ;;  %v2100_v46 = vld [vmem:[#allocation8 + $0x27f8] sm:$0xff]  ;;  %v6438_v11 = vpack.c.bf16 %v2092_v4, %v2083_v37  ;;  %v777_v20 = vadd.f32 %v8306_v52, %v8192_v47  ;;  %v6452_v47 = vpack.c.bf16 %v871_v30, %v862_v17  ;;  %v898_v17 = vld [vmem:[#allocation8 + $0x268] sm:$0xff] }
 0x271   :  { %v6152_v29 = vpack.c.bf16 %v2109_v62, %v2100_v46  ;;  %v836_v37 = vld [vmem:[#allocation8 + $0x78] sm:$0xff]  ;;  %v853_v46 = vld [vmem:[#allocation8 + $0x100] sm:$0xff]  ;;  %v846_v62 = vld [vmem:[#allocation8 + $0xc8] sm:$0xff] }
 0x272   :  { %6143 = vmatpush1.bf16.msra.mxu1 %v6142_v35  ;;  %6431 = vmatpush1.bf16.msra.mxu0 %v6430_v58  ;;  %v2099_v35 = vld [vmem:[#allocation8 + $0x27f0] sm:$0xff]  ;;  %v2108_v58 = vld [vmem:[#allocation8 + $0x2838] sm:$0xff] }
 0x273   :  { %6145 = vmatprep.subr.bf16.mxu1 %v6144_v18  ;;  %6433 = vmatprep.subr.bf16.mxu0 %v6432_v15  ;;  %v2101_v18 = vld [vmem:[#allocation8 + $0x2800] sm:$0xff]  ;;  %v2110_v15 = vld [vmem:[#allocation8 + $0x2848] sm:$0xff]  ;;  %v6154_v41 = vpack.c.bf16 %v2108_v58, %v2099_v35  ;;  %v844_v4 = vld [vmem:[#allocation8 + $0xb8] sm:$0xff]  ;;  %v772_v35 = vadd.f32 %v8122_v44, %v8306_v52 }
 0x274   :  { %v6442_v1 = vpack.c.bf16 %v2110_v15, %v2101_v18  ;;  %v852_v58 = vld [vmem:[#allocation8 + $0xf8] sm:$0xff]  ;;  %v6448_v18 = vpack.c.bf16 %v853_v46, %v844_v4  ;;  %v6736_v15 = vpack.c.bf16 %v855_v42, %v846_v62  ;;  %v873_v44 = vld [vmem:[#allocation8 + $0x1a0] sm:$0xff]  ;;  %v8322_v4 = vmax.f32 %v777_v20, 0.0  ;;  %v882_v62 = vld [vmem:[#allocation8 + $0x1e8] sm:$0xff] }
 0x275   :  { %v864_v34 = vld [vmem:[#allocation8 + $0x158] sm:$0xff]  ;;  %v889_v46 = vld [vmem:[#allocation8 + $0x220] sm:$0xff]  ;;  %v891_v42 = vld [vmem:[#allocation8 + $0x230] sm:$0xff] }
 0x276   :  { %6147 = vmatpush1.bf16.msra.mxu1 %v6146_v40  ;;  %6435 = vmatpush1.bf16.msra.mxu0 %v6434_v54  ;;  %v825_v40 = vld [vmem:[#allocation8 + $0x20] sm:$0xff]  ;;  %v767_v54 = vadd.f32 %v8306_v52, %v8126_v31  ;;  %v907_v20 = vld [vmem:[#allocation8 + $0x2b0] sm:$0xff]  ;;  %v900_v30 = vld [vmem:[#allocation8 + $0x278] sm:$0xff] }
 0x277   :  { %6149 = vmatprep.subr.bf16.mxu1 %v6148_v2  ;;  %6437 = vmatprep.subr.bf16.mxu0 %v6436_v51  ;;  %v834_v2 = vld [vmem:[#allocation8 + $0x68] sm:$0xff]  ;;  %v827_v51 = vld [vmem:[#allocation8 + $0x30] sm:$0xff] }
 0x278   :  { %v6446_v56 = vpack.c.bf16 %v834_v2, %v825_v40  ;;  %v8312_v31 = vmax.f32 %v767_v54, 0.0  ;;  %v861_v40 = vld [vmem:[#allocation8 + $0x140] sm:$0xff]  ;;  %v8318_v54 = vmax.f32 %v772_v35, 0.0  ;;  %v872_v2 = vld [vmem:[#allocation8 + $0x198] sm:$0xff]  ;;  %v879_v35 = vld [vmem:[#allocation8 + $0x1d0] sm:$0xff] }
 0x27a   :  { %6151 = vmatpush1.bf16.msra.mxu1 %v6150_v9  ;;  %6439 = vmatpush1.bf16.msra.mxu0 %v6438_v11  ;;  %v6734_v9 = vpack.c.bf16 %v836_v37, %v827_v51  ;;  %v843_v11 = vld [vmem:[#allocation8 + $0xb0] sm:$0xff]  ;;  %v6740_v51 = vpack.c.bf16 %v873_v44, %v864_v34  ;;  %v880_v37 = vld [vmem:[#allocation8 + $0x1d8] sm:$0xff] }
 0x27b   :  { %6153 = vmatprep.subr.bf16.mxu1 %v6152_v29  ;;  %6441 = vmatprep.subr.bf16.mxu0 %v6440_v26  ;;  %v845_v29 = vld [vmem:[#allocation8 + $0xc0] sm:$0xff]  ;;  %v854_v26 = vld [vmem:[#allocation8 + $0x108] sm:$0xff] }
 0x27e   :  { %6155 = vmatpush1.bf16.msra.mxu1 %v6154_v41  ;;  %6443 = vmatpush1.bf16.msra.mxu0 %v6442_v1  ;;  %v6450_v41 = vpack.c.bf16 %v852_v58, %v843_v11  ;;  %v6738_v1 = vpack.c.bf16 %v854_v26, %v845_v29  ;;  %v782_v11 = vadd.f32 %v8190_v27, %v8306_v52  ;;  %v888_v58 = vld [vmem:[#allocation8 + $0x218] sm:$0xff]  ;;  %v909_v27 = vld [vmem:[#allocation8 + $0x2c0] sm:$0xff] }
 0x27f   :  { %6445 = vmatprep.subr.bf16.mxu1 %v6444_v21  ;;  %6733 = vmatprep.subr.bf16.mxu0 %v6732_v45  ;;  %v870_v21 = vld [vmem:[#allocation8 + $0x188] sm:$0xff]  ;;  %v863_v45 = vld [vmem:[#allocation8 + $0x150] sm:$0xff]  ;;  %v6456_v29 = vpack.c.bf16 %v889_v46, %v880_v37  ;;  %v6744_v26 = vpack.c.bf16 %v891_v42, %v882_v62  ;;  %v6458_v52 = vpack.c.bf16 %v888_v58, %v879_v35  ;;  %v917_v35 = vld [vmem:[#allocation8 + $0x300] sm:$0xff] }
 0x280   :  { %v8332_v34 = vmax.f32 %v782_v11, 0.0  ;;  %v918_v37 = vld [vmem:[#allocation8 + $0x308] sm:$0xff]  ;;  %v927_v46 = vld [vmem:[#allocation8 + $0x350] sm:$0xff]  ;;  %v924_v11 = vld [vmem:[#allocation8 + $0x338] sm:$0xff] }
 0x281   :  { %2587 = vmatmul.mubr.f32.vlgmr.msra.gmra.mrb[16].mxu1 %v8312_v31  ;;  %3032 = vmatmul.mubr.f32.vlgmr.msra.gmra.mrb[20].mxu0 %v8312_v31  ;;  %v6752_v58 = vpack.c.bf16 %v927_v46, %v918_v37 }
 0x282   :  { %6447 = vmatpush1.bf16.msra.mxu1 %v6446_v56  ;;  %6735 = vmatpush1.bf16.msra.mxu0 %v6734_v9  ;;  %v6454_v56 = vpack.c.bf16 %v870_v21, %v861_v40  ;;  %v6742_v9 = vpack.c.bf16 %v872_v2, %v863_v45  ;;  %v899_v40 = vld [vmem:[#allocation8 + $0x270] sm:$0xff]  ;;  %v6460_v21 = vpack.c.bf16 %v907_v20, %v898_v17  ;;  %v908_v2 = vld [vmem:[#allocation8 + $0x2b8] sm:$0xff]  ;;  %v945_v17 = vld [vmem:[#allocation8 + $0x3e0] sm:$0xff] }
 0x283   :  { %2592 = vmatprep.mubr.f32.mxu1 %v8607_v32  ;;  %3037 = vmatprep.mubr.f32.mxu0 %v8607_v32  ;;  %v6748_v45 = vpack.c.bf16 %v909_v27, %v900_v30  ;;  %v6750_v42 = vpack.c.bf16 %v908_v2, %v899_v40  ;;  %v944_v40 = vld [vmem:[#allocation8 + $0x3d8] sm:$0xff]  ;;  %v954_v2 = vld [vmem:[#allocation8 + $0x428] sm:$0xff] }
 0x284   :  { %6449 = vmatprep.subr.bf16.mxu1 %v6448_v18  ;;  %6737 = vmatprep.subr.bf16.mxu0 %v6736_v15  ;;  %v881_v18 = vld [vmem:[#allocation8 + $0x1e0] sm:$0xff]  ;;  %v890_v15 = vld [vmem:[#allocation8 + $0x228] sm:$0xff] }
 0x285   :  { %2593 = vmatmul.mubr.f32.gmra.mrb[18].mxu1 %v8318_v54  ;;  %3038 = vmatmul.mubr.f32.gmra.mrb[22].mxu0 %v8318_v54  ;;  %v6746_v44 = vpack.c.bf16 %v890_v15, %v881_v18  ;;  %v943_v18 = vld [vmem:[#allocation8 + $0x3d0] sm:$0xff]  ;;  %v936_v15 = vld [vmem:[#allocation8 + $0x398] sm:$0xff] }
 0x286   :  { %6451 = vmatpush1.bf16.msra.mxu1 %v6450_v41  ;;  %6739 = vmatpush1.bf16.msra.mxu0 %v6738_v1  ;;  %v897_v41 = vld [vmem:[#allocation8 + $0x260] sm:$0xff]  ;;  %v906_v1 = vld [vmem:[#allocation8 + $0x2a8] sm:$0xff] }
 0x287   :  { %2598 = vmatprep.mubr.f32.mxu1 %v8607_v32  ;;  %3043 = vmatprep.mubr.f32.mxu0 %v8607_v32  ;;  %v6462_v62 = vpack.c.bf16 %v906_v1, %v897_v41  ;;  %v935_v41 = vld [vmem:[#allocation8 + $0x390] sm:$0xff]  ;;  %v6756_v1 = vpack.c.bf16 %v945_v17, %v936_v15 }
 0x288   :  { %6453 = vmatprep.subr.bf16.mxu1 %v6452_v47  ;;  %6741 = vmatprep.subr.bf16.mxu0 %v6740_v51  ;;  %v916_v47 = vld [vmem:[#allocation8 + $0x2f8] sm:$0xff]  ;;  %v925_v51 = vld [vmem:[#allocation8 + $0x340] sm:$0xff]  ;;  %v6758_v37 = vpack.c.bf16 %v944_v40, %v935_v41  ;;  %v990_v40 = vld [vmem:[#allocation8 + $0x548] sm:$0xff] }
 0x289   :  { %2599 = vmatmul.mubr.f32.gmra.mrb[20].mxu1 %v8322_v4  ;;  %3044 = vmatmul.mubr.f32.gmra.mrb[24].mxu0 %v8322_v4  ;;  %v988_v41 = vld [vmem:[#allocation8 + $0x538] sm:$0xff] }
 0x28a   :  { %6455 = vmatpush1.bf16.msra.mxu1 %v6454_v56  ;;  %6743 = vmatpush1.bf16.msra.mxu0 %v6742_v9  ;;  %v6464_v56 = vpack.c.bf16 %v925_v51, %v916_v47  ;;  %v915_v9 = vld [vmem:[#allocation8 + $0x2f0] sm:$0xff] }
 0x28b   :  { %2604 = vmatprep.mubr.f32.mxu1 %v8607_v32  ;;  %3049 = vmatprep.mubr.f32.mxu0 %v8607_v32  ;;  %v6466_v20 = vpack.c.bf16 %v924_v11, %v915_v9  ;;  %v963_v47 = vld [vmem:[#allocation8 + $0x470] sm:$0xff]  ;;  %v962_v11 = vld [vmem:[#allocation8 + $0x468] sm:$0xff] }
 0x28c   :  { %6457 = vmatprep.subr.bf16.mxu1 %v6456_v29  ;;  %6745 = vmatprep.subr.bf16.mxu0 %v6744_v26  ;;  %v926_v29 = vld [vmem:[#allocation8 + $0x348] sm:$0xff]  ;;  %v6760_v9 = vpack.c.bf16 %v963_v47, %v954_v2 }
 0x28d   :  { %2605 = vmatmul.mubr.f32.gmra.mrb[22].mxu1 %v8332_v34  ;;  %3050 = vmatmul.mubr.f32.gmra.mrb[26].mxu0 %v8332_v34  ;;  %v934_v26 = vld [vmem:[#allocation8 + $0x388] sm:$0xff]  ;;  %v6754_v30 = vpack.c.bf16 %v926_v29, %v917_v35  ;;  %v972_v29 = vld [vmem:[#allocation8 + $0x4b8] sm:$0xff] }
 0x28e   :  { %6459 = vmatpush1.bf16.msra.mxu1 %v6458_v52  ;;  %3120 = vmatprep.mubr.f32.mxu1 %v8031_v3  ;;  %v6468_v27 = vpack.c.bf16 %v943_v18, %v934_v26  ;;  %v933_v52 = vld [vmem:[#allocation8 + $0x380] sm:$0xff]  ;;  %v970_v35 = vld [vmem:[#allocation8 + $0x4a8] sm:$0xff] }
 0x28f   :  { %6747 = vmatpush1.bf16.msra.mxu0 %v6746_v44  ;;  %3565 = vmatprep.mubr.f32.mxu0 %v8031_v3  ;;  %v942_v44 = vld [vmem:[#allocation8 + $0x3c8] sm:$0xff]  ;;  %v981_v26 = vld [vmem:[#allocation8 + $0x500] sm:$0xff] }
 0x290   :  { %6461 = vmatprep.subr.bf16.mxu1 %v6460_v21  ;;  %6749 = vmatprep.subr.bf16.mxu0 %v6748_v45  ;;  %v952_v21 = vld [vmem:[#allocation8 + $0x418] sm:$0xff]  ;;  %v961_v45 = vld [vmem:[#allocation8 + $0x460] sm:$0xff]  ;;  %v6470_v51 = vpack.c.bf16 %v942_v44, %v933_v52  ;;  %v6764_v52 = vpack.c.bf16 %v981_v26, %v972_v29 }
 0x291   :  { %v6472_v46 = vpack.c.bf16 %v961_v45, %v952_v21  ;;  %v980_v44 = vld [vmem:[#allocation8 + $0x4f8] sm:$0xff]  ;;  %v999_v21 = vld [vmem:[#allocation8 + $0x590] sm:$0xff] }
 0x292   :  { %6463 = vmatpush1.bf16.msra.mxu1 %v6462_v62  ;;  %v951_v62 = vld [vmem:[#allocation8 + $0x410] sm:$0xff] }
 0x293   :  { %6751 = vmatpush1.bf16.msra.mxu0 %v6750_v42  ;;  %6465 = vmatprep.subr.bf16.mxu1 %v6464_v56  ;;  %v960_v42 = vld [vmem:[#allocation8 + $0x458] sm:$0xff]  ;;  %v953_v56 = vld [vmem:[#allocation8 + $0x420] sm:$0xff] }
 0x294   :  { %6753 = vmatprep.subr.bf16.mxu0 %v6752_v58  ;;  %v979_v58 = vld [vmem:[#allocation8 + $0x4f0] sm:$0xff]  ;;  %v6474_v18 = vpack.c.bf16 %v960_v42, %v951_v62  ;;  %v6762_v15 = vpack.c.bf16 %v962_v11, %v953_v56  ;;  %v6768_v62 = vpack.c.bf16 %v999_v21, %v990_v40  ;;  %v998_v42 = vld [vmem:[#allocation8 + $0x588] sm:$0xff]  ;;  %v1008_v11 = vld [vmem:[#allocation8 + $0x5d8] sm:$0xff] }
 0x295   :  { %v6476_v17 = vpack.c.bf16 %v979_v58, %v970_v35  ;;  %v1006_v56 = vld [vmem:[#allocation8 + $0x5c8] sm:$0xff]  ;;  %v1017_v35 = vld [vmem:[#allocation8 + $0x620] sm:$0xff] }
 0x296   :  { %6467 = vmatpush1.bf16.msra.mxu1 %v6466_v20  ;;  %v969_v20 = vld [vmem:[#allocation8 + $0x4a0] sm:$0xff] }
 0x297   :  { %6755 = vmatpush1.bf16.msra.mxu0 %v6754_v30  ;;  %6469 = vmatprep.subr.bf16.mxu1 %v6468_v27  ;;  %v978_v30 = vld [vmem:[#allocation8 + $0x4e8] sm:$0xff]  ;;  %v971_v27 = vld [vmem:[#allocation8 + $0x4b0] sm:$0xff] }
 0x298   :  { %6757 = vmatprep.subr.bf16.mxu0 %v6756_v1  ;;  %v997_v1 = vld [vmem:[#allocation8 + $0x580] sm:$0xff]  ;;  %v6478_v45 = vpack.c.bf16 %v978_v30, %v969_v20  ;;  %v6766_v2 = vpack.c.bf16 %v980_v44, %v971_v27  ;;  %v6772_v20 = vpack.c.bf16 %v1017_v35, %v1008_v11  ;;  %v1016_v30 = vld [vmem:[#allocation8 + $0x618] sm:$0xff]  ;;  %v1026_v44 = vld [vmem:[#allocation8 + $0x668] sm:$0xff] }
 0x299   :  { %v6480_v47 = vpack.c.bf16 %v997_v1, %v988_v41  ;;  %v1024_v27 = vld [vmem:[#allocation8 + $0x658] sm:$0xff]  ;;  %v1035_v41 = vld [vmem:[#allocation8 + $0x6b0] sm:$0xff] }
 0x29a   :  { %6471 = vmatpush1.bf16.msra.mxu1 %v6470_v51  ;;  %v987_v51 = vld [vmem:[#allocation8 + $0x530] sm:$0xff] }
 0x29b   :  { %6759 = vmatpush1.bf16.msra.mxu0 %v6758_v37  ;;  %6473 = vmatprep.subr.bf16.mxu1 %v6472_v46  ;;  %v996_v37 = vld [vmem:[#allocation8 + $0x578] sm:$0xff]  ;;  %v989_v46 = vld [vmem:[#allocation8 + $0x540] sm:$0xff] }
 0x29c   :  { %6761 = vmatprep.subr.bf16.mxu0 %v6760_v9  ;;  %v1015_v9 = vld [vmem:[#allocation8 + $0x610] sm:$0xff]  ;;  %v6482_v58 = vpack.c.bf16 %v996_v37, %v987_v51  ;;  %v6770_v29 = vpack.c.bf16 %v998_v42, %v989_v46  ;;  %v6776_v51 = vpack.c.bf16 %v1035_v41, %v1026_v44  ;;  %v1034_v37 = vld [vmem:[#allocation8 + $0x6a8] sm:$0xff]  ;;  %v1044_v42 = vld [vmem:[#allocation8 + $0x6f8] sm:$0xff] }
 0x29d   :  { %v6484_v26 = vpack.c.bf16 %v1015_v9, %v1006_v56  ;;  %v1042_v46 = vld [vmem:[#allocation8 + $0x6e8] sm:$0xff]  ;;  %v1053_v56 = vld [vmem:[#allocation8 + $0x740] sm:$0xff] }
 0x29e   :  { %6475 = vmatpush1.bf16.msra.mxu1 %v6474_v18  ;;  %v1005_v18 = vld [vmem:[#allocation8 + $0x5c0] sm:$0xff] }
 0x29f   :  { %6763 = vmatpush1.bf16.msra.mxu0 %v6762_v15  ;;  %6477 = vmatprep.subr.bf16.mxu1 %v6476_v17  ;;  %v1014_v15 = vld [vmem:[#allocation8 + $0x608] sm:$0xff]  ;;  %v1007_v17 = vld [vmem:[#allocation8 + $0x5d0] sm:$0xff] }
 0x2a0   :  { %6765 = vmatprep.subr.bf16.mxu0 %v6764_v52  ;;  %v1033_v52 = vld [vmem:[#allocation8 + $0x6a0] sm:$0xff]  ;;  %v6486_v1 = vpack.c.bf16 %v1014_v15, %v1005_v18  ;;  %v6774_v40 = vpack.c.bf16 %v1016_v30, %v1007_v17  ;;  %v6780_v18 = vpack.c.bf16 %v1053_v56, %v1044_v42  ;;  %v1052_v15 = vld [vmem:[#allocation8 + $0x738] sm:$0xff]  ;;  %v1062_v30 = vld [vmem:[#allocation8 + $0x788] sm:$0xff] }
 0x2a1   :  { %v6488_v21 = vpack.c.bf16 %v1033_v52, %v1024_v27  ;;  %v1060_v17 = vld [vmem:[#allocation8 + $0x778] sm:$0xff]  ;;  %v1071_v27 = vld [vmem:[#allocation8 + $0x7d0] sm:$0xff] }
 0x2a2   :  { %6479 = vmatpush1.bf16.msra.mxu1 %v6478_v45  ;;  %v1023_v45 = vld [vmem:[#allocation8 + $0x650] sm:$0xff] }
 0x2a3   :  { %6767 = vmatpush1.bf16.msra.mxu0 %v6766_v2  ;;  %6481 = vmatprep.subr.bf16.mxu1 %v6480_v47  ;;  %v1032_v2 = vld [vmem:[#allocation8 + $0x698] sm:$0xff]  ;;  %v1025_v47 = vld [vmem:[#allocation8 + $0x660] sm:$0xff] }
 0x2a4   :  { %6769 = vmatprep.subr.bf16.mxu0 %v6768_v62  ;;  %v1051_v62 = vld [vmem:[#allocation8 + $0x730] sm:$0xff]  ;;  %v6490_v9 = vpack.c.bf16 %v1032_v2, %v1023_v45  ;;  %v6778_v11 = vpack.c.bf16 %v1034_v37, %v1025_v47  ;;  %v6784_v45 = vpack.c.bf16 %v1071_v27, %v1062_v30  ;;  %v1070_v2 = vld [vmem:[#allocation8 + $0x7c8] sm:$0xff]  ;;  %v1080_v37 = vld [vmem:[#allocation8 + $0x818] sm:$0xff] }
 0x2a5   :  { %v6492_v35 = vpack.c.bf16 %v1051_v62, %v1042_v46  ;;  %v1078_v47 = vld [vmem:[#allocation8 + $0x808] sm:$0xff]  ;;  %v1089_v46 = vld [vmem:[#allocation8 + $0x860] sm:$0xff] }
 0x2a6   :  { %6483 = vmatpush1.bf16.msra.mxu1 %v6482_v58  ;;  %v1041_v58 = vld [vmem:[#allocation8 + $0x6e0] sm:$0xff] }
 0x2a7   :  { %6771 = vmatpush1.bf16.msra.mxu0 %v6770_v29  ;;  %6485 = vmatprep.subr.bf16.mxu1 %v6484_v26  ;;  %v1050_v29 = vld [vmem:[#allocation8 + $0x728] sm:$0xff]  ;;  %v1043_v26 = vld [vmem:[#allocation8 + $0x6f0] sm:$0xff] }
 0x2a8   :  { %6773 = vmatprep.subr.bf16.mxu0 %v6772_v20  ;;  %v1069_v20 = vld [vmem:[#allocation8 + $0x7c0] sm:$0xff]  ;;  %v6494_v52 = vpack.c.bf16 %v1050_v29, %v1041_v58  ;;  %v6782_v44 = vpack.c.bf16 %v1052_v15, %v1043_v26  ;;  %v6788_v58 = vpack.c.bf16 %v1089_v46, %v1080_v37  ;;  %v1088_v29 = vld [vmem:[#allocation8 + $0x858] sm:$0xff]  ;;  %v1098_v15 = vld [vmem:[#allocation8 + $0x8a8] sm:$0xff] }
 0x2a9   :  { %v6496_v41 = vpack.c.bf16 %v1069_v20, %v1060_v17  ;;  %v1096_v26 = vld [vmem:[#allocation8 + $0x898] sm:$0xff]  ;;  %v1107_v17 = vld [vmem:[#allocation8 + $0x8f0] sm:$0xff] }
 0x2aa   :  { %6487 = vmatpush1.bf16.msra.mxu1 %v6486_v1  ;;  %v1059_v1 = vld [vmem:[#allocation8 + $0x770] sm:$0xff] }
 0x2ab   :  { %6775 = vmatpush1.bf16.msra.mxu0 %v6774_v40  ;;  %6489 = vmatprep.subr.bf16.mxu1 %v6488_v21  ;;  %v1068_v40 = vld [vmem:[#allocation8 + $0x7b8] sm:$0xff]  ;;  %v1061_v21 = vld [vmem:[#allocation8 + $0x780] sm:$0xff] }
 0x2ac   :  { %6777 = vmatprep.subr.bf16.mxu0 %v6776_v51  ;;  %v1087_v51 = vld [vmem:[#allocation8 + $0x850] sm:$0xff]  ;;  %v6498_v62 = vpack.c.bf16 %v1068_v40, %v1059_v1  ;;  %v6786_v42 = vpack.c.bf16 %v1070_v2, %v1061_v21  ;;  %v6792_v1 = vpack.c.bf16 %v1107_v17, %v1098_v15  ;;  %v1106_v40 = vld [vmem:[#allocation8 + $0x8e8] sm:$0xff]  ;;  %v1116_v2 = vld [vmem:[#allocation8 + $0x938] sm:$0xff] }
 0x2ad   :  { %v6500_v56 = vpack.c.bf16 %v1087_v51, %v1078_v47  ;;  %v1114_v21 = vld [vmem:[#allocation8 + $0x928] sm:$0xff]  ;;  %v1125_v47 = vld [vmem:[#allocation8 + $0x980] sm:$0xff] }
 0x2ae   :  { %6491 = vmatpush1.bf16.msra.mxu1 %v6490_v9  ;;  %v1077_v9 = vld [vmem:[#allocation8 + $0x800] sm:$0xff] }
 0x2af   :  { %6779 = vmatpush1.bf16.msra.mxu0 %v6778_v11  ;;  %6493 = vmatprep.subr.bf16.mxu1 %v6492_v35  ;;  %v1086_v11 = vld [vmem:[#allocation8 + $0x848] sm:$0xff]  ;;  %v1079_v35 = vld [vmem:[#allocation8 + $0x810] sm:$0xff] }
 0x2b0   :  { %6781 = vmatprep.subr.bf16.mxu0 %v6780_v18  ;;  %v1105_v18 = vld [vmem:[#allocation8 + $0x8e0] sm:$0xff]  ;;  %v6502_v20 = vpack.c.bf16 %v1086_v11, %v1077_v9  ;;  %v6790_v30 = vpack.c.bf16 %v1088_v29, %v1079_v35  ;;  %v1115_v9 = vld [vmem:[#allocation8 + $0x930] sm:$0xff]  ;;  %v1124_v11 = vld [vmem:[#allocation8 + $0x978] sm:$0xff] }
 0x2b1   :  { %v6504_v27 = vpack.c.bf16 %v1105_v18, %v1096_v26  ;;  %v1132_v35 = vld [vmem:[#allocation8 + $0x9b8] sm:$0xff]  ;;  %v1134_v29 = vld [vmem:[#allocation8 + $0x9c8] sm:$0xff]  ;;  %v1143_v26 = vld [vmem:[#allocation8 + $0xa10] sm:$0xff]  ;;  %v6798_v15 = vpack.c.bf16 %v1124_v11, %v1115_v9 }
 0x2b2   :  { %6495 = vmatpush1.bf16.msra.mxu1 %v6494_v52  ;;  %v1095_v52 = vld [vmem:[#allocation8 + $0x890] sm:$0xff]  ;;  %v1177_v9 = vld [vmem:[#allocation8 + $0xb20] sm:$0xff]  ;;  %v1170_v11 = vld [vmem:[#allocation8 + $0xae8] sm:$0xff] }
 0x2b3   :  { %6783 = vmatpush1.bf16.msra.mxu0 %v6782_v44  ;;  %6497 = vmatprep.subr.bf16.mxu1 %v6496_v41  ;;  %v1104_v44 = vld [vmem:[#allocation8 + $0x8d8] sm:$0xff]  ;;  %v1097_v41 = vld [vmem:[#allocation8 + $0x8a0] sm:$0xff] }
 0x2b4   :  { %6785 = vmatprep.subr.bf16.mxu0 %v6784_v45  ;;  %v1123_v45 = vld [vmem:[#allocation8 + $0x970] sm:$0xff]  ;;  %v6506_v51 = vpack.c.bf16 %v1104_v44, %v1095_v52  ;;  %v6794_v37 = vpack.c.bf16 %v1106_v40, %v1097_v41  ;;  %v6800_v52 = vpack.c.bf16 %v1143_v26, %v1134_v29  ;;  %v1142_v44 = vld [vmem:[#allocation8 + $0xa08] sm:$0xff]  ;;  %v1152_v40 = vld [vmem:[#allocation8 + $0xa58] sm:$0xff] }
 0x2b5   :  { %v6508_v46 = vpack.c.bf16 %v1123_v45, %v1114_v21  ;;  %v1150_v41 = vld [vmem:[#allocation8 + $0xa48] sm:$0xff]  ;;  %v1161_v21 = vld [vmem:[#allocation8 + $0xaa0] sm:$0xff] }
 0x2b6   :  { %6499 = vmatpush1.bf16.msra.mxu1 %v6498_v62  ;;  %v6796_v62 = vpack.c.bf16 %v1125_v47, %v1116_v2 }
 0x2b7   :  { %6787 = vmatpush1.bf16.msra.mxu0 %v6786_v42  ;;  %6501 = vmatprep.subr.bf16.mxu1 %v6500_v56  ;;  %v1113_v42 = vld [vmem:[#allocation8 + $0x920] sm:$0xff]  ;;  %v1122_v56 = vld [vmem:[#allocation8 + $0x968] sm:$0xff] }
 0x2b8   :  { %6789 = vmatprep.subr.bf16.mxu0 %v6788_v58  ;;  %v1141_v58 = vld [vmem:[#allocation8 + $0xa00] sm:$0xff]  ;;  %v6510_v18 = vpack.c.bf16 %v1122_v56, %v1113_v42  ;;  %v1160_v42 = vld [vmem:[#allocation8 + $0xa98] sm:$0xff] }
 0x2b9   :  { %v6512_v17 = vpack.c.bf16 %v1141_v58, %v1132_v35  ;;  %v1168_v56 = vld [vmem:[#allocation8 + $0xad8] sm:$0xff]  ;;  %v1179_v35 = vld [vmem:[#allocation8 + $0xb30] sm:$0xff] }
 0x2ba   :  { %6503 = vmatpush1.bf16.msra.mxu1 %v6502_v20  ;;  %v1131_v20 = vld [vmem:[#allocation8 + $0x9b0] sm:$0xff]  ;;  %v6520_v26 = vpack.c.bf16 %v1177_v9, %v1168_v56 }
 0x2bb   :  { %6791 = vmatpush1.bf16.msra.mxu0 %v6790_v30  ;;  %6505 = vmatprep.subr.bf16.mxu1 %v6504_v27  ;;  %v1140_v30 = vld [vmem:[#allocation8 + $0x9f8] sm:$0xff]  ;;  %v1133_v27 = vld [vmem:[#allocation8 + $0x9c0] sm:$0xff]  ;;  %v1215_v56 = vld [vmem:[#allocation8 + $0xc50] sm:$0xff] }
 0x2bc   :  { %6793 = vmatprep.subr.bf16.mxu0 %v6792_v1  ;;  %v1159_v1 = vld [vmem:[#allocation8 + $0xa90] sm:$0xff]  ;;  %v6514_v45 = vpack.c.bf16 %v1140_v30, %v1131_v20  ;;  %v6802_v2 = vpack.c.bf16 %v1142_v44, %v1133_v27  ;;  %v6808_v20 = vpack.c.bf16 %v1179_v35, %v1170_v11  ;;  %v1178_v30 = vld [vmem:[#allocation8 + $0xb28] sm:$0xff]  ;;  %v1188_v44 = vld [vmem:[#allocation8 + $0xb78] sm:$0xff] }
 0x2bd   :  { %v6516_v47 = vpack.c.bf16 %v1159_v1, %v1150_v41  ;;  %v1186_v27 = vld [vmem:[#allocation8 + $0xb68] sm:$0xff]  ;;  %v1197_v41 = vld [vmem:[#allocation8 + $0xbc0] sm:$0xff] }
 0x2be   :  { %6507 = vmatpush1.bf16.msra.mxu1 %v6506_v51  ;;  %v1149_v51 = vld [vmem:[#allocation8 + $0xa40] sm:$0xff] }
 0x2bf   :  { %6795 = vmatpush1.bf16.msra.mxu0 %v6794_v37  ;;  %6509 = vmatprep.subr.bf16.mxu1 %v6508_v46  ;;  %v1158_v37 = vld [vmem:[#allocation8 + $0xa88] sm:$0xff]  ;;  %v1151_v46 = vld [vmem:[#allocation8 + $0xa50] sm:$0xff] }
 0x2c0   :  { %6797 = vmatprep.subr.bf16.mxu0 %v6796_v62  ;;  %v6804_v62 = vpack.c.bf16 %v1161_v21, %v1152_v40  ;;  %v6518_v58 = vpack.c.bf16 %v1158_v37, %v1149_v51  ;;  %v6806_v29 = vpack.c.bf16 %v1160_v42, %v1151_v46  ;;  %v6812_v51 = vpack.c.bf16 %v1197_v41, %v1188_v44  ;;  %v1196_v37 = vld [vmem:[#allocation8 + $0xbb8] sm:$0xff]  ;;  %v1206_v42 = vld [vmem:[#allocation8 + $0xc08] sm:$0xff] }
 0x2c1   :  { %3121 = vmatmul.mubr.f32.vlgmr.msra.gmra.mrb[24].mxu1 %v8033_v10  ;;  %v1204_v46 = vld [vmem:[#allocation8 + $0xbf8] sm:$0xff] }
 0x2c2   :  { %3566 = vmatmul.mubr.f32.vlgmr.msra.gmra.mrb[28].mxu0 %v8033_v10  ;;  %3126 = vmatprep.mubr.f32.mxu1 %v8044_v28 }
 0x2c3   :  { %6511 = vmatpush1.bf16.msra.mxu1 %v6510_v18  ;;  %3571 = vmatprep.mubr.f32.mxu0 %v8044_v28  ;;  %v1167_v18 = vld [vmem:[#allocation8 + $0xad0] sm:$0xff] }
 0x2c4   :  { %6799 = vmatpush1.bf16.msra.mxu0 %v6798_v15  ;;  %6513 = vmatprep.subr.bf16.mxu1 %v6512_v17  ;;  %v1176_v15 = vld [vmem:[#allocation8 + $0xb18] sm:$0xff]  ;;  %v1169_v17 = vld [vmem:[#allocation8 + $0xae0] sm:$0xff] }
 0x2c5   :  { %3127 = vmatmul.mubr.f32.gmra.mrb[26].mxu1 %v8042_v23  ;;  %6801 = vmatprep.subr.bf16.mxu0 %v6800_v52  ;;  %v1195_v52 = vld [vmem:[#allocation8 + $0xbb0] sm:$0xff]  ;;  %v6522_v1 = vpack.c.bf16 %v1176_v15, %v1167_v18  ;;  %v6810_v40 = vpack.c.bf16 %v1178_v30, %v1169_v17  ;;  %v6816_v18 = vpack.c.bf16 %v1215_v56, %v1206_v42  ;;  %v1214_v15 = vld [vmem:[#allocation8 + $0xc48] sm:$0xff]  ;;  %v1224_v30 = vld [vmem:[#allocation8 + $0xc98] sm:$0xff] }
 0x2c6   :  { %3572 = vmatmul.mubr.f32.gmra.mrb[30].mxu0 %v8042_v23  ;;  %3132 = vmatprep.mubr.f32.mxu1 %v8061_v49  ;;  %v6524_v21 = vpack.c.bf16 %v1195_v52, %v1186_v27  ;;  %v1222_v17 = vld [vmem:[#allocation8 + $0xc88] sm:$0xff]  ;;  %v1233_v27 = vld [vmem:[#allocation8 + $0xce0] sm:$0xff] }
 0x2c7   :  { %6515 = vmatpush1.bf16.msra.mxu1 %v6514_v45  ;;  %3577 = vmatprep.mubr.f32.mxu0 %v8061_v49  ;;  %v1185_v45 = vld [vmem:[#allocation8 + $0xb60] sm:$0xff] }
 0x2c8   :  { %6803 = vmatpush1.bf16.msra.mxu0 %v6802_v2  ;;  %6517 = vmatprep.subr.bf16.mxu1 %v6516_v47  ;;  %v1194_v2 = vld [vmem:[#allocation8 + $0xba8] sm:$0xff]  ;;  %v1187_v47 = vld [vmem:[#allocation8 + $0xb70] sm:$0xff] }
 0x2c9   :  { %3133 = vmatmul.mubr.f32.gmra.mrb[28].mxu1 %v8055_v43  ;;  %6805 = vmatprep.subr.bf16.mxu0 %v6804_v62  ;;  %v1213_v62 = vld [vmem:[#allocation8 + $0xc40] sm:$0xff]  ;;  %v6526_v9 = vpack.c.bf16 %v1194_v2, %v1185_v45  ;;  %v6814_v11 = vpack.c.bf16 %v1196_v37, %v1187_v47  ;;  %v6820_v45 = vpack.c.bf16 %v1233_v27, %v1224_v30  ;;  %v1232_v2 = vld [vmem:[#allocation8 + $0xcd8] sm:$0xff]  ;;  %v1242_v37 = vld [vmem:[#allocation8 + $0xd28] sm:$0xff] }
 0x2ca   :  { %3578 = vmatmul.mubr.f32.gmra.mrb[32].mxu0 %v8055_v43  ;;  %3138 = vmatprep.mubr.f32.mxu1 %v8074_v12  ;;  %v6528_v35 = vpack.c.bf16 %v1213_v62, %v1204_v46  ;;  %v1240_v47 = vld [vmem:[#allocation8 + $0xd18] sm:$0xff]  ;;  %v1251_v46 = vld [vmem:[#allocation8 + $0xd70] sm:$0xff] }
 0x2cb   :  { %6519 = vmatpush1.bf16.msra.mxu1 %v6518_v58  ;;  %3583 = vmatprep.mubr.f32.mxu0 %v8074_v12  ;;  %v1203_v58 = vld [vmem:[#allocation8 + $0xbf0] sm:$0xff] }
 0x2cc   :  { %6807 = vmatpush1.bf16.msra.mxu0 %v6806_v29  ;;  %6521 = vmatprep.subr.bf16.mxu1 %v6520_v26  ;;  %v1212_v29 = vld [vmem:[#allocation8 + $0xc38] sm:$0xff]  ;;  %v1205_v26 = vld [vmem:[#allocation8 + $0xc00] sm:$0xff] }
 0x2cd   :  { %3139 = vmatmul.mubr.f32.gmra.mrb[30].mxu1 %v8068_v7  ;;  %6809 = vmatprep.subr.bf16.mxu0 %v6808_v20  ;;  %v1231_v20 = vld [vmem:[#allocation8 + $0xcd0] sm:$0xff]  ;;  %v6530_v52 = vpack.c.bf16 %v1212_v29, %v1203_v58  ;;  %v6818_v44 = vpack.c.bf16 %v1214_v15, %v1205_v26  ;;  %v6824_v58 = vpack.c.bf16 %v1251_v46, %v1242_v37  ;;  %v1250_v29 = vld [vmem:[#allocation8 + $0xd68] sm:$0xff]  ;;  %v1260_v15 = vld [vmem:[#allocation8 + $0xdb8] sm:$0xff] }
 0x2ce   :  { %3584 = vmatmul.mubr.f32.gmra.mrb[34].mxu0 %v8068_v7  ;;  %3209 = vmatprep.mubr.f32.mxu1 %v8078_v24  ;;  %v6532_v41 = vpack.c.bf16 %v1231_v20, %v1222_v17  ;;  %v1258_v26 = vld [vmem:[#allocation8 + $0xda8] sm:$0xff]  ;;  %v1269_v17 = vld [vmem:[#allocation8 + $0xe00] sm:$0xff] }
 0x2cf   :  { %6523 = vmatpush1.bf16.msra.mxu1 %v6522_v1  ;;  %3654 = vmatprep.mubr.f32.mxu0 %v8078_v24  ;;  %v1221_v1 = vld [vmem:[#allocation8 + $0xc80] sm:$0xff] }
 0x2d0   :  { %6811 = vmatpush1.bf16.msra.mxu0 %v6810_v40  ;;  %6525 = vmatprep.subr.bf16.mxu1 %v6524_v21  ;;  %v1230_v40 = vld [vmem:[#allocation8 + $0xcc8] sm:$0xff]  ;;  %v1223_v21 = vld [vmem:[#allocation8 + $0xc90] sm:$0xff] }
 0x2d1   :  { %6813 = vmatprep.subr.bf16.mxu0 %v6812_v51  ;;  %v1249_v51 = vld [vmem:[#allocation8 + $0xd60] sm:$0xff]  ;;  %v6534_v62 = vpack.c.bf16 %v1230_v40, %v1221_v1  ;;  %v6822_v42 = vpack.c.bf16 %v1232_v2, %v1223_v21  ;;  %v6828_v1 = vpack.c.bf16 %v1269_v17, %v1260_v15  ;;  %v1268_v40 = vld [vmem:[#allocation8 + $0xdf8] sm:$0xff]  ;;  %v1278_v2 = vld [vmem:[#allocation8 + $0xe48] sm:$0xff] }
 0x2d2   :  { %v6536_v56 = vpack.c.bf16 %v1249_v51, %v1240_v47  ;;  %v1276_v21 = vld [vmem:[#allocation8 + $0xe38] sm:$0xff]  ;;  %v1287_v47 = vld [vmem:[#allocation8 + $0xe90] sm:$0xff] }
 0x2d3   :  { %6527 = vmatpush1.bf16.msra.mxu1 %v6526_v9  ;;  %v1239_v9 = vld [vmem:[#allocation8 + $0xd10] sm:$0xff] }
 0x2d4   :  { %6815 = vmatpush1.bf16.msra.mxu0 %v6814_v11  ;;  %6529 = vmatprep.subr.bf16.mxu1 %v6528_v35  ;;  %v1248_v11 = vld [vmem:[#allocation8 + $0xd58] sm:$0xff]  ;;  %v1241_v35 = vld [vmem:[#allocation8 + $0xd20] sm:$0xff] }
 0x2d5   :  { %6817 = vmatprep.subr.bf16.mxu0 %v6816_v18  ;;  %v1267_v18 = vld [vmem:[#allocation8 + $0xdf0] sm:$0xff]  ;;  %v6538_v20 = vpack.c.bf16 %v1248_v11, %v1239_v9  ;;  %v6826_v30 = vpack.c.bf16 %v1250_v29, %v1241_v35  ;;  %v6832_v9 = vpack.c.bf16 %v1287_v47, %v1278_v2  ;;  %v1286_v11 = vld [vmem:[#allocation8 + $0xe88] sm:$0xff]  ;;  %v1296_v29 = vld [vmem:[#allocation8 + $0xed8] sm:$0xff] }
 0x2d6   :  { %v6540_v27 = vpack.c.bf16 %v1267_v18, %v1258_v26  ;;  %v1294_v35 = vld [vmem:[#allocation8 + $0xec8] sm:$0xff]  ;;  %v1305_v26 = vld [vmem:[#allocation8 + $0xf20] sm:$0xff] }
 0x2d7   :  { %6531 = vmatpush1.bf16.msra.mxu1 %v6530_v52  ;;  %v1257_v52 = vld [vmem:[#allocation8 + $0xda0] sm:$0xff] }
 0x2d8   :  { %6819 = vmatpush1.bf16.msra.mxu0 %v6818_v44  ;;  %6533 = vmatprep.subr.bf16.mxu1 %v6532_v41  ;;  %v1266_v44 = vld [vmem:[#allocation8 + $0xde8] sm:$0xff]  ;;  %v1259_v41 = vld [vmem:[#allocation8 + $0xdb0] sm:$0xff] }
 0x2d9   :  { %6821 = vmatprep.subr.bf16.mxu0 %v6820_v45  ;;  %v1285_v45 = vld [vmem:[#allocation8 + $0xe80] sm:$0xff]  ;;  %v6542_v51 = vpack.c.bf16 %v1266_v44, %v1257_v52  ;;  %v6830_v37 = vpack.c.bf16 %v1268_v40, %v1259_v41  ;;  %v6836_v52 = vpack.c.bf16 %v1305_v26, %v1296_v29  ;;  %v1304_v44 = vld [vmem:[#allocation8 + $0xf18] sm:$0xff]  ;;  %v1314_v40 = vld [vmem:[#allocation8 + $0xf68] sm:$0xff] }
 0x2da   :  { %v6544_v46 = vpack.c.bf16 %v1285_v45, %v1276_v21  ;;  %v1312_v41 = vld [vmem:[#allocation8 + $0xf58] sm:$0xff]  ;;  %v1323_v21 = vld [vmem:[#allocation8 + $0xfb0] sm:$0xff] }
 0x2db   :  { %6535 = vmatpush1.bf16.msra.mxu1 %v6534_v62  ;;  %v1275_v62 = vld [vmem:[#allocation8 + $0xe30] sm:$0xff] }
 0x2dc   :  { %6823 = vmatpush1.bf16.msra.mxu0 %v6822_v42  ;;  %6537 = vmatprep.subr.bf16.mxu1 %v6536_v56  ;;  %v1284_v42 = vld [vmem:[#allocation8 + $0xe78] sm:$0xff]  ;;  %v1277_v56 = vld [vmem:[#allocation8 + $0xe40] sm:$0xff] }
 0x2dd   :  { %6825 = vmatprep.subr.bf16.mxu0 %v6824_v58  ;;  %v1303_v58 = vld [vmem:[#allocation8 + $0xf10] sm:$0xff]  ;;  %v6546_v18 = vpack.c.bf16 %v1284_v42, %v1275_v62  ;;  %v6834_v15 = vpack.c.bf16 %v1286_v11, %v1277_v56  ;;  %v6840_v62 = vpack.c.bf16 %v1323_v21, %v1314_v40  ;;  %v1322_v42 = vld [vmem:[#allocation8 + $0xfa8] sm:$0xff]  ;;  %v1332_v11 = vld [vmem:[#allocation8 + $0xff8] sm:$0xff] }
 0x2de   :  { %v6548_v17 = vpack.c.bf16 %v1303_v58, %v1294_v35  ;;  %v1330_v56 = vld [vmem:[#allocation8 + $0xfe8] sm:$0xff]  ;;  %v1341_v35 = vld [vmem:[#allocation8 + $0x1040] sm:$0xff] }
 0x2df   :  { %6539 = vmatpush1.bf16.msra.mxu1 %v6538_v20  ;;  %v1293_v20 = vld [vmem:[#allocation8 + $0xec0] sm:$0xff] }
 0x2e0   :  { %6827 = vmatpush1.bf16.msra.mxu0 %v6826_v30  ;;  %6541 = vmatprep.subr.bf16.mxu1 %v6540_v27  ;;  %v1302_v30 = vld [vmem:[#allocation8 + $0xf08] sm:$0xff]  ;;  %v1295_v27 = vld [vmem:[#allocation8 + $0xed0] sm:$0xff] }
 0x2e1   :  { %6829 = vmatprep.subr.bf16.mxu0 %v6828_v1  ;;  %v1321_v1 = vld [vmem:[#allocation8 + $0xfa0] sm:$0xff]  ;;  %v6550_v45 = vpack.c.bf16 %v1302_v30, %v1293_v20  ;;  %v6838_v2 = vpack.c.bf16 %v1304_v44, %v1295_v27  ;;  %v6844_v20 = vpack.c.bf16 %v1341_v35, %v1332_v11  ;;  %v1340_v30 = vld [vmem:[#allocation8 + $0x1038] sm:$0xff]  ;;  %v1350_v44 = vld [vmem:[#allocation8 + $0x1088] sm:$0xff] }
 0x2e2   :  { %v6552_v47 = vpack.c.bf16 %v1321_v1, %v1312_v41  ;;  %v1348_v27 = vld [vmem:[#allocation8 + $0x1078] sm:$0xff]  ;;  %v1359_v41 = vld [vmem:[#allocation8 + $0x10d0] sm:$0xff] }
 0x2e3   :  { %6543 = vmatpush1.bf16.msra.mxu1 %v6542_v51  ;;  %v1311_v51 = vld [vmem:[#allocation8 + $0xf50] sm:$0xff] }
 0x2e4   :  { %6831 = vmatpush1.bf16.msra.mxu0 %v6830_v37  ;;  %6545 = vmatprep.subr.bf16.mxu1 %v6544_v46  ;;  %v1320_v37 = vld [vmem:[#allocation8 + $0xf98] sm:$0xff]  ;;  %v1313_v46 = vld [vmem:[#allocation8 + $0xf60] sm:$0xff] }
 0x2e5   :  { %6833 = vmatprep.subr.bf16.mxu0 %v6832_v9  ;;  %v1339_v9 = vld [vmem:[#allocation8 + $0x1030] sm:$0xff]  ;;  %v6554_v58 = vpack.c.bf16 %v1320_v37, %v1311_v51  ;;  %v6842_v29 = vpack.c.bf16 %v1322_v42, %v1313_v46  ;;  %v6848_v51 = vpack.c.bf16 %v1359_v41, %v1350_v44  ;;  %v1358_v37 = vld [vmem:[#allocation8 + $0x10c8] sm:$0xff]  ;;  %v1368_v42 = vld [vmem:[#allocation8 + $0x1118] sm:$0xff] }
 0x2e6   :  { %v6556_v26 = vpack.c.bf16 %v1339_v9, %v1330_v56  ;;  %v1366_v46 = vld [vmem:[#allocation8 + $0x1108] sm:$0xff]  ;;  %v1377_v56 = vld [vmem:[#allocation8 + $0x1160] sm:$0xff] }
 0x2e7   :  { %6547 = vmatpush1.bf16.msra.mxu1 %v6546_v18  ;;  %v1329_v18 = vld [vmem:[#allocation8 + $0xfe0] sm:$0xff] }
 0x2e8   :  { %6835 = vmatpush1.bf16.msra.mxu0 %v6834_v15  ;;  %6549 = vmatprep.subr.bf16.mxu1 %v6548_v17  ;;  %v1338_v15 = vld [vmem:[#allocation8 + $0x1028] sm:$0xff]  ;;  %v1331_v17 = vld [vmem:[#allocation8 + $0xff0] sm:$0xff] }
 0x2e9   :  { %6837 = vmatprep.subr.bf16.mxu0 %v6836_v52  ;;  %v1357_v52 = vld [vmem:[#allocation8 + $0x10c0] sm:$0xff]  ;;  %v6558_v1 = vpack.c.bf16 %v1338_v15, %v1329_v18  ;;  %v6846_v40 = vpack.c.bf16 %v1340_v30, %v1331_v17  ;;  %v6852_v18 = vpack.c.bf16 %v1377_v56, %v1368_v42  ;;  %v1376_v15 = vld [vmem:[#allocation8 + $0x1158] sm:$0xff]  ;;  %v1386_v30 = vld [vmem:[#allocation8 + $0x11a8] sm:$0xff] }
 0x2ea   :  { %v6560_v21 = vpack.c.bf16 %v1357_v52, %v1348_v27  ;;  %v1384_v17 = vld [vmem:[#allocation8 + $0x1198] sm:$0xff]  ;;  %v1395_v27 = vld [vmem:[#allocation8 + $0x11f0] sm:$0xff] }
 0x2eb   :  { %6551 = vmatpush1.bf16.msra.mxu1 %v6550_v45  ;;  %v1347_v45 = vld [vmem:[#allocation8 + $0x1070] sm:$0xff] }
 0x2ec   :  { %6839 = vmatpush1.bf16.msra.mxu0 %v6838_v2  ;;  %6553 = vmatprep.subr.bf16.mxu1 %v6552_v47  ;;  %v1356_v2 = vld [vmem:[#allocation8 + $0x10b8] sm:$0xff]  ;;  %v1349_v47 = vld [vmem:[#allocation8 + $0x1080] sm:$0xff] }
 0x2ed   :  { %6841 = vmatprep.subr.bf16.mxu0 %v6840_v62  ;;  %v1375_v62 = vld [vmem:[#allocation8 + $0x1150] sm:$0xff]  ;;  %v6562_v9 = vpack.c.bf16 %v1356_v2, %v1347_v45  ;;  %v6850_v11 = vpack.c.bf16 %v1358_v37, %v1349_v47  ;;  %v6856_v45 = vpack.c.bf16 %v1395_v27, %v1386_v30  ;;  %v1394_v2 = vld [vmem:[#allocation8 + $0x11e8] sm:$0xff]  ;;  %v1404_v37 = vld [vmem:[#allocation8 + $0x1238] sm:$0xff] }
 0x2ee   :  { %v6564_v35 = vpack.c.bf16 %v1375_v62, %v1366_v46  ;;  %v1402_v47 = vld [vmem:[#allocation8 + $0x1228] sm:$0xff]  ;;  %v1413_v46 = vld [vmem:[#allocation8 + $0x1280] sm:$0xff] }
 0x2ef   :  { %6555 = vmatpush1.bf16.msra.mxu1 %v6554_v58  ;;  %v1365_v58 = vld [vmem:[#allocation8 + $0x1100] sm:$0xff] }
 0x2f0   :  { %6843 = vmatpush1.bf16.msra.mxu0 %v6842_v29  ;;  %6557 = vmatprep.subr.bf16.mxu1 %v6556_v26  ;;  %v1374_v29 = vld [vmem:[#allocation8 + $0x1148] sm:$0xff]  ;;  %v1367_v26 = vld [vmem:[#allocation8 + $0x1110] sm:$0xff] }
 0x2f1   :  { %6845 = vmatprep.subr.bf16.mxu0 %v6844_v20  ;;  %v1393_v20 = vld [vmem:[#allocation8 + $0x11e0] sm:$0xff]  ;;  %v6566_v52 = vpack.c.bf16 %v1374_v29, %v1365_v58  ;;  %v6854_v44 = vpack.c.bf16 %v1376_v15, %v1367_v26  ;;  %v1403_v58 = vld [vmem:[#allocation8 + $0x1230] sm:$0xff]  ;;  %v1412_v29 = vld [vmem:[#allocation8 + $0x1278] sm:$0xff] }
 0x2f2   :  { %v6568_v41 = vpack.c.bf16 %v1393_v20, %v1384_v17  ;;  %v1420_v26 = vld [vmem:[#allocation8 + $0x12b8] sm:$0xff]  ;;  %v1422_v15 = vld [vmem:[#allocation8 + $0x12c8] sm:$0xff]  ;;  %v1431_v17 = vld [vmem:[#allocation8 + $0x1310] sm:$0xff]  ;;  %v6862_v30 = vpack.c.bf16 %v1412_v29, %v1403_v58 }
 0x2f3   :  { %6559 = vmatpush1.bf16.msra.mxu1 %v6558_v1  ;;  %v1383_v1 = vld [vmem:[#allocation8 + $0x1190] sm:$0xff]  ;;  %v1465_v58 = vld [vmem:[#allocation8 + $0x1420] sm:$0xff]  ;;  %v1458_v29 = vld [vmem:[#allocation8 + $0x13e8] sm:$0xff] }
 0x2f4   :  { %6847 = vmatpush1.bf16.msra.mxu0 %v6846_v40  ;;  %6561 = vmatprep.subr.bf16.mxu1 %v6560_v21  ;;  %v1392_v40 = vld [vmem:[#allocation8 + $0x11d8] sm:$0xff]  ;;  %v1385_v21 = vld [vmem:[#allocation8 + $0x11a0] sm:$0xff] }
 0x2f5   :  { %6849 = vmatprep.subr.bf16.mxu0 %v6848_v51  ;;  %v1411_v51 = vld [vmem:[#allocation8 + $0x1270] sm:$0xff]  ;;  %v6570_v62 = vpack.c.bf16 %v1392_v40, %v1383_v1  ;;  %v6858_v42 = vpack.c.bf16 %v1394_v2, %v1385_v21  ;;  %v6864_v1 = vpack.c.bf16 %v1431_v17, %v1422_v15  ;;  %v1430_v40 = vld [vmem:[#allocation8 + $0x1308] sm:$0xff]  ;;  %v1440_v2 = vld [vmem:[#allocation8 + $0x1358] sm:$0xff] }
 0x2f6   :  { %v6572_v56 = vpack.c.bf16 %v1411_v51, %v1402_v47  ;;  %v1438_v21 = vld [vmem:[#allocation8 + $0x1348] sm:$0xff]  ;;  %v1449_v47 = vld [vmem:[#allocation8 + $0x13a0] sm:$0xff] }
 0x2f7   :  { %6563 = vmatpush1.bf16.msra.mxu1 %v6562_v9  ;;  %v6860_v9 = vpack.c.bf16 %v1413_v46, %v1404_v37 }
 0x2f8   :  { %6851 = vmatpush1.bf16.msra.mxu0 %v6850_v11  ;;  %6565 = vmatprep.subr.bf16.mxu1 %v6564_v35  ;;  %v1401_v11 = vld [vmem:[#allocation8 + $0x1220] sm:$0xff]  ;;  %v1410_v35 = vld [vmem:[#allocation8 + $0x1268] sm:$0xff] }
 0x2f9   :  { %6853 = vmatprep.subr.bf16.mxu0 %v6852_v18  ;;  %v1429_v18 = vld [vmem:[#allocation8 + $0x1300] sm:$0xff]  ;;  %v6574_v20 = vpack.c.bf16 %v1410_v35, %v1401_v11  ;;  %v1448_v11 = vld [vmem:[#allocation8 + $0x1398] sm:$0xff] }
 0x2fa   :  { %v6576_v27 = vpack.c.bf16 %v1429_v18, %v1420_v26  ;;  %v1456_v35 = vld [vmem:[#allocation8 + $0x13d8] sm:$0xff]  ;;  %v1467_v26 = vld [vmem:[#allocation8 + $0x1430] sm:$0xff] }
 0x2fb   :  { %6567 = vmatpush1.bf16.msra.mxu1 %v6566_v52  ;;  %v1419_v52 = vld [vmem:[#allocation8 + $0x12b0] sm:$0xff]  ;;  %v6584_v17 = vpack.c.bf16 %v1465_v58, %v1456_v35  ;;  %v1494_v58 = vld [vmem:[#allocation8 + $0x1508] sm:$0xff] }
 0x2fc   :  { %6855 = vmatpush1.bf16.msra.mxu0 %v6854_v44  ;;  %6569 = vmatprep.subr.bf16.mxu1 %v6568_v41  ;;  %v1428_v44 = vld [vmem:[#allocation8 + $0x12f8] sm:$0xff]  ;;  %v1421_v41 = vld [vmem:[#allocation8 + $0x12c0] sm:$0xff] }
 0x2fd   :  { %6857 = vmatprep.subr.bf16.mxu0 %v6856_v45  ;;  %v1447_v45 = vld [vmem:[#allocation8 + $0x1390] sm:$0xff]  ;;  %v6578_v51 = vpack.c.bf16 %v1428_v44, %v1419_v52  ;;  %v6866_v37 = vpack.c.bf16 %v1430_v40, %v1421_v41  ;;  %v6872_v52 = vpack.c.bf16 %v1467_v26, %v1458_v29  ;;  %v1466_v44 = vld [vmem:[#allocation8 + $0x1428] sm:$0xff]  ;;  %v1476_v40 = vld [vmem:[#allocation8 + $0x1478] sm:$0xff] }
 0x2fe   :  { %v6580_v46 = vpack.c.bf16 %v1447_v45, %v1438_v21  ;;  %v1474_v41 = vld [vmem:[#allocation8 + $0x1468] sm:$0xff]  ;;  %v1485_v21 = vld [vmem:[#allocation8 + $0x14c0] sm:$0xff]  ;;  %v8609_v35 = vld [vmem:[#allocation25_spill] sm:$0xff] }
 0x2ff   :  { %6571 = vmatpush1.bf16.msra.mxu1 %v6570_v62  ;;  %v1437_v62 = vld [vmem:[#allocation8 + $0x1340] sm:$0xff]  ;;  %v1503_v29 = vld [vmem:[#allocation8 + $0x1550] sm:$0xff] }
 0x300   :  { %6859 = vmatpush1.bf16.msra.mxu0 %v6858_v42  ;;  %6573 = vmatprep.subr.bf16.mxu1 %v6572_v56  ;;  %v1446_v42 = vld [vmem:[#allocation8 + $0x1388] sm:$0xff]  ;;  %v1439_v56 = vld [vmem:[#allocation8 + $0x1350] sm:$0xff] }
 0x301   :  { %6861 = vmatprep.subr.bf16.mxu0 %v6860_v9  ;;  %v6868_v9 = vpack.c.bf16 %v1449_v47, %v1440_v2  ;;  %v6582_v18 = vpack.c.bf16 %v1446_v42, %v1437_v62  ;;  %v6870_v15 = vpack.c.bf16 %v1448_v11, %v1439_v56  ;;  %v8608_v62 = vld [vmem:[#allocation24_spill] sm:$0xff]  ;;  %v6876_v42 = vpack.c.bf16 %v1485_v21, %v1476_v40  ;;  %v1484_v56 = vld [vmem:[#allocation8 + $0x14b8] sm:$0xff]  ;;  %v1501_v11 = vld [vmem:[#allocation8 + $0x1540] sm:$0xff] }
 0x302   :  { %3210 = vmatmul.mubr.f32.vlgmr.msra.gmra.mrb[24].mxu1 %v8128_v6  ;;  %v1521_v40 = vld [vmem:[#allocation8 + $0x15e0] sm:$0xff] }
 0x303   :  { %3655 = vmatmul.mubr.f32.vlgmr.msra.gmra.mrb[28].mxu0 %v8128_v6  ;;  %3215 = vmatprep.mubr.f32.mxu1 %v8132_v16 }
 0x304   :  { %6575 = vmatpush1.bf16.msra.mxu1 %v6574_v20  ;;  %3660 = vmatprep.mubr.f32.mxu0 %v8132_v16  ;;  %v1455_v20 = vld [vmem:[#allocation8 + $0x13d0] sm:$0xff] }
 0x305   :  { %6863 = vmatpush1.bf16.msra.mxu0 %v6862_v30  ;;  %6577 = vmatprep.subr.bf16.mxu1 %v6576_v27  ;;  %v1464_v30 = vld [vmem:[#allocation8 + $0x1418] sm:$0xff]  ;;  %v1457_v27 = vld [vmem:[#allocation8 + $0x13e0] sm:$0xff] }
 0x306   :  { %3216 = vmatmul.mubr.f32.gmra.mrb[26].mxu1 %v8139_v19  ;;  %6865 = vmatprep.subr.bf16.mxu0 %v6864_v1  ;;  %v1483_v1 = vld [vmem:[#allocation8 + $0x14b0] sm:$0xff]  ;;  %v6586_v45 = vpack.c.bf16 %v1464_v30, %v1455_v20  ;;  %v6874_v2 = vpack.c.bf16 %v1466_v44, %v1457_v27  ;;  %v1500_v20 = vld [vmem:[#allocation8 + $0x1538] sm:$0xff]  ;;  %v1493_v30 = vld [vmem:[#allocation8 + $0x1500] sm:$0xff]  ;;  %v6880_v27 = vpack.c.bf16 %v1503_v29, %v1494_v58 }
 0x307   :  { %3661 = vmatmul.mubr.f32.gmra.mrb[30].mxu0 %v8139_v19  ;;  %3221 = vmatprep.mubr.f32.mxu1 %v8143_v59  ;;  %v6588_v47 = vpack.c.bf16 %v1483_v1, %v1474_v41  ;;  %v1510_v44 = vld [vmem:[#allocation8 + $0x1588] sm:$0xff]  ;;  %v1519_v41 = vld [vmem:[#allocation8 + $0x15d0] sm:$0xff]  ;;  %v1512_v1 = vld [vmem:[#allocation8 + $0x1598] sm:$0xff] }
 0x308   :  { %6579 = vmatpush1.bf16.msra.mxu1 %v6578_v51  ;;  %3666 = vmatprep.mubr.f32.mxu0 %v8143_v59  ;;  %v1473_v51 = vld [vmem:[#allocation8 + $0x1460] sm:$0xff]  ;;  %v1539_v58 = vld [vmem:[#allocation8 + $0x1670] sm:$0xff] }
 0x309   :  { %6867 = vmatpush1.bf16.msra.mxu0 %v6866_v37  ;;  %6581 = vmatprep.subr.bf16.mxu1 %v6580_v46  ;;  %v1482_v37 = vld [vmem:[#allocation8 + $0x14a8] sm:$0xff]  ;;  %v1475_v46 = vld [vmem:[#allocation8 + $0x1470] sm:$0xff] }
 0x30a   :  { %3222 = vmatmul.mubr.f32.gmra.mrb[28].mxu1 %v8154_v63  ;;  %6869 = vmatprep.subr.bf16.mxu0 %v6868_v9  ;;  %v1492_v9 = vld [vmem:[#allocation8 + $0x14f8] sm:$0xff]  ;;  %v6590_v26 = vpack.c.bf16 %v1482_v37, %v1473_v51  ;;  %v6596_v51 = vpack.c.bf16 %v1519_v41, %v1510_v44  ;;  %v1511_v37 = vld [vmem:[#allocation8 + $0x1590] sm:$0xff]  ;;  %v1546_v44 = vld [vmem:[#allocation8 + $0x16a8] sm:$0xff] }
 0x30b   :  { %3667 = vmatmul.mubr.f32.gmra.mrb[32].mxu0 %v8154_v63  ;;  %3227 = vmatprep.mubr.f32.mxu1 %v8164_v60  ;;  %v1548_v41 = vld [vmem:[#allocation8 + $0x16b8] sm:$0xff] }
 0x30c   :  { %6583 = vmatpush1.bf16.msra.mxu1 %v6582_v18  ;;  %3672 = vmatprep.mubr.f32.mxu0 %v8164_v60  ;;  %v6878_v18 = vpack.c.bf16 %v1484_v56, %v1475_v46  ;;  %v6884_v46 = vpack.c.bf16 %v1521_v40, %v1512_v1  ;;  %v1520_v56 = vld [vmem:[#allocation8 + $0x15d8] sm:$0xff]  ;;  %v1557_v1 = vld [vmem:[#allocation8 + $0x1700] sm:$0xff] }
 0x30d   :  { %6871 = vmatpush1.bf16.msra.mxu0 %v6870_v15  ;;  %6585 = vmatprep.subr.bf16.mxu1 %v6584_v17  ;;  %v6592_v15 = vpack.c.bf16 %v1501_v11, %v1492_v9  ;;  %v1491_v17 = vld [vmem:[#allocation8 + $0x14f0] sm:$0xff]  ;;  %v1528_v9 = vld [vmem:[#allocation8 + $0x1618] sm:$0xff]  ;;  %v1530_v11 = vld [vmem:[#allocation8 + $0x1628] sm:$0xff] }
 0x30e   :  { %3228 = vmatmul.mubr.f32.gmra.mrb[30].mxu1 %v8608_v62  ;;  %6873 = vmatprep.subr.bf16.mxu0 %v6872_v52  ;;  %v1502_v52 = vld [vmem:[#allocation8 + $0x1548] sm:$0xff]  ;;  %v6594_v21 = vpack.c.bf16 %v1500_v20, %v1491_v17  ;;  %v1529_v20 = vld [vmem:[#allocation8 + $0x1620] sm:$0xff] }
 0x30f   :  { %3673 = vmatmul.mubr.f32.gmra.mrb[34].mxu0 %v8608_v62  ;;  %3298 = vmatprep.mubr.f32.mxu1 %v8609_v35 }
 0x310   :  { %6587 = vmatpush1.bf16.msra.mxu1 %v6586_v45  ;;  %3743 = vmatprep.mubr.f32.mxu0 %v8609_v35  ;;  %v6882_v45 = vpack.c.bf16 %v1502_v52, %v1493_v30  ;;  %v6888_v30 = vpack.c.bf16 %v1539_v58, %v1530_v11  ;;  %v1538_v52 = vld [vmem:[#allocation8 + $0x1668] sm:$0xff]  ;;  %v1575_v11 = vld [vmem:[#allocation8 + $0x1790] sm:$0xff] }
 0x311   :  { %6875 = vmatpush1.bf16.msra.mxu0 %v6874_v2  ;;  %6589 = vmatprep.subr.bf16.mxu1 %v6588_v47  ;;  %v1509_v2 = vld [vmem:[#allocation8 + $0x1580] sm:$0xff]  ;;  %v1518_v47 = vld [vmem:[#allocation8 + $0x15c8] sm:$0xff] }
 0x312   :  { %6877 = vmatprep.subr.bf16.mxu0 %v6876_v42  ;;  %v1537_v42 = vld [vmem:[#allocation8 + $0x1660] sm:$0xff]  ;;  %v6598_v29 = vpack.c.bf16 %v1518_v47, %v1509_v2  ;;  %v1547_v47 = vld [vmem:[#allocation8 + $0x16b0] sm:$0xff] }
 0x313   :  { %v6600_v17 = vpack.c.bf16 %v1537_v42, %v1528_v9  ;;  %v1564_v9 = vld [vmem:[#allocation8 + $0x1738] sm:$0xff]  ;;  %v1566_v42 = vld [vmem:[#allocation8 + $0x1748] sm:$0xff] }
 0x314   :  { %6591 = vmatpush1.bf16.msra.mxu1 %v6590_v26  ;;  %v6886_v26 = vpack.c.bf16 %v1520_v56, %v1511_v37  ;;  %v6892_v37 = vpack.c.bf16 %v1557_v1, %v1548_v41  ;;  %v1556_v56 = vld [vmem:[#allocation8 + $0x16f8] sm:$0xff]  ;;  %v1593_v41 = vld [vmem:[#allocation8 + $0x1820] sm:$0xff] }
 0x315   :  { %6879 = vmatpush1.bf16.msra.mxu0 %v6878_v18  ;;  %6593 = vmatprep.subr.bf16.mxu1 %v6592_v15  ;;  %v1527_v18 = vld [vmem:[#allocation8 + $0x1610] sm:$0xff]  ;;  %v1536_v15 = vld [vmem:[#allocation8 + $0x1658] sm:$0xff] }
 0x316   :  { %6881 = vmatprep.subr.bf16.mxu0 %v6880_v27  ;;  %v1555_v27 = vld [vmem:[#allocation8 + $0x16f0] sm:$0xff]  ;;  %v6602_v40 = vpack.c.bf16 %v1536_v15, %v1527_v18  ;;  %v1565_v15 = vld [vmem:[#allocation8 + $0x1740] sm:$0xff] }
 0x317   :  { %v6604_v2 = vpack.c.bf16 %v1555_v27, %v1546_v44  ;;  %v1582_v44 = vld [vmem:[#allocation8 + $0x17c8] sm:$0xff]  ;;  %v1584_v27 = vld [vmem:[#allocation8 + $0x17d8] sm:$0xff] }
 0x318   :  { %6595 = vmatpush1.bf16.msra.mxu1 %v6594_v21  ;;  %v6890_v21 = vpack.c.bf16 %v1538_v52, %v1529_v20  ;;  %v6896_v20 = vpack.c.bf16 %v1575_v11, %v1566_v42  ;;  %v1574_v52 = vld [vmem:[#allocation8 + $0x1788] sm:$0xff]  ;;  %v1611_v42 = vld [vmem:[#allocation8 + $0x18b0] sm:$0xff] }
 0x319   :  { %6883 = vmatpush1.bf16.msra.mxu0 %v6882_v45  ;;  %6597 = vmatprep.subr.bf16.mxu1 %v6596_v51  ;;  %v1545_v45 = vld [vmem:[#allocation8 + $0x16a0] sm:$0xff]  ;;  %v1554_v51 = vld [vmem:[#allocation8 + $0x16e8] sm:$0xff] }
 0x31a   :  { %6885 = vmatprep.subr.bf16.mxu0 %v6884_v46  ;;  %v1573_v46 = vld [vmem:[#allocation8 + $0x1780] sm:$0xff]  ;;  %v6606_v58 = vpack.c.bf16 %v1554_v51, %v1545_v45  ;;  %v1583_v51 = vld [vmem:[#allocation8 + $0x17d0] sm:$0xff] }
 0x31b   :  { %v6608_v18 = vpack.c.bf16 %v1573_v46, %v1564_v9  ;;  %v1600_v9 = vld [vmem:[#allocation8 + $0x1858] sm:$0xff]  ;;  %v1602_v46 = vld [vmem:[#allocation8 + $0x1868] sm:$0xff] }
 0x31c   :  { %6599 = vmatpush1.bf16.msra.mxu1 %v6598_v29  ;;  %v6894_v29 = vpack.c.bf16 %v1556_v56, %v1547_v47  ;;  %v6900_v47 = vpack.c.bf16 %v1593_v41, %v1584_v27  ;;  %v1592_v56 = vld [vmem:[#allocation8 + $0x1818] sm:$0xff]  ;;  %v1629_v27 = vld [vmem:[#allocation8 + $0x1940] sm:$0xff] }
 0x31d   :  { %6887 = vmatpush1.bf16.msra.mxu0 %v6886_v26  ;;  %6601 = vmatprep.subr.bf16.mxu1 %v6600_v17  ;;  %v1563_v26 = vld [vmem:[#allocation8 + $0x1730] sm:$0xff]  ;;  %v1572_v17 = vld [vmem:[#allocation8 + $0x1778] sm:$0xff] }
 0x31e   :  { %6889 = vmatprep.subr.bf16.mxu0 %v6888_v30  ;;  %v1591_v30 = vld [vmem:[#allocation8 + $0x1810] sm:$0xff]  ;;  %v6610_v1 = vpack.c.bf16 %v1572_v17, %v1563_v26  ;;  %v1601_v17 = vld [vmem:[#allocation8 + $0x1860] sm:$0xff] }
 0x31f   :  { %v6612_v45 = vpack.c.bf16 %v1591_v30, %v1582_v44  ;;  %v1618_v44 = vld [vmem:[#allocation8 + $0x18e8] sm:$0xff]  ;;  %v1620_v30 = vld [vmem:[#allocation8 + $0x18f8] sm:$0xff] }
 0x320   :  { %6603 = vmatpush1.bf16.msra.mxu1 %v6602_v40  ;;  %v6898_v40 = vpack.c.bf16 %v1574_v52, %v1565_v15  ;;  %v6904_v15 = vpack.c.bf16 %v1611_v42, %v1602_v46  ;;  %v1610_v52 = vld [vmem:[#allocation8 + $0x18a8] sm:$0xff]  ;;  %v1647_v46 = vld [vmem:[#allocation8 + $0x19d0] sm:$0xff] }
 0x321   :  { %6891 = vmatpush1.bf16.msra.mxu0 %v6890_v21  ;;  %6605 = vmatprep.subr.bf16.mxu1 %v6604_v2  ;;  %v1581_v21 = vld [vmem:[#allocation8 + $0x17c0] sm:$0xff]  ;;  %v1590_v2 = vld [vmem:[#allocation8 + $0x1808] sm:$0xff] }
 0x322   :  { %6893 = vmatprep.subr.bf16.mxu0 %v6892_v37  ;;  %v1609_v37 = vld [vmem:[#allocation8 + $0x18a0] sm:$0xff]  ;;  %v6614_v11 = vpack.c.bf16 %v1590_v2, %v1581_v21  ;;  %v1619_v2 = vld [vmem:[#allocation8 + $0x18f0] sm:$0xff] }
 0x323   :  { %v6616_v26 = vpack.c.bf16 %v1609_v37, %v1600_v9  ;;  %v1636_v9 = vld [vmem:[#allocation8 + $0x1978] sm:$0xff]  ;;  %v1638_v37 = vld [vmem:[#allocation8 + $0x1988] sm:$0xff] }
 0x324   :  { %6607 = vmatpush1.bf16.msra.mxu1 %v6606_v58  ;;  %v6902_v58 = vpack.c.bf16 %v1592_v56, %v1583_v51  ;;  %v6908_v51 = vpack.c.bf16 %v1629_v27, %v1620_v30  ;;  %v1628_v56 = vld [vmem:[#allocation8 + $0x1938] sm:$0xff]  ;;  %v1665_v30 = vld [vmem:[#allocation8 + $0x1a60] sm:$0xff] }
 0x325   :  { %6895 = vmatpush1.bf16.msra.mxu0 %v6894_v29  ;;  %6609 = vmatprep.subr.bf16.mxu1 %v6608_v18  ;;  %v1599_v29 = vld [vmem:[#allocation8 + $0x1850] sm:$0xff]  ;;  %v1608_v18 = vld [vmem:[#allocation8 + $0x1898] sm:$0xff] }
 0x326   :  { %6897 = vmatprep.subr.bf16.mxu0 %v6896_v20  ;;  %v1627_v20 = vld [vmem:[#allocation8 + $0x1930] sm:$0xff]  ;;  %v6618_v41 = vpack.c.bf16 %v1608_v18, %v1599_v29  ;;  %v1637_v18 = vld [vmem:[#allocation8 + $0x1980] sm:$0xff] }
 0x327   :  { %v6620_v21 = vpack.c.bf16 %v1627_v20, %v1618_v44  ;;  %v1654_v44 = vld [vmem:[#allocation8 + $0x1a08] sm:$0xff]  ;;  %v1656_v20 = vld [vmem:[#allocation8 + $0x1a18] sm:$0xff] }
 0x328   :  { %6611 = vmatpush1.bf16.msra.mxu1 %v6610_v1  ;;  %v6906_v1 = vpack.c.bf16 %v1610_v52, %v1601_v17  ;;  %v6912_v17 = vpack.c.bf16 %v1647_v46, %v1638_v37  ;;  %v1646_v52 = vld [vmem:[#allocation8 + $0x19c8] sm:$0xff]  ;;  %v1683_v37 = vld [vmem:[#allocation8 + $0x1af0] sm:$0xff] }
 0x329   :  { %6899 = vmatpush1.bf16.msra.mxu0 %v6898_v40  ;;  %6613 = vmatprep.subr.bf16.mxu1 %v6612_v45  ;;  %v1617_v40 = vld [vmem:[#allocation8 + $0x18e0] sm:$0xff]  ;;  %v1626_v45 = vld [vmem:[#allocation8 + $0x1928] sm:$0xff] }
 0x32a   :  { %6901 = vmatprep.subr.bf16.mxu0 %v6900_v47  ;;  %v1645_v47 = vld [vmem:[#allocation8 + $0x19c0] sm:$0xff]  ;;  %v6622_v42 = vpack.c.bf16 %v1626_v45, %v1617_v40  ;;  %v1655_v45 = vld [vmem:[#allocation8 + $0x1a10] sm:$0xff] }
 0x32b   :  { %v6624_v29 = vpack.c.bf16 %v1645_v47, %v1636_v9  ;;  %v1672_v9 = vld [vmem:[#allocation8 + $0x1a98] sm:$0xff]  ;;  %v1674_v47 = vld [vmem:[#allocation8 + $0x1aa8] sm:$0xff] }
 0x32c   :  { %6615 = vmatpush1.bf16.msra.mxu1 %v6614_v11  ;;  %v6910_v11 = vpack.c.bf16 %v1628_v56, %v1619_v2  ;;  %v6916_v2 = vpack.c.bf16 %v1665_v30, %v1656_v20  ;;  %v1664_v56 = vld [vmem:[#allocation8 + $0x1a58] sm:$0xff]  ;;  %v1701_v20 = vld [vmem:[#allocation8 + $0x1b80] sm:$0xff] }
 0x32d   :  { %6903 = vmatpush1.bf16.msra.mxu0 %v6902_v58  ;;  %6617 = vmatprep.subr.bf16.mxu1 %v6616_v26  ;;  %v1635_v58 = vld [vmem:[#allocation8 + $0x1970] sm:$0xff]  ;;  %v1644_v26 = vld [vmem:[#allocation8 + $0x19b8] sm:$0xff] }
 0x32e   :  { %6905 = vmatprep.subr.bf16.mxu0 %v6904_v15  ;;  %v1663_v15 = vld [vmem:[#allocation8 + $0x1a50] sm:$0xff]  ;;  %v6626_v27 = vpack.c.bf16 %v1644_v26, %v1635_v58  ;;  %v1673_v26 = vld [vmem:[#allocation8 + $0x1aa0] sm:$0xff] }
 0x32f   :  { %v6628_v40 = vpack.c.bf16 %v1663_v15, %v1654_v44  ;;  %v1690_v44 = vld [vmem:[#allocation8 + $0x1b28] sm:$0xff]  ;;  %v1692_v15 = vld [vmem:[#allocation8 + $0x1b38] sm:$0xff] }
 0x330   :  { %6619 = vmatpush1.bf16.msra.mxu1 %v6618_v41  ;;  %v6914_v41 = vpack.c.bf16 %v1646_v52, %v1637_v18  ;;  %v6920_v18 = vpack.c.bf16 %v1683_v37, %v1674_v47  ;;  %v1682_v52 = vld [vmem:[#allocation8 + $0x1ae8] sm:$0xff]  ;;  %v1719_v47 = vld [vmem:[#allocation8 + $0x1c10] sm:$0xff] }
 0x331   :  { %6907 = vmatpush1.bf16.msra.mxu0 %v6906_v1  ;;  %6621 = vmatprep.subr.bf16.mxu1 %v6620_v21  ;;  %v1653_v1 = vld [vmem:[#allocation8 + $0x1a00] sm:$0xff]  ;;  %v1662_v21 = vld [vmem:[#allocation8 + $0x1a48] sm:$0xff] }
 0x332   :  { %6909 = vmatprep.subr.bf16.mxu0 %v6908_v51  ;;  %v1681_v51 = vld [vmem:[#allocation8 + $0x1ae0] sm:$0xff]  ;;  %v6630_v46 = vpack.c.bf16 %v1662_v21, %v1653_v1  ;;  %v1698_v21 = vld [vmem:[#allocation8 + $0x1b68] sm:$0xff] }
 0x333   :  { %v6632_v58 = vpack.c.bf16 %v1681_v51, %v1672_v9  ;;  %v1708_v9 = vld [vmem:[#allocation8 + $0x1bb8] sm:$0xff]  ;;  %v1710_v51 = vld [vmem:[#allocation8 + $0x1bc8] sm:$0xff] }
 0x334   :  { %6623 = vmatpush1.bf16.msra.mxu1 %v6622_v42  ;;  %v6918_v42 = vpack.c.bf16 %v1664_v56, %v1655_v45  ;;  %v1691_v45 = vld [vmem:[#allocation8 + $0x1b30] sm:$0xff]  ;;  %v1700_v56 = vld [vmem:[#allocation8 + $0x1b78] sm:$0xff] }
 0x335   :  { %6911 = vmatpush1.bf16.msra.mxu0 %v6910_v11  ;;  %6625 = vmatprep.subr.bf16.mxu1 %v6624_v29  ;;  %v1671_v11 = vld [vmem:[#allocation8 + $0x1a90] sm:$0xff]  ;;  %v1680_v29 = vld [vmem:[#allocation8 + $0x1ad8] sm:$0xff] }
 0x336   :  { %6913 = vmatprep.subr.bf16.mxu0 %v6912_v17  ;;  %v1699_v17 = vld [vmem:[#allocation8 + $0x1b70] sm:$0xff]  ;;  %v6634_v30 = vpack.c.bf16 %v1680_v29, %v1671_v11  ;;  %v1716_v11 = vld [vmem:[#allocation8 + $0x1bf8] sm:$0xff]  ;;  %v1709_v29 = vld [vmem:[#allocation8 + $0x1bc0] sm:$0xff] }
 0x337   :  { %v6636_v1 = vpack.c.bf16 %v1699_v17, %v1690_v44  ;;  %v1735_v44 = vld [vmem:[#allocation8 + $0x1c90] sm:$0xff]  ;;  %v1728_v17 = vld [vmem:[#allocation8 + $0x1c58] sm:$0xff] }
 0x338   :  { %6627 = vmatpush1.bf16.msra.mxu1 %v6626_v27  ;;  %v6922_v27 = vpack.c.bf16 %v1682_v52, %v1673_v26  ;;  %v6928_v26 = vpack.c.bf16 %v1719_v47, %v1710_v51  ;;  %v1726_v52 = vld [vmem:[#allocation8 + $0x1c48] sm:$0xff]  ;;  %v1755_v51 = vld [vmem:[#allocation8 + $0x1d30] sm:$0xff] }
 0x339   :  { %6915 = vmatpush1.bf16.msra.mxu0 %v6914_v41  ;;  %6629 = vmatprep.subr.bf16.mxu1 %v6628_v40  ;;  %v6924_v41 = vpack.c.bf16 %v1701_v20, %v1692_v15  ;;  %v1689_v40 = vld [vmem:[#allocation8 + $0x1b20] sm:$0xff] }
 0x33a   :  { %6917 = vmatprep.subr.bf16.mxu0 %v6916_v2  ;;  %v1717_v2 = vld [vmem:[#allocation8 + $0x1c00] sm:$0xff]  ;;  %v6638_v37 = vpack.c.bf16 %v1698_v21, %v1689_v40  ;;  %v1727_v40 = vld [vmem:[#allocation8 + $0x1c50] sm:$0xff] }
 0x33b   :  { %v1737_v15 = vld [vmem:[#allocation8 + $0x1ca0] sm:$0xff] }
 0x33c   :  { %6631 = vmatpush1.bf16.msra.mxu1 %v6630_v46  ;;  %v6926_v46 = vpack.c.bf16 %v1700_v56, %v1691_v45  ;;  %v6932_v21 = vpack.c.bf16 %v1737_v15, %v1728_v17  ;;  %v1736_v45 = vld [vmem:[#allocation8 + $0x1c98] sm:$0xff]  ;;  %v1773_v17 = vld [vmem:[#allocation8 + $0x1dc0] sm:$0xff] }
 0x33d   :  { %6919 = vmatpush1.bf16.msra.mxu0 %v6918_v42  ;;  %6633 = vmatprep.subr.bf16.mxu1 %v6632_v58  ;;  %v6640_v42 = vpack.c.bf16 %v1717_v2, %v1708_v9  ;;  %v1707_v58 = vld [vmem:[#allocation8 + $0x1bb0] sm:$0xff]  ;;  %v1744_v56 = vld [vmem:[#allocation8 + $0x1cd8] sm:$0xff]  ;;  %v1753_v9 = vld [vmem:[#allocation8 + $0x1d20] sm:$0xff] }
 0x33e   :  { %6921 = vmatprep.subr.bf16.mxu0 %v6920_v18  ;;  %v1718_v18 = vld [vmem:[#allocation8 + $0x1c08] sm:$0xff]  ;;  %v6642_v20 = vpack.c.bf16 %v1716_v11, %v1707_v58  ;;  %v1752_v58 = vld [vmem:[#allocation8 + $0x1d18] sm:$0xff]  ;;  %v1745_v11 = vld [vmem:[#allocation8 + $0x1ce0] sm:$0xff] }
 0x33f   :  { %v1746_v2 = vld [vmem:[#allocation8 + $0x1ce8] sm:$0xff] }
 0x340   :  { %6635 = vmatpush1.bf16.msra.mxu1 %v6634_v30  ;;  %v6930_v30 = vpack.c.bf16 %v1718_v18, %v1709_v29  ;;  %v6936_v29 = vpack.c.bf16 %v1755_v51, %v1746_v2  ;;  %v1762_v18 = vld [vmem:[#allocation8 + $0x1d68] sm:$0xff]  ;;  %v1791_v2 = vld [vmem:[#allocation8 + $0x1e50] sm:$0xff] }
 0x341   :  { %6923 = vmatpush1.bf16.msra.mxu0 %v6922_v27  ;;  %6637 = vmatprep.subr.bf16.mxu1 %v6636_v1  ;;  %v6644_v27 = vpack.c.bf16 %v1735_v44, %v1726_v52  ;;  %v1725_v1 = vld [vmem:[#allocation8 + $0x1c40] sm:$0xff]  ;;  %v1771_v52 = vld [vmem:[#allocation8 + $0x1db0] sm:$0xff]  ;;  %v1764_v44 = vld [vmem:[#allocation8 + $0x1d78] sm:$0xff] }
 0x342   :  { %6925 = vmatprep.subr.bf16.mxu0 %v6924_v41  ;;  %v1734_v41 = vld [vmem:[#allocation8 + $0x1c88] sm:$0xff] }
 0x343   :  { %3299 = vmatmul.mubr.f32.vlgmr.msra.gmra.mrb[24].mxu1 %v8206_v33  ;;  %v6646_v47 = vpack.c.bf16 %v1734_v41, %v1725_v1  ;;  %v1770_v1 = vld [vmem:[#allocation8 + $0x1da8] sm:$0xff]  ;;  %v1763_v41 = vld [vmem:[#allocation8 + $0x1d70] sm:$0xff] }
 0x344   :  { %3744 = vmatmul.mubr.f32.vlgmr.msra.gmra.mrb[28].mxu0 %v8206_v33  ;;  %3304 = vmatprep.mubr.f32.mxu1 %v8210_v13 }
 0x345   :  { %6639 = vmatpush1.bf16.msra.mxu1 %v6638_v37  ;;  %3749 = vmatprep.mubr.f32.mxu0 %v8210_v13  ;;  %v6934_v37 = vpack.c.bf16 %v1736_v45, %v1727_v40  ;;  %v6940_v40 = vpack.c.bf16 %v1773_v17, %v1764_v44  ;;  %v1780_v45 = vld [vmem:[#allocation8 + $0x1df8] sm:$0xff] }
 0x346   :  { %6927 = vmatpush1.bf16.msra.mxu0 %v6926_v46  ;;  %6641 = vmatprep.subr.bf16.mxu1 %v6640_v42  ;;  %v6648_v46 = vpack.c.bf16 %v1753_v9, %v1744_v56  ;;  %v1743_v42 = vld [vmem:[#allocation8 + $0x1cd0] sm:$0xff]  ;;  %v1789_v56 = vld [vmem:[#allocation8 + $0x1e40] sm:$0xff]  ;;  %v1782_v9 = vld [vmem:[#allocation8 + $0x1e08] sm:$0xff] }
 0x347   :  { %3305 = vmatmul.mubr.f32.gmra.mrb[26].mxu1 %v8217_v0  ;;  %6929 = vmatprep.subr.bf16.mxu0 %v6928_v26  ;;  %v1754_v26 = vld [vmem:[#allocation8 + $0x1d28] sm:$0xff]  ;;  %v6650_v15 = vpack.c.bf16 %v1752_v58, %v1743_v42  ;;  %v1788_v42 = vld [vmem:[#allocation8 + $0x1e38] sm:$0xff]  ;;  %v1781_v58 = vld [vmem:[#allocation8 + $0x1e00] sm:$0xff] }
 0x348   :  { %3750 = vmatmul.mubr.f32.gmra.mrb[30].mxu0 %v8217_v0  ;;  %3310 = vmatprep.mubr.f32.mxu1 %v8221_v53  ;;  %v1800_v17 = vld [vmem:[#allocation8 + $0x1e98] sm:$0xff] }
 0x349   :  { %6643 = vmatpush1.bf16.msra.mxu1 %v6642_v20  ;;  %3755 = vmatprep.mubr.f32.mxu0 %v8221_v53  ;;  %v6938_v20 = vpack.c.bf16 %v1754_v26, %v1745_v11  ;;  %v6944_v11 = vpack.c.bf16 %v1791_v2, %v1782_v9  ;;  %v1798_v26 = vld [vmem:[#allocation8 + $0x1e88] sm:$0xff]  ;;  %v1808_v9 = vld [vmem:[#allocation8 + $0x1ed8] sm:$0xff] }
 0x34a   :  { %6931 = vmatpush1.bf16.msra.mxu0 %v6930_v30  ;;  %6645 = vmatprep.subr.bf16.mxu1 %v6644_v27  ;;  %v6652_v30 = vpack.c.bf16 %v1771_v52, %v1762_v18  ;;  %v1761_v27 = vld [vmem:[#allocation8 + $0x1d60] sm:$0xff]  ;;  %v1807_v18 = vld [vmem:[#allocation8 + $0x1ed0] sm:$0xff]  ;;  %v1816_v2 = vld [vmem:[#allocation8 + $0x1f18] sm:$0xff] }
 0x34b   :  { %3311 = vmatmul.mubr.f32.gmra.mrb[28].mxu1 %v8232_v22  ;;  %6933 = vmatprep.subr.bf16.mxu0 %v6932_v21  ;;  %v1772_v21 = vld [vmem:[#allocation8 + $0x1db8] sm:$0xff]  ;;  %v6654_v51 = vpack.c.bf16 %v1770_v1, %v1761_v27 }
 0x34c   :  { %3756 = vmatmul.mubr.f32.gmra.mrb[32].mxu0 %v8232_v22  ;;  %3316 = vmatprep.mubr.f32.mxu1 %v8238_v25 }
 0x34d   :  { %6647 = vmatpush1.bf16.msra.mxu1 %v6646_v47  ;;  %3761 = vmatprep.mubr.f32.mxu0 %v8238_v25  ;;  %v6942_v47 = vpack.c.bf16 %v1772_v21, %v1763_v41  ;;  %v6660_v41 = vpack.c.bf16 %v1807_v18, %v1798_v26  ;;  %v1806_v21 = vld [vmem:[#allocation8 + $0x1ec8] sm:$0xff]  ;;  %v1817_v26 = vld [vmem:[#allocation8 + $0x1f20] sm:$0xff] }
 0x34e   :  { %6935 = vmatpush1.bf16.msra.mxu0 %v6934_v37  ;;  %6649 = vmatprep.subr.bf16.mxu1 %v6648_v46  ;;  %v6656_v37 = vpack.c.bf16 %v1789_v56, %v1780_v45  ;;  %v1779_v46 = vld [vmem:[#allocation8 + $0x1df0] sm:$0xff] }
 0x34f   :  { %3317 = vmatmul.mubr.f32.gmra.mrb[30].mxu1 %v8244_v48  ;;  %6937 = vmatprep.subr.bf16.mxu0 %v6936_v29  ;;  %v1790_v29 = vld [vmem:[#allocation8 + $0x1e48] sm:$0xff]  ;;  %v1799_v45 = vld [vmem:[#allocation8 + $0x1e90] sm:$0xff] }
 0x350   :  { %3762 = vmatmul.mubr.f32.gmra.mrb[34].mxu0 %v8244_v48  ;;  %3387 = vmatprep.mubr.f32.mxu1 %v8248_v38  ;;  %v6946_v1 = vpack.c.bf16 %v1790_v29, %v1781_v58  ;;  %v1827_v48 = vld [vmem:[#allocation8 + $0x1f70] sm:$0xff]  ;;  %v6664_v58 = vpack.c.bf16 %v1825_v5, %v1816_v2  ;;  %v1824_v29 = vld [vmem:[#allocation8 + $0x1f58] sm:$0xff] }
 0x351   :  { %6651 = vmatpush1.bf16.msra.mxu1 %v6650_v15  ;;  %3832 = vmatprep.mubr.f32.mxu0 %v8248_v38  ;;  %v1809_v15 = vld [vmem:[#allocation8 + $0x1ee0] sm:$0xff]  ;;  %v1852_v2 = vld [vmem:[#allocation8 + $0x2038] sm:$0xff] }
 0x352   :  { %6939 = vmatpush1.bf16.msra.mxu0 %v6938_v20  ;;  %6653 = vmatprep.subr.bf16.mxu1 %v6652_v30  ;;  %v6658_v30 = vpack.c.bf16 %v1788_v42, %v1779_v46  ;;  %v6948_v56 = vpack.c.bf16 %v1809_v15, %v1800_v17  ;;  %v6950_v42 = vpack.c.bf16 %v1808_v9, %v1799_v45  ;;  %v1826_v17 = vld [vmem:[#allocation8 + $0x1f68] sm:$0xff]  ;;  %v1835_v45 = vld [vmem:[#allocation8 + $0x1fb0] sm:$0xff]  ;;  %v1844_v9 = vld [vmem:[#allocation8 + $0x1ff8] sm:$0xff] }
 0x353   :  { %6941 = vmatprep.subr.bf16.mxu0 %v6940_v40  ;;  %v1797_v40 = vld [vmem:[#allocation8 + $0x1e80] sm:$0xff]  ;;  %v1834_v15 = vld [vmem:[#allocation8 + $0x1fa8] sm:$0xff] }
 0x354   :  { %v8388_v52 = vpop.f32.mrb[16].mxu1  ;;  %v8390_v44 = vpop.f32.mrb[20].mxu0 }
 0x355   :  { %8610 = vst [vmem:[#allocation24_spill] sm:$0xff] %v8388_v52  ;;  %8611 = vst [vmem:[#allocation25_spill] sm:$0xff] %v8390_v44  ;;  %6655 = vmatpush1.bf16.msra.mxu1 %v6654_v51  ;;  %v8392_v27 = vpop.f32.mrb[17].mxu1  ;;  %v8394_v20 = vpop.f32.mrb[21].mxu0  ;;  %v1818_v52 = vld [vmem:[#allocation8 + $0x1f28] sm:$0xff] }
 0x356   :  { %8612 = vst [vmem:[#allocation27_spill] sm:$0xff] %v8394_v20  ;;  %6943 = vmatpush1.bf16.msra.mxu0 %v6942_v47  ;;  %6657 = vmatprep.subr.bf16.mxu1 %v6656_v37  ;;  %v6662_v37 = vpack.c.bf16 %v1806_v21, %v1797_v40  ;;  %v6952_v18 = vpack.c.bf16 %v1827_v48, %v1818_v52  ;;  %v1836_v20 = vld [vmem:[#allocation8 + $0x1fb8] sm:$0xff]  ;;  %v1833_v48 = vld [vmem:[#allocation8 + $0x1fa0] sm:$0xff]  ;;  %v1842_v52 = vld [vmem:[#allocation8 + $0x1fe8] sm:$0xff] }
 0x357   :  { %6945 = vmatprep.subr.bf16.mxu0 %v6944_v11  ;;  %v1815_v11 = vld [vmem:[#allocation8 + $0x1f10] sm:$0xff] }
 0x358   :  { %v8396_v44 = vpop.f32.mrb[18].mxu1  ;;  %v8398_v51 = vpop.f32.mrb[22].mxu0  ;;  %v6666_v5 = vpack.c.bf16 %v1824_v29, %v1815_v11 }
 0x359   :  { %8613 = vst [vmem:[#allocation28_spill] sm:$0xff] %v8396_v44  ;;  %8614 = vst [vmem:[#allocation29_spill] sm:$0xff] %v8398_v51  ;;  %6659 = vmatpush1.bf16.msra.mxu1 %v6658_v30  ;;  %v8400_v46 = vpop.f32.mrb[19].mxu1  ;;  %v8402_v47 = vpop.f32.mrb[23].mxu0  ;;  %v1843_v51 = vld [vmem:[#allocation8 + $0x1ff0] sm:$0xff] }
 0x35a   :  { %8615 = vst [vmem:[#allocation30_spill] sm:$0xff] %v8400_v46  ;;  %8616 = vst [vmem:[#allocation31_spill] sm:$0xff] %v8402_v47  ;;  %6947 = vmatpush1.bf16.msra.mxu0 %v6946_v1  ;;  %6661 = vmatprep.subr.bf16.mxu1 %v6660_v41  ;;  %v1845_v46 = vld [vmem:[#allocation8 + $0x2000] sm:$0xff]  ;;  %v6954_v41 = vpack.c.bf16 %v1826_v17, %v1817_v26  ;;  %v6668_v21 = vpack.c.bf16 %v1843_v51, %v1834_v15  ;;  %v1862_v17 = vld [vmem:[#allocation8 + $0x2088] sm:$0xff] }
 0x35b   :  { %6949 = vmatprep.subr.bf16.mxu0 %v6948_v56  ;;  %v6956_v56 = vpack.c.bf16 %v1845_v46, %v1836_v20  ;;  %v6670_v51 = vpack.c.bf16 %v1842_v52, %v1833_v48  ;;  %v1851_v20 = vld [vmem:[#allocation8 + $0x2030] sm:$0xff]  ;;  %v1860_v46 = vld [vmem:[#allocation8 + $0x2078] sm:$0xff]  ;;  %v1853_v26 = vld [vmem:[#allocation8 + $0x2040] sm:$0xff] }
 0x35c   :  { %v8404_v44 = vpop.f32.mrb[20].mxu1  ;;  %v8406_v30 = vpop.f32.mrb[24].mxu0  ;;  %v1870_v15 = vld [vmem:[#allocation8 + $0x20c8] sm:$0xff]  ;;  %v1871_v52 = vld [vmem:[#allocation8 + $0x20d0] sm:$0xff] }
 0x35d   :  { %8617 = vst [vmem:[#allocation32_spill] sm:$0xff] %v8404_v44  ;;  %8618 = vst [vmem:[#allocation33_spill] sm:$0xff] %v8406_v30  ;;  %6663 = vmatpush1.bf16.msra.mxu1 %v6662_v37  ;;  %v8408_v40 = vpop.f32.mrb[21].mxu1  ;;  %v8410_v1 = vpop.f32.mrb[25].mxu0  ;;  %v1861_v30 = vld [vmem:[#allocation8 + $0x2080] sm:$0xff]  ;;  %v1854_v44 = vld [vmem:[#allocation8 + $0x2048] sm:$0xff] }
 0x35e   :  { %8619 = vst [vmem:[#allocation34_spill] sm:$0xff] %v8408_v40  ;;  %8620 = vst [vmem:[#allocation35_spill] sm:$0xff] %v8410_v1  ;;  %6951 = vmatpush1.bf16.msra.mxu0 %v6950_v42  ;;  %6665 = vmatprep.subr.bf16.mxu1 %v6664_v58  ;;  %v1863_v40 = vld [vmem:[#allocation8 + $0x2090] sm:$0xff]  ;;  %v6958_v58 = vpack.c.bf16 %v1844_v9, %v1835_v45  ;;  %v6672_v29 = vpack.c.bf16 %v1861_v30, %v1852_v2  ;;  %v1872_v1 = vld [vmem:[#allocation8 + $0x20d8] sm:$0xff] }
 0x35f   :  { %6953 = vmatprep.subr.bf16.mxu0 %v6952_v18  ;;  %v6960_v18 = vpack.c.bf16 %v1863_v40, %v1854_v44  ;;  %v1880_v45 = vld [vmem:[#allocation8 + $0x2118] sm:$0xff]  ;;  %v1890_v44 = vld [vmem:[#allocation8 + $0x2168] sm:$0xff]  ;;  %v1899_v40 = vld [vmem:[#allocation8 + $0x21b0] sm:$0xff] }
 0x360   :  { %v8412_v47 = vpop.f32.mrb[22].mxu1  ;;  %v8414_v37 = vpop.f32.mrb[26].mxu0  ;;  %v1888_v9 = vld [vmem:[#allocation8 + $0x2158] sm:$0xff] }
 0x361   :  { %8621 = vst [vmem:[#allocation36_spill] sm:$0xff] %v8412_v47  ;;  %8622 = vst [vmem:[#allocation37_spill] sm:$0xff] %v8414_v37  ;;  %6667 = vmatpush1.bf16.msra.mxu1 %v6666_v5  ;;  %v8416_v11 = vpop.f32.mrb[23].mxu1  ;;  %v8418_v42 = vpop.f32.mrb[27].mxu0  ;;  %v1879_v37 = vld [vmem:[#allocation8 + $0x2110] sm:$0xff]  ;;  %v1881_v47 = vld [vmem:[#allocation8 + $0x2120] sm:$0xff]  ;;  %v6674_v5 = vpack.c.bf16 %v1860_v46, %v1851_v20 }
 0x362   :  { %8623 = vst [vmem:[#allocation38_spill] sm:$0xff] %v8418_v42  ;;  %6955 = vmatpush1.bf16.msra.mxu0 %v6954_v41  ;;  %6669 = vmatprep.subr.bf16.mxu1 %v6668_v21  ;;  %v6962_v42 = vpack.c.bf16 %v1862_v17, %v1853_v26  ;;  %v6676_v48 = vpack.c.bf16 %v1879_v37, %v1870_v15  ;;  %v1869_v41 = vld [vmem:[#allocation8 + $0x20c0] sm:$0xff]  ;;  %v1878_v21 = vld [vmem:[#allocation8 + $0x2108] sm:$0xff] }
 0x363   :  { %6957 = vmatprep.subr.bf16.mxu0 %v6956_v56  ;;  %v6964_v30 = vpack.c.bf16 %v1881_v47, %v1872_v1  ;;  %v1897_v56 = vld [vmem:[#allocation8 + $0x21a0] sm:$0xff]  ;;  %v6678_v2 = vpack.c.bf16 %v1878_v21, %v1869_v41  ;;  %v6968_v37 = vpack.c.bf16 %v1899_v40, %v1890_v44  ;;  %v1898_v26 = vld [vmem:[#allocation8 + $0x21a8] sm:$0xff]  ;;  %v1908_v47 = vld [vmem:[#allocation8 + $0x21f8] sm:$0xff] }
 0x364   :  { %v6680_v20 = vpack.c.bf16 %v1897_v56, %v1888_v9  ;;  %v1889_v46 = vld [vmem:[#allocation8 + $0x2160] sm:$0xff]  ;;  %v1906_v17 = vld [vmem:[#allocation8 + $0x21e8] sm:$0xff]  ;;  %v1907_v21 = vld [vmem:[#allocation8 + $0x21f0] sm:$0xff] }
 0x365   :  { %6671 = vmatpush1.bf16.msra.mxu1 %v6670_v51  ;;  %v6966_v51 = vpack.c.bf16 %v1880_v45, %v1871_v52  ;;  %v1917_v1 = vld [vmem:[#allocation8 + $0x2240] sm:$0xff]  ;;  %v1916_v45 = vld [vmem:[#allocation8 + $0x2238] sm:$0xff]  ;;  %v1926_v56 = vld [vmem:[#allocation8 + $0x2288] sm:$0xff] }
 0x366   :  { %6959 = vmatpush1.bf16.msra.mxu0 %v6958_v58  ;;  %6673 = vmatprep.subr.bf16.mxu1 %v6672_v29  ;;  %v1887_v58 = vld [vmem:[#allocation8 + $0x2150] sm:$0xff]  ;;  %v1896_v29 = vld [vmem:[#allocation8 + $0x2198] sm:$0xff]  ;;  %v6972_v52 = vpack.c.bf16 %v1917_v1, %v1908_v47  ;;  %v1953_v47 = vld [vmem:[#allocation8 + $0x2360] sm:$0xff] }
 0x367   :  { %6961 = vmatprep.subr.bf16.mxu0 %v6960_v18  ;;  %v1915_v18 = vld [vmem:[#allocation8 + $0x2230] sm:$0xff]  ;;  %v6682_v15 = vpack.c.bf16 %v1896_v29, %v1887_v58  ;;  %v1924_v9 = vld [vmem:[#allocation8 + $0x2278] sm:$0xff]  ;;  %v1925_v29 = vld [vmem:[#allocation8 + $0x2280] sm:$0xff] }
 0x368   :  { %v6684_v41 = vpack.c.bf16 %v1915_v18, %v1906_v17  ;;  %v1935_v44 = vld [vmem:[#allocation8 + $0x22d0] sm:$0xff]  ;;  %v1942_v17 = vld [vmem:[#allocation8 + $0x2308] sm:$0xff]  ;;  %v1944_v18 = vld [vmem:[#allocation8 + $0x2318] sm:$0xff] }
 0x369   :  { %6675 = vmatpush1.bf16.msra.mxu1 %v6674_v5  ;;  %v6970_v5 = vpack.c.bf16 %v1898_v26, %v1889_v46  ;;  %v6976_v46 = vpack.c.bf16 %v1935_v44, %v1926_v56  ;;  %v1934_v26 = vld [vmem:[#allocation8 + $0x22c8] sm:$0xff]  ;;  %v1971_v56 = vld [vmem:[#allocation8 + $0x23f0] sm:$0xff] }
 0x36a   :  { %6963 = vmatpush1.bf16.msra.mxu0 %v6962_v42  ;;  %6677 = vmatprep.subr.bf16.mxu1 %v6676_v48  ;;  %v1905_v42 = vld [vmem:[#allocation8 + $0x21e0] sm:$0xff]  ;;  %v1914_v48 = vld [vmem:[#allocation8 + $0x2228] sm:$0xff] }
 0x36b   :  { %6965 = vmatprep.subr.bf16.mxu0 %v6964_v30  ;;  %v1933_v30 = vld [vmem:[#allocation8 + $0x22c0] sm:$0xff]  ;;  %v6686_v40 = vpack.c.bf16 %v1914_v48, %v1905_v42  ;;  %v1943_v48 = vld [vmem:[#allocation8 + $0x2310] sm:$0xff] }
 0x36c   :  { %v6688_v58 = vpack.c.bf16 %v1933_v30, %v1924_v9  ;;  %v1960_v9 = vld [vmem:[#allocation8 + $0x2398] sm:$0xff]  ;;  %v1962_v30 = vld [vmem:[#allocation8 + $0x23a8] sm:$0xff] }
 0x36d   :  { %6679 = vmatpush1.bf16.msra.mxu1 %v6678_v2  ;;  %v6974_v2 = vpack.c.bf16 %v1916_v45, %v1907_v21  ;;  %v6980_v21 = vpack.c.bf16 %v1953_v47, %v1944_v18  ;;  %v1952_v45 = vld [vmem:[#allocation8 + $0x2358] sm:$0xff]  ;;  %v1989_v18 = vld [vmem:[#allocation8 + $0x2480] sm:$0xff] }
 0x36e   :  { %6967 = vmatpush1.bf16.msra.mxu0 %v6966_v51  ;;  %6681 = vmatprep.subr.bf16.mxu1 %v6680_v20  ;;  %v1923_v51 = vld [vmem:[#allocation8 + $0x2270] sm:$0xff]  ;;  %v1932_v20 = vld [vmem:[#allocation8 + $0x22b8] sm:$0xff] }
 0x36f   :  { %6969 = vmatprep.subr.bf16.mxu0 %v6968_v37  ;;  %v1951_v37 = vld [vmem:[#allocation8 + $0x2350] sm:$0xff]  ;;  %v6690_v1 = vpack.c.bf16 %v1932_v20, %v1923_v51  ;;  %v1961_v20 = vld [vmem:[#allocation8 + $0x23a0] sm:$0xff] }
 0x370   :  { %v6692_v42 = vpack.c.bf16 %v1951_v37, %v1942_v17  ;;  %v1978_v17 = vld [vmem:[#allocation8 + $0x2428] sm:$0xff]  ;;  %v1980_v37 = vld [vmem:[#allocation8 + $0x2438] sm:$0xff] }
 0x371   :  { %6683 = vmatpush1.bf16.msra.mxu1 %v6682_v15  ;;  %v6978_v15 = vpack.c.bf16 %v1934_v26, %v1925_v29  ;;  %v6984_v29 = vpack.c.bf16 %v1971_v56, %v1962_v30  ;;  %v1970_v26 = vld [vmem:[#allocation8 + $0x23e8] sm:$0xff]  ;;  %v2007_v30 = vld [vmem:[#allocation8 + $0x2510] sm:$0xff] }
 0x372   :  { %6971 = vmatpush1.bf16.msra.mxu0 %v6970_v5  ;;  %6685 = vmatprep.subr.bf16.mxu1 %v6684_v41  ;;  %v1941_v5 = vld [vmem:[#allocation8 + $0x2300] sm:$0xff]  ;;  %v1950_v41 = vld [vmem:[#allocation8 + $0x2348] sm:$0xff] }
 0x373   :  { %6973 = vmatprep.subr.bf16.mxu0 %v6972_v52  ;;  %v1969_v52 = vld [vmem:[#allocation8 + $0x23e0] sm:$0xff]  ;;  %v6694_v44 = vpack.c.bf16 %v1950_v41, %v1941_v5  ;;  %v1986_v41 = vld [vmem:[#allocation8 + $0x2468] sm:$0xff] }
 0x374   :  { %v6696_v51 = vpack.c.bf16 %v1969_v52, %v1960_v9  ;;  %v1996_v9 = vld [vmem:[#allocation8 + $0x24b8] sm:$0xff]  ;;  %v1998_v52 = vld [vmem:[#allocation8 + $0x24c8] sm:$0xff] }
 0x375   :  { %6687 = vmatpush1.bf16.msra.mxu1 %v6686_v40  ;;  %v6982_v40 = vpack.c.bf16 %v1952_v45, %v1943_v48  ;;  %v1979_v48 = vld [vmem:[#allocation8 + $0x2430] sm:$0xff]  ;;  %v1988_v45 = vld [vmem:[#allocation8 + $0x2478] sm:$0xff] }
 0x376   :  { %6975 = vmatpush1.bf16.msra.mxu0 %v6974_v2  ;;  %6689 = vmatprep.subr.bf16.mxu1 %v6688_v58  ;;  %v1959_v2 = vld [vmem:[#allocation8 + $0x2390] sm:$0xff]  ;;  %v1968_v58 = vld [vmem:[#allocation8 + $0x23d8] sm:$0xff] }
 0x377   :  { %6977 = vmatprep.subr.bf16.mxu0 %v6976_v46  ;;  %v1987_v46 = vld [vmem:[#allocation8 + $0x2470] sm:$0xff]  ;;  %v6698_v47 = vpack.c.bf16 %v1968_v58, %v1959_v2  ;;  %v2004_v2 = vld [vmem:[#allocation8 + $0x24f8] sm:$0xff]  ;;  %v1997_v58 = vld [vmem:[#allocation8 + $0x24c0] sm:$0xff] }
 0x378   :  { %v6700_v5 = vpack.c.bf16 %v1987_v46, %v1978_v17  ;;  %v2023_v17 = vld [vmem:[#allocation8 + $0x2590] sm:$0xff]  ;;  %v2016_v46 = vld [vmem:[#allocation8 + $0x2558] sm:$0xff] }
 0x379   :  { %6691 = vmatpush1.bf16.msra.mxu1 %v6690_v1  ;;  %v6986_v1 = vpack.c.bf16 %v1970_v26, %v1961_v20  ;;  %v6992_v20 = vpack.c.bf16 %v2007_v30, %v1998_v52  ;;  %v2014_v26 = vld [vmem:[#allocation8 + $0x2548] sm:$0xff]  ;;  %v2043_v52 = vld [vmem:[#allocation8 + $0x2630] sm:$0xff] }
 0x37a   :  { %6979 = vmatpush1.bf16.msra.mxu0 %v6978_v15  ;;  %6693 = vmatprep.subr.bf16.mxu1 %v6692_v42  ;;  %v6988_v15 = vpack.c.bf16 %v1989_v18, %v1980_v37  ;;  %v1977_v42 = vld [vmem:[#allocation8 + $0x2420] sm:$0xff] }
 0x37b   :  { %6981 = vmatprep.subr.bf16.mxu0 %v6980_v21  ;;  %v2005_v21 = vld [vmem:[#allocation8 + $0x2500] sm:$0xff]  ;;  %v6702_v56 = vpack.c.bf16 %v1986_v41, %v1977_v42  ;;  %v2015_v42 = vld [vmem:[#allocation8 + $0x2550] sm:$0xff] }
 0x37c   :  { %v2025_v37 = vld [vmem:[#allocation8 + $0x25a0] sm:$0xff] }
 0x37d   :  { %6695 = vmatpush1.bf16.msra.mxu1 %v6694_v44  ;;  %v6990_v44 = vpack.c.bf16 %v1988_v45, %v1979_v48  ;;  %v6996_v41 = vpack.c.bf16 %v2025_v37, %v2016_v46  ;;  %v2024_v48 = vld [vmem:[#allocation8 + $0x2598] sm:$0xff]  ;;  %v2061_v46 = vld [vmem:[#allocation8 + $0x26c0] sm:$0xff] }
 0x37e   :  { %6983 = vmatpush1.bf16.msra.mxu0 %v6982_v40  ;;  %6697 = vmatprep.subr.bf16.mxu1 %v6696_v51  ;;  %v6704_v40 = vpack.c.bf16 %v2005_v21, %v1996_v9  ;;  %v1995_v51 = vld [vmem:[#allocation8 + $0x24b0] sm:$0xff]  ;;  %v2032_v45 = vld [vmem:[#allocation8 + $0x25d8] sm:$0xff]  ;;  %v2041_v9 = vld [vmem:[#allocation8 + $0x2620] sm:$0xff] }
 0x37f   :  { %6985 = vmatprep.subr.bf16.mxu0 %v6984_v29  ;;  %v2006_v29 = vld [vmem:[#allocation8 + $0x2508] sm:$0xff]  ;;  %v6706_v18 = vpack.c.bf16 %v2004_v2, %v1995_v51  ;;  %v2040_v51 = vld [vmem:[#allocation8 + $0x2618] sm:$0xff]  ;;  %v2033_v2 = vld [vmem:[#allocation8 + $0x25e0] sm:$0xff] }
 0x380   :  { %v2034_v21 = vld [vmem:[#allocation8 + $0x25e8] sm:$0xff] }
 0x381   :  { %6699 = vmatpush1.bf16.msra.mxu1 %v6698_v47  ;;  %v6994_v47 = vpack.c.bf16 %v2006_v29, %v1997_v58  ;;  %v7000_v58 = vpack.c.bf16 %v2043_v52, %v2034_v21  ;;  %v2050_v29 = vld [vmem:[#allocation8 + $0x2668] sm:$0xff]  ;;  %v2079_v21 = vld [vmem:[#allocation8 + $0x2750] sm:$0xff] }
 0x382   :  { %6987 = vmatpush1.bf16.msra.mxu0 %v6986_v1  ;;  %6701 = vmatprep.subr.bf16.mxu1 %v6700_v5  ;;  %v6708_v1 = vpack.c.bf16 %v2023_v17, %v2014_v26  ;;  %v2013_v5 = vld [vmem:[#allocation8 + $0x2540] sm:$0xff]  ;;  %v2059_v26 = vld [vmem:[#allocation8 + $0x26b0] sm:$0xff]  ;;  %v2052_v17 = vld [vmem:[#allocation8 + $0x2678] sm:$0xff] }
 0x383   :  { %6989 = vmatprep.subr.bf16.mxu0 %v6988_v15  ;;  %v2022_v15 = vld [vmem:[#allocation8 + $0x2588] sm:$0xff] }
 0x384   :  { %3388 = vmatmul.mubr.f32.vlgmr.msra.gmra.mrb[24].mxu1 %v8268_v8  ;;  %v6710_v30 = vpack.c.bf16 %v2022_v15, %v2013_v5  ;;  %v2058_v5 = vld [vmem:[#allocation8 + $0x26a8] sm:$0xff]  ;;  %v2051_v15 = vld [vmem:[#allocation8 + $0x2670] sm:$0xff] }
 0x385   :  { %3833 = vmatmul.mubr.f32.vlgmr.msra.gmra.mrb[28].mxu0 %v8268_v8  ;;  %3393 = vmatprep.mubr.f32.mxu1 %v8270_v39 }
 0x386   :  { %6703 = vmatpush1.bf16.msra.mxu1 %v6702_v56  ;;  %3838 = vmatprep.mubr.f32.mxu0 %v8270_v39  ;;  %v6998_v56 = vpack.c.bf16 %v2024_v48, %v2015_v42  ;;  %v7004_v42 = vpack.c.bf16 %v2061_v46, %v2052_v17  ;;  %v2068_v48 = vld [vmem:[#allocation8 + $0x26f8] sm:$0xff]  ;;  %v2097_v17 = vld [vmem:[#allocation8 + $0x27e0] sm:$0xff] }
 0x387   :  { %6991 = vmatpush1.bf16.msra.mxu0 %v6990_v44  ;;  %6705 = vmatprep.subr.bf16.mxu1 %v6704_v40  ;;  %v6712_v44 = vpack.c.bf16 %v2041_v9, %v2032_v45  ;;  %v2031_v40 = vld [vmem:[#allocation8 + $0x25d0] sm:$0xff]  ;;  %v2077_v45 = vld [vmem:[#allocation8 + $0x2740] sm:$0xff]  ;;  %v2070_v9 = vld [vmem:[#allocation8 + $0x2708] sm:$0xff] }
 0x388   :  { %3394 = vmatmul.mubr.f32.gmra.mrb[26].mxu1 %v8276_v55  ;;  %6993 = vmatprep.subr.bf16.mxu0 %v6992_v20  ;;  %v2042_v20 = vld [vmem:[#allocation8 + $0x2628] sm:$0xff]  ;;  %v6714_v37 = vpack.c.bf16 %v2040_v51, %v2031_v40  ;;  %v2076_v40 = vld [vmem:[#allocation8 + $0x2738] sm:$0xff]  ;;  %v2069_v51 = vld [vmem:[#allocation8 + $0x2700] sm:$0xff] }
 0x389   :  { %3839 = vmatmul.mubr.f32.gmra.mrb[30].mxu0 %v8276_v55  ;;  %3399 = vmatprep.mubr.f32.mxu1 %v8280_v61 }
 0x38a   :  { %6707 = vmatpush1.bf16.msra.mxu1 %v6706_v18  ;;  %3844 = vmatprep.mubr.f32.mxu0 %v8280_v61  ;;  %v7002_v18 = vpack.c.bf16 %v2042_v20, %v2033_v2  ;;  %v7008_v2 = vpack.c.bf16 %v2079_v21, %v2070_v9  ;;  %v2086_v20 = vld [vmem:[#allocation8 + $0x2788] sm:$0xff]  ;;  %v2115_v9 = vld [vmem:[#allocation8 + $0x2870] sm:$0xff] }
 0x38b   :  { %6995 = vmatpush1.bf16.msra.mxu0 %v6994_v47  ;;  %6709 = vmatprep.subr.bf16.mxu1 %v6708_v1  ;;  %v6716_v47 = vpack.c.bf16 %v2059_v26, %v2050_v29  ;;  %v2049_v1 = vld [vmem:[#allocation8 + $0x2660] sm:$0xff]  ;;  %v2095_v29 = vld [vmem:[#allocation8 + $0x27d0] sm:$0xff]  ;;  %v2088_v26 = vld [vmem:[#allocation8 + $0x2798] sm:$0xff] }
 0x38c   :  { %3400 = vmatmul.mubr.f32.gmra.mrb[28].mxu1 %v8286_v36  ;;  %6997 = vmatprep.subr.bf16.mxu0 %v6996_v41  ;;  %v2060_v41 = vld [vmem:[#allocation8 + $0x26b8] sm:$0xff]  ;;  %v6718_v52 = vpack.c.bf16 %v2058_v5, %v2049_v1  ;;  %v6724_v1 = vpack.c.bf16 %v2095_v29, %v2086_v20  ;;  %v2087_v5 = vld [vmem:[#allocation8 + $0x2790] sm:$0xff]  ;;  %v973_v20 = vld [vmem:[#allocation8 + $0x4c0] sm:$0xff] }
 0x38d   :  { %3845 = vmatmul.mubr.f32.gmra.mrb[32].mxu0 %v8286_v36  ;;  %3405 = vmatprep.mubr.f32.mxu1 %v8292_v14  ;;  %v1261_v29 = vld [vmem:[#allocation8 + $0xdc0] sm:$0xff] }
 0x38e   :  { %6711 = vmatpush1.bf16.msra.mxu1 %v6710_v30  ;;  %3850 = vmatprep.mubr.f32.mxu0 %v8292_v14  ;;  %v7006_v30 = vpack.c.bf16 %v2060_v41, %v2051_v15  ;;  %v7012_v15 = vpack.c.bf16 %v2097_v17, %v2088_v26  ;;  %v2096_v41 = vld [vmem:[#allocation8 + $0x27d8] sm:$0xff]  ;;  %v1270_v26 = vld [vmem:[#allocation8 + $0xe08] sm:$0xff] }
 0x38f   :  { %6999 = vmatpush1.bf16.msra.mxu0 %v6998_v56  ;;  %6713 = vmatprep.subr.bf16.mxu1 %v6712_v44  ;;  %v6720_v56 = vpack.c.bf16 %v2077_v45, %v2068_v48  ;;  %v2067_v44 = vld [vmem:[#allocation8 + $0x26f0] sm:$0xff]  ;;  %v2104_v48 = vld [vmem:[#allocation8 + $0x2818] sm:$0xff]  ;;  %v2106_v45 = vld [vmem:[#allocation8 + $0x2828] sm:$0xff] }
 0x390   :  { %3406 = vmatmul.mubr.f32.gmra.mrb[30].mxu1 %v8296_v57  ;;  %7001 = vmatprep.subr.bf16.mxu0 %v7000_v58  ;;  %v2078_v58 = vld [vmem:[#allocation8 + $0x2748] sm:$0xff]  ;;  %v6722_v46 = vpack.c.bf16 %v2076_v40, %v2067_v44  ;;  %v2105_v40 = vld [vmem:[#allocation8 + $0x2820] sm:$0xff] }
 0x391   :  { %3851 = vmatmul.mubr.f32.gmra.mrb[34].mxu0 %v8296_v57  ;;  %3476 = vmatprep.mubr.f32.mxu1 %v8607_v32 }
 0x392   :  { %6715 = vmatpush1.bf16.msra.mxu1 %v6714_v37  ;;  %3921 = vmatprep.mubr.f32.mxu0 %v8607_v32  ;;  %v7010_v37 = vpack.c.bf16 %v2078_v58, %v2069_v51  ;;  %v7016_v51 = vpack.c.bf16 %v2115_v9, %v2106_v45  ;;  %v2114_v58 = vld [vmem:[#allocation8 + $0x2868] sm:$0xff]  ;;  %v1279_v45 = vld [vmem:[#allocation8 + $0xe50] sm:$0xff]  ;;  %v1288_v9 = vld [vmem:[#allocation8 + $0xe98] sm:$0xff] }
 0x393   :  { %7003 = vmatpush1.bf16.msra.mxu0 %v7002_v18  ;;  %6717 = vmatprep.subr.bf16.mxu1 %v6716_v47  ;;  %v2085_v18 = vld [vmem:[#allocation8 + $0x2780] sm:$0xff]  ;;  %v2094_v47 = vld [vmem:[#allocation8 + $0x27c8] sm:$0xff] }
 0x394   :  { %7005 = vmatprep.subr.bf16.mxu0 %v7004_v42  ;;  %v2113_v42 = vld [vmem:[#allocation8 + $0x2860] sm:$0xff]  ;;  %v6726_v21 = vpack.c.bf16 %v2094_v47, %v2085_v18  ;;  %v7052_v47 = vpack.c.bf16 %v1270_v26, %v1261_v29  ;;  %v1306_v26 = vld [vmem:[#allocation8 + $0xf28] sm:$0xff] }
 0x395   :  { %v6728_v44 = vpack.c.bf16 %v2113_v42, %v2104_v48  ;;  %v991_v48 = vld [vmem:[#allocation8 + $0x550] sm:$0xff]  ;;  %v1297_v29 = vld [vmem:[#allocation8 + $0xee0] sm:$0xff] }
 0x396   :  { %6719 = vmatpush1.bf16.msra.mxu1 %v6718_v52  ;;  %v7014_v52 = vpack.c.bf16 %v2096_v41, %v2087_v5  ;;  %v1117_v5 = vld [vmem:[#allocation8 + $0x940] sm:$0xff]  ;;  %v1126_v41 = vld [vmem:[#allocation8 + $0x988] sm:$0xff] }
 0x397   :  { %7007 = vmatpush1.bf16.msra.mxu0 %v7006_v30  ;;  %6721 = vmatprep.subr.bf16.mxu1 %v6720_v56  ;;  %v2103_v30 = vld [vmem:[#allocation8 + $0x2810] sm:$0xff]  ;;  %v2112_v56 = vld [vmem:[#allocation8 + $0x2858] sm:$0xff] }
 0x398   :  { %7009 = vmatprep.subr.bf16.mxu0 %v7008_v2  ;;  %v982_v2 = vld [vmem:[#allocation8 + $0x508] sm:$0xff]  ;;  %v6730_v17 = vpack.c.bf16 %v2112_v56, %v2103_v30  ;;  %v847_v30 = vld [vmem:[#allocation8 + $0xd0] sm:$0xff] }
 0x399   :  { %v7020_v18 = vpack.c.bf16 %v982_v2, %v973_v20  ;;  %v1135_v56 = vld [vmem:[#allocation8 + $0x9d0] sm:$0xff]  ;;  %v1018_v20 = vld [vmem:[#allocation8 + $0x628] sm:$0xff] }
 0x39a   :  { %6723 = vmatpush1.bf16.msra.mxu1 %v6722_v46  ;;  %v7018_v46 = vpack.c.bf16 %v2114_v58, %v2105_v40  ;;  %v1144_v40 = vld [vmem:[#allocation8 + $0xa18] sm:$0xff]  ;;  %v1009_v58 = vld [vmem:[#allocation8 + $0x5e0] sm:$0xff] }
 0x39b   :  { %7011 = vmatpush1.bf16.msra.mxu0 %v7010_v37  ;;  %6725 = vmatprep.subr.bf16.mxu1 %v6724_v1  ;;  %v829_v37 = vld [vmem:[#allocation8 + $0x40] sm:$0xff]  ;;  %v838_v1 = vld [vmem:[#allocation8 + $0x88] sm:$0xff] }
 0x39c   :  { %7013 = vmatprep.subr.bf16.mxu0 %v7012_v15  ;;  %v1000_v15 = vld [vmem:[#allocation8 + $0x598] sm:$0xff]  ;;  %v7022_v42 = vpack.c.bf16 %v838_v1, %v829_v37  ;;  %v7028_v37 = vpack.c.bf16 %v1018_v20, %v1009_v58  ;;  %v1153_v1 = vld [vmem:[#allocation8 + $0xa60] sm:$0xff]  ;;  %v1054_v58 = vld [vmem:[#allocation8 + $0x748] sm:$0xff] }
 0x39e   :  { %6727 = vmatpush1.bf16.msra.mxu1 %v6726_v21  ;;  %v7054_v21 = vpack.c.bf16 %v1126_v41, %v1117_v5  ;;  %v7060_v5 = vpack.c.bf16 %v1306_v26, %v1297_v29  ;;  %v1027_v41 = vld [vmem:[#allocation8 + $0x670] sm:$0xff]  ;;  %v1342_v29 = vld [vmem:[#allocation8 + $0x1048] sm:$0xff] }
 0x39f   :  { %7015 = vmatpush1.bf16.msra.mxu0 %v7014_v52  ;;  %6729 = vmatprep.subr.bf16.mxu1 %v6728_v44  ;;  %v856_v52 = vld [vmem:[#allocation8 + $0x118] sm:$0xff]  ;;  %v7024_v44 = vpack.c.bf16 %v1000_v15, %v991_v48 }
 0x3a0   :  { %7017 = vmatprep.subr.bf16.mxu0 %v7016_v51  ;;  %v7056_v51 = vpack.c.bf16 %v1288_v9, %v1279_v45  ;;  %v7026_v2 = vpack.c.bf16 %v856_v52, %v847_v30  ;;  %v1036_v48 = vld [vmem:[#allocation8 + $0x6b8] sm:$0xff] }
 0x3a1   :  { %v1324_v45 = vld [vmem:[#allocation8 + $0xfb8] sm:$0xff]  ;;  %v7032_v52 = vpack.c.bf16 %v1036_v48, %v1027_v41  ;;  %v1351_v48 = vld [vmem:[#allocation8 + $0x1090] sm:$0xff] }
 0x3a2   :  { %6731 = vmatpush1.bf16.msra.mxu1 %v6730_v17  ;;  %v7058_v17 = vpack.c.bf16 %v1144_v40, %v1135_v56  ;;  %v892_v30 = vld [vmem:[#allocation8 + $0x238] sm:$0xff] }
 0x3a3   :  { %7019 = vmatpush1.bf16.msra.mxu0 %v7018_v46  ;;  %7021 = vmatprep.subr.bf16.mxu1 %v7020_v18  ;;  %v865_v46 = vld [vmem:[#allocation8 + $0x160] sm:$0xff]  ;;  %v874_v18 = vld [vmem:[#allocation8 + $0x1a8] sm:$0xff]  ;;  %v1180_v56 = vld [vmem:[#allocation8 + $0xb38] sm:$0xff] }
 0x3a4   :  { %7053 = vmatprep.subr.bf16.mxu0 %v7052_v47  ;;  %v1162_v47 = vld [vmem:[#allocation8 + $0xaa8] sm:$0xff]  ;;  %v7030_v15 = vpack.c.bf16 %v874_v18, %v865_v46  ;;  %v1189_v18 = vld [vmem:[#allocation8 + $0xb80] sm:$0xff] }
 0x3a5   :  { %3477 = vmatmul.mubr.f32.vlgmr.msra.gmra.mrb[24].mxu1 %v8312_v31  ;;  %v7062_v9 = vpack.c.bf16 %v1162_v47, %v1153_v1  ;;  %v910_v46 = vld [vmem:[#allocation8 + $0x2c8] sm:$0xff]  ;;  %v1063_v47 = vld [vmem:[#allocation8 + $0x790] sm:$0xff] }
 0x3a6   :  { %3922 = vmatmul.mubr.f32.vlgmr.msra.gmra.mrb[28].mxu0 %v8312_v31  ;;  %7023 = vmatpush3.bf16.msra.mxu1 %v7022_v42  ;;  %v1315_v42 = vld [vmem:[#allocation8 + $0xf70] sm:$0xff]  ;;  %v1198_v1 = vld [vmem:[#allocation8 + $0xbc8] sm:$0xff] }
 0x3a7   :  { %7055 = vmatpush3.bf16.msra.mxu0 %v7054_v21  ;;  %3482 = vmatprep.mubr.f32.mxu1 %v8607_v32  ;;  %v883_v21 = vld [vmem:[#allocation8 + $0x1f0] sm:$0xff]  ;;  %v7064_v40 = vpack.c.bf16 %v1324_v45, %v1315_v42  ;;  %v7070_v45 = vpack.c.bf16 %v1198_v1, %v1189_v18 }
 0x3a8   :  { %3927 = vmatprep.mubr.f32.mxu0 %v8607_v32  ;;  %7025 = vmatprep.subr.bf16.mxu1 %v7024_v44  ;;  %v1171_v44 = vld [vmem:[#allocation8 + $0xaf0] sm:$0xff]  ;;  %v7034_v20 = vpack.c.bf16 %v892_v30, %v883_v21  ;;  %v928_v21 = vld [vmem:[#allocation8 + $0x358] sm:$0xff] }
 0x3a9   :  { %3483 = vmatmul.mubr.f32.gmra.mrb[26].mxu1 %v8318_v54  ;;  %7057 = vmatprep.subr.bf16.mxu0 %v7056_v51  ;;  %v1045_v51 = vld [vmem:[#allocation8 + $0x700] sm:$0xff]  ;;  %v7066_v26 = vpack.c.bf16 %v1180_v56, %v1171_v44  ;;  %v1207_v30 = vld [vmem:[#allocation8 + $0xc10] sm:$0xff]  ;;  %v1216_v44 = vld [vmem:[#allocation8 + $0xc58] sm:$0xff] }
 0x3aa   :  { %3928 = vmatmul.mubr.f32.gmra.mrb[30].mxu0 %v8318_v54  ;;  %7027 = vmatpush3.bf16.msra.mxu1 %v7026_v2  ;;  %v1333_v2 = vld [vmem:[#allocation8 + $0x1000] sm:$0xff]  ;;  %v1099_v18 = vld [vmem:[#allocation8 + $0x8b0] sm:$0xff] }
 0x3ab   :  { %7059 = vmatpush3.bf16.msra.mxu0 %v7058_v17  ;;  %3488 = vmatprep.mubr.f32.mxu1 %v8607_v32  ;;  %v901_v17 = vld [vmem:[#allocation8 + $0x280] sm:$0xff]  ;;  %v7068_v41 = vpack.c.bf16 %v1342_v29, %v1333_v2  ;;  %v1387_v1 = vld [vmem:[#allocation8 + $0x11b0] sm:$0xff] }
 0x3ac   :  { %3933 = vmatprep.mubr.f32.mxu0 %v8607_v32  ;;  %7029 = vmatprep.subr.bf16.mxu1 %v7028_v37  ;;  %v7036_v37 = vpack.c.bf16 %v1054_v58, %v1045_v51  ;;  %v7038_v42 = vpack.c.bf16 %v910_v46, %v901_v17  ;;  %v1081_v56 = vld [vmem:[#allocation8 + $0x820] sm:$0xff]  ;;  %v1378_v58 = vld [vmem:[#allocation8 + $0x1168] sm:$0xff] }
 0x3ad   :  { %3489 = vmatmul.mubr.f32.gmra.mrb[28].mxu1 %v8322_v4  ;;  %7061 = vmatprep.subr.bf16.mxu0 %v7060_v5  ;;  %v1072_v5 = vld [vmem:[#allocation8 + $0x7d8] sm:$0xff]  ;;  %v1369_v51 = vld [vmem:[#allocation8 + $0x1120] sm:$0xff] }
 0x3ae   :  { %3934 = vmatmul.mubr.f32.gmra.mrb[32].mxu0 %v8322_v4  ;;  %7031 = vmatpush3.bf16.msra.mxu1 %v7030_v15  ;;  %v1360_v15 = vld [vmem:[#allocation8 + $0x10d8] sm:$0xff]  ;;  %v937_v29 = vld [vmem:[#allocation8 + $0x3a0] sm:$0xff]  ;;  %v7076_v46 = vpack.c.bf16 %v1378_v58, %v1369_v51 }
 0x3af   :  { %7063 = vmatpush3.bf16.msra.mxu0 %v7062_v9  ;;  %3494 = vmatprep.mubr.f32.mxu1 %v8607_v32  ;;  %v919_v9 = vld [vmem:[#allocation8 + $0x310] sm:$0xff]  ;;  %v1225_v17 = vld [vmem:[#allocation8 + $0xca0] sm:$0xff] }
 0x3b0   :  { %3939 = vmatprep.mubr.f32.mxu0 %v8607_v32  ;;  %7033 = vmatprep.subr.bf16.mxu1 %v7032_v52  ;;  %v7040_v32 = vpack.c.bf16 %v1072_v5, %v1063_v47  ;;  %v7072_v52 = vpack.c.bf16 %v1360_v15, %v1351_v48  ;;  %v1396_v47 = vld [vmem:[#allocation8 + $0x11f8] sm:$0xff]  ;;  %v955_v15 = vld [vmem:[#allocation8 + $0x430] sm:$0xff] }
 0x3b1   :  { %3495 = vmatmul.mubr.f32.gmra.mrb[30].mxu1 %v8332_v34  ;;  %7065 = vmatprep.subr.bf16.mxu0 %v7064_v40  ;;  %v1090_v40 = vld [vmem:[#allocation8 + $0x868] sm:$0xff] }
 0x3b2   :  { %3940 = vmatmul.mubr.f32.gmra.mrb[34].mxu0 %v8332_v34  ;;  %7035 = vmatpush3.bf16.msra.mxu1 %v7034_v20  ;;  %v7042_v20 = vpack.c.bf16 %v928_v21, %v919_v9  ;;  %v7044_v2 = vpack.c.bf16 %v1090_v40, %v1081_v56  ;;  %v1252_v9 = vld [vmem:[#allocation8 + $0xd78] sm:$0xff]  ;;  %v1549_v21 = vld [vmem:[#allocation8 + $0x16c0] sm:$0xff] }
 0x3b3   :  { %4010 = vmatprep.mubr.f32.mxu1 %v8031_v3  ;;  %7067 = vmatpush3.bf16.msra.mxu0 %v7066_v26  ;;  %v7074_v3 = vpack.c.bf16 %v1216_v44, %v1207_v30  ;;  %v946_v26 = vld [vmem:[#allocation8 + $0x3e8] sm:$0xff] }
 0x3b4   :  { %4095 = vmatprep.mubr.f32.mxu0 %v8078_v24  ;;  %7037 = vmatprep.subr.bf16.mxu1 %v7036_v37  ;;  %v1234_v24 = vld [vmem:[#allocation8 + $0xce8] sm:$0xff]  ;;  %v1108_v37 = vld [vmem:[#allocation8 + $0x8f8] sm:$0xff]  ;;  %v7046_v5 = vpack.c.bf16 %v946_v26, %v937_v29  ;;  %v1567_v26 = vld [vmem:[#allocation8 + $0x1750] sm:$0xff] }
 0x3b5   :  { %7069 = vmatprep.subr.bf16.mxu0 %v7068_v41  ;;  %v7078_v41 = vpack.c.bf16 %v1234_v24, %v1225_v17  ;;  %v7048_v48 = vpack.c.bf16 %v1108_v37, %v1099_v18  ;;  %v1558_v30 = vld [vmem:[#allocation8 + $0x1708] sm:$0xff]  ;;  %v1576_v17 = vld [vmem:[#allocation8 + $0x1798] sm:$0xff] }
 0x3b6   :  { %7039 = vmatpush3.bf16.msra.mxu1 %v7038_v42  ;;  %v964_v42 = vld [vmem:[#allocation8 + $0x478] sm:$0xff]  ;;  %v1846_v44 = vld [vmem:[#allocation8 + $0x2008] sm:$0xff]  ;;  %v7084_v51 = vpack.c.bf16 %v1558_v30, %v1549_v21 }
 0x3b7   :  { %7071 = vmatpush3.bf16.msra.mxu0 %v7070_v45  ;;  %7041 = vmatprep.subr.bf16.mxu1 %v7040_v32  ;;  %v1243_v45 = vld [vmem:[#allocation8 + $0xd30] sm:$0xff]  ;;  %v7080_v32 = vpack.c.bf16 %v1396_v47, %v1387_v1  ;;  %v7050_v56 = vpack.c.bf16 %v964_v42, %v955_v15  ;;  %v1702_v29 = vld [vmem:[#allocation8 + $0x1b88] sm:$0xff]  ;;  %v1864_v24 = vld [vmem:[#allocation8 + $0x2098] sm:$0xff]  ;;  %v7088_v1 = vpack.c.bf16 %v1576_v17, %v1567_v26 }
 0x3b8   :  { %7073 = vmatprep.subr.bf16.mxu0 %v7072_v52  ;;  %v1837_v52 = vld [vmem:[#allocation8 + $0x1fc0] sm:$0xff]  ;;  %v7082_v40 = vpack.c.bf16 %v1252_v9, %v1243_v45  ;;  %v1423_v47 = vld [vmem:[#allocation8 + $0x12d0] sm:$0xff]  ;;  %v1720_v15 = vld [vmem:[#allocation8 + $0x1c18] sm:$0xff] }
 0x3b9   :  { %v7116_v58 = vpack.c.bf16 %v1846_v44, %v1837_v52  ;;  %v1585_v42 = vld [vmem:[#allocation8 + $0x17e0] sm:$0xff]  ;;  %v1594_v45 = vld [vmem:[#allocation8 + $0x1828] sm:$0xff]  ;;  %v1747_v26 = vld [vmem:[#allocation8 + $0x1cf0] sm:$0xff] }
 0x3ba   :  { %7043 = vmatpush3.bf16.msra.mxu1 %v7042_v20  ;;  %v1405_v20 = vld [vmem:[#allocation8 + $0x1240] sm:$0xff]  ;;  %v1882_v9 = vld [vmem:[#allocation8 + $0x2128] sm:$0xff]  ;;  %v7092_v52 = vpack.c.bf16 %v1594_v45, %v1585_v42 }
 0x3bb   :  { %7075 = vmatpush3.bf16.msra.mxu0 %v7074_v3  ;;  %7045 = vmatprep.subr.bf16.mxu1 %v7044_v2  ;;  %v1414_v3 = vld [vmem:[#allocation8 + $0x1288] sm:$0xff]  ;;  %v1693_v2 = vld [vmem:[#allocation8 + $0x1b40] sm:$0xff] }
 0x3bc   :  { %7077 = vmatprep.subr.bf16.mxu0 %v7076_v46  ;;  %v1855_v46 = vld [vmem:[#allocation8 + $0x2050] sm:$0xff]  ;;  %v7086_v18 = vpack.c.bf16 %v1414_v3, %v1405_v20  ;;  %v7118_v37 = vpack.c.bf16 %v1702_v29, %v1693_v2  ;;  %v1441_v44 = vld [vmem:[#allocation8 + $0x1360] sm:$0xff]  ;;  %v1468_v29 = vld [vmem:[#allocation8 + $0x1438] sm:$0xff] }
 0x3be   :  { %7047 = vmatpush3.bf16.msra.mxu1 %v7046_v5  ;;  %v1432_v5 = vld [vmem:[#allocation8 + $0x1318] sm:$0xff] }
 0x3bf   :  { %7079 = vmatpush3.bf16.msra.mxu0 %v7078_v41  ;;  %7049 = vmatprep.subr.bf16.mxu1 %v7048_v48  ;;  %v1711_v41 = vld [vmem:[#allocation8 + $0x1bd0] sm:$0xff]  ;;  %v7120_v48 = vpack.c.bf16 %v1864_v24, %v1855_v46  ;;  %v7090_v21 = vpack.c.bf16 %v1432_v5, %v1423_v47  ;;  %v1621_v46 = vld [vmem:[#allocation8 + $0x1900] sm:$0xff]  ;;  %v1918_v24 = vld [vmem:[#allocation8 + $0x2248] sm:$0xff] }
 0x3c0   :  { %7081 = vmatprep.subr.bf16.mxu0 %v7080_v32  ;;  %v1873_v32 = vld [vmem:[#allocation8 + $0x20e0] sm:$0xff]  ;;  %v7122_v30 = vpack.c.bf16 %v1720_v15, %v1711_v41  ;;  %v1486_v47 = vld [vmem:[#allocation8 + $0x14c8] sm:$0xff]  ;;  %v1936_v15 = vld [vmem:[#allocation8 + $0x22d8] sm:$0xff] }
 0x3c1   :  { %v1765_v5 = vld [vmem:[#allocation8 + $0x1d80] sm:$0xff] }
 0x3c2   :  { %7051 = vmatpush3.bf16.msra.mxu1 %v7050_v56  ;;  %v1729_v56 = vld [vmem:[#allocation8 + $0x1c60] sm:$0xff] }
 0x3c3   :  { %7083 = vmatpush3.bf16.msra.mxu0 %v7082_v40  ;;  %7085 = vmatprep.subr.bf16.mxu1 %v7084_v51  ;;  %v7124_v40 = vpack.c.bf16 %v1882_v9, %v1873_v32  ;;  %v1603_v51 = vld [vmem:[#allocation8 + $0x1870] sm:$0xff]  ;;  %v1504_v9 = vld [vmem:[#allocation8 + $0x1558] sm:$0xff] }
 0x3c4   :  { %7117 = vmatprep.subr.bf16.mxu0 %v7116_v58  ;;  %v1900_v58 = vld [vmem:[#allocation8 + $0x21b8] sm:$0xff] }
 0x3c5   :  { %4011 = vmatmul.mubr.f32.vlgmr.msra.gmra.mrb[32].mxu1 %v8033_v10  ;;  %v1450_v10 = vld [vmem:[#allocation8 + $0x13a8] sm:$0xff] }
 0x3c6   :  { %4096 = vmatmul.mubr.f32.vlgmr.msra.gmra.mrb[36].mxu0 %v8128_v6  ;;  %4015 = vmatprep.mubr.f32.mxu1 %v8044_v28  ;;  %v1738_v6 = vld [vmem:[#allocation8 + $0x1ca8] sm:$0xff]  ;;  %v1612_v28 = vld [vmem:[#allocation8 + $0x18b8] sm:$0xff]  ;;  %v7094_v20 = vpack.c.bf16 %v1450_v10, %v1441_v44  ;;  %v1657_v44 = vld [vmem:[#allocation8 + $0x1a20] sm:$0xff] }
 0x3c7   :  { %4100 = vmatprep.mubr.f32.mxu0 %v8132_v16  ;;  %7087 = vmatpush3.bf16.msra.mxu1 %v7086_v18  ;;  %v1891_v16 = vld [vmem:[#allocation8 + $0x2170] sm:$0xff]  ;;  %v7126_v3 = vpack.c.bf16 %v1738_v6, %v1729_v56  ;;  %v7096_v2 = vpack.c.bf16 %v1612_v28, %v1603_v51  ;;  %v1945_v10 = vld [vmem:[#allocation8 + $0x2320] sm:$0xff]  ;;  %v1522_v51 = vld [vmem:[#allocation8 + $0x15e8] sm:$0xff] }
 0x3c8   :  { %7119 = vmatpush3.bf16.msra.mxu0 %v7118_v37  ;;  %7089 = vmatprep.subr.bf16.mxu1 %v7088_v1  ;;  %v7128_v17 = vpack.c.bf16 %v1900_v58, %v1891_v16  ;;  %v1513_v6 = vld [vmem:[#allocation8 + $0x15a0] sm:$0xff]  ;;  %v1810_v58 = vld [vmem:[#allocation8 + $0x1ee8] sm:$0xff] }
 0x3c9   :  { %4016 = vmatmul.mubr.f32.gmra.mrb[34].mxu1 %v8042_v23  ;;  %7121 = vmatprep.subr.bf16.mxu0 %v7120_v48  ;;  %v1459_v23 = vld [vmem:[#allocation8 + $0x13f0] sm:$0xff]  ;;  %v1801_v28 = vld [vmem:[#allocation8 + $0x1ea0] sm:$0xff] }
 0x3ca   :  { %4101 = vmatmul.mubr.f32.gmra.mrb[38].mxu0 %v8139_v19  ;;  %4020 = vmatprep.mubr.f32.mxu1 %v8061_v49  ;;  %v1756_v19 = vld [vmem:[#allocation8 + $0x1d38] sm:$0xff]  ;;  %v1630_v49 = vld [vmem:[#allocation8 + $0x1948] sm:$0xff]  ;;  %v7098_v18 = vpack.c.bf16 %v1468_v29, %v1459_v23  ;;  %v1639_v48 = vld [vmem:[#allocation8 + $0x1990] sm:$0xff]  ;;  %v7110_v29 = vpack.c.bf16 %v1522_v51, %v1513_v6 }
 0x3cb   :  { %4105 = vmatprep.mubr.f32.mxu0 %v8143_v59  ;;  %7091 = vmatpush3.bf16.msra.mxu1 %v7090_v21  ;;  %v1909_v59 = vld [vmem:[#allocation8 + $0x2200] sm:$0xff]  ;;  %v7130_v37 = vpack.c.bf16 %v1756_v19, %v1747_v26  ;;  %v7100_v1 = vpack.c.bf16 %v1630_v49, %v1621_v46  ;;  %v1783_v21 = vld [vmem:[#allocation8 + $0x1e10] sm:$0xff]  ;;  %v1972_v23 = vld [vmem:[#allocation8 + $0x23f8] sm:$0xff]  ;;  %v7142_v26 = vpack.c.bf16 %v1810_v58, %v1801_v28 }
 0x3cc   :  { %7123 = vmatpush3.bf16.msra.mxu0 %v7122_v30  ;;  %7093 = vmatprep.subr.bf16.mxu1 %v7092_v52  ;;  %v7132_v41 = vpack.c.bf16 %v1918_v24, %v1909_v59  ;;  %v1792_v52 = vld [vmem:[#allocation8 + $0x1e58] sm:$0xff]  ;;  %v1531_v19 = vld [vmem:[#allocation8 + $0x1630] sm:$0xff] }
 0x3cd   :  { %4021 = vmatmul.mubr.f32.gmra.mrb[36].mxu1 %v8055_v43  ;;  %7125 = vmatprep.subr.bf16.mxu0 %v7124_v40  ;;  %v1477_v43 = vld [vmem:[#allocation8 + $0x1480] sm:$0xff]  ;;  %v1540_v46 = vld [vmem:[#allocation8 + $0x1678] sm:$0xff]  ;;  %v1819_v49 = vld [vmem:[#allocation8 + $0x1f30] sm:$0xff] }
 0x3ce   :  { %4106 = vmatmul.mubr.f32.gmra.mrb[40].mxu0 %v8154_v63  ;;  %4025 = vmatprep.mubr.f32.mxu1 %v8074_v12  ;;  %v1774_v63 = vld [vmem:[#allocation8 + $0x1dc8] sm:$0xff]  ;;  %v1648_v12 = vld [vmem:[#allocation8 + $0x19d8] sm:$0xff]  ;;  %v7102_v42 = vpack.c.bf16 %v1486_v47, %v1477_v43  ;;  %v7114_v47 = vpack.c.bf16 %v1540_v46, %v1531_v19  ;;  %v2035_v51 = vld [vmem:[#allocation8 + $0x25f0] sm:$0xff] }
 0x3cf   :  { %4110 = vmatprep.mubr.f32.mxu0 %v8164_v60  ;;  %7095 = vmatpush3.bf16.msra.mxu1 %v7094_v20  ;;  %v1927_v60 = vld [vmem:[#allocation8 + $0x2290] sm:$0xff]  ;;  %v7134_v45 = vpack.c.bf16 %v1774_v63, %v1765_v5  ;;  %v7104_v32 = vpack.c.bf16 %v1648_v12, %v1639_v48  ;;  %v1828_v24 = vld [vmem:[#allocation8 + $0x1f78] sm:$0xff] }
 0x3d0   :  { %7127 = vmatpush3.bf16.msra.mxu0 %v7126_v3  ;;  %7097 = vmatprep.subr.bf16.mxu1 %v7096_v2  ;;  %v7136_v30 = vpack.c.bf16 %v1936_v15, %v1927_v60  ;;  %v1675_v20 = vld [vmem:[#allocation8 + $0x1ab0] sm:$0xff]  ;;  %v1684_v3 = vld [vmem:[#allocation8 + $0x1af8] sm:$0xff]  ;;  %v7146_v5 = vpack.c.bf16 %v1828_v24, %v1819_v49 }
 0x3d1   :  { %4026 = vmatmul.mubr.f32.gmra.mrb[38].mxu1 %v8068_v7  ;;  %7129 = vmatprep.subr.bf16.mxu0 %v7128_v17  ;;  %v1495_v7 = vld [vmem:[#allocation8 + $0x1510] sm:$0xff]  ;;  %v7112_v17 = vpack.c.bf16 %v1684_v3, %v1675_v20  ;;  %v2008_v15 = vld [vmem:[#allocation8 + $0x2518] sm:$0xff] }
 0x3d2   :  { %4111 = vmatmul.mubr.f32.gmra.mrb[42].mxu0 %v8608_v62  ;;  %4180 = vmatprep.mubr.f32.mxu1 %v8609_v35  ;;  %v1666_v62 = vld [vmem:[#allocation8 + $0x1a68] sm:$0xff]  ;;  %v7106_v56 = vpack.c.bf16 %v1504_v9, %v1495_v7  ;;  %v1963_v2 = vld [vmem:[#allocation8 + $0x23b0] sm:$0xff]  ;;  %v4409_v9 = vld [vmem:[#allocation11 + $0x10] sm:$0xff] }
 0x3d3   :  { %7099 = vmatpush3.bf16.msra.mxu1 %v7098_v18  ;;  %4265 = vmatprep.mubr.f32.mxu0 %v8248_v38  ;;  %v1954_v35 = vld [vmem:[#allocation8 + $0x2368] sm:$0xff]  ;;  %v7138_v38 = vpack.c.bf16 %v1792_v52, %v1783_v21  ;;  %v7108_v40 = vpack.c.bf16 %v1666_v62, %v1657_v44  ;;  %v7144_v59 = vpack.c.bf16 %v1972_v23, %v1963_v2  ;;  %v1981_v18 = vld [vmem:[#allocation8 + $0x2440] sm:$0xff]  ;;  %v4424_v43 = vld [vmem:[#allocation11 + $0x88] sm:$0xff] }
 0x3d4   :  { %7131 = vmatpush3.bf16.msra.mxu0 %v7130_v37  ;;  %7101 = vmatprep.subr.bf16.mxu1 %v7100_v1  ;;  %v7140_v16 = vpack.c.bf16 %v1954_v35, %v1945_v10  ;;  %v1990_v37 = vld [vmem:[#allocation8 + $0x2488] sm:$0xff]  ;;  %v4408_v12 = vld [vmem:[#allocation11 + $0x8] sm:$0xff]  ;;  %v2017_v52 = vld [vmem:[#allocation8 + $0x2560] sm:$0xff] }
 0x3d5   :  { %7133 = vmatprep.subr.bf16.mxu0 %v7132_v41  ;;  %v4423_v1 = vld [vmem:[#allocation11 + $0x80] sm:$0xff]  ;;  %v7148_v41 = vpack.c.bf16 %v1990_v37, %v1981_v18  ;;  %v8469_v62 = vld [vmem:[#allocation10] sm:$0xff]  ;;  %v4428_v35 = vld [vmem:[#allocation11 + $0xa8] sm:$0xff] }
 0x3d6   :  { %v7180_v63 = vpack.c.bf16 %v4424_v43, %v4423_v1  ;;  %v4407_v48 = vld [vmem:[#allocation11] sm:$0xff]  ;;  %v2044_v28 = vld [vmem:[#allocation8 + $0x2638] sm:$0xff]  ;;  %v2053_v23 = vld [vmem:[#allocation8 + $0x2680] sm:$0xff] }
 0x3d7   :  { %7103 = vmatpush3.bf16.msra.mxu1 %v7102_v42  ;;  %v1999_v60 = vld [vmem:[#allocation8 + $0x24d0] sm:$0xff]  ;;  %v4425_v42 = vld [vmem:[#allocation11 + $0x90] sm:$0xff]  ;;  %v2026_v44 = vld [vmem:[#allocation8 + $0x25a8] sm:$0xff]  ;;  %v7160_v20 = vpack.c.bf16 %v2044_v28, %v2035_v51 }
 0x3d8   :  { %7135 = vmatpush3.bf16.msra.mxu0 %v7134_v45  ;;  %7105 = vmatprep.subr.bf16.mxu1 %v7104_v32  ;;  %v4426_v45 = vld [vmem:[#allocation11 + $0x98] sm:$0xff]  ;;  %v7182_v32 = vpack.c.bf16 %v4408_v12, %v4407_v48  ;;  %v7152_v7 = vpack.c.bf16 %v2008_v15, %v1999_v60  ;;  %v4427_v10 = vld [vmem:[#allocation11 + $0xa0] sm:$0xff]  ;;  %v4413_v3 = vld [vmem:[#allocation11 + $0x30] sm:$0xff] }
 0x3d9   :  { %7137 = vmatprep.subr.bf16.mxu0 %v7136_v30  ;;  %v7184_v21 = vpack.c.bf16 %v4426_v45, %v4425_v42  ;;  %v4410_v30 = vld [vmem:[#allocation11 + $0x18] sm:$0xff]  ;;  %v4416_v49 = vld [vmem:[#allocation11 + $0x48] sm:$0xff]  ;;  %v4417_v37 = vld [vmem:[#allocation11 + $0x50] sm:$0xff] }
 0x3da   :  { %v8625_v19 = vld [vmem:[#allocation26_spill] sm:$0xff]  ;;  %v4419_v48 = vld [vmem:[#allocation11 + $0x60] sm:$0xff]  ;;  %v4420_v60 = vld [vmem:[#allocation11 + $0x68] sm:$0xff] }
 0x3db   :  { %7107 = vmatpush3.bf16.msra.mxu1 %v7106_v56  ;;  %v7186_v56 = vpack.c.bf16 %v4410_v30, %v4409_v9  ;;  %v4418_v43 = vld [vmem:[#allocation11 + $0x58] sm:$0xff]  ;;  %v2107_v15 = vld [vmem:[#allocation8 + $0x2830] sm:$0xff]  ;;  %v2116_v42 = vld [vmem:[#allocation8 + $0x2878] sm:$0xff]  ;;  %v8626_v30 = vsub.s32 0, %v8013_v50 }
 0x3dc   :  { %7139 = vmatpush3.bf16.msra.mxu0 %v7138_v38  ;;  %7109 = vmatprep.subr.bf16.mxu1 %v7108_v40  ;;  %v7156_v38 = vpack.c.bf16 %v2026_v44, %v2017_v52  ;;  %v8624_v40 = vsub.s32 1, %v8013_v50  ;;  %v4437_v45 = vld [vmem:[#allocation11 + $0xf0] sm:$0xff]  ;;  %v7176_v9 = vpack.c.bf16 %v2116_v42, %v2107_v15  ;;  %v8628_v28 = vld [vmem:[#allocation24_spill] sm:$0xff] }
 0x3dd   :  { %7141 = vmatprep.subr.bf16.mxu0 %v7140_v16  ;;  %v4430_v16 = vld [vmem:[#allocation11 + $0xb8] sm:$0xff]  ;;  %v8495_v52 = vrot.slane %v8469_v62, %v8626_v30  ;;  %v4444_v42 = vld [vmem:[#allocation11 + $0x128] sm:$0xff]  ;;  %v4475_v30 = vld [vmem:[#allocation11 + $0x220] sm:$0xff] }
 0x3de   :  { %v8477_v6 = vrot.slane %v8469_v62, %v8624_v40  ;;  %v8627_v40 = vsub.s32 3, %v8013_v50 }
 0x3df   :  { %7111 = vmatpush3.bf16.msra.mxu1 %v7110_v29  ;;  %v4432_v29 = vld [vmem:[#allocation11 + $0xc8] sm:$0xff] }
 0x3e0   :  { %7143 = vmatpush3.bf16.msra.mxu0 %v7142_v26  ;;  %7113 = vmatprep.subr.bf16.mxu1 %v7112_v17  ;;  %v4415_v17 = vld [vmem:[#allocation11 + $0x40] sm:$0xff] }
 0x3e1   :  { %7145 = vmatprep.subr.bf16.mxu0 %v7144_v59  ;;  %v2071_v59 = vld [vmem:[#allocation8 + $0x2710] sm:$0xff]  ;;  %v7198_v24 = vpack.c.bf16 %v4416_v49, %v4415_v17 }
 0x3e3   :  { %7115 = vmatpush3.bf16.msra.mxu1 %v7114_v47  ;;  %v2089_v47 = vld [vmem:[#allocation8 + $0x27a0] sm:$0xff] }
 0x3e4   :  { %7147 = vmatpush3.bf16.msra.mxu0 %v7146_v5  ;;  %7149 = vmatprep.subr.bf16.mxu1 %v7148_v41  ;;  %v2098_v5 = vld [vmem:[#allocation8 + $0x27e8] sm:$0xff] }
 0x3e5   :  { %7181 = vmatprep.subr.bf16.mxu0 %v7180_v63  ;;  %v4436_v63 = vld [vmem:[#allocation11 + $0xe8] sm:$0xff] }
 0x3e6   :  { %4181 = vmatmul.mubr.f32.vlgmr.msra.gmra.mrb[40].mxu1 %v8206_v33  ;;  %v4411_v33 = vld [vmem:[#allocation11 + $0x20] sm:$0xff] }
 0x3e7   :  { %4266 = vmatmul.mubr.f32.vlgmr.msra.gmra.mrb[44].mxu0 %v8268_v8  ;;  %4185 = vmatprep.mubr.f32.mxu1 %v8210_v13  ;;  %v7188_v8 = vpack.c.bf16 %v4428_v35, %v4427_v10  ;;  %v4412_v13 = vld [vmem:[#allocation11 + $0x28] sm:$0xff]  ;;  %v4422_v10 = vld [vmem:[#allocation11 + $0x78] sm:$0xff]  ;;  %v4455_v35 = vld [vmem:[#allocation11 + $0x180] sm:$0xff] }
 0x3e8   :  { %4270 = vmatprep.mubr.f32.mxu0 %v8270_v39  ;;  %7151 = vmatpush3.bf16.msra.mxu1 %v7148_v41  ;;  %v4429_v39 = vld [vmem:[#allocation11 + $0xb0] sm:$0xff]  ;;  %v7190_v58 = vpack.c.bf16 %v4412_v13, %v4411_v33  ;;  %v4435_v41 = vld [vmem:[#allocation11 + $0xe0] sm:$0xff]  ;;  %v4488_v33 = vld [vmem:[#allocation11 + $0x288] sm:$0xff] }
 0x3e9   :  { %7183 = vmatpush3.bf16.msra.mxu0 %v7182_v32  ;;  %7153 = vmatprep.subr.bf16.mxu1 %v7152_v7  ;;  %v7192_v2 = vpack.c.bf16 %v4430_v16, %v4429_v39  ;;  %v7204_v12 = vpack.c.bf16 %v4436_v63, %v4435_v41  ;;  %v4438_v32 = vld [vmem:[#allocation11 + $0xf8] sm:$0xff]  ;;  %v7372_v39 = vadd.f32 %v8628_v28, %v8495_v52  ;;  %v4439_v16 = vld [vmem:[#allocation11 + $0x100] sm:$0xff]  ;;  %v4492_v63 = vld [vmem:[#allocation11 + $0x2a8] sm:$0xff] }
 0x3ea   :  { %4186 = vmatmul.mubr.f32.gmra.mrb[42].mxu1 %v8217_v0  ;;  %7185 = vmatprep.subr.bf16.mxu0 %v7184_v21  ;;  %v7373_v0 = vadd.f32 %v8392_v27, %v8477_v6  ;;  %v4421_v21 = vld [vmem:[#allocation11 + $0x70] sm:$0xff]  ;;  %v7208_v44 = vpack.c.bf16 %v4438_v32, %v4437_v45  ;;  %v4491_v41 = vld [vmem:[#allocation11 + $0x2a0] sm:$0xff] }
 0x3eb   :  { %4271 = vmatmul.mubr.f32.gmra.mrb[46].mxu0 %v8276_v55  ;;  %4190 = vmatprep.mubr.f32.mxu1 %v8221_v53  ;;  %v4414_v55 = vld [vmem:[#allocation11 + $0x38] sm:$0xff]  ;;  %v7210_v13 = vpack.c.bf16 %v4422_v10, %v4421_v21  ;;  %v4461_v45 = vld [vmem:[#allocation11 + $0x1b0] sm:$0xff]  ;;  %v7252_v21 = vpack.c.bf16 %v4492_v63, %v4491_v41 }
 0x3ec   :  { %4275 = vmatprep.mubr.f32.mxu0 %v8280_v61  ;;  %7155 = vmatpush3.bf16.msra.mxu1 %v7152_v7  ;;  %v2062_v53 = vld [vmem:[#allocation8 + $0x26c8] sm:$0xff]  ;;  %v7194_v26 = vpack.c.bf16 %v4414_v55, %v4413_v3  ;;  %v7206_v7 = vpack.c.bf16 %v4420_v60, %v4419_v48  ;;  %v4493_v10 = vld [vmem:[#allocation11 + $0x2b0] sm:$0xff] }
 0x3ed   :  { %7187 = vmatpush3.bf16.msra.mxu0 %v7186_v56  ;;  %7157 = vmatprep.subr.bf16.mxu1 %v7156_v38  ;;  %v4431_v61 = vld [vmem:[#allocation11 + $0xc0] sm:$0xff]  ;;  %v7164_v27 = vpack.c.bf16 %v2062_v53, %v2053_v23  ;;  %v4456_v56 = vld [vmem:[#allocation11 + $0x188] sm:$0xff]  ;;  %v4458_v55 = vld [vmem:[#allocation11 + $0x198] sm:$0xff] }
 0x3ee   :  { %4191 = vmatmul.mubr.f32.gmra.mrb[44].mxu1 %v8232_v22  ;;  %7189 = vmatprep.subr.bf16.mxu0 %v7188_v8  ;;  %v4372_v22 = vmax.f32 %v7373_v0, 0.0  ;;  %v7196_v46 = vpack.c.bf16 %v4432_v29, %v4431_v61  ;;  %v8500_v8 = vrot.slane %v8469_v62, %v8627_v40  ;;  %v7212_v51 = vpack.c.bf16 %v4456_v56, %v4455_v35  ;;  %v8629_v0 = vld [vmem:[#allocation30_spill] sm:$0xff]  ;;  %v4471_v23 = vld [vmem:[#allocation11 + $0x200] sm:$0xff]  ;;  %v4472_v53 = vld [vmem:[#allocation11 + $0x208] sm:$0xff] }
 0x3ef   :  { %4276 = vmatmul.mubr.f32.gmra.mrb[48].mxu0 %v8286_v36  ;;  %4195 = vmatprep.mubr.f32.mxu1 %v8238_v25  ;;  %v2080_v36 = vld [vmem:[#allocation8 + $0x2758] sm:$0xff]  ;;  %v4490_v29 = vld [vmem:[#allocation11 + $0x298] sm:$0xff] }
 0x3f0   :  { %4280 = vmatprep.mubr.f32.mxu0 %v8292_v14  ;;  %7159 = vmatpush3.bf16.msra.mxu1 %v7156_v38  ;;  %v4433_v25 = vld [vmem:[#allocation11 + $0xd0] sm:$0xff]  ;;  %v4434_v14 = vld [vmem:[#allocation11 + $0xd8] sm:$0xff]  ;;  %v7168_v18 = vpack.c.bf16 %v2080_v36, %v2071_v59  ;;  %v4487_v38 = vld [vmem:[#allocation11 + $0x280] sm:$0xff] }
 0x3f1   :  { %7191 = vmatpush3.bf16.msra.mxu0 %v7190_v58  ;;  %7161 = vmatprep.subr.bf16.mxu1 %v7160_v20  ;;  %v7200_v1 = vpack.c.bf16 %v4434_v14, %v4433_v25  ;;  %v4440_v58 = vld [vmem:[#allocation11 + $0x108] sm:$0xff]  ;;  %v7244_v3 = vpack.c.bf16 %v4488_v33, %v4487_v38  ;;  %v4489_v61 = vld [vmem:[#allocation11 + $0x290] sm:$0xff]  ;;  %v4442_v36 = vld [vmem:[#allocation11 + $0x118] sm:$0xff]  ;;  %v7246_v14 = vpack.c.bf16 %v4472_v53, %v4471_v23 }
 0x3f2   :  { %4196 = vmatmul.mubr.f32.gmra.mrb[46].mxu1 %v8625_v19  ;;  %7193 = vmatprep.subr.bf16.mxu0 %v7192_v2  ;;  %v7375_v2 = vadd.f32 %v8629_v0, %v8477_v6  ;;  %v7214_v17 = vpack.c.bf16 %v4440_v58, %v4439_v16  ;;  %v8631_v19 = vld [vmem:[#allocation28_spill] sm:$0xff]  ;;  %v4441_v59 = vld [vmem:[#allocation11 + $0x110] sm:$0xff]  ;;  %v4494_v35 = vld [vmem:[#allocation11 + $0x2b8] sm:$0xff] }
 0x3f3   :  { %4281 = vmatmul.mubr.f32.gmra.mrb[50].mxu0 %v8296_v57  ;;  %5626 = vmatprep.mubr.f32.mxu1 %v8312_v31  ;;  %v7202_v57 = vpack.c.bf16 %v4418_v43, %v4417_v37  ;;  %v7172_v31 = vpack.c.bf16 %v2098_v5, %v2089_v47  ;;  %v4459_v25 = vld [vmem:[#allocation11 + $0x1a0] sm:$0xff]  ;;  %v7248_v43 = vpack.c.bf16 %v4490_v29, %v4489_v61  ;;  %v4473_v47 = vld [vmem:[#allocation11 + $0x210] sm:$0xff]  ;;  %v4474_v5 = vld [vmem:[#allocation11 + $0x218] sm:$0xff] }
 0x3f4   :  { %7163 = vmatpush3.bf16.msra.mxu1 %v7160_v20  ;;  %4622 = vmatprep.mubr.f32.mxu0 %v4372_v22  ;;  %v4457_v20 = vld [vmem:[#allocation11 + $0x190] sm:$0xff]  ;;  %v4371_v22 = vmax.f32 %v7372_v39, 0.0  ;;  %v7250_v32 = vpack.c.bf16 %v4474_v5, %v4473_v47  ;;  %v8634_v33 = vld [vmem:[#allocation36_spill] sm:$0xff]  ;;  %v7256_v16 = vpack.c.bf16 %v4494_v35, %v4493_v10 }
 0x3f5   :  { %7195 = vmatpush3.bf16.msra.mxu0 %v7194_v26  ;;  %7165 = vmatprep.subr.bf16.mxu1 %v7164_v27  ;;  %v8630_v26 = vld [vmem:[#allocation27_spill] sm:$0xff]  ;;  %v7216_v49 = vpack.c.bf16 %v4458_v55, %v4457_v20  ;;  %v7378_v40 = vadd.f32 %v8634_v33, %v8495_v52  ;;  %v4464_v39 = vld [vmem:[#allocation11 + $0x1c8] sm:$0xff]  ;;  %v4477_v58 = vld [vmem:[#allocation11 + $0x230] sm:$0xff] }
 0x3f6   :  { %7197 = vmatprep.subr.bf16.mxu0 %v7196_v46  ;;  %v7374_v46 = vadd.f32 %v8631_v19, %v8495_v52  ;;  %v4478_v20 = vld [vmem:[#allocation11 + $0x238] sm:$0xff]  ;;  %v4496_v0 = vld [vmem:[#allocation11 + $0x2c8] sm:$0xff]  ;;  %v4447_v23 = vld [vmem:[#allocation11 + $0x140] sm:$0xff] }
 0x3f7   :  { %v4448_v53 = vld [vmem:[#allocation11 + $0x148] sm:$0xff]  ;;  %v4465_v61 = vld [vmem:[#allocation11 + $0x1d0] sm:$0xff]  ;;  %v7258_v29 = vpack.c.bf16 %v4478_v20, %v4477_v58  ;;  %v4499_v47 = vld [vmem:[#allocation11 + $0x2e0] sm:$0xff] }
 0x3f8   :  { %7167 = vmatpush3.bf16.msra.mxu1 %v7164_v27  ;;  %v7381_v27 = vadd.f32 %v8630_v26, %v8500_v8  ;;  %v4380_v48 = vmax.f32 %v7374_v46, 0.0  ;;  %v4466_v26 = vld [vmem:[#allocation11 + $0x1d8] sm:$0xff]  ;;  %v4497_v19 = vld [vmem:[#allocation11 + $0x2d0] sm:$0xff]  ;;  %v4500_v5 = vld [vmem:[#allocation11 + $0x2e8] sm:$0xff] }
 0x3f9   :  { %7199 = vmatpush3.bf16.msra.mxu0 %v7198_v24  ;;  %7169 = vmatprep.subr.bf16.mxu1 %v7168_v18  ;;  %v4381_v24 = vmax.f32 %v7375_v2, 0.0  ;;  %v4498_v46 = vld [vmem:[#allocation11 + $0x2d8] sm:$0xff]  ;;  %v4519_v10 = vld [vmem:[#allocation11 + $0x380] sm:$0xff]  ;;  %v4485_v33 = vld [vmem:[#allocation11 + $0x270] sm:$0xff] }
 0x3fa   :  { %7201 = vmatprep.subr.bf16.mxu0 %v7200_v1  ;;  %v4460_v1 = vld [vmem:[#allocation11 + $0x1a8] sm:$0xff]  ;;  %v4521_v20 = vld [vmem:[#allocation11 + $0x390] sm:$0xff] }
 0x3fb   :  { %v7220_v15 = vpack.c.bf16 %v4460_v1, %v4459_v25  ;;  %v4450_v25 = vld [vmem:[#allocation11 + $0x158] sm:$0xff]  ;;  %v4481_v1 = vld [vmem:[#allocation11 + $0x250] sm:$0xff] }
 0x3fc   :  { %7171 = vmatpush3.bf16.msra.mxu1 %v7168_v18  ;;  %v8632_v18 = vld [vmem:[#allocation34_spill] sm:$0xff] }
 0x3fd   :  { %7203 = vmatpush3.bf16.msra.mxu0 %v7202_v57  ;;  %7173 = vmatprep.subr.bf16.mxu1 %v7172_v31  ;;  %v7377_v37 = vadd.f32 %v8632_v18, %v8477_v6  ;;  %v4374_v57 = vmax.f32 %v7381_v27, 0.0  ;;  %v4468_v18 = vld [vmem:[#allocation11 + $0x1e8] sm:$0xff] }
 0x3fe   :  { %7205 = vmatprep.subr.bf16.mxu0 %v7204_v12  ;;  %v8633_v12 = vld [vmem:[#allocation32_spill] sm:$0xff] }
 0x3ff   :  { %v7376_v60 = vadd.f32 %v8633_v12, %v8495_v52  ;;  %v4398_v52 = vmax.f32 %v7378_v40, 0.0  ;;  %v4486_v40 = vld [vmem:[#allocation11 + $0x278] sm:$0xff] }
 0x400   :  { %7175 = vmatpush3.bf16.msra.mxu1 %v7172_v31  ;;  %v7218_v31 = vpack.c.bf16 %v4442_v36, %v4441_v59  ;;  %v7232_v59 = vpack.c.bf16 %v4466_v26, %v4465_v61  ;;  %v4449_v36 = vld [vmem:[#allocation11 + $0x150] sm:$0xff]  ;;  %v4506_v61 = vld [vmem:[#allocation11 + $0x318] sm:$0xff] }
 0x401   :  { %7207 = vmatpush3.bf16.msra.mxu0 %v7206_v7  ;;  %7177 = vmatprep.subr.bf16.mxu1 %v7176_v9  ;;  %v4390_v7 = vmax.f32 %v7377_v37, 0.0  ;;  %v4389_v38 = vmax.f32 %v7376_v60, 0.0  ;;  %v7264_v37 = vpack.c.bf16 %v4498_v46, %v4497_v19  ;;  %v7234_v41 = vpack.c.bf16 %v4450_v25, %v4449_v36  ;;  %v4470_v60 = vld [vmem:[#allocation11 + $0x1f8] sm:$0xff]  ;;  %v4507_v25 = vld [vmem:[#allocation11 + $0x320] sm:$0xff] }
 0x402   :  { %7209 = vmatprep.subr.bf16.mxu0 %v7208_v44  ;;  %v4476_v44 = vld [vmem:[#allocation11 + $0x228] sm:$0xff]  ;;  %v8639_v26 = vld [vmem:[#allocation35_spill] sm:$0xff] }
 0x404   :  { %7179 = vmatpush3.bf16.msra.mxu1 %v7176_v9  ;;  %v4462_v9 = vld [vmem:[#allocation11 + $0x1b8] sm:$0xff] }
 0x405   :  { %7211 = vmatpush3.bf16.msra.mxu0 %v7210_v13  ;;  %7213 = vmatprep.subr.bf16.mxu1 %v7212_v51  ;;  %v4463_v13 = vld [vmem:[#allocation11 + $0x1c0] sm:$0xff]  ;;  %v7254_v51 = vpack.c.bf16 %v4476_v44, %v4475_v30  ;;  %v4453_v30 = vld [vmem:[#allocation11 + $0x170] sm:$0xff]  ;;  %v4454_v44 = vld [vmem:[#allocation11 + $0x178] sm:$0xff] }
 0x406   :  { %7245 = vmatprep.subr.bf16.mxu0 %v7244_v3  ;;  %v4495_v3 = vld [vmem:[#allocation11 + $0x2c0] sm:$0xff]  ;;  %v7228_v55 = vpack.c.bf16 %v4464_v39, %v4463_v13  ;;  %v7274_v39 = vpack.c.bf16 %v4486_v40, %v4485_v33  ;;  %v4516_v40 = vld [vmem:[#allocation11 + $0x368] sm:$0xff] }
 0x407   :  { %5627 = vmatmul.mubr.f32.vlgmr.msra.gmra.mrb[48].mxu1 %v8318_v54  ;;  %v4443_v54 = vld [vmem:[#allocation11 + $0x120] sm:$0xff]  ;;  %v7260_v27 = vpack.c.bf16 %v4496_v0, %v4495_v3  ;;  %v4522_v3 = vld [vmem:[#allocation11 + $0x398] sm:$0xff] }
 0x408   :  { %4623 = vmatmul.mubr.f32.vlgmr.msra.gmra.mrb[52].mxu0 %v4371_v22  ;;  %5629 = vmatprep.mubr.f32.mxu1 %v8322_v4  ;;  %v7379_v4 = vadd.f32 %v8416_v11, %v8477_v6  ;;  %v7222_v56 = vpack.c.bf16 %v4444_v42, %v4443_v54  ;;  %v7224_v11 = vpack.c.bf16 %v4462_v9, %v4461_v45  ;;  %v4445_v6 = vld [vmem:[#allocation11 + $0x130] sm:$0xff]  ;;  %v4480_v22 = vld [vmem:[#allocation11 + $0x248] sm:$0xff]  ;;  %v4483_v54 = vld [vmem:[#allocation11 + $0x260] sm:$0xff] }
 0x409   :  { %4627 = vmatprep.mubr.f32.mxu0 %v4381_v24  ;;  %7215 = vmatpush3.bf16.msra.mxu1 %v7214_v17  ;;  %v4479_v17 = vld [vmem:[#allocation11 + $0x240] sm:$0xff]  ;;  %v4484_v42 = vld [vmem:[#allocation11 + $0x268] sm:$0xff]  ;;  %v4501_v45 = vld [vmem:[#allocation11 + $0x2f0] sm:$0xff] }
 0x40a   :  { %7217 = vmatprep.subr.bf16.mxu1 %v7216_v49  ;;  %7247 = vmatpush3.bf16.msra.mxu0 %v7246_v14  ;;  %v4399_v28 = vmax.f32 %v7379_v4, 0.0  ;;  %v7230_v49 = vpack.c.bf16 %v4448_v53, %v4447_v23  ;;  %v4467_v14 = vld [vmem:[#allocation11 + $0x1e0] sm:$0xff]  ;;  %v7262_v24 = vpack.c.bf16 %v4480_v22, %v4479_v17  ;;  %v8635_v4 = vsub.s32 2, %v8013_v50  ;;  %v4505_v53 = vld [vmem:[#allocation11 + $0x310] sm:$0xff]  ;;  %v4524_v22 = vld [vmem:[#allocation11 + $0x3a8] sm:$0xff] }
 0x40b   :  { %5630 = vmatmul.mubr.f32.gmra.mrb[50].mxu1 %v8332_v34  ;;  %7249 = vmatprep.subr.bf16.mxu0 %v7248_v43  ;;  %v4446_v34 = vld [vmem:[#allocation11 + $0x138] sm:$0xff]  ;;  %v7236_v63 = vpack.c.bf16 %v4468_v18, %v4467_v14  ;;  %v7270_v35 = vpack.c.bf16 %v4484_v42, %v4483_v54  ;;  %v7280_v23 = vpack.c.bf16 %v4522_v3, %v4521_v20  ;;  %v4523_v17 = vld [vmem:[#allocation11 + $0x3a0] sm:$0xff]  ;;  %v4508_v14 = vld [vmem:[#allocation11 + $0x328] sm:$0xff]  ;;  %v8643_v3 = vsub.s32 4, %v8013_v50 }
 0x40c   :  { %4628 = vmatmul.mubr.f32.gmra.mrb[54].mxu0 %v4380_v48  ;;  %4707 = vmatprep.mubr.f32.mxu1 %v4374_v57  ;;  %v7226_v2 = vpack.c.bf16 %v4446_v34, %v4445_v6  ;;  %v4482_v43 = vld [vmem:[#allocation11 + $0x258] sm:$0xff]  ;;  %v4451_v57 = vld [vmem:[#allocation11 + $0x160] sm:$0xff]  ;;  %v4469_v48 = vld [vmem:[#allocation11 + $0x1f0] sm:$0xff]  ;;  %v2132_v9 = vrot.slane %v8469_v62, %v8635_v4  ;;  %v7282_v19 = vpack.c.bf16 %v4506_v61, %v4505_v53  ;;  %v8646_v53 = vsub.s32 7, %v8013_v50 }
 0x40d   :  { %4632 = vmatprep.mubr.f32.mxu0 %v4390_v7  ;;  %7219 = vmatpush3.bf16.msra.mxu1 %v7218_v31  ;;  %v4452_v31 = vld [vmem:[#allocation11 + $0x168] sm:$0xff]  ;;  %v7266_v12 = vpack.c.bf16 %v4482_v43, %v4481_v1  ;;  %v7284_v36 = vpack.c.bf16 %v4524_v22, %v4523_v17  ;;  %v8641_v18 = vld [vmem:[#allocation38_spill] sm:$0xff]  ;;  %v4515_v33 = vld [vmem:[#allocation11 + $0x360] sm:$0xff] }
 0x40e   :  { %7221 = vmatprep.subr.bf16.mxu1 %v7220_v15  ;;  %7251 = vmatpush3.bf16.msra.mxu0 %v7250_v32  ;;  %v7268_v15 = vpack.c.bf16 %v4500_v5, %v4499_v47  ;;  %v4502_v32 = vld [vmem:[#allocation11 + $0x2f8] sm:$0xff]  ;;  %v7238_v7 = vpack.c.bf16 %v4452_v31, %v4451_v57  ;;  %v8636_v6 = vld [vmem:[#allocation25_spill] sm:$0xff]  ;;  %v7286_v47 = vpack.c.bf16 %v4508_v14, %v4507_v25 }
 0x40f   :  { %7253 = vmatprep.subr.bf16.mxu0 %v7252_v21  ;;  %v7240_v21 = vpack.c.bf16 %v4470_v60, %v4469_v48  ;;  %v7380_v34 = vadd.f32 %v8636_v6, %v2132_v9  ;;  %v4525_v1 = vld [vmem:[#allocation11 + $0x3b0] sm:$0xff]  ;;  %v4526_v43 = vld [vmem:[#allocation11 + $0x3b8] sm:$0xff]  ;;  %v4527_v60 = vld [vmem:[#allocation11 + $0x3c0] sm:$0xff]  ;;  %v8550_v61 = vrot.slane %v8469_v62, %v8646_v53 }
 0x410   :  { %4633 = vmatmul.mubr.f32.gmra.mrb[56].mxu0 %v4389_v38  ;;  %v7272_v38 = vpack.c.bf16 %v4502_v32, %v4501_v45  ;;  %v7288_v57 = vpack.c.bf16 %v4526_v43, %v4525_v1  ;;  %v4509_v31 = vld [vmem:[#allocation11 + $0x330] sm:$0xff]  ;;  %v4510_v48 = vld [vmem:[#allocation11 + $0x338] sm:$0xff]  ;;  %v4511_v45 = vld [vmem:[#allocation11 + $0x340] sm:$0xff] }
 0x411   :  { %4637 = vmatprep.mubr.f32.mxu0 %v4399_v28  ;;  %7223 = vmatpush3.bf16.msra.mxu1 %v7222_v56  ;;  %v4520_v56 = vld [vmem:[#allocation11 + $0x388] sm:$0xff]  ;;  %v4530_v4 = vld [vmem:[#allocation11 + $0x3d8] sm:$0xff] }
 0x412   :  { %7225 = vmatprep.subr.bf16.mxu1 %v7224_v11  ;;  %7255 = vmatpush3.bf16.msra.mxu0 %v7254_v51  ;;  %v7242_v11 = vpack.c.bf16 %v4454_v44, %v4453_v30  ;;  %v7276_v13 = vpack.c.bf16 %v4520_v56, %v4519_v10  ;;  %v4503_v51 = vld [vmem:[#allocation11 + $0x300] sm:$0xff]  ;;  %v4504_v28 = vld [vmem:[#allocation11 + $0x308] sm:$0xff]  ;;  %v4513_v30 = vld [vmem:[#allocation11 + $0x350] sm:$0xff] }
 0x413   :  { %7257 = vmatprep.subr.bf16.mxu0 %v7256_v16  ;;  %v8637_v16 = vld [vmem:[#allocation31_spill] sm:$0xff]  ;;  %v7278_v0 = vpack.c.bf16 %v4504_v28, %v4503_v51  ;;  %v4512_v32 = vld [vmem:[#allocation11 + $0x348] sm:$0xff]  ;;  %v4517_v51 = vld [vmem:[#allocation11 + $0x370] sm:$0xff] }
 0x414   :  { %4638 = vmatmul.mubr.f32.gmra.mrb[58].mxu0 %v4398_v52  ;;  %v7383_v58 = vadd.f32 %v8637_v16, %v8500_v8  ;;  %v8638_v52 = vld [vmem:[#allocation29_spill] sm:$0xff]  ;;  %v4514_v44 = vld [vmem:[#allocation11 + $0x358] sm:$0xff]  ;;  %v4531_v10 = vld [vmem:[#allocation11 + $0x3e0] sm:$0xff] }
 0x415   :  { %7227 = vmatpush3.bf16.msra.mxu1 %v7226_v2  ;;  %v4373_v2 = vmax.f32 %v7380_v34, 0.0  ;;  %v7298_v56 = vpack.c.bf16 %v4514_v44, %v4513_v30  ;;  %v4534_v6 = vld [vmem:[#allocation11 + $0x3f8] sm:$0xff]  ;;  %v7302_v34 = vpack.c.bf16 %v4516_v40, %v4515_v33  ;;  %v4536_v16 = vld [vmem:[#allocation11 + $0x408] sm:$0xff] }
 0x416   :  { %7229 = vmatprep.subr.bf16.mxu1 %v7228_v55  ;;  %7259 = vmatpush3.bf16.msra.mxu0 %v7258_v29  ;;  %v7382_v55 = vadd.f32 %v8638_v52, %v2132_v9  ;;  %v4383_v29 = vmax.f32 %v7383_v58, 0.0  ;;  %v4518_v28 = vld [vmem:[#allocation11 + $0x378] sm:$0xff] }
 0x417   :  { %7261 = vmatprep.subr.bf16.mxu0 %v7260_v27  ;;  %v7385_v27 = vadd.f32 %v8639_v26, %v8500_v8  ;;  %v7306_v20 = vpack.c.bf16 %v4518_v28, %v4517_v51  ;;  %v4542_v30 = vld [vmem:[#allocation11 + $0x438] sm:$0xff] }
 0x418   :  { %v4382_v46 = vmax.f32 %v7382_v55, 0.0  ;;  %v8645_v55 = vsub.s32 5, %v8013_v50  ;;  %v4546_v53 = vld [vmem:[#allocation11 + $0x458] sm:$0xff] }
 0x419   :  { %7231 = vmatpush3.bf16.msra.mxu1 %v7230_v49  ;;  %v8640_v49 = vld [vmem:[#allocation33_spill] sm:$0xff] }
 0x41a   :  { %7233 = vmatprep.subr.bf16.mxu1 %v7232_v59  ;;  %7263 = vmatpush3.bf16.msra.mxu0 %v7262_v24  ;;  %v7384_v59 = vadd.f32 %v8640_v49, %v2132_v9  ;;  %v4392_v24 = vmax.f32 %v7385_v27, 0.0  ;;  %v4537_v49 = vld [vmem:[#allocation11 + $0x410] sm:$0xff] }
 0x41b   :  { %7265 = vmatprep.subr.bf16.mxu0 %v7264_v37  ;;  %v7387_v37 = vadd.f32 %v8641_v18, %v8500_v8  ;;  %v7290_v8 = vpack.c.bf16 %v4510_v48, %v4509_v31 }
 0x41c   :  { %v4391_v5 = vmax.f32 %v7384_v59, 0.0  ;;  %v4538_v59 = vld [vmem:[#allocation11 + $0x418] sm:$0xff] }
 0x41d   :  { %7235 = vmatpush3.bf16.msra.mxu1 %v7234_v41  ;;  %v8642_v41 = vld [vmem:[#allocation37_spill] sm:$0xff]  ;;  %v7312_v1 = vpack.c.bf16 %v4538_v59, %v4537_v49  ;;  %v5121_v49 = vld [vmem:[#allocation10 + $0x8] ss:$0 sm:$0xff] }
 0x41e   :  { %7237 = vmatprep.subr.bf16.mxu1 %v7236_v63  ;;  %7267 = vmatpush3.bf16.msra.mxu0 %v7266_v12  ;;  %v7386_v63 = vadd.f32 %v8642_v41, %v2132_v9  ;;  %v4401_v12 = vmax.f32 %v7387_v37, 0.0  ;;  %v7294_v9 = vpack.c.bf16 %v4512_v32, %v4511_v45 }
 0x41f   :  { %7269 = vmatprep.subr.bf16.mxu0 %v7268_v15  ;;  %v4528_v15 = vld [vmem:[#allocation11 + $0x3c8] sm:$0xff] }
 0x420   :  { %v4400_v54 = vmax.f32 %v7386_v63, 0.0  ;;  %v7292_v42 = vpack.c.bf16 %v4528_v15, %v4527_v60  ;;  %v4539_v63 = vld [vmem:[#allocation11 + $0x420] sm:$0xff] }
 0x421   :  { %7239 = vmatpush3.bf16.msra.mxu1 %v7238_v7  ;;  %v4529_v7 = vld [vmem:[#allocation11 + $0x3d0] sm:$0xff] }
 0x422   :  { %7241 = vmatprep.subr.bf16.mxu1 %v7240_v21  ;;  %7271 = vmatpush3.bf16.msra.mxu0 %v7270_v35  ;;  %v7296_v21 = vpack.c.bf16 %v4530_v4, %v4529_v7  ;;  %v4532_v35 = vld [vmem:[#allocation11 + $0x3e8] sm:$0xff] }
 0x423   :  { %7273 = vmatprep.subr.bf16.mxu0 %v7272_v38  ;;  %v7300_v38 = vpack.c.bf16 %v4532_v35, %v4531_v10 }
 0x425   :  { %7243 = vmatpush3.bf16.msra.mxu1 %v7242_v11  ;;  %v4533_v11 = vld [vmem:[#allocation11 + $0x3f0] sm:$0xff] }
 0x426   :  { %7277 = vmatprep.subr.bf16.mxu1 %v7276_v13  ;;  %7275 = vmatpush3.bf16.msra.mxu0 %v7274_v39  ;;  %v7304_v13 = vpack.c.bf16 %v4534_v6, %v4533_v11  ;;  %v4535_v39 = vld [vmem:[#allocation11 + $0x400] sm:$0xff] }
 0x427   :  { %v7308_v58 = vpack.c.bf16 %v4536_v16, %v4535_v39  ;;  %v4543_v39 = vld [vmem:[#allocation11 + $0x440] sm:$0xff]  ;;  %v4544_v16 = vld [vmem:[#allocation11 + $0x448] sm:$0xff] }
 0x428   :  { %4708 = vmatmul.mubr.f32.vlgmr.msra.gmra.mrb[52].mxu1 %v4373_v2  ;;  %v8644_v2 = vsub.s32 6, %v8013_v50 }
 0x429   :  { %4712 = vmatprep.mubr.f32.mxu1 %v4383_v29  ;;  %7279 = vmatpush3.bf16.msra.mxu1 %v7278_v0  ;;  %v2140_v0 = vrot.slane %v8469_v62, %v8643_v3 }
 0x42a   :  { %7281 = vmatprep.subr.bf16.mxu1 %v7280_v23  ;;  %7309 = vmatprep.subr.bf16.mxu0 %v7308_v58  ;;  %v8540_v52 = vrot.slane %v8469_v62, %v8644_v2  ;;  %v8545_v23 = vrot.slane %v8469_v62, %v8645_v55  ;;  %v7324_v2 = vpack.c.bf16 %v4544_v16, %v4543_v39 }
 0x42c   :  { %4713 = vmatmul.mubr.f32.gmra.mrb[54].mxu1 %v4382_v46 }
 0x42d   :  { %4717 = vmatprep.mubr.f32.mxu1 %v4392_v24  ;;  %7283 = vmatpush3.bf16.msra.mxu1 %v7282_v19 }
 0x42e   :  { %7285 = vmatprep.subr.bf16.mxu1 %v7284_v36 }
 0x430   :  { %4718 = vmatmul.mubr.f32.gmra.mrb[56].mxu1 %v4391_v5 }
 0x431   :  { %4722 = vmatprep.mubr.f32.mxu1 %v4401_v12  ;;  %7287 = vmatpush3.bf16.msra.mxu1 %v7286_v47 }
 0x432   :  { %7289 = vmatprep.subr.bf16.mxu1 %v7288_v57  ;;  %v4540_v57 = vld [vmem:[#allocation11 + $0x428] sm:$0xff] }
 0x433   :  { %v7316_v45 = vpack.c.bf16 %v4540_v57, %v4539_v63 }
 0x434   :  { %4723 = vmatmul.mubr.f32.gmra.mrb[58].mxu1 %v4400_v54 }
 0x435   :  { %7291 = vmatpush3.bf16.msra.mxu1 %v7290_v8 }
 0x436   :  { %7293 = vmatprep.subr.bf16.mxu1 %v7292_v42 }
 0x439   :  { %7295 = vmatpush3.bf16.msra.mxu1 %v7294_v9 }
 0x43a   :  { %7297 = vmatprep.subr.bf16.mxu1 %v7296_v21  ;;  %v4541_v21 = vld [vmem:[#allocation11 + $0x430] sm:$0xff] }
 0x43b   :  { %v7320_v6 = vpack.c.bf16 %v4542_v30, %v4541_v21 }
 0x43d   :  { %7299 = vmatpush3.bf16.msra.mxu1 %v7298_v56 }
 0x43e   :  { %7301 = vmatprep.subr.bf16.mxu1 %v7300_v38 }
 0x441   :  { %7303 = vmatpush3.bf16.msra.mxu1 %v7302_v34 }
 0x442   :  { %7305 = vmatprep.subr.bf16.mxu1 %v7304_v13 }
 0x445   :  { %7307 = vmatpush3.bf16.msra.mxu1 %v7306_v20 }
 0x478   :  { %v3478_v29 = vpop.f32.mrb[24].mxu1 }
 0x479   :  { %v7388_v26 = vadd.f32 %v3478_v29, %v2140_v0  ;;  %v3923_v27 = vpop.f32.mrb[28].mxu0  ;;  %v3480_v17 = vpop.f32.mrb[25].mxu1  ;;  %v4548_v29 = vld [vmem:[#allocation11 + $0x468] sm:$0xff] }
 0x47a   :  { %v7396_v22 = vadd.f32 %v3923_v27, %v8540_v52  ;;  %v7389_v19 = vadd.f32 %v3480_v17, %v8545_v23  ;;  %v3925_v46 = vpop.f32.mrb[29].mxu0  ;;  %v4549_v27 = vld [vmem:[#allocation11 + $0x470] sm:$0xff]  ;;  %v4550_v17 = vld [vmem:[#allocation11 + $0x478] sm:$0xff] }
 0x47b   :  { %v7397_v36 = vadd.f32 %v3925_v46, %v8550_v61  ;;  %v4375_v24 = vmax.f32 %v7388_v26, 0.0 }
 0x47c   :  { %v4376_v25 = vmax.f32 %v7389_v19, 0.0  ;;  %v3484_v14 = vpop.f32.mrb[26].mxu1  ;;  %v4377_v43 = vmax.f32 %v7396_v22, 0.0  ;;  %v7336_v22 = vpack.c.bf16 %v4550_v17, %v4549_v27 }
 0x47d   :  { %v4378_v50 = vmax.f32 %v7397_v36, 0.0  ;;  %v7390_v18 = vadd.f32 %v3484_v14, %v2140_v0  ;;  %v3929_v62 = vpop.f32.mrb[30].mxu0  ;;  %v3486_v37 = vpop.f32.mrb[27].mxu1 }
 0x47e   :  { %v7398_v47 = vadd.f32 %v3929_v62, %v8540_v52  ;;  %v7391_v5 = vadd.f32 %v3486_v37, %v8545_v23  ;;  %v3931_v41 = vpop.f32.mrb[31].mxu0  ;;  %4792 = vmatprep.mubr.f32.mxu0 %v4376_v25 }
 0x47f   :  { %v7399_v31 = vadd.f32 %v3931_v41, %v8550_v61  ;;  %4877 = vmatprep.mubr.f32.mxu1 %v4378_v50  ;;  %4793 = vmatmul.mubr.f32.vlgmr.msra.gmra.mrb[60].mxu0 %v4375_v24  ;;  %v4384_v60 = vmax.f32 %v7390_v18, 0.0 }
 0x480   :  { %v4385_v48 = vmax.f32 %v7391_v5, 0.0  ;;  %4878 = vmatmul.mubr.f32.vlgmr.msra.gmra.mrb[60].mxu1 %v4377_v43  ;;  %v3490_v12 = vpop.f32.mrb[28].mxu1  ;;  %7311 = vmatpush3.bf16.msra.mxu0 %v7308_v58  ;;  %v4386_v32 = vmax.f32 %v7398_v47, 0.0 }
 0x481   :  { %v4387_v15 = vmax.f32 %v7399_v31, 0.0  ;;  %v7392_v8 = vadd.f32 %v3490_v12, %v2140_v0  ;;  %v3935_v54 = vpop.f32.mrb[32].mxu0  ;;  %v3492_v42 = vpop.f32.mrb[29].mxu1  ;;  %7313 = vmatprep.subr.bf16.mxu0 %v7312_v1 }
 0x482   :  { %v7400_v7 = vadd.f32 %v3935_v54, %v8540_v52  ;;  %v7393_v4 = vadd.f32 %v3492_v42, %v8545_v23  ;;  %v3937_v9 = vpop.f32.mrb[33].mxu0  ;;  %4797 = vmatprep.mubr.f32.mxu0 %v4385_v48 }
 0x483   :  { %v7401_v44 = vadd.f32 %v3937_v9, %v8550_v61  ;;  %4882 = vmatprep.mubr.f32.mxu1 %v4387_v15  ;;  %4798 = vmatmul.mubr.f32.gmra.mrb[62].mxu0 %v4384_v60  ;;  %v4393_v56 = vmax.f32 %v7392_v8, 0.0 }
 0x484   :  { %v4394_v10 = vmax.f32 %v7393_v4, 0.0  ;;  %4883 = vmatmul.mubr.f32.gmra.mrb[62].mxu1 %v4386_v32  ;;  %v3496_v35 = vpop.f32.mrb[30].mxu1  ;;  %7315 = vmatpush3.bf16.msra.mxu0 %v7312_v1  ;;  %v4395_v34 = vmax.f32 %v7400_v7, 0.0 }
 0x485   :  { %v4396_v38 = vmax.f32 %v7401_v44, 0.0  ;;  %v7394_v33 = vadd.f32 %v3496_v35, %v2140_v0  ;;  %v3941_v40 = vpop.f32.mrb[34].mxu0  ;;  %v3498_v11 = vpop.f32.mrb[31].mxu1  ;;  %7317 = vmatprep.subr.bf16.mxu0 %v7316_v45 }
 0x486   :  { %v7402_v13 = vadd.f32 %v3941_v40, %v8540_v52  ;;  %v7395_v51 = vadd.f32 %v3498_v11, %v8545_v23  ;;  %v3943_v28 = vpop.f32.mrb[35].mxu0  ;;  %4802 = vmatprep.mubr.f32.mxu0 %v4394_v10  ;;  %v4545_v52 = vld [vmem:[#allocation11 + $0x450] sm:$0xff] }
 0x487   :  { %v7403_v58 = vadd.f32 %v3943_v28, %v8550_v61  ;;  %4887 = vmatprep.mubr.f32.mxu1 %v4396_v38  ;;  %4803 = vmatmul.mubr.f32.gmra.mrb[64].mxu0 %v4393_v56  ;;  %v4402_v3 = vmax.f32 %v7394_v33, 0.0  ;;  %v7328_v23 = vpack.c.bf16 %v4546_v53, %v4545_v52  ;;  %v4547_v61 = vld [vmem:[#allocation11 + $0x460] sm:$0xff] }
 0x488   :  { %v4403_v20 = vmax.f32 %v7395_v51, 0.0  ;;  %4888 = vmatmul.mubr.f32.gmra.mrb[64].mxu1 %v4395_v34  ;;  %7319 = vmatpush3.bf16.msra.mxu0 %v7316_v45  ;;  %v4404_v55 = vmax.f32 %v7402_v13, 0.0  ;;  %v7332_v26 = vpack.c.bf16 %v4548_v29, %v4547_v61 }
 0x489   :  { %v4405_v0 = vmax.f32 %v7403_v58, 0.0  ;;  %7321 = vmatprep.subr.bf16.mxu0 %v7320_v6 }
 0x48a   :  { %4807 = vmatprep.mubr.f32.mxu0 %v4403_v20 }
 0x48b   :  { %4892 = vmatprep.mubr.f32.mxu1 %v4405_v0  ;;  %4808 = vmatmul.mubr.f32.gmra.mrb[66].mxu0 %v4402_v3 }
 0x48c   :  { %4893 = vmatmul.mubr.f32.gmra.mrb[66].mxu1 %v4404_v55  ;;  %7323 = vmatpush3.bf16.msra.mxu0 %v7320_v6 }
 0x48d   :  { %7325 = vmatprep.subr.bf16.mxu0 %v7324_v2 }
 0x490   :  { %7327 = vmatpush3.bf16.msra.mxu0 %v7324_v2 }
 0x491   :  { %7329 = vmatprep.subr.bf16.mxu0 %v7328_v23 }
 0x494   :  { %7331 = vmatpush3.bf16.msra.mxu0 %v7328_v23 }
 0x495   :  { %7333 = vmatprep.subr.bf16.mxu0 %v7332_v26 }
 0x498   :  { %v5176_v19 = vpop.f32.mrb[32].mxu1  ;;  %7335 = vmatpush3.bf16.msra.mxu0 %v7332_v26 }
 0x499   :  { %v5220_v46 = vpop.f32.mrb[36].mxu0  ;;  %v5177_v59 = vpop.f32.mrb[33].mxu1  ;;  %7337 = vmatprep.subr.bf16.mxu0 %v7336_v22 }
 0x49a   :  { %v5178_v36 = vadd.f32 %v5177_v59, %v5176_v19  ;;  %v5221_v25 = vpop.f32.mrb[37].mxu0 }
 0x49b   :  { %v5222_v14 = vadd.f32 %v5221_v25, %v5220_v46 }
 0x49c   :  { %v4013_v24 = vadd.f32 %v5178_v36, %v5121_v49  ;;  %v5179_v50 = vpop.f32.mrb[34].mxu1  ;;  %7339 = vmatpush3.bf16.msra.mxu0 %v7336_v22 }
 0x49d   :  { %v5223_v18 = vpop.f32.mrb[38].mxu0  ;;  %v5180_v62 = vpop.f32.mrb[35].mxu1 }
 0x49e   :  { %v4098_v37 = vadd.f32 %v5222_v14, %v4013_v24  ;;  %v5181_v1 = vadd.f32 %v5180_v62, %v5179_v50  ;;  %v5224_v43 = vpop.f32.mrb[39].mxu0 }
 0x49f   :  { %v5225_v47 = vadd.f32 %v5224_v43, %v5223_v18 }
 0x4a0   :  { %v4018_v5 = vadd.f32 %v5181_v1, %v5121_v49  ;;  %v5182_v41 = vpop.f32.mrb[36].mxu1 }
 0x4a1   :  { %v5226_v63 = vpop.f32.mrb[40].mxu0  ;;  %v5183_v57 = vpop.f32.mrb[37].mxu1 }
 0x4a2   :  { %v4103_v31 = vadd.f32 %v5225_v47, %v4018_v5  ;;  %v5184_v48 = vadd.f32 %v5183_v57, %v5182_v41  ;;  %v5227_v12 = vpop.f32.mrb[41].mxu0  ;;  %v4987_v57 = vld [vmem:[#allocation14] sm:$0xff] }
 0x4a3   :  { %v5228_v60 = vadd.f32 %v5227_v12, %v5226_v63 }
 0x4a4   :  { %v4023_v15 = vadd.f32 %v5184_v48, %v5121_v49  ;;  %v5185_v8 = vpop.f32.mrb[38].mxu1  ;;  %v4989_v48 = vld [vmem:[#allocation14 + $0x10] sm:$0xff] }
 0x4a5   :  { %v5229_v54 = vpop.f32.mrb[42].mxu0  ;;  %v5186_v42 = vpop.f32.mrb[39].mxu1 }
 0x4a6   :  { %v4108_v45 = vadd.f32 %v5228_v60, %v4023_v15  ;;  %v5187_v32 = vadd.f32 %v5186_v42, %v5185_v8  ;;  %v5230_v7 = vpop.f32.mrb[43].mxu0  ;;  %v4990_v8 = vld [vmem:[#allocation14 + $0x18] sm:$0xff] }
 0x4a7   :  { %v5231_v4 = vadd.f32 %v5230_v7, %v5229_v54  ;;  %v7344_v42 = vpack.c.bf16 %v4990_v8, %v4989_v48 }
 0x4a8   :  { %v4028_v9 = vadd.f32 %v5187_v32, %v5121_v49  ;;  %v4992_v32 = vld [vmem:[#allocation14 + $0x28] sm:$0xff] }
 0x4aa   :  { %v4113_v21 = vadd.f32 %v5231_v4, %v4028_v9 }
 0x4b9   :  { %v5264_v30 = vpop.f32.mrb[40].mxu1 }
 0x4ba   :  { %v5308_v44 = vpop.f32.mrb[44].mxu0  ;;  %v5265_v10 = vpop.f32.mrb[41].mxu1 }
 0x4bb   :  { %v5266_v35 = vadd.f32 %v5265_v10, %v5264_v30  ;;  %v5309_v56 = vpop.f32.mrb[45].mxu0  ;;  %v4993_v30 = vld [vmem:[#allocation14 + $0x30] sm:$0xff] }
 0x4bc   :  { %v5310_v38 = vadd.f32 %v5309_v56, %v5308_v44  ;;  %v4994_v44 = vld [vmem:[#allocation14 + $0x38] sm:$0xff]  ;;  %v4995_v56 = vld [vmem:[#allocation14 + $0x40] sm:$0xff] }
 0x4bd   :  { %v4183_v33 = vadd.f32 %v5266_v35, %v4098_v37  ;;  %v5267_v40 = vpop.f32.mrb[42].mxu1  ;;  %v7352_v35 = vpack.c.bf16 %v4994_v44, %v4993_v30 }
 0x4be   :  { %v5311_v11 = vpop.f32.mrb[46].mxu0  ;;  %v5268_v6 = vpop.f32.mrb[43].mxu1 }
 0x4bf   :  { %v5269_v34 = vadd.f32 %v5268_v6, %v5267_v40  ;;  %v5312_v13 = vpop.f32.mrb[47].mxu0  ;;  %v4268_v51 = vadd.f32 %v5310_v38, %v4183_v33  ;;  %v4996_v38 = vld [vmem:[#allocation14 + $0x48] sm:$0xff]  ;;  %v4997_v40 = vld [vmem:[#allocation14 + $0x50] sm:$0xff] }
 0x4c0   :  { %v5313_v28 = vadd.f32 %v5312_v13, %v5311_v11  ;;  %v7356_v33 = vpack.c.bf16 %v4996_v38, %v4995_v56  ;;  %v4998_v11 = vld [vmem:[#allocation14 + $0x58] sm:$0xff]  ;;  %v5000_v13 = vld [vmem:[#allocation14 + $0x68] sm:$0xff] }
 0x4c1   :  { %v4188_v39 = vadd.f32 %v5269_v34, %v4103_v31  ;;  %v5270_v16 = vpop.f32.mrb[44].mxu1  ;;  %v4988_v31 = vld [vmem:[#allocation14 + $0x8] sm:$0xff]  ;;  %v7360_v6 = vpack.c.bf16 %v4998_v11, %v4997_v40  ;;  %v4999_v34 = vld [vmem:[#allocation14 + $0x60] sm:$0xff] }
 0x4c2   :  { %v5314_v58 = vpop.f32.mrb[48].mxu0  ;;  %v5271_v20 = vpop.f32.mrb[45].mxu1  ;;  %v7340_v15 = vpack.c.bf16 %v4988_v31, %v4987_v57 }
 0x4c3   :  { %v5272_v3 = vadd.f32 %v5271_v20, %v5270_v16  ;;  %v5315_v0 = vpop.f32.mrb[49].mxu0  ;;  %v4273_v2 = vadd.f32 %v5313_v28, %v4188_v39  ;;  %v5122_v28 = vld [vmem:[#allocation13] ss:$0 sm:$0xff] }
 0x4c4   :  { %v5316_v55 = vadd.f32 %v5315_v0, %v5314_v58  ;;  %7341 = vmatprep.subr.bf16.mxu1 %v7340_v15 }
 0x4c5   :  { %v4193_v52 = vadd.f32 %v5272_v3, %v4108_v45  ;;  %v5273_v53 = vpop.f32.mrb[46].mxu1  ;;  %v4991_v45 = vld [vmem:[#allocation14 + $0x20] sm:$0xff]  ;;  %7343 = vmatpush3.bf16.msra.mxu1 %v7340_v15 }
 0x4c6   :  { %v5317_v23 = vpop.f32.mrb[50].mxu0  ;;  %v5274_v61 = vpop.f32.mrb[47].mxu1  ;;  %7345 = vmatprep.subr.bf16.mxu1 %v7344_v42  ;;  %v7348_v9 = vpack.c.bf16 %v4992_v32, %v4991_v45 }
 0x4c7   :  { %v5275_v29 = vadd.f32 %v5274_v61, %v5273_v53  ;;  %v5318_v26 = vpop.f32.mrb[51].mxu0  ;;  %v4278_v27 = vadd.f32 %v5316_v55, %v4193_v52 }
 0x4c8   :  { %v5319_v17 = vadd.f32 %v5318_v26, %v5317_v23 }
 0x4c9   :  { %v4198_v22 = vadd.f32 %v5275_v29, %v4113_v21  ;;  %7347 = vmatpush3.bf16.msra.mxu1 %v7344_v42 }
 0x4ca   :  { %7349 = vmatprep.subr.bf16.mxu1 %v7348_v9 }
 0x4cb   :  { %v4283_v19 = vadd.f32 %v5319_v17, %v4198_v22 }
 0x4cd   :  { %7351 = vmatpush3.bf16.msra.mxu1 %v7348_v9 }
 0x4ce   :  { %7353 = vmatprep.subr.bf16.mxu1 %v7352_v35 }
 0x4d1   :  { %7355 = vmatpush3.bf16.msra.mxu1 %v7352_v35 }
 0x4d2   :  { %7357 = vmatprep.subr.bf16.mxu1 %v7356_v33 }
 0x4d5   :  { %7359 = vmatpush3.bf16.msra.mxu1 %v7356_v33 }
 0x4d6   :  { %7361 = vmatprep.subr.bf16.mxu1 %v7360_v6 }
 0x4d9   :  { %7363 = vmatpush3.bf16.msra.mxu1 %v7360_v6 }
 0x4da   :  { %v5628_v46 = vpop.f32.mrb[48].mxu1 }
 0x4db   :  { %v4358_v49 = vadd.f32 %v5628_v46, %v4273_v2  ;;  %v5372_v59 = vpop.f32.mrb[52].mxu0  ;;  %v4352_v36 = vpop.f32.mrb[49].mxu1 }
 0x4dc   :  { %v4353_v25 = vadd.f32 %v4352_v36, %v4268_v51  ;;  %v5373_v14 = vpop.f32.mrb[53].mxu0  ;;  %v7364_v51 = vpack.c.bf16 %v5000_v13, %v4999_v34  ;;  %v5002_v36 = vld [vmem:[#allocation14 + $0x78] sm:$0xff] }
 0x4dd   :  { %v5374_v24 = vadd.f32 %v5373_v14, %v5372_v59  ;;  %v4388_v62 = vmax.f32 %v4358_v49, 0.0  ;;  %v5001_v59 = vld [vmem:[#allocation14 + $0x70] sm:$0xff] }
 0x4de   :  { %v4379_v50 = vmax.f32 %v4353_v25, 0.0  ;;  %v5631_v18 = vpop.f32.mrb[50].mxu1  ;;  %7365 = vmatprep.subr.bf16.mxu1 %v7364_v51  ;;  %v7368_v25 = vpack.c.bf16 %v5002_v36, %v5001_v59 }
 0x4df   :  { %v4368_v37 = vadd.f32 %v5631_v18, %v4283_v19  ;;  %v5375_v1 = vpop.f32.mrb[54].mxu0  ;;  %v4362_v43 = vpop.f32.mrb[51].mxu1  ;;  %v4625_v58 = vadd.f32 %v5374_v24, %v5122_v28  ;;  %7367 = vmatpush3.bf16.msra.mxu1 %v7364_v51 }
 0x4e0   :  { %v4363_v47 = vadd.f32 %v4362_v43, %v4278_v27  ;;  %v5376_v5 = vpop.f32.mrb[55].mxu0  ;;  %5664 = vmatprep.mubr.f32.mxu0 %v4379_v50  ;;  %7369 = vmatprep.subr.bf16.mxu1 %v7368_v25 }
 0x4e1   :  { %v5377_v41 = vadd.f32 %v5376_v5, %v5375_v1  ;;  %5665 = vmatmul.mubr.f32.vlgmr.msra.gmra.mrb[68].mxu0 %v4388_v62  ;;  %v4406_v12 = vmax.f32 %v4368_v37, 0.0 }
 0x4e2   :  { %v4397_v63 = vmax.f32 %v4363_v47, 0.0 }
 0x4e3   :  { %v5378_v60 = vpop.f32.mrb[56].mxu0  ;;  %v4630_v55 = vadd.f32 %v5377_v41, %v5122_v28  ;;  %7371 = vmatpush3.bf16.msra.mxu1 %v7368_v25 }
 0x4e4   :  { %v5379_v54 = vpop.f32.mrb[57].mxu0  ;;  %5667 = vmatprep.mubr.f32.mxu0 %v4397_v63 }
 0x4e5   :  { %v5380_v7 = vadd.f32 %v5379_v54, %v5378_v60  ;;  %5668 = vmatmul.mubr.f32.gmra.mrb[70].mxu0 %v4406_v12 }
 0x4e7   :  { %v5381_v4 = vpop.f32.mrb[58].mxu0  ;;  %v4635_v29 = vadd.f32 %v5380_v7, %v5122_v28 }
 0x4e8   :  { %v5382_v21 = vpop.f32.mrb[59].mxu0 }
 0x4e9   :  { %v5383_v10 = vadd.f32 %v5382_v21, %v5381_v4 }
 0x4eb   :  { %v4640_v19 = vadd.f32 %v5383_v10, %v5122_v28 }
 0x4fb   :  { %v5416_v39 = vpop.f32.mrb[52].mxu1 }
 0x4fc   :  { %v5417_v16 = vpop.f32.mrb[53].mxu1 }
 0x4fd   :  { %v5418_v20 = vadd.f32 %v5417_v16, %v5416_v39 }
 0x4ff   :  { %v4710_v3 = vadd.f32 %v5418_v20, %v4625_v58  ;;  %v5419_v0 = vpop.f32.mrb[54].mxu1  ;;  %v5123_v20 = vld [vmem:[#allocation16] ss:$0 sm:$0xff] }
 0x500   :  { %v5420_v2 = vpop.f32.mrb[55].mxu1 }
 0x501   :  { %v5421_v52 = vadd.f32 %v5420_v2, %v5419_v0 }
 0x503   :  { %v4715_v53 = vadd.f32 %v5421_v52, %v4630_v55  ;;  %v5422_v23 = vpop.f32.mrb[56].mxu1 }
 0x504   :  { %v5423_v61 = vpop.f32.mrb[57].mxu1 }
 0x505   :  { %v5424_v26 = vadd.f32 %v5423_v61, %v5422_v23 }
 0x507   :  { %v4720_v27 = vadd.f32 %v5424_v26, %v4635_v29  ;;  %v5425_v17 = vpop.f32.mrb[58].mxu1 }
 0x508   :  { %v5426_v22 = vpop.f32.mrb[59].mxu1 }
 0x509   :  { %v5427_v46 = vadd.f32 %v5426_v22, %v5425_v17 }
 0x50b   :  { %v4725_v49 = vadd.f32 %v5427_v46, %v4640_v19 }
 0x552   :  { %v5460_v14 = vpop.f32.mrb[60].mxu0 }
 0x553   :  { %v5504_v24 = vpop.f32.mrb[60].mxu1  ;;  %v5461_v50 = vpop.f32.mrb[61].mxu0 }
 0x554   :  { %v5462_v18 = vadd.f32 %v5461_v50, %v5460_v14  ;;  %v5505_v62 = vpop.f32.mrb[61].mxu1 }
 0x555   :  { %v5506_v37 = vadd.f32 %v5505_v62, %v5504_v24 }
 0x556   :  { %v4795_v1 = vadd.f32 %v5462_v18, %v4710_v3  ;;  %v5463_v43 = vpop.f32.mrb[62].mxu0 }
 0x557   :  { %v5507_v47 = vpop.f32.mrb[62].mxu1  ;;  %v5464_v5 = vpop.f32.mrb[63].mxu0 }
 0x558   :  { %v5465_v41 = vadd.f32 %v5464_v5, %v5463_v43  ;;  %v5508_v63 = vpop.f32.mrb[63].mxu1  ;;  %v4880_v57 = vadd.f32 %v5506_v37, %v4795_v1 }
 0x559   :  { %v5509_v31 = vadd.f32 %v5508_v63, %v5507_v47 }
 0x55a   :  { %v4800_v48 = vadd.f32 %v5465_v41, %v4715_v53  ;;  %v5466_v12 = vpop.f32.mrb[64].mxu0 }
 0x55b   :  { %v5510_v60 = vpop.f32.mrb[64].mxu1  ;;  %v5467_v15 = vpop.f32.mrb[65].mxu0 }
 0x55c   :  { %v5468_v8 = vadd.f32 %v5467_v15, %v5466_v12  ;;  %v5511_v54 = vpop.f32.mrb[65].mxu1  ;;  %v4885_v42 = vadd.f32 %v5509_v31, %v4800_v48 }
 0x55d   :  { %v5512_v45 = vadd.f32 %v5511_v54, %v5510_v60 }
 0x55e   :  { %v4805_v32 = vadd.f32 %v5468_v8, %v4720_v27  ;;  %v5469_v7 = vpop.f32.mrb[66].mxu0 }
 0x55f   :  { %v5513_v4 = vpop.f32.mrb[66].mxu1  ;;  %v5470_v9 = vpop.f32.mrb[67].mxu0 }
 0x560   :  { %v5471_v21 = vadd.f32 %v5470_v9, %v5469_v7  ;;  %v5514_v30 = vpop.f32.mrb[67].mxu1  ;;  %v4890_v44 = vadd.f32 %v5512_v45, %v4805_v32 }
 0x561   :  { %v5515_v10 = vadd.f32 %v5514_v30, %v5513_v4 }
 0x562   :  { %v4810_v35 = vadd.f32 %v5471_v21, %v4725_v49 }
 0x564   :  { %v4895_v56 = vadd.f32 %v5515_v10, %v4810_v35 }
 0x5b4   :  { %v5666_v38 = vpop.f32.mrb[68].mxu0 }
 0x5b5   :  { %v4970_v33 = vadd.f32 %v5666_v38, %v4885_v42  ;;  %v4964_v40 = vpop.f32.mrb[69].mxu0 }
 0x5b6   :  { %v4965_v11 = vadd.f32 %v4964_v40, %v4880_v57 }
 0x5b7   :  { %v4984_v13 = vmax.f32 %v4970_v33, 0.0 }
 0x5b8   :  { %v4983_v6 = vmax.f32 %v4965_v11, 0.0  ;;  %v5669_v34 = vpop.f32.mrb[70].mxu0 }
 0x5b9   :  { %v4980_v51 = vadd.f32 %v5669_v34, %v4895_v56  ;;  %v4974_v28 = vpop.f32.mrb[71].mxu0 }
 0x5ba   :  { %v4975_v39 = vadd.f32 %v4974_v28, %v4890_v44  ;;  %5702 = vmatprep.mubr.f32.mxu1 %v4983_v6 }
 0x5bb   :  { %5703 = vmatmul.mubr.f32.vlgmr.msra.gmra.mrb[68].mxu1 %v4984_v13  ;;  %v4986_v58 = vmax.f32 %v4980_v51, 0.0 }
 0x5bc   :  { %v4985_v16 = vmax.f32 %v4975_v39, 0.0 }
 0x5be   :  { %5705 = vmatprep.mubr.f32.mxu1 %v4985_v16 }
 0x5bf   :  { %5706 = vmatmul.mubr.f32.gmra.mrb[70].mxu1 %v4986_v58 }
 0x68e   :  { %v5704_v3 = vpop.f32.mrb[68].mxu1 }
 0x68f   :  { %v5082_v0 = vadd.f32 %v5704_v3, %v5123_v20  ;;  %v5076_v2 = vpop.f32.mrb[69].mxu1 }
 0x690   :  { %v5077_v55 = vadd.f32 %v5123_v20, %v5076_v2 }
 0x691   :  { %5096 = vst [vmem:[#allocation17 + $0x8] sm:$0xff] %v5082_v0 }
 0x692   :  { %5095 = vst [vmem:[#allocation17] sm:$0xff] %v5077_v55  ;;  %v5707_v52 = vpop.f32.mrb[70].mxu1 }
 0x693   :  { %v5092_v53 = vadd.f32 %v5707_v52, %v5123_v20  ;;  %v5086_v23 = vpop.f32.mrb[71].mxu1 }
 0x694   :  { %v5087_v61 = vadd.f32 %v5123_v20, %v5086_v23 }
 0x695   :  { %5098 = vst [vmem:[#allocation17 + $0x18] sm:$0xff] %v5092_v53 }
 0x696   :  { %5097 = vst [vmem:[#allocation17 + $0x10] sm:$0xff] %v5087_v61 }
 0x697   :  { %7757 = shalt.err (!%p7754_p6)
}
 0x698   :  { %s7758_s11 = scalar_lea.hbm %s8588_s9, 512 }
 0x699   :  { %p7759_p7 = scmp.ne.s32.totalorder %s8588_s9, %s7758_s11  ;;  %p7762_p8 = scmp.lt.u32.totalorder %s7758_s11, %s8588_s9 }
 0x69b   :  { %p7764_p9 = pnand %p7762_p8, %p7759_p7 }
 0x69d   :  { %7767 = shalt.err (!%p7764_p9)
}
 0x69e   :  { %5110 = dma.vmem_to_hbm [thread:$0]  %s5105_s21, 512, %s8588_s9, [#allocation4], %s7786_s19, %s7786_s19, %s7787_s20  }
 0x69f   :  { %7778 = dma.done.wait [#allocation4], 512  }
 0x6a0   :  { %7779 = vsyncadd [#allocation4], 4294966784 }
 0x6a1   :  { %5114 = vsyncpa [#allocation3], 1 }
 0x6a2   :  { %5115 = vsyncpa [#allocation6], 1 }
 0x6a3   :  { %5116 = vsyncpa [#allocation9], 1 }
 0x6a4   :  { %5117 = vsyncpa [#allocation12], 1 }
 0x6a5   :  { %5118 = vsyncpa [#allocation15], 1 }
 0x6a6   :  { %5119 = vsyncpa [#allocation4], 1 }

</bundles_post_ra>
